<compile_context>
chip_gen: v7x
topology: tpu7x:2x2x1
jax: 0.10.0
libtpu: 0.0.40
codegen_flags: <defaults>
</compile_context>

<pallas_src>
import jax
import jax.numpy as jnp
from jax.experimental import pallas as pl
from jax.experimental.pallas import tpu as pltpu

EPS = 1e-5            # nn.InstanceNorm2d default eps
MAX_SLAB_ROWS = 512   # target M rows per MXU dot (review: >=256, aim for 512)
TAIL_ROWS = 8         # scratch tail so garbage-output taps never read OOB
CDT = jnp.bfloat16    # MXU compute dtype (f32 accumulation everywhere)


def _pick_row_tile(H, W):
  """Largest divisor TH of H with TH*W <= MAX_SLAB_ROWS (at least 1).

  If W itself exceeds MAX_SLAB_ROWS this degenerates to one image row per
  slab (M = W + 2): still correct, just a bigger-than-target matmul.
  """
  best = 1
  for th in range(1, H + 1):
    if H % th == 0 and th * W <= MAX_SLAB_ROWS:
      best = th
  return best


def _make_resnet_block_call(B, H, W, C, out_dtype):
  """Builds the fused ResnetBlock pallas_call (flat NHWC layout internally)."""
  Hp = H + 2
  Wr = W + 2                      # row pitch of the flat padded buffers
  HW = H * W
  TH = _pick_row_tile(H, W)
  n_slabs = H // TH
  M = TH * Wr                     # rows per conv matmul slab (incl. 2 garbage
                                  # pad columns per image row)
  PAD_ROWS = Hp * Wr + TAIL_ROWS  # flat padded-buffer length (+ zeroed tail)

  def conv_pass(src_ref, w_ref, acc_ref, valid_mask):
    """3x3 conv as 9 accumulated (M,C)@(C,C) MXU dots per slab.

    Stores raw f32 conv outputs into acc_ref and fuses the InstanceNorm
    sum / sum-of-squares (garbage pad columns masked out) into the epilogue.
    Returns (mean, inv_std), each (1, C) f32.
    """
    s1 = jnp.zeros((1, C), jnp.float32)
    s2 = jnp.zeros((1, C), jnp.float32)
    for s in range(n_slabs):          # static: n_slabs <= 8 for realistic cfgs
      m0 = s * M
      acc = None
      for t in range(9):
        dy, dx = divmod(t, 3)
        o = m0 + dy * Wr + dx         # flat tap offset: contiguous 2-D slice
        d = jnp.dot(src_ref[o:o + M, :], w_ref[t],
                    preferred_element_type=jnp.float32)
        acc = d if acc is None else acc + d
      acc_ref[m0:m0 + M, :] = acc
      am = jnp.where(valid_mask, acc, 0.0)          # drop garbage pad columns
      s1 = s1 + jnp.sum(am, axis=0, keepdims=True)
      s2 = s2 + jnp.sum(am * am, axis=0, keepdims=True)
    mean = s1 / HW
    # E[x^2]-E[x]^2 can dip slightly negative in f32 -> clamp before rsqrt.
    var = jnp.maximum(s2 / HW - mean * mean, 0.0)
    return mean, jax.lax.rsqrt(var + EPS)           # EUP rsqrt

  def kernel(x_ref, w1_ref, w2_ref, o_ref, acc_ref, xp_ref, yp_ref):
    # x_ref  : (HW, C)  f32   dense flat input rows (index = h*W + w)
    # w*_ref : (9, C, C) bf16 (tap t = dy*3 + dx, laid out (ci, co))
    # o_ref  : (HW, C)  out_dtype
    # acc_ref: (H*Wr, C) f32  conv accumulator, flat with row pitch Wr
    # xp/yp  : (Hp*Wr + TAIL, C) bf16 reflection-padded activations, flat

    zeros_tail = jnp.zeros((TAIL_ROWS, C), CDT)
    xp_ref[Hp * Wr:Hp * Wr + TAIL_ROWS, :] = zeros_tail
    yp_ref[Hp * Wr:Hp * Wr + TAIL_ROWS, :] = zeros_tail

    # ---- reflection-pad x into xp (bf16) : built in VMEM, no HBM pad pass ---
    for h in range(H):
      row = x_ref[h * W:(h + 1) * W, :].astype(CDT)                # (W, C)
      base = (h + 1) * Wr
      xp_ref[base + 1:base + 1 + W, :] = row
      xp_ref[base:base + 1, :] = row[1:2, :]                       # left
      xp_ref[base + W + 1:base + W + 2, :] = row[W - 2:W - 1, :]   # right
    xp_ref[0:Wr, :] = xp_ref[2 * Wr:3 * Wr, :]                     # top row
    xp_ref[(H + 1) * Wr:(H + 2) * Wr, :] = xp_ref[(H - 1) * Wr:H * Wr, :]

    # valid-column mask: pad columns excluded from the IN statistics.
    col = jax.lax.broadcasted_iota(jnp.int32, (M, 1), 0) % Wr
    valid = col < W

    # ---- conv1 (+ fused InstanceNorm statistics) ----------------------------
    # Conv bias omitted on purpose: InstanceNorm2d(affine=False) subtracts the
    # per-channel mean, so a per-channel bias cancels exactly.
    mean1, inv1 = conv_pass(xp_ref, w1_ref, acc_ref, valid)

    # ---- IN + ReLU, streamed per slab into the padded-y buffer --------------
    # Storing the whole slab at flat offset (Wr + 1) lands every valid value
    # on its padded position; the garbage rows land on border positions that
    # the reflection fill below overwrites.
    for s in range(n_slabs):
      m0 = s * M
      a = acc_ref[m0:m0 + M, :]
      y = jnp.maximum((a - mean1) * inv1, 0.0).astype(CDT)
      yp_ref[m0 + Wr + 1:m0 + Wr + 1 + M, :] = y
    # TODO(synk): use_dropout=True would insert Dropout(0.5) here (identity in
    # eval mode); this block is built with use_dropout=False.

    # reflection borders of y (read interior, overwrite pad/garbage positions)
    for h in range(H):
      base = (h + 1) * Wr
      yp_ref[base:base + 1, :] = yp_ref[base + 2:base + 3, :]
      yp_ref[base + W + 1:base + W + 2, :] = yp_ref[base + W - 1:base + W, :]
    yp_ref[0:Wr, :] = yp_ref[2 * Wr:3 * Wr, :]
    yp_ref[(H + 1) * Wr:(H + 2) * Wr, :] = yp_ref[(H - 1) * Wr:H * Wr, :]

    # ---- conv2 (+ fused InstanceNorm statistics), reuses acc_ref ------------
    mean2, inv2 = conv_pass(yp_ref, w2_ref, acc_ref, valid)

    # ---- IN + residual (f32 x) + Wr->W compaction, streamed per row ---------
    for h in range(H):
      a = acc_ref[h * Wr:h * Wr + W, :]              # valid columns only
      z = (a - mean2) * inv2
      res = x_ref[h * W:(h + 1) * W, :]              # original f32 x
      o_ref[h * W:(h + 1) * W, :] = (res + z).astype(o_ref.dtype)

  # ---- VMEM budget: computed with headroom, capped well below v7x's 64 MiB --
  est = (
      2 * HW * C * 4                                  # x block (double buffer)
      + 2 * HW * C * jnp.dtype(out_dtype).itemsize    # output (double buffer)
      + 2 * 2 * 9 * C * C * 2                         # two weight tensors
      + H * Wr * C * 4                                # acc scratch
      + 2 * PAD_ROWS * C * 2                          # xp / yp scratch
  )
  vmem_limit = min(48 * 1024 * 1024, max(32 * 1024 * 1024, int(est * 1.5)))

  return pl.pallas_call(
      kernel,
      out_shape=jax.ShapeDtypeStruct((B, HW, C), out_dtype),
      grid_spec=pltpu.PrefetchScalarGridSpec(
          num_scalar_prefetch=0,
          grid=(B,),
          in_specs=[
              # Dense, unpadded activation: the only streaming input (f32 so
              # the residual keeps full precision).
              pl.BlockSpec((None, HW, C), lambda b: (b, 0, 0)),
              # Constant index_map -> fetched once, stays VMEM-resident.
              pl.BlockSpec((9, C, C), lambda b: (0, 0, 0)),
              pl.BlockSpec((9, C, C), lambda b: (0, 0, 0)),
          ],
          out_specs=pl.BlockSpec((None, HW, C), lambda b: (b, 0, 0)),
          scratch_shapes=[
              pltpu.VMEM((H * Wr, C), jnp.float32),   # conv accumulator
              pltpu.VMEM((PAD_ROWS, C), CDT),         # reflection-padded x
              pltpu.VMEM((PAD_ROWS, C), CDT),         # reflection-padded y
          ],
      ),
      compiler_params=pltpu.CompilerParams(
          # Batch-parallel grid; on v7x (2 TCs/chip) keep B >= 2 per chip so
          # both cores are busy.  v5e/v6e are single-TC.
          dimension_semantics=("parallel",),
          vmem_limit_bytes=vmem_limit,
      ),
  )


def _prep_weight(w, C):
  """(C_out, C_in, 3, 3) -> (9, C_in, C_out) bf16, tap index t = dy*3 + dx."""
  return jnp.transpose(w, (2, 3, 1, 0)).reshape(9, C, C).astype(CDT)


@jax.jit
def resnet_block_nhwc(x_nhwc, w1, w2):
  """Fused ResnetBlock, NHWC in (f32) / NHWC out (bf16).

  Preferred entry point: in a stack of blocks, stay NHWC end-to-end so the
  NCHW<->NHWC transposes disappear.
  """
  B, H, W, C = x_nhwc.shape
  call = _make_resnet_block_call(B, H, W, C, out_dtype=jnp.bfloat16)
  out = call(x_nhwc.reshape(B, H * W, C).astype(jnp.float32),
             _prep_weight(w1, C), _prep_weight(w2, C))
  return out.reshape(B, H, W, C)


@jax.jit
def resnet_block_forward(x_nchw, w1, b1, w2, b2):
  """PyTorch-layout wrapper: x (B,C,H,W); w* (C,C,3,3); b* (C,). Returns bf16."""
  # b1/b2 accepted to mirror Conv2d(..., bias=True) but not applied: a
  # per-channel bias is exactly cancelled by InstanceNorm2d(affine=False).
  del b1, b2
  x_nhwc = jnp.transpose(x_nchw, (0, 2, 3, 1))
  out_nhwc = resnet_block_nhwc(x_nhwc, w1, w2)
  return jnp.transpose(out_nhwc, (0, 3, 1, 2))


# ---------------------------------------------------------------------------
# Pure-JAX f32 reference (mirrors the PyTorch ops, including the bias).
# ---------------------------------------------------------------------------
def _instance_norm_nchw(x):
  mean = jnp.mean(x, axis=(2, 3), keepdims=True)
  var = jnp.mean((x - mean) ** 2, axis=(2, 3), keepdims=True)
  return (x - mean) * jax.lax.rsqrt(var + EPS)


def reference_forward(x, w1, b1, w2, b2):
  def conv(inp, w, b):
    xp = jnp.pad(inp, ((0, 0), (0, 0), (1, 1), (1, 1)), mode="reflect")
    y = jax.lax.conv_general_dilated(
        xp, w, window_strides=(1, 1), padding="VALID",
        dimension_numbers=("NCHW", "OIHW", "NCHW"))
    return y + b[None, :, None, None]

  y = jnp.maximum(_instance_norm_nchw(conv(x, w1, b1)), 0.0)
  z = _instance_norm_nchw(conv(y, w2, b2))
  return x + z


# ---------------------------------------------------------------------------
if __name__ == "__main__":
  B, C, H, W = 2, 4, 16, 16

  key = jax.random.PRNGKey(0)
  kx, kw1, kb1, kw2, kb2 = jax.random.split(key, 5)

  x = jax.random.normal(kx, (B, C, H, W), dtype=jnp.float32)
  fan_in = C * 3 * 3
  w1 = jax.random.normal(kw1, (C, C, 3, 3), dtype=jnp.float32) / jnp.sqrt(fan_in)
  b1 = jax.random.normal(kb1, (C,), dtype=jnp.float32) * 0.1
  w2 = jax.random.normal(kw2, (C, C, 3, 3), dtype=jnp.float32) / jnp.sqrt(fan_in)
  b2 = jax.random.normal(kb2, (C,), dtype=jnp.float32) * 0.1

  out = jax.block_until_ready(resnet_block_forward(x, w1, b1, w2, b2))
  ref = reference_forward(x, w1, b1, w2, b2)

  assert out.shape == (B, C, H, W), out.shape
  # bf16 MXU inputs / bf16 output (f32 accumulation & residual math) vs. the
  # f32 reference -> relaxed tolerance.
  max_err = float(jnp.max(jnp.abs(out.astype(jnp.float32) - ref)))
  assert jnp.allclose(out.astype(jnp.float32), ref, atol=1e-1, rtol=1e-2), max_err
  print("KERNEL_OK")
</pallas_src>

<mosaic_0001>
module attributes {stable_mosaic.version = 11 : i64} {
  func.func @kernel(%arg0: i32, %arg1: memref<1x256x4xf32, #tpu.memory_space<vmem>>, %arg2: memref<9x4x4xbf16, #tpu.memory_space<vmem>>, %arg3: memref<9x4x4xbf16, #tpu.memory_space<vmem>>, %arg4: memref<1x256x4xbf16, #tpu.memory_space<vmem>>, %arg5: memref<288x4xf32, #tpu.memory_space<vmem>>, %arg6: memref<332x4xbf16, #tpu.memory_space<vmem>>, %arg7: memref<332x4xbf16, #tpu.memory_space<vmem>>) attributes {dimension_semantics = [#tpu.dimension_semantics<parallel>], iteration_bounds = array<i64: 2>, scalar_prefetch = 0 : i64, scratch_operands = 3 : i64, tpu.core_type = #tpu.core_type<tc>, window_params = [{transform_indices = @transform_0, window_bounds = array<i64: 1, 256, 4>}, {pipeline_mode = #tpu.pipeline_mode<synchronous>, transform_indices = @transform_1, window_bounds = array<i64: 9, 4, 4>}, {pipeline_mode = #tpu.pipeline_mode<synchronous>, transform_indices = @transform_2, window_bounds = array<i64: 9, 4, 4>}, {transform_indices = @transform_3, window_bounds = array<i64: 1, 256, 4>}]} {
    %cst = arith.constant 0.000000e+00 : bf16
    %0 = vector.broadcast %cst : bf16 to vector<8x4xbf16>
    %c324 = arith.constant 324 : index
    %c0 = arith.constant 0 : index
    %1 = vector.load %arg6[%c324, %c0] : memref<332x4xbf16, #tpu.memory_space<vmem>>, vector<8x4xbf16>
    tpu.vector_store %arg6[%c324, %c0], %0 {strides = array<i32>} : memref<332x4xbf16, #tpu.memory_space<vmem>>, vector<8x4xbf16>,
    %c324_0 = arith.constant 324 : index
    %c0_1 = arith.constant 0 : index
    %2 = vector.load %arg7[%c324_0, %c0_1] : memref<332x4xbf16, #tpu.memory_space<vmem>>, vector<8x4xbf16>
    tpu.vector_store %arg7[%c324_0, %c0_1], %0 {strides = array<i32>} : memref<332x4xbf16, #tpu.memory_space<vmem>>, vector<8x4xbf16>,
    %c0_2 = arith.constant 0 : index
    %c0_3 = arith.constant 0 : index
    %c0_4 = arith.constant 0 : index
    %3 = vector.load %arg1[%c0_2, %c0_3, %c0_4] : memref<1x256x4xf32, #tpu.memory_space<vmem>>, vector<1x16x4xf32>
    %4 = vector.shape_cast %3 : vector<1x16x4xf32> to vector<16x4xf32>
    %5 = arith.truncf %4 : vector<16x4xf32> to vector<16x4xbf16>
    %c19 = arith.constant 19 : index
    %c0_5 = arith.constant 0 : index
    %6 = vector.load %arg6[%c19, %c0_5] : memref<332x4xbf16, #tpu.memory_space<vmem>>, vector<16x4xbf16>
    tpu.vector_store %arg6[%c19, %c0_5], %5 {strides = array<i32>} : memref<332x4xbf16, #tpu.memory_space<vmem>>, vector<16x4xbf16>,
    %7 = vector.extract_strided_slice %5 {offsets = [1, 0], sizes = [1, 4], strides = [1, 1]} : vector<16x4xbf16> to vector<1x4xbf16>
    %c18 = arith.constant 18 : index
    %c0_6 = arith.constant 0 : index
    %8 = vector.load %arg6[%c18, %c0_6] : memref<332x4xbf16, #tpu.memory_space<vmem>>, vector<1x4xbf16>
    tpu.vector_store %arg6[%c18, %c0_6], %7 {strides = array<i32>} : memref<332x4xbf16, #tpu.memory_space<vmem>>, vector<1x4xbf16>,
    %9 = vector.extract_strided_slice %5 {offsets = [14, 0], sizes = [1, 4], strides = [1, 1]} : vector<16x4xbf16> to vector<1x4xbf16>
    %c35 = arith.constant 35 : index
    %c0_7 = arith.constant 0 : index
    %10 = vector.load %arg6[%c35, %c0_7] : memref<332x4xbf16, #tpu.memory_space<vmem>>, vector<1x4xbf16>
    tpu.vector_store %arg6[%c35, %c0_7], %9 {strides = array<i32>} : memref<332x4xbf16, #tpu.memory_space<vmem>>, vector<1x4xbf16>,
    %c0_8 = arith.constant 0 : index
    %c16 = arith.constant 16 : index
    %c0_9 = arith.constant 0 : index
    %11 = vector.load %arg1[%c0_8, %c16, %c0_9] : memref<1x256x4xf32, #tpu.memory_space<vmem>>, vector<1x16x4xf32>
    %12 = vector.shape_cast %11 : vector<1x16x4xf32> to vector<16x4xf32>
    %13 = arith.truncf %12 : vector<16x4xf32> to vector<16x4xbf16>
    %c37 = arith.constant 37 : index
    %c0_10 = arith.constant 0 : index
    %14 = vector.load %arg6[%c37, %c0_10] : memref<332x4xbf16, #tpu.memory_space<vmem>>, vector<16x4xbf16>
    tpu.vector_store %arg6[%c37, %c0_10], %13 {strides = array<i32>} : memref<332x4xbf16, #tpu.memory_space<vmem>>, vector<16x4xbf16>,
    %15 = vector.extract_strided_slice %13 {offsets = [1, 0], sizes = [1, 4], strides = [1, 1]} : vector<16x4xbf16> to vector<1x4xbf16>
    %c36 = arith.constant 36 : index
    %c0_11 = arith.constant 0 : index
    %16 = vector.load %arg6[%c36, %c0_11] : memref<332x4xbf16, #tpu.memory_space<vmem>>, vector<1x4xbf16>
    tpu.vector_store %arg6[%c36, %c0_11], %15 {strides = array<i32>} : memref<332x4xbf16, #tpu.memory_space<vmem>>, vector<1x4xbf16>,
    %17 = vector.extract_strided_slice %13 {offsets = [14, 0], sizes = [1, 4], strides = [1, 1]} : vector<16x4xbf16> to vector<1x4xbf16>
    %c53 = arith.constant 53 : index
    %c0_12 = arith.constant 0 : index
    %18 = vector.load %arg6[%c53, %c0_12] : memref<332x4xbf16, #tpu.memory_space<vmem>>, vector<1x4xbf16>
    tpu.vector_store %arg6[%c53, %c0_12], %17 {strides = array<i32>} : memref<332x4xbf16, #tpu.memory_space<vmem>>, vector<1x4xbf16>,
    %c0_13 = arith.constant 0 : index
    %c32 = arith.constant 32 : index
    %c0_14 = arith.constant 0 : index
    %19 = vector.load %arg1[%c0_13, %c32, %c0_14] : memref<1x256x4xf32, #tpu.memory_space<vmem>>, vector<1x16x4xf32>
    %20 = vector.shape_cast %19 : vector<1x16x4xf32> to vector<16x4xf32>
    %21 = arith.truncf %20 : vector<16x4xf32> to vector<16x4xbf16>
    %c55 = arith.constant 55 : index
    %c0_15 = arith.constant 0 : index
    %22 = vector.load %arg6[%c55, %c0_15] : memref<332x4xbf16, #tpu.memory_space<vmem>>, vector<16x4xbf16>
    tpu.vector_store %arg6[%c55, %c0_15], %21 {strides = array<i32>} : memref<332x4xbf16, #tpu.memory_space<vmem>>, vector<16x4xbf16>,
    %23 = vector.extract_strided_slice %21 {offsets = [1, 0], sizes = [1, 4], strides = [1, 1]} : vector<16x4xbf16> to vector<1x4xbf16>
    %c54 = arith.constant 54 : index
    %c0_16 = arith.constant 0 : index
    %24 = vector.load %arg6[%c54, %c0_16] : memref<332x4xbf16, #tpu.memory_space<vmem>>, vector<1x4xbf16>
    tpu.vector_store %arg6[%c54, %c0_16], %23 {strides = array<i32>} : memref<332x4xbf16, #tpu.memory_space<vmem>>, vector<1x4xbf16>,
    %25 = vector.extract_strided_slice %21 {offsets = [14, 0], sizes = [1, 4], strides = [1, 1]} : vector<16x4xbf16> to vector<1x4xbf16>
    %c71 = arith.constant 71 : index
    %c0_17 = arith.constant 0 : index
    %26 = vector.load %arg6[%c71, %c0_17] : memref<332x4xbf16, #tpu.memory_space<vmem>>, vector<1x4xbf16>
    tpu.vector_store %arg6[%c71, %c0_17], %25 {strides = array<i32>} : memref<332x4xbf16, #tpu.memory_space<vmem>>, vector<1x4xbf16>,
    %c0_18 = arith.constant 0 : index
    %c48 = arith.constant 48 : index
    %c0_19 = arith.constant 0 : index
    %27 = vector.load %arg1[%c0_18, %c48, %c0_19] : memref<1x256x4xf32, #tpu.memory_space<vmem>>, vector<1x16x4xf32>
    %28 = vector.shape_cast %27 : vector<1x16x4xf32> to vector<16x4xf32>
    %29 = arith.truncf %28 : vector<16x4xf32> to vector<16x4xbf16>
    %c73 = arith.constant 73 : index
    %c0_20 = arith.constant 0 : index
    %30 = vector.load %arg6[%c73, %c0_20] : memref<332x4xbf16, #tpu.memory_space<vmem>>, vector<16x4xbf16>
    tpu.vector_store %arg6[%c73, %c0_20], %29 {strides = array<i32>} : memref<332x4xbf16, #tpu.memory_space<vmem>>, vector<16x4xbf16>,
    %31 = vector.extract_strided_slice %29 {offsets = [1, 0], sizes = [1, 4], strides = [1, 1]} : vector<16x4xbf16> to vector<1x4xbf16>
    %c72 = arith.constant 72 : index
    %c0_21 = arith.constant 0 : index
    %32 = vector.load %arg6[%c72, %c0_21] : memref<332x4xbf16, #tpu.memory_space<vmem>>, vector<1x4xbf16>
    tpu.vector_store %arg6[%c72, %c0_21], %31 {strides = array<i32>} : memref<332x4xbf16, #tpu.memory_space<vmem>>, vector<1x4xbf16>,
    %33 = vector.extract_strided_slice %29 {offsets = [14, 0], sizes = [1, 4], strides = [1, 1]} : vector<16x4xbf16> to vector<1x4xbf16>
    %c89 = arith.constant 89 : index
    %c0_22 = arith.constant 0 : index
    %34 = vector.load %arg6[%c89, %c0_22] : memref<332x4xbf16, #tpu.memory_space<vmem>>, vector<1x4xbf16>
    tpu.vector_store %arg6[%c89, %c0_22], %33 {strides = array<i32>} : memref<332x4xbf16, #tpu.memory_space<vmem>>, vector<1x4xbf16>,
    %c0_23 = arith.constant 0 : index
    %c64 = arith.constant 64 : index
    %c0_24 = arith.constant 0 : index
    %35 = vector.load %arg1[%c0_23, %c64, %c0_24] : memref<1x256x4xf32, #tpu.memory_space<vmem>>, vector<1x16x4xf32>
    %36 = vector.shape_cast %35 : vector<1x16x4xf32> to vector<16x4xf32>
    %37 = arith.truncf %36 : vector<16x4xf32> to vector<16x4xbf16>
    %c91 = arith.constant 91 : index
    %c0_25 = arith.constant 0 : index
    %38 = vector.load %arg6[%c91, %c0_25] : memref<332x4xbf16, #tpu.memory_space<vmem>>, vector<16x4xbf16>
    tpu.vector_store %arg6[%c91, %c0_25], %37 {strides = array<i32>} : memref<332x4xbf16, #tpu.memory_space<vmem>>, vector<16x4xbf16>,
    %39 = vector.extract_strided_slice %37 {offsets = [1, 0], sizes = [1, 4], strides = [1, 1]} : vector<16x4xbf16> to vector<1x4xbf16>
    %c90 = arith.constant 90 : index
    %c0_26 = arith.constant 0 : index
    %40 = vector.load %arg6[%c90, %c0_26] : memref<332x4xbf16, #tpu.memory_space<vmem>>, vector<1x4xbf16>
    tpu.vector_store %arg6[%c90, %c0_26], %39 {strides = array<i32>} : memref<332x4xbf16, #tpu.memory_space<vmem>>, vector<1x4xbf16>,
    %41 = vector.extract_strided_slice %37 {offsets = [14, 0], sizes = [1, 4], strides = [1, 1]} : vector<16x4xbf16> to vector<1x4xbf16>
    %c107 = arith.constant 107 : index
    %c0_27 = arith.constant 0 : index
    %42 = vector.load %arg6[%c107, %c0_27] : memref<332x4xbf16, #tpu.memory_space<vmem>>, vector<1x4xbf16>
    tpu.vector_store %arg6[%c107, %c0_27], %41 {strides = array<i32>} : memref<332x4xbf16, #tpu.memory_space<vmem>>, vector<1x4xbf16>,
    %c0_28 = arith.constant 0 : index
    %c80 = arith.constant 80 : index
    %c0_29 = arith.constant 0 : index
    %43 = vector.load %arg1[%c0_28, %c80, %c0_29] : memref<1x256x4xf32, #tpu.memory_space<vmem>>, vector<1x16x4xf32>
    %44 = vector.shape_cast %43 : vector<1x16x4xf32> to vector<16x4xf32>
    %45 = arith.truncf %44 : vector<16x4xf32> to vector<16x4xbf16>
    %c109 = arith.constant 109 : index
    %c0_30 = arith.constant 0 : index
    %46 = vector.load %arg6[%c109, %c0_30] : memref<332x4xbf16, #tpu.memory_space<vmem>>, vector<16x4xbf16>
    tpu.vector_store %arg6[%c109, %c0_30], %45 {strides = array<i32>} : memref<332x4xbf16, #tpu.memory_space<vmem>>, vector<16x4xbf16>,
    %47 = vector.extract_strided_slice %45 {offsets = [1, 0], sizes = [1, 4], strides = [1, 1]} : vector<16x4xbf16> to vector<1x4xbf16>
    %c108 = arith.constant 108 : index
    %c0_31 = arith.constant 0 : index
    %48 = vector.load %arg6[%c108, %c0_31] : memref<332x4xbf16, #tpu.memory_space<vmem>>, vector<1x4xbf16>
    tpu.vector_store %arg6[%c108, %c0_31], %47 {strides = array<i32>} : memref<332x4xbf16, #tpu.memory_space<vmem>>, vector<1x4xbf16>,
    %49 = vector.extract_strided_slice %45 {offsets = [14, 0], sizes = [1, 4], strides = [1, 1]} : vector<16x4xbf16> to vector<1x4xbf16>
    %c125 = arith.constant 125 : index
    %c0_32 = arith.constant 0 : index
    %50 = vector.load %arg6[%c125, %c0_32] : memref<332x4xbf16, #tpu.memory_space<vmem>>, vector<1x4xbf16>
    tpu.vector_store %arg6[%c125, %c0_32], %49 {strides = array<i32>} : memref<332x4xbf16, #tpu.memory_space<vmem>>, vector<1x4xbf16>,
    %c0_33 = arith.constant 0 : index
    %c96 = arith.constant 96 : index
    %c0_34 = arith.constant 0 : index
    %51 = vector.load %arg1[%c0_33, %c96, %c0_34] : memref<1x256x4xf32, #tpu.memory_space<vmem>>, vector<1x16x4xf32>
    %52 = vector.shape_cast %51 : vector<1x16x4xf32> to vector<16x4xf32>
    %53 = arith.truncf %52 : vector<16x4xf32> to vector<16x4xbf16>
    %c127 = arith.constant 127 : index
    %c0_35 = arith.constant 0 : index
    %54 = vector.load %arg6[%c127, %c0_35] : memref<332x4xbf16, #tpu.memory_space<vmem>>, vector<16x4xbf16>
    tpu.vector_store %arg6[%c127, %c0_35], %53 {strides = array<i32>} : memref<332x4xbf16, #tpu.memory_space<vmem>>, vector<16x4xbf16>,
    %55 = vector.extract_strided_slice %53 {offsets = [1, 0], sizes = [1, 4], strides = [1, 1]} : vector<16x4xbf16> to vector<1x4xbf16>
    %c126 = arith.constant 126 : index
    %c0_36 = arith.constant 0 : index
    %56 = vector.load %arg6[%c126, %c0_36] : memref<332x4xbf16, #tpu.memory_space<vmem>>, vector<1x4xbf16>
    tpu.vector_store %arg6[%c126, %c0_36], %55 {strides = array<i32>} : memref<332x4xbf16, #tpu.memory_space<vmem>>, vector<1x4xbf16>,
    %57 = vector.extract_strided_slice %53 {offsets = [14, 0], sizes = [1, 4], strides = [1, 1]} : vector<16x4xbf16> to vector<1x4xbf16>
    %c143 = arith.constant 143 : index
    %c0_37 = arith.constant 0 : index
    %58 = vector.load %arg6[%c143, %c0_37] : memref<332x4xbf16, #tpu.memory_space<vmem>>, vector<1x4xbf16>
    tpu.vector_store %arg6[%c143, %c0_37], %57 {strides = array<i32>} : memref<332x4xbf16, #tpu.memory_space<vmem>>, vector<1x4xbf16>,
    %c0_38 = arith.constant 0 : index
    %c112 = arith.constant 112 : index
    %c0_39 = arith.constant 0 : index
    %59 = vector.load %arg1[%c0_38, %c112, %c0_39] : memref<1x256x4xf32, #tpu.memory_space<vmem>>, vector<1x16x4xf32>
    %60 = vector.shape_cast %59 : vector<1x16x4xf32> to vector<16x4xf32>
    %61 = arith.truncf %60 : vector<16x4xf32> to vector<16x4xbf16>
    %c145 = arith.constant 145 : index
    %c0_40 = arith.constant 0 : index
    %62 = vector.load %arg6[%c145, %c0_40] : memref<332x4xbf16, #tpu.memory_space<vmem>>, vector<16x4xbf16>
    tpu.vector_store %arg6[%c145, %c0_40], %61 {strides = array<i32>} : memref<332x4xbf16, #tpu.memory_space<vmem>>, vector<16x4xbf16>,
    %63 = vector.extract_strided_slice %61 {offsets = [1, 0], sizes = [1, 4], strides = [1, 1]} : vector<16x4xbf16> to vector<1x4xbf16>
    %c144 = arith.constant 144 : index
    %c0_41 = arith.constant 0 : index
    %64 = vector.load %arg6[%c144, %c0_41] : memref<332x4xbf16, #tpu.memory_space<vmem>>, vector<1x4xbf16>
    tpu.vector_store %arg6[%c144, %c0_41], %63 {strides = array<i32>} : memref<332x4xbf16, #tpu.memory_space<vmem>>, vector<1x4xbf16>,
    %65 = vector.extract_strided_slice %61 {offsets = [14, 0], sizes = [1, 4], strides = [1, 1]} : vector<16x4xbf16> to vector<1x4xbf16>
    %c161 = arith.constant 161 : index
    %c0_42 = arith.constant 0 : index
    %66 = vector.load %arg6[%c161, %c0_42] : memref<332x4xbf16, #tpu.memory_space<vmem>>, vector<1x4xbf16>
    tpu.vector_store %arg6[%c161, %c0_42], %65 {strides = array<i32>} : memref<332x4xbf16, #tpu.memory_space<vmem>>, vector<1x4xbf16>,
    %c0_43 = arith.constant 0 : index
    %c128 = arith.constant 128 : index
    %c0_44 = arith.constant 0 : index
    %67 = vector.load %arg1[%c0_43, %c128, %c0_44] : memref<1x256x4xf32, #tpu.memory_space<vmem>>, vector<1x16x4xf32>
    %68 = vector.shape_cast %67 : vector<1x16x4xf32> to vector<16x4xf32>
    %69 = arith.truncf %68 : vector<16x4xf32> to vector<16x4xbf16>
    %c163 = arith.constant 163 : index
    %c0_45 = arith.constant 0 : index
    %70 = vector.load %arg6[%c163, %c0_45] : memref<332x4xbf16, #tpu.memory_space<vmem>>, vector<16x4xbf16>
    tpu.vector_store %arg6[%c163, %c0_45], %69 {strides = array<i32>} : memref<332x4xbf16, #tpu.memory_space<vmem>>, vector<16x4xbf16>,
    %71 = vector.extract_strided_slice %69 {offsets = [1, 0], sizes = [1, 4], strides = [1, 1]} : vector<16x4xbf16> to vector<1x4xbf16>
    %c162 = arith.constant 162 : index
    %c0_46 = arith.constant 0 : index
    %72 = vector.load %arg6[%c162, %c0_46] : memref<332x4xbf16, #tpu.memory_space<vmem>>, vector<1x4xbf16>
    tpu.vector_store %arg6[%c162, %c0_46], %71 {strides = array<i32>} : memref<332x4xbf16, #tpu.memory_space<vmem>>, vector<1x4xbf16>,
    %73 = vector.extract_strided_slice %69 {offsets = [14, 0], sizes = [1, 4], strides = [1, 1]} : vector<16x4xbf16> to vector<1x4xbf16>
    %c179 = arith.constant 179 : index
    %c0_47 = arith.constant 0 : index
    %74 = vector.load %arg6[%c179, %c0_47] : memref<332x4xbf16, #tpu.memory_space<vmem>>, vector<1x4xbf16>
    tpu.vector_store %arg6[%c179, %c0_47], %73 {strides = array<i32>} : memref<332x4xbf16, #tpu.memory_space<vmem>>, vector<1x4xbf16>,
    %c0_48 = arith.constant 0 : index
    %c144_49 = arith.constant 144 : index
    %c0_50 = arith.constant 0 : index
    %75 = vector.load %arg1[%c0_48, %c144_49, %c0_50] : memref<1x256x4xf32, #tpu.memory_space<vmem>>, vector<1x16x4xf32>
    %76 = vector.shape_cast %75 : vector<1x16x4xf32> to vector<16x4xf32>
    %77 = arith.truncf %76 : vector<16x4xf32> to vector<16x4xbf16>
    %c181 = arith.constant 181 : index
    %c0_51 = arith.constant 0 : index
    %78 = vector.load %arg6[%c181, %c0_51] : memref<332x4xbf16, #tpu.memory_space<vmem>>, vector<16x4xbf16>
    tpu.vector_store %arg6[%c181, %c0_51], %77 {strides = array<i32>} : memref<332x4xbf16, #tpu.memory_space<vmem>>, vector<16x4xbf16>,
    %79 = vector.extract_strided_slice %77 {offsets = [1, 0], sizes = [1, 4], strides = [1, 1]} : vector<16x4xbf16> to vector<1x4xbf16>
    %c180 = arith.constant 180 : index
    %c0_52 = arith.constant 0 : index
    %80 = vector.load %arg6[%c180, %c0_52] : memref<332x4xbf16, #tpu.memory_space<vmem>>, vector<1x4xbf16>
    tpu.vector_store %arg6[%c180, %c0_52], %79 {strides = array<i32>} : memref<332x4xbf16, #tpu.memory_space<vmem>>, vector<1x4xbf16>,
    %81 = vector.extract_strided_slice %77 {offsets = [14, 0], sizes = [1, 4], strides = [1, 1]} : vector<16x4xbf16> to vector<1x4xbf16>
    %c197 = arith.constant 197 : index
    %c0_53 = arith.constant 0 : index
    %82 = vector.load %arg6[%c197, %c0_53] : memref<332x4xbf16, #tpu.memory_space<vmem>>, vector<1x4xbf16>
    tpu.vector_store %arg6[%c197, %c0_53], %81 {strides = array<i32>} : memref<332x4xbf16, #tpu.memory_space<vmem>>, vector<1x4xbf16>,
    %c0_54 = arith.constant 0 : index
    %c160 = arith.constant 160 : index
    %c0_55 = arith.constant 0 : index
    %83 = vector.load %arg1[%c0_54, %c160, %c0_55] : memref<1x256x4xf32, #tpu.memory_space<vmem>>, vector<1x16x4xf32>
    %84 = vector.shape_cast %83 : vector<1x16x4xf32> to vector<16x4xf32>
    %85 = arith.truncf %84 : vector<16x4xf32> to vector<16x4xbf16>
    %c199 = arith.constant 199 : index
    %c0_56 = arith.constant 0 : index
    %86 = vector.load %arg6[%c199, %c0_56] : memref<332x4xbf16, #tpu.memory_space<vmem>>, vector<16x4xbf16>
    tpu.vector_store %arg6[%c199, %c0_56], %85 {strides = array<i32>} : memref<332x4xbf16, #tpu.memory_space<vmem>>, vector<16x4xbf16>,
    %87 = vector.extract_strided_slice %85 {offsets = [1, 0], sizes = [1, 4], strides = [1, 1]} : vector<16x4xbf16> to vector<1x4xbf16>
    %c198 = arith.constant 198 : index
    %c0_57 = arith.constant 0 : index
    %88 = vector.load %arg6[%c198, %c0_57] : memref<332x4xbf16, #tpu.memory_space<vmem>>, vector<1x4xbf16>
    tpu.vector_store %arg6[%c198, %c0_57], %87 {strides = array<i32>} : memref<332x4xbf16, #tpu.memory_space<vmem>>, vector<1x4xbf16>,
    %89 = vector.extract_strided_slice %85 {offsets = [14, 0], sizes = [1, 4], strides = [1, 1]} : vector<16x4xbf16> to vector<1x4xbf16>
    %c215 = arith.constant 215 : index
    %c0_58 = arith.constant 0 : index
    %90 = vector.load %arg6[%c215, %c0_58] : memref<332x4xbf16, #tpu.memory_space<vmem>>, vector<1x4xbf16>
    tpu.vector_store %arg6[%c215, %c0_58], %89 {strides = array<i32>} : memref<332x4xbf16, #tpu.memory_space<vmem>>, vector<1x4xbf16>,
    %c0_59 = arith.constant 0 : index
    %c176 = arith.constant 176 : index
    %c0_60 = arith.constant 0 : index
    %91 = vector.load %arg1[%c0_59, %c176, %c0_60] : memref<1x256x4xf32, #tpu.memory_space<vmem>>, vector<1x16x4xf32>
    %92 = vector.shape_cast %91 : vector<1x16x4xf32> to vector<16x4xf32>
    %93 = arith.truncf %92 : vector<16x4xf32> to vector<16x4xbf16>
    %c217 = arith.constant 217 : index
    %c0_61 = arith.constant 0 : index
    %94 = vector.load %arg6[%c217, %c0_61] : memref<332x4xbf16, #tpu.memory_space<vmem>>, vector<16x4xbf16>
    tpu.vector_store %arg6[%c217, %c0_61], %93 {strides = array<i32>} : memref<332x4xbf16, #tpu.memory_space<vmem>>, vector<16x4xbf16>,
    %95 = vector.extract_strided_slice %93 {offsets = [1, 0], sizes = [1, 4], strides = [1, 1]} : vector<16x4xbf16> to vector<1x4xbf16>
    %c216 = arith.constant 216 : index
    %c0_62 = arith.constant 0 : index
    %96 = vector.load %arg6[%c216, %c0_62] : memref<332x4xbf16, #tpu.memory_space<vmem>>, vector<1x4xbf16>
    tpu.vector_store %arg6[%c216, %c0_62], %95 {strides = array<i32>} : memref<332x4xbf16, #tpu.memory_space<vmem>>, vector<1x4xbf16>,
    %97 = vector.extract_strided_slice %93 {offsets = [14, 0], sizes = [1, 4], strides = [1, 1]} : vector<16x4xbf16> to vector<1x4xbf16>
    %c233 = arith.constant 233 : index
    %c0_63 = arith.constant 0 : index
    %98 = vector.load %arg6[%c233, %c0_63] : memref<332x4xbf16, #tpu.memory_space<vmem>>, vector<1x4xbf16>
    tpu.vector_store %arg6[%c233, %c0_63], %97 {strides = array<i32>} : memref<332x4xbf16, #tpu.memory_space<vmem>>, vector<1x4xbf16>,
    %c0_64 = arith.constant 0 : index
    %c192 = arith.constant 192 : index
    %c0_65 = arith.constant 0 : index
    %99 = vector.load %arg1[%c0_64, %c192, %c0_65] : memref<1x256x4xf32, #tpu.memory_space<vmem>>, vector<1x16x4xf32>
    %100 = vector.shape_cast %99 : vector<1x16x4xf32> to vector<16x4xf32>
    %101 = arith.truncf %100 : vector<16x4xf32> to vector<16x4xbf16>
    %c235 = arith.constant 235 : index
    %c0_66 = arith.constant 0 : index
    %102 = vector.load %arg6[%c235, %c0_66] : memref<332x4xbf16, #tpu.memory_space<vmem>>, vector<16x4xbf16>
    tpu.vector_store %arg6[%c235, %c0_66], %101 {strides = array<i32>} : memref<332x4xbf16, #tpu.memory_space<vmem>>, vector<16x4xbf16>,
    %103 = vector.extract_strided_slice %101 {offsets = [1, 0], sizes = [1, 4], strides = [1, 1]} : vector<16x4xbf16> to vector<1x4xbf16>
    %c234 = arith.constant 234 : index
    %c0_67 = arith.constant 0 : index
    %104 = vector.load %arg6[%c234, %c0_67] : memref<332x4xbf16, #tpu.memory_space<vmem>>, vector<1x4xbf16>
    tpu.vector_store %arg6[%c234, %c0_67], %103 {strides = array<i32>} : memref<332x4xbf16, #tpu.memory_space<vmem>>, vector<1x4xbf16>,
    %105 = vector.extract_strided_slice %101 {offsets = [14, 0], sizes = [1, 4], strides = [1, 1]} : vector<16x4xbf16> to vector<1x4xbf16>
    %c251 = arith.constant 251 : index
    %c0_68 = arith.constant 0 : index
    %106 = vector.load %arg6[%c251, %c0_68] : memref<332x4xbf16, #tpu.memory_space<vmem>>, vector<1x4xbf16>
    tpu.vector_store %arg6[%c251, %c0_68], %105 {strides = array<i32>} : memref<332x4xbf16, #tpu.memory_space<vmem>>, vector<1x4xbf16>,
    %c0_69 = arith.constant 0 : index
    %c208 = arith.constant 208 : index
    %c0_70 = arith.constant 0 : index
    %107 = vector.load %arg1[%c0_69, %c208, %c0_70] : memref<1x256x4xf32, #tpu.memory_space<vmem>>, vector<1x16x4xf32>
    %108 = vector.shape_cast %107 : vector<1x16x4xf32> to vector<16x4xf32>
    %109 = arith.truncf %108 : vector<16x4xf32> to vector<16x4xbf16>
    %c253 = arith.constant 253 : index
    %c0_71 = arith.constant 0 : index
    %110 = vector.load %arg6[%c253, %c0_71] : memref<332x4xbf16, #tpu.memory_space<vmem>>, vector<16x4xbf16>
    tpu.vector_store %arg6[%c253, %c0_71], %109 {strides = array<i32>} : memref<332x4xbf16, #tpu.memory_space<vmem>>, vector<16x4xbf16>,
    %111 = vector.extract_strided_slice %109 {offsets = [1, 0], sizes = [1, 4], strides = [1, 1]} : vector<16x4xbf16> to vector<1x4xbf16>
    %c252 = arith.constant 252 : index
    %c0_72 = arith.constant 0 : index
    %112 = vector.load %arg6[%c252, %c0_72] : memref<332x4xbf16, #tpu.memory_space<vmem>>, vector<1x4xbf16>
    tpu.vector_store %arg6[%c252, %c0_72], %111 {strides = array<i32>} : memref<332x4xbf16, #tpu.memory_space<vmem>>, vector<1x4xbf16>,
    %113 = vector.extract_strided_slice %109 {offsets = [14, 0], sizes = [1, 4], strides = [1, 1]} : vector<16x4xbf16> to vector<1x4xbf16>
    %c269 = arith.constant 269 : index
    %c0_73 = arith.constant 0 : index
    %114 = vector.load %arg6[%c269, %c0_73] : memref<332x4xbf16, #tpu.memory_space<vmem>>, vector<1x4xbf16>
    tpu.vector_store %arg6[%c269, %c0_73], %113 {strides = array<i32>} : memref<332x4xbf16, #tpu.memory_space<vmem>>, vector<1x4xbf16>,
    %c0_74 = arith.constant 0 : index
    %c224 = arith.constant 224 : index
    %c0_75 = arith.constant 0 : index
    %115 = vector.load %arg1[%c0_74, %c224, %c0_75] : memref<1x256x4xf32, #tpu.memory_space<vmem>>, vector<1x16x4xf32>
    %116 = vector.shape_cast %115 : vector<1x16x4xf32> to vector<16x4xf32>
    %117 = arith.truncf %116 : vector<16x4xf32> to vector<16x4xbf16>
    %c271 = arith.constant 271 : index
    %c0_76 = arith.constant 0 : index
    %118 = vector.load %arg6[%c271, %c0_76] : memref<332x4xbf16, #tpu.memory_space<vmem>>, vector<16x4xbf16>
    tpu.vector_store %arg6[%c271, %c0_76], %117 {strides = array<i32>} : memref<332x4xbf16, #tpu.memory_space<vmem>>, vector<16x4xbf16>,
    %119 = vector.extract_strided_slice %117 {offsets = [1, 0], sizes = [1, 4], strides = [1, 1]} : vector<16x4xbf16> to vector<1x4xbf16>
    %c270 = arith.constant 270 : index
    %c0_77 = arith.constant 0 : index
    %120 = vector.load %arg6[%c270, %c0_77] : memref<332x4xbf16, #tpu.memory_space<vmem>>, vector<1x4xbf16>
    tpu.vector_store %arg6[%c270, %c0_77], %119 {strides = array<i32>} : memref<332x4xbf16, #tpu.memory_space<vmem>>, vector<1x4xbf16>,
    %121 = vector.extract_strided_slice %117 {offsets = [14, 0], sizes = [1, 4], strides = [1, 1]} : vector<16x4xbf16> to vector<1x4xbf16>
    %c287 = arith.constant 287 : index
    %c0_78 = arith.constant 0 : index
    %122 = vector.load %arg6[%c287, %c0_78] : memref<332x4xbf16, #tpu.memory_space<vmem>>, vector<1x4xbf16>
    tpu.vector_store %arg6[%c287, %c0_78], %121 {strides = array<i32>} : memref<332x4xbf16, #tpu.memory_space<vmem>>, vector<1x4xbf16>,
    %c0_79 = arith.constant 0 : index
    %c240 = arith.constant 240 : index
    %c0_80 = arith.constant 0 : index
    %123 = vector.load %arg1[%c0_79, %c240, %c0_80] : memref<1x256x4xf32, #tpu.memory_space<vmem>>, vector<1x16x4xf32>
    %124 = vector.shape_cast %123 : vector<1x16x4xf32> to vector<16x4xf32>
    %125 = arith.truncf %124 : vector<16x4xf32> to vector<16x4xbf16>
    %c289 = arith.constant 289 : index
    %c0_81 = arith.constant 0 : index
    %126 = vector.load %arg6[%c289, %c0_81] : memref<332x4xbf16, #tpu.memory_space<vmem>>, vector<16x4xbf16>
    tpu.vector_store %arg6[%c289, %c0_81], %125 {strides = array<i32>} : memref<332x4xbf16, #tpu.memory_space<vmem>>, vector<16x4xbf16>,
    %127 = vector.extract_strided_slice %125 {offsets = [1, 0], sizes = [1, 4], strides = [1, 1]} : vector<16x4xbf16> to vector<1x4xbf16>
    %c288 = arith.constant 288 : index
    %c0_82 = arith.constant 0 : index
    %128 = vector.load %arg6[%c288, %c0_82] : memref<332x4xbf16, #tpu.memory_space<vmem>>, vector<1x4xbf16>
    tpu.vector_store %arg6[%c288, %c0_82], %127 {strides = array<i32>} : memref<332x4xbf16, #tpu.memory_space<vmem>>, vector<1x4xbf16>,
    %129 = vector.extract_strided_slice %125 {offsets = [14, 0], sizes = [1, 4], strides = [1, 1]} : vector<16x4xbf16> to vector<1x4xbf16>
    %c305 = arith.constant 305 : index
    %c0_83 = arith.constant 0 : index
    %130 = vector.load %arg6[%c305, %c0_83] : memref<332x4xbf16, #tpu.memory_space<vmem>>, vector<1x4xbf16>
    tpu.vector_store %arg6[%c305, %c0_83], %129 {strides = array<i32>} : memref<332x4xbf16, #tpu.memory_space<vmem>>, vector<1x4xbf16>,
    %c36_84 = arith.constant 36 : index
    %c0_85 = arith.constant 0 : index
    %131 = vector.load %arg6[%c36_84, %c0_85] : memref<332x4xbf16, #tpu.memory_space<vmem>>, vector<18x4xbf16>
    %c0_86 = arith.constant 0 : index
    %c0_87 = arith.constant 0 : index
    %132 = vector.load %arg6[%c0_86, %c0_87] : memref<332x4xbf16, #tpu.memory_space<vmem>>, vector<18x4xbf16>
    tpu.vector_store %arg6[%c0_86, %c0_87], %131 {strides = array<i32>} : memref<332x4xbf16, #tpu.memory_space<vmem>>, vector<18x4xbf16>,
    %c270_88 = arith.constant 270 : index
    %c0_89 = arith.constant 0 : index
    %133 = vector.load %arg6[%c270_88, %c0_89] : memref<332x4xbf16, #tpu.memory_space<vmem>>, vector<18x4xbf16>
    %c306 = arith.constant 306 : index
    %c0_90 = arith.constant 0 : index
    %134 = vector.load %arg6[%c306, %c0_90] : memref<332x4xbf16, #tpu.memory_space<vmem>>, vector<18x4xbf16>
    tpu.vector_store %arg6[%c306, %c0_90], %133 {strides = array<i32>} : memref<332x4xbf16, #tpu.memory_space<vmem>>, vector<18x4xbf16>,
    %135 = tpu.iota {dimensions = array<i32: 0>} : vector<288x1xi32>
    %c18_i32 = arith.constant 18 : i32
    %c0_i32 = arith.constant 0 : i32
    %136 = arith.cmpi eq, %c18_i32, %c0_i32 : i32
    %c1_i32 = arith.constant 1 : i32
    %137 = arith.select %136, %c1_i32, %c18_i32 : i32
    %138 = vector.broadcast %137 : i32 to vector<288x1xi32>
    %139 = arith.remsi %135, %138 : vector<288x1xi32>
    %c0_i32_91 = arith.constant 0 : i32
    %140 = vector.broadcast %c0_i32_91 : i32 to vector<288x1xi32>
    %141 = arith.cmpi ne, %139, %140 : vector<288x1xi32>
    %c0_i32_92 = arith.constant 0 : i32
    %142 = vector.broadcast %c0_i32_92 : i32 to vector<288x1xi32>
    %143 = arith.cmpi slt, %139, %142 : vector<288x1xi32>
    %c0_i32_93 = arith.constant 0 : i32
    %144 = arith.cmpi slt, %137, %c0_i32_93 : i32
    %145 = vector.broadcast %144 : i1 to vector<288x1xi1>
    %146 = vector.broadcast %145 : vector<288x1xi1> to vector<288x1xi1>
    %147 = arith.xori %143, %146 : vector<288x1xi1>
    %148 = arith.andi %147, %141 : vector<288x1xi1>
    %149 = vector.broadcast %137 : i32 to vector<288x1xi32>
    %150 = arith.addi %139, %149 : vector<288x1xi32>
    %151 = arith.select %148, %150, %139 : vector<288x1xi1>, vector<288x1xi32>
    %c16_i32 = arith.constant 16 : i32
    %152 = vector.broadcast %c16_i32 : i32 to vector<288x1xi32>
    %153 = arith.cmpi slt, %151, %152 : vector<288x1xi32>
    %cst_94 = arith.constant 0.000000e+00 : f32
    %154 = vector.broadcast %cst_94 : f32 to vector<1x4xf32>
    %cst_95 = arith.constant 0.000000e+00 : f32
    %155 = vector.broadcast %cst_95 : f32 to vector<1x4xf32>
    %c0_96 = arith.constant 0 : index
    %c0_97 = arith.constant 0 : index
    %156 = vector.load %arg6[%c0_96, %c0_97] : memref<332x4xbf16, #tpu.memory_space<vmem>>, vector<288x4xbf16>
    %c0_98 = arith.constant 0 : index
    %c0_99 = arith.constant 0 : index
    %c0_100 = arith.constant 0 : index
    %157 = vector.load %arg2[%c0_98, %c0_99, %c0_100] : memref<9x4x4xbf16, #tpu.memory_space<vmem>>, vector<1x4x4xbf16>
    %158 = vector.shape_cast %157 : vector<1x4x4xbf16> to vector<4x4xbf16>
    %cst_101 = arith.constant dense<0.000000e+00> : vector<288x4xf32>
    %159 = tpu.matmul %156, %158, %cst_101 {dimension_numbers = #tpu.dot_dimension_numbers<[1], [0], [0], [1], [0, 0, 1, 1], [], []>} : vector<288x4xbf16>, vector<4x4xbf16>, vector<288x4xf32> -> vector<288x4xf32>
    %c1 = arith.constant 1 : index
    %c0_102 = arith.constant 0 : index
    %160 = vector.load %arg6[%c1, %c0_102] : memref<332x4xbf16, #tpu.memory_space<vmem>>, vector<288x4xbf16>
    %c1_103 = arith.constant 1 : index
    %c0_104 = arith.constant 0 : index
    %c0_105 = arith.constant 0 : index
    %161 = vector.load %arg2[%c1_103, %c0_104, %c0_105] : memref<9x4x4xbf16, #tpu.memory_space<vmem>>, vector<1x4x4xbf16>
    %162 = vector.shape_cast %161 : vector<1x4x4xbf16> to vector<4x4xbf16>
    %cst_106 = arith.constant dense<0.000000e+00> : vector<288x4xf32>
    %163 = tpu.matmul %160, %162, %cst_106 {dimension_numbers = #tpu.dot_dimension_numbers<[1], [0], [0], [1], [0, 0, 1, 1], [], []>} : vector<288x4xbf16>, vector<4x4xbf16>, vector<288x4xf32> -> vector<288x4xf32>
    %164 = arith.addf %159, %163 : vector<288x4xf32>
    %c2 = arith.constant 2 : index
    %c0_107 = arith.constant 0 : index
    %165 = vector.load %arg6[%c2, %c0_107] : memref<332x4xbf16, #tpu.memory_space<vmem>>, vector<288x4xbf16>
    %c2_108 = arith.constant 2 : index
    %c0_109 = arith.constant 0 : index
    %c0_110 = arith.constant 0 : index
    %166 = vector.load %arg2[%c2_108, %c0_109, %c0_110] : memref<9x4x4xbf16, #tpu.memory_space<vmem>>, vector<1x4x4xbf16>
    %167 = vector.shape_cast %166 : vector<1x4x4xbf16> to vector<4x4xbf16>
    %cst_111 = arith.constant dense<0.000000e+00> : vector<288x4xf32>
    %168 = tpu.matmul %165, %167, %cst_111 {dimension_numbers = #tpu.dot_dimension_numbers<[1], [0], [0], [1], [0, 0, 1, 1], [], []>} : vector<288x4xbf16>, vector<4x4xbf16>, vector<288x4xf32> -> vector<288x4xf32>
    %169 = arith.addf %164, %168 : vector<288x4xf32>
    %c18_112 = arith.constant 18 : index
    %c0_113 = arith.constant 0 : index
    %170 = vector.load %arg6[%c18_112, %c0_113] : memref<332x4xbf16, #tpu.memory_space<vmem>>, vector<288x4xbf16>
    %c3 = arith.constant 3 : index
    %c0_114 = arith.constant 0 : index
    %c0_115 = arith.constant 0 : index
    %171 = vector.load %arg2[%c3, %c0_114, %c0_115] : memref<9x4x4xbf16, #tpu.memory_space<vmem>>, vector<1x4x4xbf16>
    %172 = vector.shape_cast %171 : vector<1x4x4xbf16> to vector<4x4xbf16>
    %cst_116 = arith.constant dense<0.000000e+00> : vector<288x4xf32>
    %173 = tpu.matmul %170, %172, %cst_116 {dimension_numbers = #tpu.dot_dimension_numbers<[1], [0], [0], [1], [0, 0, 1, 1], [], []>} : vector<288x4xbf16>, vector<4x4xbf16>, vector<288x4xf32> -> vector<288x4xf32>
    %174 = arith.addf %169, %173 : vector<288x4xf32>
    %c19_117 = arith.constant 19 : index
    %c0_118 = arith.constant 0 : index
    %175 = vector.load %arg6[%c19_117, %c0_118] : memref<332x4xbf16, #tpu.memory_space<vmem>>, vector<288x4xbf16>
    %c4 = arith.constant 4 : index
    %c0_119 = arith.constant 0 : index
    %c0_120 = arith.constant 0 : index
    %176 = vector.load %arg2[%c4, %c0_119, %c0_120] : memref<9x4x4xbf16, #tpu.memory_space<vmem>>, vector<1x4x4xbf16>
    %177 = vector.shape_cast %176 : vector<1x4x4xbf16> to vector<4x4xbf16>
    %cst_121 = arith.constant dense<0.000000e+00> : vector<288x4xf32>
    %178 = tpu.matmul %175, %177, %cst_121 {dimension_numbers = #tpu.dot_dimension_numbers<[1], [0], [0], [1], [0, 0, 1, 1], [], []>} : vector<288x4xbf16>, vector<4x4xbf16>, vector<288x4xf32> -> vector<288x4xf32>
    %179 = arith.addf %174, %178 : vector<288x4xf32>
    %c20 = arith.constant 20 : index
    %c0_122 = arith.constant 0 : index
    %180 = vector.load %arg6[%c20, %c0_122] : memref<332x4xbf16, #tpu.memory_space<vmem>>, vector<288x4xbf16>
    %c5 = arith.constant 5 : index
    %c0_123 = arith.constant 0 : index
    %c0_124 = arith.constant 0 : index
    %181 = vector.load %arg2[%c5, %c0_123, %c0_124] : memref<9x4x4xbf16, #tpu.memory_space<vmem>>, vector<1x4x4xbf16>
    %182 = vector.shape_cast %181 : vector<1x4x4xbf16> to vector<4x4xbf16>
    %cst_125 = arith.constant dense<0.000000e+00> : vector<288x4xf32>
    %183 = tpu.matmul %180, %182, %cst_125 {dimension_numbers = #tpu.dot_dimension_numbers<[1], [0], [0], [1], [0, 0, 1, 1], [], []>} : vector<288x4xbf16>, vector<4x4xbf16>, vector<288x4xf32> -> vector<288x4xf32>
    %184 = arith.addf %179, %183 : vector<288x4xf32>
    %c36_126 = arith.constant 36 : index
    %c0_127 = arith.constant 0 : index
    %185 = vector.load %arg6[%c36_126, %c0_127] : memref<332x4xbf16, #tpu.memory_space<vmem>>, vector<288x4xbf16>
    %c6 = arith.constant 6 : index
    %c0_128 = arith.constant 0 : index
    %c0_129 = arith.constant 0 : index
    %186 = vector.load %arg2[%c6, %c0_128, %c0_129] : memref<9x4x4xbf16, #tpu.memory_space<vmem>>, vector<1x4x4xbf16>
    %187 = vector.shape_cast %186 : vector<1x4x4xbf16> to vector<4x4xbf16>
    %cst_130 = arith.constant dense<0.000000e+00> : vector<288x4xf32>
    %188 = tpu.matmul %185, %187, %cst_130 {dimension_numbers = #tpu.dot_dimension_numbers<[1], [0], [0], [1], [0, 0, 1, 1], [], []>} : vector<288x4xbf16>, vector<4x4xbf16>, vector<288x4xf32> -> vector<288x4xf32>
    %189 = arith.addf %184, %188 : vector<288x4xf32>
    %c37_131 = arith.constant 37 : index
    %c0_132 = arith.constant 0 : index
    %190 = vector.load %arg6[%c37_131, %c0_132] : memref<332x4xbf16, #tpu.memory_space<vmem>>, vector<288x4xbf16>
    %c7 = arith.constant 7 : index
    %c0_133 = arith.constant 0 : index
    %c0_134 = arith.constant 0 : index
    %191 = vector.load %arg2[%c7, %c0_133, %c0_134] : memref<9x4x4xbf16, #tpu.memory_space<vmem>>, vector<1x4x4xbf16>
    %192 = vector.shape_cast %191 : vector<1x4x4xbf16> to vector<4x4xbf16>
    %cst_135 = arith.constant dense<0.000000e+00> : vector<288x4xf32>
    %193 = tpu.matmul %190, %192, %cst_135 {dimension_numbers = #tpu.dot_dimension_numbers<[1], [0], [0], [1], [0, 0, 1, 1], [], []>} : vector<288x4xbf16>, vector<4x4xbf16>, vector<288x4xf32> -> vector<288x4xf32>
    %194 = arith.addf %189, %193 : vector<288x4xf32>
    %c38 = arith.constant 38 : index
    %c0_136 = arith.constant 0 : index
    %195 = vector.load %arg6[%c38, %c0_136] : memref<332x4xbf16, #tpu.memory_space<vmem>>, vector<288x4xbf16>
    %c8 = arith.constant 8 : index
    %c0_137 = arith.constant 0 : index
    %c0_138 = arith.constant 0 : index
    %196 = vector.load %arg2[%c8, %c0_137, %c0_138] : memref<9x4x4xbf16, #tpu.memory_space<vmem>>, vector<1x4x4xbf16>
    %197 = vector.shape_cast %196 : vector<1x4x4xbf16> to vector<4x4xbf16>
    %cst_139 = arith.constant dense<0.000000e+00> : vector<288x4xf32>
    %198 = tpu.matmul %195, %197, %cst_139 {dimension_numbers = #tpu.dot_dimension_numbers<[1], [0], [0], [1], [0, 0, 1, 1], [], []>} : vector<288x4xbf16>, vector<4x4xbf16>, vector<288x4xf32> -> vector<288x4xf32>
    %199 = arith.addf %194, %198 : vector<288x4xf32>
    %c0_140 = arith.constant 0 : index
    %c0_141 = arith.constant 0 : index
    %200 = vector.load %arg5[%c0_140, %c0_141] : memref<288x4xf32, #tpu.memory_space<vmem>>, vector<288x4xf32>
    tpu.vector_store %arg5[%c0_140, %c0_141], %199 {strides = array<i32>} : memref<288x4xf32, #tpu.memory_space<vmem>>, vector<288x4xf32>,
    %cst_142 = arith.constant 0.000000e+00 : f32
    %201 = vector.shape_cast %153 : vector<288x1xi1> to vector<288x1xi1>
    %202 = vector.broadcast %201 : vector<288x1xi1> to vector<288x4xi1>
    %203 = vector.broadcast %cst_142 : f32 to vector<288x4xf32>
    %204 = arith.select %202, %199, %203 : vector<288x4xi1>, vector<288x4xf32>
    %cst_143 = arith.constant dense<0.000000e+00> : vector<4xf32>
    %205 = vector.multi_reduction <add>, %204, %cst_143 [0] : vector<288x4xf32> to vector<4xf32>
    %206 = vector.shape_cast %205 : vector<4xf32> to vector<1x4xf32>
    %207 = arith.addf %154, %206 : vector<1x4xf32>
    %208 = arith.mulf %204, %204 : vector<288x4xf32>
    %cst_144 = arith.constant dense<0.000000e+00> : vector<4xf32>
    %209 = vector.multi_reduction <add>, %208, %cst_144 [0] : vector<288x4xf32> to vector<4xf32>
    %210 = vector.shape_cast %209 : vector<4xf32> to vector<1x4xf32>
    %211 = arith.addf %155, %210 : vector<1x4xf32>
    %cst_145 = arith.constant 2.560000e+02 : f32
    %212 = vector.broadcast %cst_145 : f32 to vector<1x4xf32>
    %213 = arith.divf %207, %212 : vector<1x4xf32>
    %cst_146 = arith.constant 2.560000e+02 : f32
    %214 = vector.broadcast %cst_146 : f32 to vector<1x4xf32>
    %215 = arith.divf %211, %214 : vector<1x4xf32>
    %216 = arith.mulf %213, %213 : vector<1x4xf32>
    %217 = arith.subf %215, %216 : vector<1x4xf32>
    %cst_147 = arith.constant 0.000000e+00 : f32
    %218 = vector.broadcast %cst_147 : f32 to vector<1x4xf32>
    %219 = arith.maximumf %217, %218 : vector<1x4xf32>
    %cst_148 = arith.constant 9.99999974E-6 : f32
    %220 = vector.broadcast %cst_148 : f32 to vector<1x4xf32>
    %221 = arith.addf %219, %220 : vector<1x4xf32>
    %222 = math.rsqrt %221 : vector<1x4xf32>
    %c0_149 = arith.constant 0 : index
    %c0_150 = arith.constant 0 : index
    %223 = vector.load %arg5[%c0_149, %c0_150] : memref<288x4xf32, #tpu.memory_space<vmem>>, vector<288x4xf32>
    %224 = vector.broadcast %213 : vector<1x4xf32> to vector<288x4xf32>
    %225 = arith.subf %223, %224 : vector<288x4xf32>
    %226 = vector.broadcast %222 : vector<1x4xf32> to vector<288x4xf32>
    %227 = arith.mulf %225, %226 : vector<288x4xf32>
    %cst_151 = arith.constant 0.000000e+00 : f32
    %228 = vector.broadcast %cst_151 : f32 to vector<288x4xf32>
    %229 = arith.maximumf %227, %228 : vector<288x4xf32>
    %230 = arith.truncf %229 : vector<288x4xf32> to vector<288x4xbf16>
    %c19_152 = arith.constant 19 : index
    %c0_153 = arith.constant 0 : index
    %231 = vector.load %arg7[%c19_152, %c0_153] : memref<332x4xbf16, #tpu.memory_space<vmem>>, vector<288x4xbf16>
    tpu.vector_store %arg7[%c19_152, %c0_153], %230 {strides = array<i32>} : memref<332x4xbf16, #tpu.memory_space<vmem>>, vector<288x4xbf16>,
    %c20_154 = arith.constant 20 : index
    %c0_155 = arith.constant 0 : index
    %232 = vector.load %arg7[%c20_154, %c0_155] : memref<332x4xbf16, #tpu.memory_space<vmem>>, vector<1x4xbf16>
    %c18_156 = arith.constant 18 : index
    %c0_157 = arith.constant 0 : index
    %233 = vector.load %arg7[%c18_156, %c0_157] : memref<332x4xbf16, #tpu.memory_space<vmem>>, vector<1x4xbf16>
    tpu.vector_store %arg7[%c18_156, %c0_157], %232 {strides = array<i32>} : memref<332x4xbf16, #tpu.memory_space<vmem>>, vector<1x4xbf16>,
    %c33 = arith.constant 33 : index
    %c0_158 = arith.constant 0 : index
    %234 = vector.load %arg7[%c33, %c0_158] : memref<332x4xbf16, #tpu.memory_space<vmem>>, vector<1x4xbf16>
    %c35_159 = arith.constant 35 : index
    %c0_160 = arith.constant 0 : index
    %235 = vector.load %arg7[%c35_159, %c0_160] : memref<332x4xbf16, #tpu.memory_space<vmem>>, vector<1x4xbf16>
    tpu.vector_store %arg7[%c35_159, %c0_160], %234 {strides = array<i32>} : memref<332x4xbf16, #tpu.memory_space<vmem>>, vector<1x4xbf16>,
    %c38_161 = arith.constant 38 : index
    %c0_162 = arith.constant 0 : index
    %236 = vector.load %arg7[%c38_161, %c0_162] : memref<332x4xbf16, #tpu.memory_space<vmem>>, vector<1x4xbf16>
    %c36_163 = arith.constant 36 : index
    %c0_164 = arith.constant 0 : index
    %237 = vector.load %arg7[%c36_163, %c0_164] : memref<332x4xbf16, #tpu.memory_space<vmem>>, vector<1x4xbf16>
    tpu.vector_store %arg7[%c36_163, %c0_164], %236 {strides = array<i32>} : memref<332x4xbf16, #tpu.memory_space<vmem>>, vector<1x4xbf16>,
    %c51 = arith.constant 51 : index
    %c0_165 = arith.constant 0 : index
    %238 = vector.load %arg7[%c51, %c0_165] : memref<332x4xbf16, #tpu.memory_space<vmem>>, vector<1x4xbf16>
    %c53_166 = arith.constant 53 : index
    %c0_167 = arith.constant 0 : index
    %239 = vector.load %arg7[%c53_166, %c0_167] : memref<332x4xbf16, #tpu.memory_space<vmem>>, vector<1x4xbf16>
    tpu.vector_store %arg7[%c53_166, %c0_167], %238 {strides = array<i32>} : memref<332x4xbf16, #tpu.memory_space<vmem>>, vector<1x4xbf16>,
    %c56 = arith.constant 56 : index
    %c0_168 = arith.constant 0 : index
    %240 = vector.load %arg7[%c56, %c0_168] : memref<332x4xbf16, #tpu.memory_space<vmem>>, vector<1x4xbf16>
    %c54_169 = arith.constant 54 : index
    %c0_170 = arith.constant 0 : index
    %241 = vector.load %arg7[%c54_169, %c0_170] : memref<332x4xbf16, #tpu.memory_space<vmem>>, vector<1x4xbf16>
    tpu.vector_store %arg7[%c54_169, %c0_170], %240 {strides = array<i32>} : memref<332x4xbf16, #tpu.memory_space<vmem>>, vector<1x4xbf16>,
    %c69 = arith.constant 69 : index
    %c0_171 = arith.constant 0 : index
    %242 = vector.load %arg7[%c69, %c0_171] : memref<332x4xbf16, #tpu.memory_space<vmem>>, vector<1x4xbf16>
    %c71_172 = arith.constant 71 : index
    %c0_173 = arith.constant 0 : index
    %243 = vector.load %arg7[%c71_172, %c0_173] : memref<332x4xbf16, #tpu.memory_space<vmem>>, vector<1x4xbf16>
    tpu.vector_store %arg7[%c71_172, %c0_173], %242 {strides = array<i32>} : memref<332x4xbf16, #tpu.memory_space<vmem>>, vector<1x4xbf16>,
    %c74 = arith.constant 74 : index
    %c0_174 = arith.constant 0 : index
    %244 = vector.load %arg7[%c74, %c0_174] : memref<332x4xbf16, #tpu.memory_space<vmem>>, vector<1x4xbf16>
    %c72_175 = arith.constant 72 : index
    %c0_176 = arith.constant 0 : index
    %245 = vector.load %arg7[%c72_175, %c0_176] : memref<332x4xbf16, #tpu.memory_space<vmem>>, vector<1x4xbf16>
    tpu.vector_store %arg7[%c72_175, %c0_176], %244 {strides = array<i32>} : memref<332x4xbf16, #tpu.memory_space<vmem>>, vector<1x4xbf16>,
    %c87 = arith.constant 87 : index
    %c0_177 = arith.constant 0 : index
    %246 = vector.load %arg7[%c87, %c0_177] : memref<332x4xbf16, #tpu.memory_space<vmem>>, vector<1x4xbf16>
    %c89_178 = arith.constant 89 : index
    %c0_179 = arith.constant 0 : index
    %247 = vector.load %arg7[%c89_178, %c0_179] : memref<332x4xbf16, #tpu.memory_space<vmem>>, vector<1x4xbf16>
    tpu.vector_store %arg7[%c89_178, %c0_179], %246 {strides = array<i32>} : memref<332x4xbf16, #tpu.memory_space<vmem>>, vector<1x4xbf16>,
    %c92 = arith.constant 92 : index
    %c0_180 = arith.constant 0 : index
    %248 = vector.load %arg7[%c92, %c0_180] : memref<332x4xbf16, #tpu.memory_space<vmem>>, vector<1x4xbf16>
    %c90_181 = arith.constant 90 : index
    %c0_182 = arith.constant 0 : index
    %249 = vector.load %arg7[%c90_181, %c0_182] : memref<332x4xbf16, #tpu.memory_space<vmem>>, vector<1x4xbf16>
    tpu.vector_store %arg7[%c90_181, %c0_182], %248 {strides = array<i32>} : memref<332x4xbf16, #tpu.memory_space<vmem>>, vector<1x4xbf16>,
    %c105 = arith.constant 105 : index
    %c0_183 = arith.constant 0 : index
    %250 = vector.load %arg7[%c105, %c0_183] : memref<332x4xbf16, #tpu.memory_space<vmem>>, vector<1x4xbf16>
    %c107_184 = arith.constant 107 : index
    %c0_185 = arith.constant 0 : index
    %251 = vector.load %arg7[%c107_184, %c0_185] : memref<332x4xbf16, #tpu.memory_space<vmem>>, vector<1x4xbf16>
    tpu.vector_store %arg7[%c107_184, %c0_185], %250 {strides = array<i32>} : memref<332x4xbf16, #tpu.memory_space<vmem>>, vector<1x4xbf16>,
    %c110 = arith.constant 110 : index
    %c0_186 = arith.constant 0 : index
    %252 = vector.load %arg7[%c110, %c0_186] : memref<332x4xbf16, #tpu.memory_space<vmem>>, vector<1x4xbf16>
    %c108_187 = arith.constant 108 : index
    %c0_188 = arith.constant 0 : index
    %253 = vector.load %arg7[%c108_187, %c0_188] : memref<332x4xbf16, #tpu.memory_space<vmem>>, vector<1x4xbf16>
    tpu.vector_store %arg7[%c108_187, %c0_188], %252 {strides = array<i32>} : memref<332x4xbf16, #tpu.memory_space<vmem>>, vector<1x4xbf16>,
    %c123 = arith.constant 123 : index
    %c0_189 = arith.constant 0 : index
    %254 = vector.load %arg7[%c123, %c0_189] : memref<332x4xbf16, #tpu.memory_space<vmem>>, vector<1x4xbf16>
    %c125_190 = arith.constant 125 : index
    %c0_191 = arith.constant 0 : index
    %255 = vector.load %arg7[%c125_190, %c0_191] : memref<332x4xbf16, #tpu.memory_space<vmem>>, vector<1x4xbf16>
    tpu.vector_store %arg7[%c125_190, %c0_191], %254 {strides = array<i32>} : memref<332x4xbf16, #tpu.memory_space<vmem>>, vector<1x4xbf16>,
    %c128_192 = arith.constant 128 : index
    %c0_193 = arith.constant 0 : index
    %256 = vector.load %arg7[%c128_192, %c0_193] : memref<332x4xbf16, #tpu.memory_space<vmem>>, vector<1x4xbf16>
    %c126_194 = arith.constant 126 : index
    %c0_195 = arith.constant 0 : index
    %257 = vector.load %arg7[%c126_194, %c0_195] : memref<332x4xbf16, #tpu.memory_space<vmem>>, vector<1x4xbf16>
    tpu.vector_store %arg7[%c126_194, %c0_195], %256 {strides = array<i32>} : memref<332x4xbf16, #tpu.memory_space<vmem>>, vector<1x4xbf16>,
    %c141 = arith.constant 141 : index
    %c0_196 = arith.constant 0 : index
    %258 = vector.load %arg7[%c141, %c0_196] : memref<332x4xbf16, #tpu.memory_space<vmem>>, vector<1x4xbf16>
    %c143_197 = arith.constant 143 : index
    %c0_198 = arith.constant 0 : index
    %259 = vector.load %arg7[%c143_197, %c0_198] : memref<332x4xbf16, #tpu.memory_space<vmem>>, vector<1x4xbf16>
    tpu.vector_store %arg7[%c143_197, %c0_198], %258 {strides = array<i32>} : memref<332x4xbf16, #tpu.memory_space<vmem>>, vector<1x4xbf16>,
    %c146 = arith.constant 146 : index
    %c0_199 = arith.constant 0 : index
    %260 = vector.load %arg7[%c146, %c0_199] : memref<332x4xbf16, #tpu.memory_space<vmem>>, vector<1x4xbf16>
    %c144_200 = arith.constant 144 : index
    %c0_201 = arith.constant 0 : index
    %261 = vector.load %arg7[%c144_200, %c0_201] : memref<332x4xbf16, #tpu.memory_space<vmem>>, vector<1x4xbf16>
    tpu.vector_store %arg7[%c144_200, %c0_201], %260 {strides = array<i32>} : memref<332x4xbf16, #tpu.memory_space<vmem>>, vector<1x4xbf16>,
    %c159 = arith.constant 159 : index
    %c0_202 = arith.constant 0 : index
    %262 = vector.load %arg7[%c159, %c0_202] : memref<332x4xbf16, #tpu.memory_space<vmem>>, vector<1x4xbf16>
    %c161_203 = arith.constant 161 : index
    %c0_204 = arith.constant 0 : index
    %263 = vector.load %arg7[%c161_203, %c0_204] : memref<332x4xbf16, #tpu.memory_space<vmem>>, vector<1x4xbf16>
    tpu.vector_store %arg7[%c161_203, %c0_204], %262 {strides = array<i32>} : memref<332x4xbf16, #tpu.memory_space<vmem>>, vector<1x4xbf16>,
    %c164 = arith.constant 164 : index
    %c0_205 = arith.constant 0 : index
    %264 = vector.load %arg7[%c164, %c0_205] : memref<332x4xbf16, #tpu.memory_space<vmem>>, vector<1x4xbf16>
    %c162_206 = arith.constant 162 : index
    %c0_207 = arith.constant 0 : index
    %265 = vector.load %arg7[%c162_206, %c0_207] : memref<332x4xbf16, #tpu.memory_space<vmem>>, vector<1x4xbf16>
    tpu.vector_store %arg7[%c162_206, %c0_207], %264 {strides = array<i32>} : memref<332x4xbf16, #tpu.memory_space<vmem>>, vector<1x4xbf16>,
    %c177 = arith.constant 177 : index
    %c0_208 = arith.constant 0 : index
    %266 = vector.load %arg7[%c177, %c0_208] : memref<332x4xbf16, #tpu.memory_space<vmem>>, vector<1x4xbf16>
    %c179_209 = arith.constant 179 : index
    %c0_210 = arith.constant 0 : index
    %267 = vector.load %arg7[%c179_209, %c0_210] : memref<332x4xbf16, #tpu.memory_space<vmem>>, vector<1x4xbf16>
    tpu.vector_store %arg7[%c179_209, %c0_210], %266 {strides = array<i32>} : memref<332x4xbf16, #tpu.memory_space<vmem>>, vector<1x4xbf16>,
    %c182 = arith.constant 182 : index
    %c0_211 = arith.constant 0 : index
    %268 = vector.load %arg7[%c182, %c0_211] : memref<332x4xbf16, #tpu.memory_space<vmem>>, vector<1x4xbf16>
    %c180_212 = arith.constant 180 : index
    %c0_213 = arith.constant 0 : index
    %269 = vector.load %arg7[%c180_212, %c0_213] : memref<332x4xbf16, #tpu.memory_space<vmem>>, vector<1x4xbf16>
    tpu.vector_store %arg7[%c180_212, %c0_213], %268 {strides = array<i32>} : memref<332x4xbf16, #tpu.memory_space<vmem>>, vector<1x4xbf16>,
    %c195 = arith.constant 195 : index
    %c0_214 = arith.constant 0 : index
    %270 = vector.load %arg7[%c195, %c0_214] : memref<332x4xbf16, #tpu.memory_space<vmem>>, vector<1x4xbf16>
    %c197_215 = arith.constant 197 : index
    %c0_216 = arith.constant 0 : index
    %271 = vector.load %arg7[%c197_215, %c0_216] : memref<332x4xbf16, #tpu.memory_space<vmem>>, vector<1x4xbf16>
    tpu.vector_store %arg7[%c197_215, %c0_216], %270 {strides = array<i32>} : memref<332x4xbf16, #tpu.memory_space<vmem>>, vector<1x4xbf16>,
    %c200 = arith.constant 200 : index
    %c0_217 = arith.constant 0 : index
    %272 = vector.load %arg7[%c200, %c0_217] : memref<332x4xbf16, #tpu.memory_space<vmem>>, vector<1x4xbf16>
    %c198_218 = arith.constant 198 : index
    %c0_219 = arith.constant 0 : index
    %273 = vector.load %arg7[%c198_218, %c0_219] : memref<332x4xbf16, #tpu.memory_space<vmem>>, vector<1x4xbf16>
    tpu.vector_store %arg7[%c198_218, %c0_219], %272 {strides = array<i32>} : memref<332x4xbf16, #tpu.memory_space<vmem>>, vector<1x4xbf16>,
    %c213 = arith.constant 213 : index
    %c0_220 = arith.constant 0 : index
    %274 = vector.load %arg7[%c213, %c0_220] : memref<332x4xbf16, #tpu.memory_space<vmem>>, vector<1x4xbf16>
    %c215_221 = arith.constant 215 : index
    %c0_222 = arith.constant 0 : index
    %275 = vector.load %arg7[%c215_221, %c0_222] : memref<332x4xbf16, #tpu.memory_space<vmem>>, vector<1x4xbf16>
    tpu.vector_store %arg7[%c215_221, %c0_222], %274 {strides = array<i32>} : memref<332x4xbf16, #tpu.memory_space<vmem>>, vector<1x4xbf16>,
    %c218 = arith.constant 218 : index
    %c0_223 = arith.constant 0 : index
    %276 = vector.load %arg7[%c218, %c0_223] : memref<332x4xbf16, #tpu.memory_space<vmem>>, vector<1x4xbf16>
    %c216_224 = arith.constant 216 : index
    %c0_225 = arith.constant 0 : index
    %277 = vector.load %arg7[%c216_224, %c0_225] : memref<332x4xbf16, #tpu.memory_space<vmem>>, vector<1x4xbf16>
    tpu.vector_store %arg7[%c216_224, %c0_225], %276 {strides = array<i32>} : memref<332x4xbf16, #tpu.memory_space<vmem>>, vector<1x4xbf16>,
    %c231 = arith.constant 231 : index
    %c0_226 = arith.constant 0 : index
    %278 = vector.load %arg7[%c231, %c0_226] : memref<332x4xbf16, #tpu.memory_space<vmem>>, vector<1x4xbf16>
    %c233_227 = arith.constant 233 : index
    %c0_228 = arith.constant 0 : index
    %279 = vector.load %arg7[%c233_227, %c0_228] : memref<332x4xbf16, #tpu.memory_space<vmem>>, vector<1x4xbf16>
    tpu.vector_store %arg7[%c233_227, %c0_228], %278 {strides = array<i32>} : memref<332x4xbf16, #tpu.memory_space<vmem>>, vector<1x4xbf16>,
    %c236 = arith.constant 236 : index
    %c0_229 = arith.constant 0 : index
    %280 = vector.load %arg7[%c236, %c0_229] : memref<332x4xbf16, #tpu.memory_space<vmem>>, vector<1x4xbf16>
    %c234_230 = arith.constant 234 : index
    %c0_231 = arith.constant 0 : index
    %281 = vector.load %arg7[%c234_230, %c0_231] : memref<332x4xbf16, #tpu.memory_space<vmem>>, vector<1x4xbf16>
    tpu.vector_store %arg7[%c234_230, %c0_231], %280 {strides = array<i32>} : memref<332x4xbf16, #tpu.memory_space<vmem>>, vector<1x4xbf16>,
    %c249 = arith.constant 249 : index
    %c0_232 = arith.constant 0 : index
    %282 = vector.load %arg7[%c249, %c0_232] : memref<332x4xbf16, #tpu.memory_space<vmem>>, vector<1x4xbf16>
    %c251_233 = arith.constant 251 : index
    %c0_234 = arith.constant 0 : index
    %283 = vector.load %arg7[%c251_233, %c0_234] : memref<332x4xbf16, #tpu.memory_space<vmem>>, vector<1x4xbf16>
    tpu.vector_store %arg7[%c251_233, %c0_234], %282 {strides = array<i32>} : memref<332x4xbf16, #tpu.memory_space<vmem>>, vector<1x4xbf16>,
    %c254 = arith.constant 254 : index
    %c0_235 = arith.constant 0 : index
    %284 = vector.load %arg7[%c254, %c0_235] : memref<332x4xbf16, #tpu.memory_space<vmem>>, vector<1x4xbf16>
    %c252_236 = arith.constant 252 : index
    %c0_237 = arith.constant 0 : index
    %285 = vector.load %arg7[%c252_236, %c0_237] : memref<332x4xbf16, #tpu.memory_space<vmem>>, vector<1x4xbf16>
    tpu.vector_store %arg7[%c252_236, %c0_237], %284 {strides = array<i32>} : memref<332x4xbf16, #tpu.memory_space<vmem>>, vector<1x4xbf16>,
    %c267 = arith.constant 267 : index
    %c0_238 = arith.constant 0 : index
    %286 = vector.load %arg7[%c267, %c0_238] : memref<332x4xbf16, #tpu.memory_space<vmem>>, vector<1x4xbf16>
    %c269_239 = arith.constant 269 : index
    %c0_240 = arith.constant 0 : index
    %287 = vector.load %arg7[%c269_239, %c0_240] : memref<332x4xbf16, #tpu.memory_space<vmem>>, vector<1x4xbf16>
    tpu.vector_store %arg7[%c269_239, %c0_240], %286 {strides = array<i32>} : memref<332x4xbf16, #tpu.memory_space<vmem>>, vector<1x4xbf16>,
    %c272 = arith.constant 272 : index
    %c0_241 = arith.constant 0 : index
    %288 = vector.load %arg7[%c272, %c0_241] : memref<332x4xbf16, #tpu.memory_space<vmem>>, vector<1x4xbf16>
    %c270_242 = arith.constant 270 : index
    %c0_243 = arith.constant 0 : index
    %289 = vector.load %arg7[%c270_242, %c0_243] : memref<332x4xbf16, #tpu.memory_space<vmem>>, vector<1x4xbf16>
    tpu.vector_store %arg7[%c270_242, %c0_243], %288 {strides = array<i32>} : memref<332x4xbf16, #tpu.memory_space<vmem>>, vector<1x4xbf16>,
    %c285 = arith.constant 285 : index
    %c0_244 = arith.constant 0 : index
    %290 = vector.load %arg7[%c285, %c0_244] : memref<332x4xbf16, #tpu.memory_space<vmem>>, vector<1x4xbf16>
    %c287_245 = arith.constant 287 : index
    %c0_246 = arith.constant 0 : index
    %291 = vector.load %arg7[%c287_245, %c0_246] : memref<332x4xbf16, #tpu.memory_space<vmem>>, vector<1x4xbf16>
    tpu.vector_store %arg7[%c287_245, %c0_246], %290 {strides = array<i32>} : memref<332x4xbf16, #tpu.memory_space<vmem>>, vector<1x4xbf16>,
    %c290 = arith.constant 290 : index
    %c0_247 = arith.constant 0 : index
    %292 = vector.load %arg7[%c290, %c0_247] : memref<332x4xbf16, #tpu.memory_space<vmem>>, vector<1x4xbf16>
    %c288_248 = arith.constant 288 : index
    %c0_249 = arith.constant 0 : index
    %293 = vector.load %arg7[%c288_248, %c0_249] : memref<332x4xbf16, #tpu.memory_space<vmem>>, vector<1x4xbf16>
    tpu.vector_store %arg7[%c288_248, %c0_249], %292 {strides = array<i32>} : memref<332x4xbf16, #tpu.memory_space<vmem>>, vector<1x4xbf16>,
    %c303 = arith.constant 303 : index
    %c0_250 = arith.constant 0 : index
    %294 = vector.load %arg7[%c303, %c0_250] : memref<332x4xbf16, #tpu.memory_space<vmem>>, vector<1x4xbf16>
    %c305_251 = arith.constant 305 : index
    %c0_252 = arith.constant 0 : index
    %295 = vector.load %arg7[%c305_251, %c0_252] : memref<332x4xbf16, #tpu.memory_space<vmem>>, vector<1x4xbf16>
    tpu.vector_store %arg7[%c305_251, %c0_252], %294 {strides = array<i32>} : memref<332x4xbf16, #tpu.memory_space<vmem>>, vector<1x4xbf16>,
    %c36_253 = arith.constant 36 : index
    %c0_254 = arith.constant 0 : index
    %296 = vector.load %arg7[%c36_253, %c0_254] : memref<332x4xbf16, #tpu.memory_space<vmem>>, vector<18x4xbf16>
    %c0_255 = arith.constant 0 : index
    %c0_256 = arith.constant 0 : index
    %297 = vector.load %arg7[%c0_255, %c0_256] : memref<332x4xbf16, #tpu.memory_space<vmem>>, vector<18x4xbf16>
    tpu.vector_store %arg7[%c0_255, %c0_256], %296 {strides = array<i32>} : memref<332x4xbf16, #tpu.memory_space<vmem>>, vector<18x4xbf16>,
    %c270_257 = arith.constant 270 : index
    %c0_258 = arith.constant 0 : index
    %298 = vector.load %arg7[%c270_257, %c0_258] : memref<332x4xbf16, #tpu.memory_space<vmem>>, vector<18x4xbf16>
    %c306_259 = arith.constant 306 : index
    %c0_260 = arith.constant 0 : index
    %299 = vector.load %arg7[%c306_259, %c0_260] : memref<332x4xbf16, #tpu.memory_space<vmem>>, vector<18x4xbf16>
    tpu.vector_store %arg7[%c306_259, %c0_260], %298 {strides = array<i32>} : memref<332x4xbf16, #tpu.memory_space<vmem>>, vector<18x4xbf16>,
    %cst_261 = arith.constant 0.000000e+00 : f32
    %300 = vector.broadcast %cst_261 : f32 to vector<1x4xf32>
    %cst_262 = arith.constant 0.000000e+00 : f32
    %301 = vector.broadcast %cst_262 : f32 to vector<1x4xf32>
    %c0_263 = arith.constant 0 : index
    %c0_264 = arith.constant 0 : index
    %302 = vector.load %arg7[%c0_263, %c0_264] : memref<332x4xbf16, #tpu.memory_space<vmem>>, vector<288x4xbf16>
    %c0_265 = arith.constant 0 : index
    %c0_266 = arith.constant 0 : index
    %c0_267 = arith.constant 0 : index
    %303 = vector.load %arg3[%c0_265, %c0_266, %c0_267] : memref<9x4x4xbf16, #tpu.memory_space<vmem>>, vector<1x4x4xbf16>
    %304 = vector.shape_cast %303 : vector<1x4x4xbf16> to vector<4x4xbf16>
    %cst_268 = arith.constant dense<0.000000e+00> : vector<288x4xf32>
    %305 = tpu.matmul %302, %304, %cst_268 {dimension_numbers = #tpu.dot_dimension_numbers<[1], [0], [0], [1], [0, 0, 1, 1], [], []>} : vector<288x4xbf16>, vector<4x4xbf16>, vector<288x4xf32> -> vector<288x4xf32>
    %c1_269 = arith.constant 1 : index
    %c0_270 = arith.constant 0 : index
    %306 = vector.load %arg7[%c1_269, %c0_270] : memref<332x4xbf16, #tpu.memory_space<vmem>>, vector<288x4xbf16>
    %c1_271 = arith.constant 1 : index
    %c0_272 = arith.constant 0 : index
    %c0_273 = arith.constant 0 : index
    %307 = vector.load %arg3[%c1_271, %c0_272, %c0_273] : memref<9x4x4xbf16, #tpu.memory_space<vmem>>, vector<1x4x4xbf16>
    %308 = vector.shape_cast %307 : vector<1x4x4xbf16> to vector<4x4xbf16>
    %cst_274 = arith.constant dense<0.000000e+00> : vector<288x4xf32>
    %309 = tpu.matmul %306, %308, %cst_274 {dimension_numbers = #tpu.dot_dimension_numbers<[1], [0], [0], [1], [0, 0, 1, 1], [], []>} : vector<288x4xbf16>, vector<4x4xbf16>, vector<288x4xf32> -> vector<288x4xf32>
    %310 = arith.addf %305, %309 : vector<288x4xf32>
    %c2_275 = arith.constant 2 : index
    %c0_276 = arith.constant 0 : index
    %311 = vector.load %arg7[%c2_275, %c0_276] : memref<332x4xbf16, #tpu.memory_space<vmem>>, vector<288x4xbf16>
    %c2_277 = arith.constant 2 : index
    %c0_278 = arith.constant 0 : index
    %c0_279 = arith.constant 0 : index
    %312 = vector.load %arg3[%c2_277, %c0_278, %c0_279] : memref<9x4x4xbf16, #tpu.memory_space<vmem>>, vector<1x4x4xbf16>
    %313 = vector.shape_cast %312 : vector<1x4x4xbf16> to vector<4x4xbf16>
    %cst_280 = arith.constant dense<0.000000e+00> : vector<288x4xf32>
    %314 = tpu.matmul %311, %313, %cst_280 {dimension_numbers = #tpu.dot_dimension_numbers<[1], [0], [0], [1], [0, 0, 1, 1], [], []>} : vector<288x4xbf16>, vector<4x4xbf16>, vector<288x4xf32> -> vector<288x4xf32>
    %315 = arith.addf %310, %314 : vector<288x4xf32>
    %c18_281 = arith.constant 18 : index
    %c0_282 = arith.constant 0 : index
    %316 = vector.load %arg7[%c18_281, %c0_282] : memref<332x4xbf16, #tpu.memory_space<vmem>>, vector<288x4xbf16>
    %c3_283 = arith.constant 3 : index
    %c0_284 = arith.constant 0 : index
    %c0_285 = arith.constant 0 : index
    %317 = vector.load %arg3[%c3_283, %c0_284, %c0_285] : memref<9x4x4xbf16, #tpu.memory_space<vmem>>, vector<1x4x4xbf16>
    %318 = vector.shape_cast %317 : vector<1x4x4xbf16> to vector<4x4xbf16>
    %cst_286 = arith.constant dense<0.000000e+00> : vector<288x4xf32>
    %319 = tpu.matmul %316, %318, %cst_286 {dimension_numbers = #tpu.dot_dimension_numbers<[1], [0], [0], [1], [0, 0, 1, 1], [], []>} : vector<288x4xbf16>, vector<4x4xbf16>, vector<288x4xf32> -> vector<288x4xf32>
    %320 = arith.addf %315, %319 : vector<288x4xf32>
    %c19_287 = arith.constant 19 : index
    %c0_288 = arith.constant 0 : index
    %321 = vector.load %arg7[%c19_287, %c0_288] : memref<332x4xbf16, #tpu.memory_space<vmem>>, vector<288x4xbf16>
    %c4_289 = arith.constant 4 : index
    %c0_290 = arith.constant 0 : index
    %c0_291 = arith.constant 0 : index
    %322 = vector.load %arg3[%c4_289, %c0_290, %c0_291] : memref<9x4x4xbf16, #tpu.memory_space<vmem>>, vector<1x4x4xbf16>
    %323 = vector.shape_cast %322 : vector<1x4x4xbf16> to vector<4x4xbf16>
    %cst_292 = arith.constant dense<0.000000e+00> : vector<288x4xf32>
    %324 = tpu.matmul %321, %323, %cst_292 {dimension_numbers = #tpu.dot_dimension_numbers<[1], [0], [0], [1], [0, 0, 1, 1], [], []>} : vector<288x4xbf16>, vector<4x4xbf16>, vector<288x4xf32> -> vector<288x4xf32>
    %325 = arith.addf %320, %324 : vector<288x4xf32>
    %c20_293 = arith.constant 20 : index
    %c0_294 = arith.constant 0 : index
    %326 = vector.load %arg7[%c20_293, %c0_294] : memref<332x4xbf16, #tpu.memory_space<vmem>>, vector<288x4xbf16>
    %c5_295 = arith.constant 5 : index
    %c0_296 = arith.constant 0 : index
    %c0_297 = arith.constant 0 : index
    %327 = vector.load %arg3[%c5_295, %c0_296, %c0_297] : memref<9x4x4xbf16, #tpu.memory_space<vmem>>, vector<1x4x4xbf16>
    %328 = vector.shape_cast %327 : vector<1x4x4xbf16> to vector<4x4xbf16>
    %cst_298 = arith.constant dense<0.000000e+00> : vector<288x4xf32>
    %329 = tpu.matmul %326, %328, %cst_298 {dimension_numbers = #tpu.dot_dimension_numbers<[1], [0], [0], [1], [0, 0, 1, 1], [], []>} : vector<288x4xbf16>, vector<4x4xbf16>, vector<288x4xf32> -> vector<288x4xf32>
    %330 = arith.addf %325, %329 : vector<288x4xf32>
    %c36_299 = arith.constant 36 : index
    %c0_300 = arith.constant 0 : index
    %331 = vector.load %arg7[%c36_299, %c0_300] : memref<332x4xbf16, #tpu.memory_space<vmem>>, vector<288x4xbf16>
    %c6_301 = arith.constant 6 : index
    %c0_302 = arith.constant 0 : index
    %c0_303 = arith.constant 0 : index
    %332 = vector.load %arg3[%c6_301, %c0_302, %c0_303] : memref<9x4x4xbf16, #tpu.memory_space<vmem>>, vector<1x4x4xbf16>
    %333 = vector.shape_cast %332 : vector<1x4x4xbf16> to vector<4x4xbf16>
    %cst_304 = arith.constant dense<0.000000e+00> : vector<288x4xf32>
    %334 = tpu.matmul %331, %333, %cst_304 {dimension_numbers = #tpu.dot_dimension_numbers<[1], [0], [0], [1], [0, 0, 1, 1], [], []>} : vector<288x4xbf16>, vector<4x4xbf16>, vector<288x4xf32> -> vector<288x4xf32>
    %335 = arith.addf %330, %334 : vector<288x4xf32>
    %c37_305 = arith.constant 37 : index
    %c0_306 = arith.constant 0 : index
    %336 = vector.load %arg7[%c37_305, %c0_306] : memref<332x4xbf16, #tpu.memory_space<vmem>>, vector<288x4xbf16>
    %c7_307 = arith.constant 7 : index
    %c0_308 = arith.constant 0 : index
    %c0_309 = arith.constant 0 : index
    %337 = vector.load %arg3[%c7_307, %c0_308, %c0_309] : memref<9x4x4xbf16, #tpu.memory_space<vmem>>, vector<1x4x4xbf16>
    %338 = vector.shape_cast %337 : vector<1x4x4xbf16> to vector<4x4xbf16>
    %cst_310 = arith.constant dense<0.000000e+00> : vector<288x4xf32>
    %339 = tpu.matmul %336, %338, %cst_310 {dimension_numbers = #tpu.dot_dimension_numbers<[1], [0], [0], [1], [0, 0, 1, 1], [], []>} : vector<288x4xbf16>, vector<4x4xbf16>, vector<288x4xf32> -> vector<288x4xf32>
    %340 = arith.addf %335, %339 : vector<288x4xf32>
    %c38_311 = arith.constant 38 : index
    %c0_312 = arith.constant 0 : index
    %341 = vector.load %arg7[%c38_311, %c0_312] : memref<332x4xbf16, #tpu.memory_space<vmem>>, vector<288x4xbf16>
    %c8_313 = arith.constant 8 : index
    %c0_314 = arith.constant 0 : index
    %c0_315 = arith.constant 0 : index
    %342 = vector.load %arg3[%c8_313, %c0_314, %c0_315] : memref<9x4x4xbf16, #tpu.memory_space<vmem>>, vector<1x4x4xbf16>
    %343 = vector.shape_cast %342 : vector<1x4x4xbf16> to vector<4x4xbf16>
    %cst_316 = arith.constant dense<0.000000e+00> : vector<288x4xf32>
    %344 = tpu.matmul %341, %343, %cst_316 {dimension_numbers = #tpu.dot_dimension_numbers<[1], [0], [0], [1], [0, 0, 1, 1], [], []>} : vector<288x4xbf16>, vector<4x4xbf16>, vector<288x4xf32> -> vector<288x4xf32>
    %345 = arith.addf %340, %344 : vector<288x4xf32>
    %c0_317 = arith.constant 0 : index
    %c0_318 = arith.constant 0 : index
    %346 = vector.load %arg5[%c0_317, %c0_318] : memref<288x4xf32, #tpu.memory_space<vmem>>, vector<288x4xf32>
    tpu.vector_store %arg5[%c0_317, %c0_318], %345 {strides = array<i32>} : memref<288x4xf32, #tpu.memory_space<vmem>>, vector<288x4xf32>,
    %cst_319 = arith.constant 0.000000e+00 : f32
    %347 = vector.shape_cast %153 : vector<288x1xi1> to vector<288x1xi1>
    %348 = vector.broadcast %347 : vector<288x1xi1> to vector<288x4xi1>
    %349 = vector.broadcast %cst_319 : f32 to vector<288x4xf32>
    %350 = arith.select %348, %345, %349 : vector<288x4xi1>, vector<288x4xf32>
    %cst_320 = arith.constant dense<0.000000e+00> : vector<4xf32>
    %351 = vector.multi_reduction <add>, %350, %cst_320 [0] : vector<288x4xf32> to vector<4xf32>
    %352 = vector.shape_cast %351 : vector<4xf32> to vector<1x4xf32>
    %353 = arith.addf %300, %352 : vector<1x4xf32>
    %354 = arith.mulf %350, %350 : vector<288x4xf32>
    %cst_321 = arith.constant dense<0.000000e+00> : vector<4xf32>
    %355 = vector.multi_reduction <add>, %354, %cst_321 [0] : vector<288x4xf32> to vector<4xf32>
    %356 = vector.shape_cast %355 : vector<4xf32> to vector<1x4xf32>
    %357 = arith.addf %301, %356 : vector<1x4xf32>
    %cst_322 = arith.constant 2.560000e+02 : f32
    %358 = vector.broadcast %cst_322 : f32 to vector<1x4xf32>
    %359 = arith.divf %353, %358 : vector<1x4xf32>
    %cst_323 = arith.constant 2.560000e+02 : f32
    %360 = vector.broadcast %cst_323 : f32 to vector<1x4xf32>
    %361 = arith.divf %357, %360 : vector<1x4xf32>
    %362 = arith.mulf %359, %359 : vector<1x4xf32>
    %363 = arith.subf %361, %362 : vector<1x4xf32>
    %cst_324 = arith.constant 0.000000e+00 : f32
    %364 = vector.broadcast %cst_324 : f32 to vector<1x4xf32>
    %365 = arith.maximumf %363, %364 : vector<1x4xf32>
    %cst_325 = arith.constant 9.99999974E-6 : f32
    %366 = vector.broadcast %cst_325 : f32 to vector<1x4xf32>
    %367 = arith.addf %365, %366 : vector<1x4xf32>
    %368 = math.rsqrt %367 : vector<1x4xf32>
    %c0_326 = arith.constant 0 : index
    %c0_327 = arith.constant 0 : index
    %369 = vector.load %arg5[%c0_326, %c0_327] : memref<288x4xf32, #tpu.memory_space<vmem>>, vector<16x4xf32>
    %370 = vector.broadcast %359 : vector<1x4xf32> to vector<16x4xf32>
    %371 = arith.subf %369, %370 : vector<16x4xf32>
    %372 = vector.broadcast %368 : vector<1x4xf32> to vector<16x4xf32>
    %373 = arith.mulf %371, %372 : vector<16x4xf32>
    %c0_328 = arith.constant 0 : index
    %c0_329 = arith.constant 0 : index
    %c0_330 = arith.constant 0 : index
    %374 = vector.load %arg1[%c0_328, %c0_329, %c0_330] : memref<1x256x4xf32, #tpu.memory_space<vmem>>, vector<1x16x4xf32>
    %375 = vector.shape_cast %374 : vector<1x16x4xf32> to vector<16x4xf32>
    %376 = arith.addf %375, %373 : vector<16x4xf32>
    %377 = arith.truncf %376 : vector<16x4xf32> to vector<16x4xbf16>
    %c0_331 = arith.constant 0 : index
    %c0_332 = arith.constant 0 : index
    %c0_333 = arith.constant 0 : index
    %378 = vector.load %arg4[%c0_331, %c0_332, %c0_333] : memref<1x256x4xbf16, #tpu.memory_space<vmem>>, vector<1x16x4xbf16>
    %379 = vector.shape_cast %378 : vector<1x16x4xbf16> to vector<16x4xbf16>
    %380 = vector.shape_cast %377 : vector<16x4xbf16> to vector<1x16x4xbf16>
    tpu.vector_store %arg4[%c0_331, %c0_332, %c0_333], %380 {strides = array<i32>} : memref<1x256x4xbf16, #tpu.memory_space<vmem>>, vector<1x16x4xbf16>,
    %c18_334 = arith.constant 18 : index
    %c0_335 = arith.constant 0 : index
    %381 = vector.load %arg5[%c18_334, %c0_335] : memref<288x4xf32, #tpu.memory_space<vmem>>, vector<16x4xf32>
    %382 = vector.broadcast %359 : vector<1x4xf32> to vector<16x4xf32>
    %383 = arith.subf %381, %382 : vector<16x4xf32>
    %384 = vector.broadcast %368 : vector<1x4xf32> to vector<16x4xf32>
    %385 = arith.mulf %383, %384 : vector<16x4xf32>
    %c0_336 = arith.constant 0 : index
    %c16_337 = arith.constant 16 : index
    %c0_338 = arith.constant 0 : index
    %386 = vector.load %arg1[%c0_336, %c16_337, %c0_338] : memref<1x256x4xf32, #tpu.memory_space<vmem>>, vector<1x16x4xf32>
    %387 = vector.shape_cast %386 : vector<1x16x4xf32> to vector<16x4xf32>
    %388 = arith.addf %387, %385 : vector<16x4xf32>
    %389 = arith.truncf %388 : vector<16x4xf32> to vector<16x4xbf16>
    %c0_339 = arith.constant 0 : index
    %c16_340 = arith.constant 16 : index
    %c0_341 = arith.constant 0 : index
    %390 = vector.load %arg4[%c0_339, %c16_340, %c0_341] : memref<1x256x4xbf16, #tpu.memory_space<vmem>>, vector<1x16x4xbf16>
    %391 = vector.shape_cast %390 : vector<1x16x4xbf16> to vector<16x4xbf16>
    %392 = vector.shape_cast %389 : vector<16x4xbf16> to vector<1x16x4xbf16>
    tpu.vector_store %arg4[%c0_339, %c16_340, %c0_341], %392 {strides = array<i32>} : memref<1x256x4xbf16, #tpu.memory_space<vmem>>, vector<1x16x4xbf16>,
    %c36_342 = arith.constant 36 : index
    %c0_343 = arith.constant 0 : index
    %393 = vector.load %arg5[%c36_342, %c0_343] : memref<288x4xf32, #tpu.memory_space<vmem>>, vector<16x4xf32>
    %394 = vector.broadcast %359 : vector<1x4xf32> to vector<16x4xf32>
    %395 = arith.subf %393, %394 : vector<16x4xf32>
    %396 = vector.broadcast %368 : vector<1x4xf32> to vector<16x4xf32>
    %397 = arith.mulf %395, %396 : vector<16x4xf32>
    %c0_344 = arith.constant 0 : index
    %c32_345 = arith.constant 32 : index
    %c0_346 = arith.constant 0 : index
    %398 = vector.load %arg1[%c0_344, %c32_345, %c0_346] : memref<1x256x4xf32, #tpu.memory_space<vmem>>, vector<1x16x4xf32>
    %399 = vector.shape_cast %398 : vector<1x16x4xf32> to vector<16x4xf32>
    %400 = arith.addf %399, %397 : vector<16x4xf32>
    %401 = arith.truncf %400 : vector<16x4xf32> to vector<16x4xbf16>
    %c0_347 = arith.constant 0 : index
    %c32_348 = arith.constant 32 : index
    %c0_349 = arith.constant 0 : index
    %402 = vector.load %arg4[%c0_347, %c32_348, %c0_349] : memref<1x256x4xbf16, #tpu.memory_space<vmem>>, vector<1x16x4xbf16>
    %403 = vector.shape_cast %402 : vector<1x16x4xbf16> to vector<16x4xbf16>
    %404 = vector.shape_cast %401 : vector<16x4xbf16> to vector<1x16x4xbf16>
    tpu.vector_store %arg4[%c0_347, %c32_348, %c0_349], %404 {strides = array<i32>} : memref<1x256x4xbf16, #tpu.memory_space<vmem>>, vector<1x16x4xbf16>,
    %c54_350 = arith.constant 54 : index
    %c0_351 = arith.constant 0 : index
    %405 = vector.load %arg5[%c54_350, %c0_351] : memref<288x4xf32, #tpu.memory_space<vmem>>, vector<16x4xf32>
    %406 = vector.broadcast %359 : vector<1x4xf32> to vector<16x4xf32>
    %407 = arith.subf %405, %406 : vector<16x4xf32>
    %408 = vector.broadcast %368 : vector<1x4xf32> to vector<16x4xf32>
    %409 = arith.mulf %407, %408 : vector<16x4xf32>
    %c0_352 = arith.constant 0 : index
    %c48_353 = arith.constant 48 : index
    %c0_354 = arith.constant 0 : index
    %410 = vector.load %arg1[%c0_352, %c48_353, %c0_354] : memref<1x256x4xf32, #tpu.memory_space<vmem>>, vector<1x16x4xf32>
    %411 = vector.shape_cast %410 : vector<1x16x4xf32> to vector<16x4xf32>
    %412 = arith.addf %411, %409 : vector<16x4xf32>
    %413 = arith.truncf %412 : vector<16x4xf32> to vector<16x4xbf16>
    %c0_355 = arith.constant 0 : index
    %c48_356 = arith.constant 48 : index
    %c0_357 = arith.constant 0 : index
    %414 = vector.load %arg4[%c0_355, %c48_356, %c0_357] : memref<1x256x4xbf16, #tpu.memory_space<vmem>>, vector<1x16x4xbf16>
    %415 = vector.shape_cast %414 : vector<1x16x4xbf16> to vector<16x4xbf16>
    %416 = vector.shape_cast %413 : vector<16x4xbf16> to vector<1x16x4xbf16>
    tpu.vector_store %arg4[%c0_355, %c48_356, %c0_357], %416 {strides = array<i32>} : memref<1x256x4xbf16, #tpu.memory_space<vmem>>, vector<1x16x4xbf16>,
    %c72_358 = arith.constant 72 : index
    %c0_359 = arith.constant 0 : index
    %417 = vector.load %arg5[%c72_358, %c0_359] : memref<288x4xf32, #tpu.memory_space<vmem>>, vector<16x4xf32>
    %418 = vector.broadcast %359 : vector<1x4xf32> to vector<16x4xf32>
    %419 = arith.subf %417, %418 : vector<16x4xf32>
    %420 = vector.broadcast %368 : vector<1x4xf32> to vector<16x4xf32>
    %421 = arith.mulf %419, %420 : vector<16x4xf32>
    %c0_360 = arith.constant 0 : index
    %c64_361 = arith.constant 64 : index
    %c0_362 = arith.constant 0 : index
    %422 = vector.load %arg1[%c0_360, %c64_361, %c0_362] : memref<1x256x4xf32, #tpu.memory_space<vmem>>, vector<1x16x4xf32>
    %423 = vector.shape_cast %422 : vector<1x16x4xf32> to vector<16x4xf32>
    %424 = arith.addf %423, %421 : vector<16x4xf32>
    %425 = arith.truncf %424 : vector<16x4xf32> to vector<16x4xbf16>
    %c0_363 = arith.constant 0 : index
    %c64_364 = arith.constant 64 : index
    %c0_365 = arith.constant 0 : index
    %426 = vector.load %arg4[%c0_363, %c64_364, %c0_365] : memref<1x256x4xbf16, #tpu.memory_space<vmem>>, vector<1x16x4xbf16>
    %427 = vector.shape_cast %426 : vector<1x16x4xbf16> to vector<16x4xbf16>
    %428 = vector.shape_cast %425 : vector<16x4xbf16> to vector<1x16x4xbf16>
    tpu.vector_store %arg4[%c0_363, %c64_364, %c0_365], %428 {strides = array<i32>} : memref<1x256x4xbf16, #tpu.memory_space<vmem>>, vector<1x16x4xbf16>,
    %c90_366 = arith.constant 90 : index
    %c0_367 = arith.constant 0 : index
    %429 = vector.load %arg5[%c90_366, %c0_367] : memref<288x4xf32, #tpu.memory_space<vmem>>, vector<16x4xf32>
    %430 = vector.broadcast %359 : vector<1x4xf32> to vector<16x4xf32>
    %431 = arith.subf %429, %430 : vector<16x4xf32>
    %432 = vector.broadcast %368 : vector<1x4xf32> to vector<16x4xf32>
    %433 = arith.mulf %431, %432 : vector<16x4xf32>
    %c0_368 = arith.constant 0 : index
    %c80_369 = arith.constant 80 : index
    %c0_370 = arith.constant 0 : index
    %434 = vector.load %arg1[%c0_368, %c80_369, %c0_370] : memref<1x256x4xf32, #tpu.memory_space<vmem>>, vector<1x16x4xf32>
    %435 = vector.shape_cast %434 : vector<1x16x4xf32> to vector<16x4xf32>
    %436 = arith.addf %435, %433 : vector<16x4xf32>
    %437 = arith.truncf %436 : vector<16x4xf32> to vector<16x4xbf16>
    %c0_371 = arith.constant 0 : index
    %c80_372 = arith.constant 80 : index
    %c0_373 = arith.constant 0 : index
    %438 = vector.load %arg4[%c0_371, %c80_372, %c0_373] : memref<1x256x4xbf16, #tpu.memory_space<vmem>>, vector<1x16x4xbf16>
    %439 = vector.shape_cast %438 : vector<1x16x4xbf16> to vector<16x4xbf16>
    %440 = vector.shape_cast %437 : vector<16x4xbf16> to vector<1x16x4xbf16>
    tpu.vector_store %arg4[%c0_371, %c80_372, %c0_373], %440 {strides = array<i32>} : memref<1x256x4xbf16, #tpu.memory_space<vmem>>, vector<1x16x4xbf16>,
    %c108_374 = arith.constant 108 : index
    %c0_375 = arith.constant 0 : index
    %441 = vector.load %arg5[%c108_374, %c0_375] : memref<288x4xf32, #tpu.memory_space<vmem>>, vector<16x4xf32>
    %442 = vector.broadcast %359 : vector<1x4xf32> to vector<16x4xf32>
    %443 = arith.subf %441, %442 : vector<16x4xf32>
    %444 = vector.broadcast %368 : vector<1x4xf32> to vector<16x4xf32>
    %445 = arith.mulf %443, %444 : vector<16x4xf32>
    %c0_376 = arith.constant 0 : index
    %c96_377 = arith.constant 96 : index
    %c0_378 = arith.constant 0 : index
    %446 = vector.load %arg1[%c0_376, %c96_377, %c0_378] : memref<1x256x4xf32, #tpu.memory_space<vmem>>, vector<1x16x4xf32>
    %447 = vector.shape_cast %446 : vector<1x16x4xf32> to vector<16x4xf32>
    %448 = arith.addf %447, %445 : vector<16x4xf32>
    %449 = arith.truncf %448 : vector<16x4xf32> to vector<16x4xbf16>
    %c0_379 = arith.constant 0 : index
    %c96_380 = arith.constant 96 : index
    %c0_381 = arith.constant 0 : index
    %450 = vector.load %arg4[%c0_379, %c96_380, %c0_381] : memref<1x256x4xbf16, #tpu.memory_space<vmem>>, vector<1x16x4xbf16>
    %451 = vector.shape_cast %450 : vector<1x16x4xbf16> to vector<16x4xbf16>
    %452 = vector.shape_cast %449 : vector<16x4xbf16> to vector<1x16x4xbf16>
    tpu.vector_store %arg4[%c0_379, %c96_380, %c0_381], %452 {strides = array<i32>} : memref<1x256x4xbf16, #tpu.memory_space<vmem>>, vector<1x16x4xbf16>,
    %c126_382 = arith.constant 126 : index
    %c0_383 = arith.constant 0 : index
    %453 = vector.load %arg5[%c126_382, %c0_383] : memref<288x4xf32, #tpu.memory_space<vmem>>, vector<16x4xf32>
    %454 = vector.broadcast %359 : vector<1x4xf32> to vector<16x4xf32>
    %455 = arith.subf %453, %454 : vector<16x4xf32>
    %456 = vector.broadcast %368 : vector<1x4xf32> to vector<16x4xf32>
    %457 = arith.mulf %455, %456 : vector<16x4xf32>
    %c0_384 = arith.constant 0 : index
    %c112_385 = arith.constant 112 : index
    %c0_386 = arith.constant 0 : index
    %458 = vector.load %arg1[%c0_384, %c112_385, %c0_386] : memref<1x256x4xf32, #tpu.memory_space<vmem>>, vector<1x16x4xf32>
    %459 = vector.shape_cast %458 : vector<1x16x4xf32> to vector<16x4xf32>
    %460 = arith.addf %459, %457 : vector<16x4xf32>
    %461 = arith.truncf %460 : vector<16x4xf32> to vector<16x4xbf16>
    %c0_387 = arith.constant 0 : index
    %c112_388 = arith.constant 112 : index
    %c0_389 = arith.constant 0 : index
    %462 = vector.load %arg4[%c0_387, %c112_388, %c0_389] : memref<1x256x4xbf16, #tpu.memory_space<vmem>>, vector<1x16x4xbf16>
    %463 = vector.shape_cast %462 : vector<1x16x4xbf16> to vector<16x4xbf16>
    %464 = vector.shape_cast %461 : vector<16x4xbf16> to vector<1x16x4xbf16>
    tpu.vector_store %arg4[%c0_387, %c112_388, %c0_389], %464 {strides = array<i32>} : memref<1x256x4xbf16, #tpu.memory_space<vmem>>, vector<1x16x4xbf16>,
    %c144_390 = arith.constant 144 : index
    %c0_391 = arith.constant 0 : index
    %465 = vector.load %arg5[%c144_390, %c0_391] : memref<288x4xf32, #tpu.memory_space<vmem>>, vector<16x4xf32>
    %466 = vector.broadcast %359 : vector<1x4xf32> to vector<16x4xf32>
    %467 = arith.subf %465, %466 : vector<16x4xf32>
    %468 = vector.broadcast %368 : vector<1x4xf32> to vector<16x4xf32>
    %469 = arith.mulf %467, %468 : vector<16x4xf32>
    %c0_392 = arith.constant 0 : index
    %c128_393 = arith.constant 128 : index
    %c0_394 = arith.constant 0 : index
    %470 = vector.load %arg1[%c0_392, %c128_393, %c0_394] : memref<1x256x4xf32, #tpu.memory_space<vmem>>, vector<1x16x4xf32>
    %471 = vector.shape_cast %470 : vector<1x16x4xf32> to vector<16x4xf32>
    %472 = arith.addf %471, %469 : vector<16x4xf32>
    %473 = arith.truncf %472 : vector<16x4xf32> to vector<16x4xbf16>
    %c0_395 = arith.constant 0 : index
    %c128_396 = arith.constant 128 : index
    %c0_397 = arith.constant 0 : index
    %474 = vector.load %arg4[%c0_395, %c128_396, %c0_397] : memref<1x256x4xbf16, #tpu.memory_space<vmem>>, vector<1x16x4xbf16>
    %475 = vector.shape_cast %474 : vector<1x16x4xbf16> to vector<16x4xbf16>
    %476 = vector.shape_cast %473 : vector<16x4xbf16> to vector<1x16x4xbf16>
    tpu.vector_store %arg4[%c0_395, %c128_396, %c0_397], %476 {strides = array<i32>} : memref<1x256x4xbf16, #tpu.memory_space<vmem>>, vector<1x16x4xbf16>,
    %c162_398 = arith.constant 162 : index
    %c0_399 = arith.constant 0 : index
    %477 = vector.load %arg5[%c162_398, %c0_399] : memref<288x4xf32, #tpu.memory_space<vmem>>, vector<16x4xf32>
    %478 = vector.broadcast %359 : vector<1x4xf32> to vector<16x4xf32>
    %479 = arith.subf %477, %478 : vector<16x4xf32>
    %480 = vector.broadcast %368 : vector<1x4xf32> to vector<16x4xf32>
    %481 = arith.mulf %479, %480 : vector<16x4xf32>
    %c0_400 = arith.constant 0 : index
    %c144_401 = arith.constant 144 : index
    %c0_402 = arith.constant 0 : index
    %482 = vector.load %arg1[%c0_400, %c144_401, %c0_402] : memref<1x256x4xf32, #tpu.memory_space<vmem>>, vector<1x16x4xf32>
    %483 = vector.shape_cast %482 : vector<1x16x4xf32> to vector<16x4xf32>
    %484 = arith.addf %483, %481 : vector<16x4xf32>
    %485 = arith.truncf %484 : vector<16x4xf32> to vector<16x4xbf16>
    %c0_403 = arith.constant 0 : index
    %c144_404 = arith.constant 144 : index
    %c0_405 = arith.constant 0 : index
    %486 = vector.load %arg4[%c0_403, %c144_404, %c0_405] : memref<1x256x4xbf16, #tpu.memory_space<vmem>>, vector<1x16x4xbf16>
    %487 = vector.shape_cast %486 : vector<1x16x4xbf16> to vector<16x4xbf16>
    %488 = vector.shape_cast %485 : vector<16x4xbf16> to vector<1x16x4xbf16>
    tpu.vector_store %arg4[%c0_403, %c144_404, %c0_405], %488 {strides = array<i32>} : memref<1x256x4xbf16, #tpu.memory_space<vmem>>, vector<1x16x4xbf16>,
    %c180_406 = arith.constant 180 : index
    %c0_407 = arith.constant 0 : index
    %489 = vector.load %arg5[%c180_406, %c0_407] : memref<288x4xf32, #tpu.memory_space<vmem>>, vector<16x4xf32>
    %490 = vector.broadcast %359 : vector<1x4xf32> to vector<16x4xf32>
    %491 = arith.subf %489, %490 : vector<16x4xf32>
    %492 = vector.broadcast %368 : vector<1x4xf32> to vector<16x4xf32>
    %493 = arith.mulf %491, %492 : vector<16x4xf32>
    %c0_408 = arith.constant 0 : index
    %c160_409 = arith.constant 160 : index
    %c0_410 = arith.constant 0 : index
    %494 = vector.load %arg1[%c0_408, %c160_409, %c0_410] : memref<1x256x4xf32, #tpu.memory_space<vmem>>, vector<1x16x4xf32>
    %495 = vector.shape_cast %494 : vector<1x16x4xf32> to vector<16x4xf32>
    %496 = arith.addf %495, %493 : vector<16x4xf32>
    %497 = arith.truncf %496 : vector<16x4xf32> to vector<16x4xbf16>
    %c0_411 = arith.constant 0 : index
    %c160_412 = arith.constant 160 : index
    %c0_413 = arith.constant 0 : index
    %498 = vector.load %arg4[%c0_411, %c160_412, %c0_413] : memref<1x256x4xbf16, #tpu.memory_space<vmem>>, vector<1x16x4xbf16>
    %499 = vector.shape_cast %498 : vector<1x16x4xbf16> to vector<16x4xbf16>
    %500 = vector.shape_cast %497 : vector<16x4xbf16> to vector<1x16x4xbf16>
    tpu.vector_store %arg4[%c0_411, %c160_412, %c0_413], %500 {strides = array<i32>} : memref<1x256x4xbf16, #tpu.memory_space<vmem>>, vector<1x16x4xbf16>,
    %c198_414 = arith.constant 198 : index
    %c0_415 = arith.constant 0 : index
    %501 = vector.load %arg5[%c198_414, %c0_415] : memref<288x4xf32, #tpu.memory_space<vmem>>, vector<16x4xf32>
    %502 = vector.broadcast %359 : vector<1x4xf32> to vector<16x4xf32>
    %503 = arith.subf %501, %502 : vector<16x4xf32>
    %504 = vector.broadcast %368 : vector<1x4xf32> to vector<16x4xf32>
    %505 = arith.mulf %503, %504 : vector<16x4xf32>
    %c0_416 = arith.constant 0 : index
    %c176_417 = arith.constant 176 : index
    %c0_418 = arith.constant 0 : index
    %506 = vector.load %arg1[%c0_416, %c176_417, %c0_418] : memref<1x256x4xf32, #tpu.memory_space<vmem>>, vector<1x16x4xf32>
    %507 = vector.shape_cast %506 : vector<1x16x4xf32> to vector<16x4xf32>
    %508 = arith.addf %507, %505 : vector<16x4xf32>
    %509 = arith.truncf %508 : vector<16x4xf32> to vector<16x4xbf16>
    %c0_419 = arith.constant 0 : index
    %c176_420 = arith.constant 176 : index
    %c0_421 = arith.constant 0 : index
    %510 = vector.load %arg4[%c0_419, %c176_420, %c0_421] : memref<1x256x4xbf16, #tpu.memory_space<vmem>>, vector<1x16x4xbf16>
    %511 = vector.shape_cast %510 : vector<1x16x4xbf16> to vector<16x4xbf16>
    %512 = vector.shape_cast %509 : vector<16x4xbf16> to vector<1x16x4xbf16>
    tpu.vector_store %arg4[%c0_419, %c176_420, %c0_421], %512 {strides = array<i32>} : memref<1x256x4xbf16, #tpu.memory_space<vmem>>, vector<1x16x4xbf16>,
    %c216_422 = arith.constant 216 : index
    %c0_423 = arith.constant 0 : index
    %513 = vector.load %arg5[%c216_422, %c0_423] : memref<288x4xf32, #tpu.memory_space<vmem>>, vector<16x4xf32>
    %514 = vector.broadcast %359 : vector<1x4xf32> to vector<16x4xf32>
    %515 = arith.subf %513, %514 : vector<16x4xf32>
    %516 = vector.broadcast %368 : vector<1x4xf32> to vector<16x4xf32>
    %517 = arith.mulf %515, %516 : vector<16x4xf32>
    %c0_424 = arith.constant 0 : index
    %c192_425 = arith.constant 192 : index
    %c0_426 = arith.constant 0 : index
    %518 = vector.load %arg1[%c0_424, %c192_425, %c0_426] : memref<1x256x4xf32, #tpu.memory_space<vmem>>, vector<1x16x4xf32>
    %519 = vector.shape_cast %518 : vector<1x16x4xf32> to vector<16x4xf32>
    %520 = arith.addf %519, %517 : vector<16x4xf32>
    %521 = arith.truncf %520 : vector<16x4xf32> to vector<16x4xbf16>
    %c0_427 = arith.constant 0 : index
    %c192_428 = arith.constant 192 : index
    %c0_429 = arith.constant 0 : index
    %522 = vector.load %arg4[%c0_427, %c192_428, %c0_429] : memref<1x256x4xbf16, #tpu.memory_space<vmem>>, vector<1x16x4xbf16>
    %523 = vector.shape_cast %522 : vector<1x16x4xbf16> to vector<16x4xbf16>
    %524 = vector.shape_cast %521 : vector<16x4xbf16> to vector<1x16x4xbf16>
    tpu.vector_store %arg4[%c0_427, %c192_428, %c0_429], %524 {strides = array<i32>} : memref<1x256x4xbf16, #tpu.memory_space<vmem>>, vector<1x16x4xbf16>,
    %c234_430 = arith.constant 234 : index
    %c0_431 = arith.constant 0 : index
    %525 = vector.load %arg5[%c234_430, %c0_431] : memref<288x4xf32, #tpu.memory_space<vmem>>, vector<16x4xf32>
    %526 = vector.broadcast %359 : vector<1x4xf32> to vector<16x4xf32>
    %527 = arith.subf %525, %526 : vector<16x4xf32>
    %528 = vector.broadcast %368 : vector<1x4xf32> to vector<16x4xf32>
    %529 = arith.mulf %527, %528 : vector<16x4xf32>
    %c0_432 = arith.constant 0 : index
    %c208_433 = arith.constant 208 : index
    %c0_434 = arith.constant 0 : index
    %530 = vector.load %arg1[%c0_432, %c208_433, %c0_434] : memref<1x256x4xf32, #tpu.memory_space<vmem>>, vector<1x16x4xf32>
    %531 = vector.shape_cast %530 : vector<1x16x4xf32> to vector<16x4xf32>
    %532 = arith.addf %531, %529 : vector<16x4xf32>
    %533 = arith.truncf %532 : vector<16x4xf32> to vector<16x4xbf16>
    %c0_435 = arith.constant 0 : index
    %c208_436 = arith.constant 208 : index
    %c0_437 = arith.constant 0 : index
    %534 = vector.load %arg4[%c0_435, %c208_436, %c0_437] : memref<1x256x4xbf16, #tpu.memory_space<vmem>>, vector<1x16x4xbf16>
    %535 = vector.shape_cast %534 : vector<1x16x4xbf16> to vector<16x4xbf16>
    %536 = vector.shape_cast %533 : vector<16x4xbf16> to vector<1x16x4xbf16>
    tpu.vector_store %arg4[%c0_435, %c208_436, %c0_437], %536 {strides = array<i32>} : memref<1x256x4xbf16, #tpu.memory_space<vmem>>, vector<1x16x4xbf16>,
    %c252_438 = arith.constant 252 : index
    %c0_439 = arith.constant 0 : index
    %537 = vector.load %arg5[%c252_438, %c0_439] : memref<288x4xf32, #tpu.memory_space<vmem>>, vector<16x4xf32>
    %538 = vector.broadcast %359 : vector<1x4xf32> to vector<16x4xf32>
    %539 = arith.subf %537, %538 : vector<16x4xf32>
    %540 = vector.broadcast %368 : vector<1x4xf32> to vector<16x4xf32>
    %541 = arith.mulf %539, %540 : vector<16x4xf32>
    %c0_440 = arith.constant 0 : index
    %c224_441 = arith.constant 224 : index
    %c0_442 = arith.constant 0 : index
    %542 = vector.load %arg1[%c0_440, %c224_441, %c0_442] : memref<1x256x4xf32, #tpu.memory_space<vmem>>, vector<1x16x4xf32>
    %543 = vector.shape_cast %542 : vector<1x16x4xf32> to vector<16x4xf32>
    %544 = arith.addf %543, %541 : vector<16x4xf32>
    %545 = arith.truncf %544 : vector<16x4xf32> to vector<16x4xbf16>
    %c0_443 = arith.constant 0 : index
    %c224_444 = arith.constant 224 : index
    %c0_445 = arith.constant 0 : index
    %546 = vector.load %arg4[%c0_443, %c224_444, %c0_445] : memref<1x256x4xbf16, #tpu.memory_space<vmem>>, vector<1x16x4xbf16>
    %547 = vector.shape_cast %546 : vector<1x16x4xbf16> to vector<16x4xbf16>
    %548 = vector.shape_cast %545 : vector<16x4xbf16> to vector<1x16x4xbf16>
    tpu.vector_store %arg4[%c0_443, %c224_444, %c0_445], %548 {strides = array<i32>} : memref<1x256x4xbf16, #tpu.memory_space<vmem>>, vector<1x16x4xbf16>,
    %c270_446 = arith.constant 270 : index
    %c0_447 = arith.constant 0 : index
    %549 = vector.load %arg5[%c270_446, %c0_447] : memref<288x4xf32, #tpu.memory_space<vmem>>, vector<16x4xf32>
    %550 = vector.broadcast %359 : vector<1x4xf32> to vector<16x4xf32>
    %551 = arith.subf %549, %550 : vector<16x4xf32>
    %552 = vector.broadcast %368 : vector<1x4xf32> to vector<16x4xf32>
    %553 = arith.mulf %551, %552 : vector<16x4xf32>
    %c0_448 = arith.constant 0 : index
    %c240_449 = arith.constant 240 : index
    %c0_450 = arith.constant 0 : index
    %554 = vector.load %arg1[%c0_448, %c240_449, %c0_450] : memref<1x256x4xf32, #tpu.memory_space<vmem>>, vector<1x16x4xf32>
    %555 = vector.shape_cast %554 : vector<1x16x4xf32> to vector<16x4xf32>
    %556 = arith.addf %555, %553 : vector<16x4xf32>
    %557 = arith.truncf %556 : vector<16x4xf32> to vector<16x4xbf16>
    %c0_451 = arith.constant 0 : index
    %c240_452 = arith.constant 240 : index
    %c0_453 = arith.constant 0 : index
    %558 = vector.load %arg4[%c0_451, %c240_452, %c0_453] : memref<1x256x4xbf16, #tpu.memory_space<vmem>>, vector<1x16x4xbf16>
    %559 = vector.shape_cast %558 : vector<1x16x4xbf16> to vector<16x4xbf16>
    %560 = vector.shape_cast %557 : vector<16x4xbf16> to vector<1x16x4xbf16>
    tpu.vector_store %arg4[%c0_451, %c240_452, %c0_453], %560 {strides = array<i32>} : memref<1x256x4xbf16, #tpu.memory_space<vmem>>, vector<1x16x4xbf16>,
    return
  }
  func.func @transform_0(%arg0: i32) -> (i32, i32, i32) {
    %c0_i32 = arith.constant 0 : i32
    %c0_i32_0 = arith.constant 0 : i32
    %c0_i32_1 = arith.constant 0 : i32
    return %arg0, %c0_i32, %c0_i32_0 : i32, i32, i32
  }
  func.func @transform_1(%arg0: i32) -> (i32, i32, i32) {
    %c0_i32 = arith.constant 0 : i32
    %c0_i32_0 = arith.constant 0 : i32
    %c0_i32_1 = arith.constant 0 : i32
    %c0_i32_2 = arith.constant 0 : i32
    return %c0_i32, %c0_i32_0, %c0_i32_1 : i32, i32, i32
  }
  func.func @transform_2(%arg0: i32) -> (i32, i32, i32) {
    %c0_i32 = arith.constant 0 : i32
    %c0_i32_0 = arith.constant 0 : i32
    %c0_i32_1 = arith.constant 0 : i32
    %c0_i32_2 = arith.constant 0 : i32
    return %c0_i32, %c0_i32_0, %c0_i32_1 : i32, i32, i32
  }
  func.func @transform_3(%arg0: i32) -> (i32, i32, i32) {
    %c0_i32 = arith.constant 0 : i32
    %c0_i32_0 = arith.constant 0 : i32
    %c0_i32_1 = arith.constant 0 : i32
    return %arg0, %c0_i32, %c0_i32_0 : i32, i32, i32
  }
}

</mosaic_0001>

<bundles_post_ra>
// kernel: resnet_block_nhwc.1
= control target key start
LH: loop header
LB: loop body
LE: loop exit
PB: predicated region body
PF: predicated region fallthrough
CT: control target
= control target key end

     0   :  { %s13103_s12 = smov 0   ;;  %s17903_s0 = inlined_call_operand.vmem [shape: f32[2,256,4], index: 0, kind: input, shape index: {}]   ;;  %s17904_s1 = inlined_call_operand.vmem [shape: bf16[9,4,4], index: 1, kind: input, shape index: {}]   ;;  %s17905_s2 = inlined_call_operand.vmem [shape: bf16[9,4,4], index: 2, kind: input, shape index: {}]   ;;  %s17906_s3 = inlined_call_operand.vmem [shape: bf16[2,256,4], index: 3, kind: output, shape index: {}]  }
   0x1 LB: > { %s10515_s13 = sadd.s32 4294967295, %s13081_s12   ;;  %p10519_p0 = scmp.ge.s32.totalorder %s13081_s12, 1  ;;  %s13081_s12 = sphi %s13103_s12, %s13_s12  }
   0x2   : > { %p137_p1 = scmp.lt.s32.totalorder %s13081_s12, 3 }
   0x4   : > { %p138_p2 = pnand %p10519_p0, %p137_p1 }
   0x6   : > { %141 = sbr.rel (%p138_p2) target bundleno = 2122 (0x84a), region = 32 }
   0xd   : > { %vm17907_vm0 = vcmask 1041408   ;;  %v10574_v0 = vld [vmem:[%s17904_s1 + $0x2] sm:$0x3]  ;;  %p161_p3 = scmp.lt.s32.totalorder %s10515_s13, 1  ;;  %vm172_vm1 = vcmask 27650   ;;  %vm17908_vm6 = vcmask 27649  }
   0xe   : > { %12830 = vmatprep.subr.msk.bf16.mxu0 %vm17907_vm0, %v10574_v0  ;;  %v2007_v1 = vsel %vm17907_vm0, %v10574_v0, 0  ;;  %vm186_vm2 = vsmask.f32 1280  ;;  %vm187_vm3 = vsmask.f32 5392  ;;  %vm226_vm8 = vcmask 25601  }
   0xf   : > { %11571 = vmatpush3.bf16.msra.mxu0 %v2007_v1  ;;  %s19533_s13 = smov (!%p161_p3, %s10515_s13), 1  ;;  %vm212_vm4 = vsmask.f32 7942  ;;  %vm246_vm5 = vsmask.f32 2304  ;;  %vm17916_vm10 = vcmask 27648   ;;  %vm13137_vm15 = vmor %vm186_vm2, %vm187_vm3 }
  0x10   : > { %s11126_s16 = sshll.u32 %s19533_s13, 8  ;;  %vm247_vm7 = vsmask.f32 6416  ;;  %vm17909_vm9 = vsmask.f32 7946  ;;  %vm278_vm11 = vcmask 26624   ;;  %vm13144_vm13 = vmand %vm17908_vm6, %vm212_vm4 }
  0x11   : > { %s13122_s19 = scalar_lea.vmem %s17903_s0, %s11126_s16  ;;  %v1704_v9 = vld [vmem:[%s17904_s1] sm:$0x3]  ;;  %vm17910_vm12 = vcmask 25600   ;;  %vm17911_vm14 = vcmask 26626   ;;  %v18111_v20 = vmov 0  ;;  %v18114_v26 = vmov 0  ;;  %vm13152_vm3 = vmand %vm172_vm1, %vm17909_vm9 }
  0x12   : > { %v178_v2 = vld [vmem:[%s13122_s19] sm:$0xff]  ;;  %v179_v3 = vld [vmem:[%s13122_s19 + $0x8] sm:$0xff]  ;;  %v238_v4 = vld [vmem:[%s13122_s19 + $0x10] sm:$0xff]  ;;  %12831 = vmatprep.subr.msk.bf16.mxu0 %vm17907_vm0, %v1704_v9  ;;  %v13133_v11 = vsel %vm17907_vm0, %v1704_v9, 0  ;;  %v18112_v20 = vsel %vm13137_vm15, 4294967295, %v18111_v20  ;;  %v18115_v26 = vsel %vm13144_vm13, 4294967295, %v18114_v26 }
  0x13   : > { %v11128_v5 = vpack.c.bf16 %v178_v2, %v178_v2  ;;  %v11129_v6 = vpack.c.bf16 %v179_v3, %v179_v3  ;;  %v239_v7 = vld [vmem:[%s13122_s19 + $0x18] sm:$0xff]  ;;  %v11130_v8 = vpack.c.bf16 %v238_v4, %v238_v4  ;;  %18113 = vst [vmem:[#allocation5_spill] sm:$0xff] %v18112_v20  ;;  %v297_v25 = vld [vmem:[%s13122_s19 + $0x20] sm:$0xff]  ;;  %18116 = vst [vmem:[#allocation6_spill] sm:$0xff] %v18115_v26  ;;  %v18119_v39 = vmov 0  ;;  %s11127_s5 = sshll.u32 %s19533_s13, 7 }
  0x14   : > { %v11131_v10 = vpack.c.bf16 %v239_v7, %v239_v7  ;;  %v214_v27 = vld [vmem:[#allocation3 + $0x8] sm:$0xe]  ;;  %v274_v36 = vld [vmem:[#allocation3 + $0x10] sm:$0xc]  ;;  %vm13161_vm6 = vmor %vm246_vm5, %vm247_vm7  ;;  %v11132_v44 = vpack.c.bf16 %v297_v25, %v297_v25  ;;  %v18121_v49 = vmov 0  ;;  %v18124_v52 = vmov 0  ;;  %s17714_s7 = scalar_lea.vmem %s17906_s3, %s11127_s5 }
  0x15   : > { %v190_v12 = vshrl.u32 %v11128_v5, 16  ;;  %v193_v13 = vshll.u32 %v11128_v5, 16  ;;  %v199_v14 = vshrl.u32 %v11129_v6, 16  ;;  %v202_v15 = vshll.u32 %v11129_v6, 16  ;;  %v298_v38 = vld [vmem:[%s13122_s19 + $0x28] sm:$0xff]  ;;  %vm13173_vm7 = vmand %vm17910_vm12, %vm186_vm2  ;;  %v352_v55 = vld [vmem:[%s13122_s19 + $0x30] sm:$0xff] }
  0x16   : > { %v250_v16 = vshrl.u32 %v11130_v8, 16  ;;  %v253_v17 = vshll.u32 %v11130_v8, 16  ;;  %v259_v18 = vshrl.u32 %v11131_v10, 16  ;;  %v262_v19 = vshll.u32 %v11131_v10, 16  ;;  %v221_v42 = vld [vmem:[#allocation3 + $0x10] sm:$0x3]  ;;  %vm13181_vm9 = vmand %vm278_vm11, %vm246_vm5 }
  0x17   : > { %v192_v21 = vrot.slane %v190_v12, 6  ;;  %v195_v22 = vrot.slane %v193_v13, 7  ;;  %v201_v23 = vrot.slane %v199_v14, 6  ;;  %v204_v24 = vrot.slane %v202_v15, 7  ;;  %v280_v53 = vld [vmem:[#allocation3 + $0x18] sm:$0x7]  ;;  %vm13195_vm11 = vmand %vm226_vm8, %vm186_vm2 }
  0x18   : > { %v13148_v28 = vrot.slane %v190_v12, 7  ;;  %v252_v29 = vrot.slane %v250_v16, 5  ;;  %v255_v30 = vrot.slane %v253_v17, 6  ;;  %v261_v31 = vrot.slane %v259_v18, 5  ;;  %v353_v0 = vld [vmem:[%s13122_s19 + $0x38] sm:$0xff]  ;;  %vm13205_vm12 = vmand %vm226_vm8, %vm212_vm4  ;;  %v407_v6 = vld [vmem:[%s13122_s19 + $0x40] sm:$0xff] }
  0x19   : > { %v196_v32 = vor.u32 %v195_v22, %v192_v21  ;;  %v205_v33 = vor.u32 %v204_v24, %v201_v23  ;;  %v264_v34 = vrot.slane %v262_v19, 6  ;;  %v13156_v37 = vrot.slane %v250_v16, 6  ;;  %v333_v3 = vld [vmem:[#allocation3 + $0x18] sm:$0x8]  ;;  %vm13227_vm1 = vmand %vm17911_vm14, %vm246_vm5  ;;  %v339_v21 = vld [vmem:[#allocation3 + $0x20] sm:$0xf] }
  0x1a   : > { %v18120_v39 = vsel %vm13161_vm6, 4294967295, %v18119_v39  ;;  %v256_v40 = vor.u32 %v255_v30, %v252_v29  ;;  %v13165_v41 = vrot.slane %v262_v19, 9  ;;  %v13167_v43 = vrot.slane %v202_v15, 10  ;;  %v385_v23 = vld [vmem:[#allocation3 + $0x24] sm:$0xf] }
  0x1b   : > { %v197_v45 = vrot.slane %v196_v32, 4  ;;  %v207_v46 = vrot.slane %v205_v33, 4  ;;  %v215_v47 = vsel %vm13144_vm13, %v196_v32, %v214_v27  ;;  %v265_v48 = vor.u32 %v264_v34, %v261_v31 }
  0x1c   : > { %v18122_v49 = vsel %vm13173_vm7, 4294967295, %v18121_v49  ;;  %216 = vst [vmem:[#allocation3 + $0x8] sm:$0xe] %v215_v47  ;;  %v257_v50 = vrot.slane %v256_v40, 4  ;;  %v275_v51 = vsel %vm13152_vm3, %v256_v40, %v274_v36  ;;  %v18125_v52 = vsel %vm13181_vm9, 4294967295, %v18124_v52 }
  0x1d   : > { %18123 = vst [vmem:[#allocation7_spill] sm:$0xff] %v18122_v49  ;;  %v13185_v54 = vpack.c.bf16 %v298_v38, %v298_v38  ;;  %v206_v56 = vsel %vm13137_vm15, %v197_v45, %v205_v33  ;;  %v267_v57 = vrot.slane %v265_v48, 4  ;;  %276 = vst [vmem:[#allocation3 + $0x10] sm:$0xc] %v275_v51  ;;  %v222_v58 = vsel %vm13173_vm7, %v207_v46, %v221_v42  ;;  %v455_v45 = vld [vmem:[%s13122_s19 + $0x50] sm:$0xff] }
  0x1e   : > { %218 = vst.msk [vmem:[#allocation3 + $0xc] sm:$0xf] %vm17916_vm10, %v206_v56  ;;  %v18126_v59 = vmov 0  ;;  %v266_v60 = vsel %vm13161_vm6, %v257_v50, %v265_v48  ;;  %223 = vst [vmem:[#allocation3 + $0x10] sm:$0x3] %v222_v58  ;;  %v309_v61 = vshll.u32 %v11132_v44, 16  ;;  %v13213_v5 = vpack.c.bf16 %v352_v55, %v352_v55 }
  0x1f   : > { %v18127_v59 = vsel %vm13195_vm11, 4294967295, %v18126_v59  ;;  %v312_v62 = vshrl.u32 %v11132_v44, 16  ;;  %v318_v63 = vshll.u32 %v13185_v54, 16  ;;  %v18129_v1 = vmov 0  ;;  %277 = vst.msk [vmem:[#allocation3 + $0x14] sm:$0xf] %vm17916_vm10, %v266_v60 }
  0x20   : > { %18128 = vst [vmem:[#allocation8_spill] sm:$0xff] %v18127_v59  ;;  %v18130_v1 = vsel %vm13205_vm12, 4294967295, %v18129_v1  ;;  %v281_v2 = vsel %vm13181_vm9, %v267_v57, %v280_v53  ;;  %vm331_vm2 = vsmask.f32 7950  ;;  %v322_v4 = vshrl.u32 %v13185_v54, 16  ;;  %v408_v44 = vld [vmem:[%s13122_s19 + $0x48] sm:$0xff] }
  0x21   : > { %18131 = vst [vmem:[#allocation9_spill] sm:$0xff] %v18130_v1  ;;  %282 = vst [vmem:[#allocation3 + $0x18] sm:$0x7] %v281_v2  ;;  %v311_v7 = vrot.slane %v309_v61, 5  ;;  %v314_v8 = vrot.slane %v312_v62, 4  ;;  %v320_v9 = vrot.slane %v318_v63, 5  ;;  %v11135_v17 = vpack.c.bf16 %v353_v0, %v353_v0 }
  0x22   : > { %vm18132_vm4 = vcmask 27651   ;;  %v18133_v10 = vmov 0  ;;  %v13223_v12 = vrot.slane %v312_v62, 5  ;;  %v18136_v13 = vmov 0  ;;  %v391_v53 = vld [vmem:[#allocation3 + $0x2c] sm:$0x1] }
  0x23   : > { %vm13219_vm8 = vmand %vm18132_vm4, %vm331_vm2  ;;  %v18137_v13 = vsel %vm13227_vm1, 4294967295, %v18136_v13  ;;  %v324_v14 = vrot.slane %v322_v4, 4  ;;  %v364_v15 = vshrl.u32 %v13213_v5, 16  ;;  %v367_v16 = vshll.u32 %v13213_v5, 16  ;;  %v228_v25 = vld [vmem:[#allocation3 + $0x8] sm:$0x2] }
  0x24   : > { %v18134_v10 = vsel %vm13219_vm8, 4294967295, %v18133_v10  ;;  %18138 = vst [vmem:[#allocation11_spill] sm:$0xff] %v18137_v13  ;;  %v315_v18 = vor.u32 %v314_v8, %v311_v7  ;;  %v334_v19 = vsel %vm13219_vm8, %v311_v7, %v333_v3  ;;  %vm18139_vm2 = vsmask.f32 7938  ;;  %v287_v34 = vld [vmem:[#allocation3 + $0x10] sm:$0x4] }
  0x25   : > { %18135 = vst [vmem:[#allocation10_spill] sm:$0xff] %v18134_v10  ;;  %vm13237_vm4 = vmand %vm17916_vm10, %vm18139_vm2  ;;  %v11136_v24 = vpack.c.bf16 %v407_v6, %v407_v6  ;;  %vm18142_vm14 = vsmask.f32 7440  ;;  %vm18143_vm9 = vsmask.f32 3328  ;;  %v18144_v27 = vmov 0 }
  0x26   : > { %vm13243_vm0 = vmor %vm18143_vm9, %vm18142_vm14  ;;  %335 = vst [vmem:[#allocation3 + $0x18] sm:$0x8] %v334_v19  ;;  %v325_v29 = vor.u32 %v324_v14, %v320_v9  ;;  %v366_v30 = vrot.slane %v364_v15, 7  ;;  %v372_v31 = vshrl.u32 %v11135_v17, 16  ;;  %v375_v32 = vshll.u32 %v11135_v17, 16  ;;  %v456_v4 = vld [vmem:[%s13122_s19 + $0x58] sm:$0xff] }
  0x27   : > { %v18145_v27 = vsel %vm13243_vm0, 4294967295, %v18144_v27  ;;  %v229_v33 = vsel %vm13195_vm11, %v13148_v28, %v228_v25  ;;  %v316_v36 = vrot.slane %v315_v18, 4  ;;  %vm18146_vm2 = vmmov %vm18143_vm9  ;;  %v416_v40 = vshrl.u32 %v11136_v24, 16  ;;  %v235_v47 = vld [vmem:[#allocation3 + $0x10] sm:$0x2] }
  0x28   : > { %vm13254_vm5 = vmand %vm17916_vm10, %vm18146_vm2  ;;  %v419_v42 = vshll.u32 %v11136_v24, 16  ;;  %230 = vst [vmem:[#allocation3 + $0x8] sm:$0x2] %v229_v33  ;;  %v288_v46 = vsel %vm13227_vm1, %v13156_v37, %v287_v34  ;;  %vm18149_vm9 = vsmask.f32 7946  ;;  %vm18150_vm14 = vcmask 26626  }
  0x29   : > { %vm13265_vm6 = vmand %vm18150_vm14, %vm18149_vm9  ;;  %v18151_v28 = vmov 0  ;;  %v326_v48 = vrot.slane %v325_v29, 4  ;;  %v369_v50 = vor.u32 %v367_v16, %v366_v30  ;;  %v370_v51 = vrot.slane %v366_v30, 4  ;;  %289 = vst [vmem:[#allocation3 + $0x10] sm:$0x4] %v288_v46  ;;  %v503_v34 = vld [vmem:[%s13122_s19 + $0x60] sm:$0xff] }
  0x2a   : > { %v18152_v28 = vsel %vm13265_vm6, 4294967295, %v18151_v28  ;;  %vm18154_vm2 = vsmask.f32 256  ;;  %vm18155_vm10 = vcmask 24576   ;;  %v18156_v55 = vmov 0 }
  0x2b   : > { %18153 = vst [vmem:[#allocation12_spill] sm:$0xff] %v18152_v28  ;;  %vm13271_vm11 = vmand %vm18155_vm10, %vm18154_vm2  ;;  %v13275_v37 = vld [vmem:[#allocation3 + $0x14] sm:$0xf]  ;;  %v236_v56 = vsel %vm13205_vm12, %v13167_v43, %v235_v47  ;;  %v321_v57 = vsel %vm13243_vm0, %v316_v36, %v320_v9  ;;  %v374_v58 = vrot.slane %v372_v31, 7  ;;  %v13282_v60 = vrot.slane %v375_v32, 11  ;;  %v504_v36 = vld [vmem:[%s13122_s19 + $0x68] sm:$0xff] }
  0x2c   : > { %v18157_v55 = vsel %vm13271_vm11, 4294967295, %v18156_v55  ;;  %v294_v61 = vld [vmem:[#allocation3 + $0x18] sm:$0x4]  ;;  %v985_v62 = vrot.slane %v13275_v37, 6  ;;  %237 = vst [vmem:[#allocation3 + $0x10] sm:$0x2] %v236_v56  ;;  %v340_v0 = vsel %vm13254_vm5, %v326_v48, %v339_v21  ;;  %v386_v2 = vsel %vm13237_vm4, %v369_v50, %v385_v23  ;;  %vm18161_vm14 = vmmov %vm18154_vm2 }
  0x2d   : > { %18158 = vst [vmem:[#allocation13_spill] sm:$0xff] %v18157_v55  ;;  %vm18159_vm10 = vcmask 27648   ;;  %vm18160_vm9 = vsmask.f32 4368  ;;  %v418_v3 = vrot.slane %v416_v40, 6  ;;  %v295_v6 = vsel %vm13265_vm6, %v13165_v41, %v294_v61  ;;  %v550_v47 = vld [vmem:[%s13122_s19 + $0x78] sm:$0xff] }
  0x2e   : > { %336 = vst.msk [vmem:[#allocation3 + $0x1c] sm:$0xf] %vm18159_vm10, %v321_v57  ;;  %vm13292_vm2 = vmor %vm18161_vm14, %vm18160_vm9  ;;  %vm18164_vm0 = vsmask.f32 3328  ;;  %vm18165_vm10 = vcmask 27651   ;;  %v18166_v7 = vmov 0  ;;  %v377_v8 = vor.u32 %v375_v32, %v374_v58 }
  0x2f   : > { %vm13302_vm1 = vmand %vm18165_vm10, %vm18164_vm0  ;;  %341 = vst [vmem:[#allocation3 + $0x20] sm:$0xf] %v340_v0  ;;  %v379_v9 = vrot.slane %v374_v58, 4  ;;  %v421_v14 = vrot.slane %v419_v42, 7  ;;  %v13308_v16 = vrot.slane %v985_v62, 4  ;;  %v13310_v41 = vrot.slane %v416_v40, 7 }
  0x30   : > { %v18167_v7 = vsel %vm13302_vm1, 4294967295, %v18166_v7  ;;  %387 = vst [vmem:[#allocation3 + $0x24] sm:$0xf] %v386_v2  ;;  %296 = vst [vmem:[#allocation3 + $0x18] sm:$0x4] %v295_v6  ;;  %v11137_v18 = vpack.c.bf16 %v408_v44, %v408_v44  ;;  %v11138_v19 = vpack.c.bf16 %v455_v45, %v455_v45  ;;  %v378_v23 = vsel %vm13292_vm2, %v370_v51, %v377_v8  ;;  %v549_v40 = vld [vmem:[%s13122_s19 + $0x70] sm:$0xff] }
  0x31   : > { %18168 = vst [vmem:[#allocation14_spill] sm:$0xff] %v18167_v7  ;;  %v437_v17 = vld [vmem:[#allocation3 + $0x2c] sm:$0xe]  ;;  %v345_v21 = vld [vmem:[#allocation3 + $0x18] sm:$0x8]  ;;  %v392_v24 = vsel %vm13271_vm11, %v379_v9, %v391_v53  ;;  %v422_v25 = vor.u32 %v421_v14, %v418_v3  ;;  %v13316_v29 = vpack.c.bf16 %v456_v4, %v456_v4  ;;  %vm18169_vm0 = vcmask 27648  }
  0x32   : > { %v346_v30 = vsel %vm13302_vm1, %v13223_v12, %v345_v21  ;;  %388 = vst.msk [vmem:[#allocation3 + $0x28] sm:$0xf] %vm18169_vm0, %v378_v23  ;;  %393 = vst [vmem:[#allocation3 + $0x2c] sm:$0x1] %v392_v24  ;;  %v425_v31 = vshrl.u32 %v11137_v18, 16  ;;  %v428_v32 = vshll.u32 %v11137_v18, 16  ;;  %v13338_v0 = vpack.c.bf16 %v503_v34, %v503_v34 }
  0x33   : > { %v464_v33 = vshrl.u32 %v11138_v19, 16  ;;  %347 = vst [vmem:[#allocation3 + $0x18] sm:$0x8] %v346_v30  ;;  %v438_v42 = vsel %vm13144_vm13, %v422_v25, %v437_v17  ;;  %v423_v44 = vrot.slane %v422_v25, 4  ;;  %v467_v45 = vshll.u32 %v11138_v19, 16  ;;  %v596_v57 = vld [vmem:[%s13122_s19 + $0x80] sm:$0xff] }
  0x34   : > { %v473_v46 = vshrl.u32 %v13316_v29, 16  ;;  %v974_v12 = vld [vmem:[#allocation3 + $0x10] sm:$0xc]  ;;  %vm18170_vm9 = vcmask 1045508   ;;  %vm18171_vm14 = vcmask 1041408   ;;  %v18172_v48 = vmov 0 }
  0x35   : > { %vm13331_vm10 = vmor %vm18171_vm14, %vm18170_vm9  ;;  %439 = vst [vmem:[#allocation3 + $0x2c] sm:$0xe] %v438_v42  ;;  %v427_v50 = vrot.slane %v425_v31, 6  ;;  %v430_v51 = vrot.slane %v428_v32, 7  ;;  %v13335_v53 = vrot.slane %v428_v32, 10  ;;  %v466_v56 = vrot.slane %v464_v33, 5 }
  0x36   : > { %v18173_v48 = vsel %vm13331_vm10, 4294967295, %v18172_v48  ;;  %v10572_v58 = vrot.slane %v974_v12, 10  ;;  %v12931_v61 = vld [vmem:[#allocation3 + $0x10] sm:$0xff]   ;;  %v13340_v2 = vpack.c.bf16 %v504_v36, %v504_v36  ;;  %v13342_v3 = vpack.c.bf16 %v549_v40, %v549_v40  ;;  %v349_v4 = vld [vmem:[#allocation3 + $0x20] sm:$0x8] }
  0x37   : > { %18174 = vst [vmem:[#allocation15_spill] sm:$0xff] %v18173_v48  ;;  %v397_v6 = vld [vmem:[#allocation3 + $0x24] sm:$0x1]  ;;  %v431_v8 = vor.u32 %v430_v51, %v427_v50  ;;  %v469_v9 = vrot.slane %v467_v45, 6  ;;  %v13344_v14 = vrot.slane %v464_v33, 6  ;;  %v13346_v17 = vpack.c.bf16 %v550_v47, %v550_v47 }
  0x38   : > { %vm18175_vm0 = vsmask.f32 7938  ;;  %vm18176_vm9 = vcmask 24576   ;;  %v18177_v18 = vmov 0  ;;  %v976_v19 = vld [vmem:[#allocation3 + $0x18] sm:$0x7]  ;;  %v986_v21 = vsel %vm13331_vm10, %v10572_v58, %v985_v62 }
  0x39   : > { %vm13350_vm14 = vmand %vm18176_vm9, %vm18175_vm0  ;;  %v1818_v23 = vshll.u32 %v12931_v61, 16  ;;  %v1822_v24 = vshrl.u32 %v12931_v61, 16  ;;  %v350_v25 = vsel %vm13219_vm8, %v318_v63, %v349_v4  ;;  %v441_v30 = vld [vmem:[#allocation3 + $0x34] sm:$0x3]  ;;  %v988_v31 = vrot.slane %v976_v19, 6  ;;  %v597_v58 = vld [vmem:[%s13122_s19 + $0x88] sm:$0xff] }
  0x3a   : > { %v18178_v18 = vsel %vm13350_vm14, 4294967295, %v18177_v18  ;;  %vm18180_vm0 = vcmask 27648   ;;  %351 = vst [vmem:[#allocation3 + $0x20] sm:$0x8] %v350_v25  ;;  %v398_v37 = vsel %vm13271_vm11, %v364_v15, %v397_v6  ;;  %v432_v62 = vsel %vm13137_vm15, %v423_v44, %v431_v8  ;;  %v485_v33 = vld [vmem:[#allocation3 + $0x34] sm:$0xc] }
  0x3b   : > { %18179 = vst [vmem:[#allocation16_spill] sm:$0xff] %v18178_v18  ;;  %994 = vst.msk [vmem:[#allocation3] sm:$0xf] %vm18180_vm0, %v986_v21  ;;  %v433_v32 = vrot.slane %v431_v8, 4  ;;  %v13369_v34 = vrot.slane %v1818_v23, 1  ;;  %v470_v63 = vor.u32 %v469_v9, %v466_v56  ;;  %v475_v36 = vrot.slane %v473_v46, 5 }
  0x3c   : > { %399 = vst [vmem:[#allocation3 + $0x24] sm:$0x1] %v398_v37  ;;  %v404_v54 = vld [vmem:[#allocation3 + $0x2c] sm:$0x1]  ;;  %vm18181_vm9 = vmmov %vm18180_vm0  ;;  %v13372_v40 = vpack.c.bf16 %v596_v57, %v596_v57  ;;  %v989_v5 = vsel %vm13331_vm10, %v13308_v16, %v988_v31  ;;  %v990_v15 = vrot.slane %v988_v31, 4  ;;  %v12932_v42 = vld [vmem:[#allocation3 + $0x18] sm:$0xff]   ;;  %vm18183_vm13 = vnez %v18127_v59 }
  0x3d   : > { %440 = vst.msk [vmem:[#allocation3 + $0x30] sm:$0xf] %vm18181_vm9, %v432_v62  ;;  %v405_v44 = vsel %vm13350_vm14, %v13282_v60, %v404_v54  ;;  %v442_v45 = vsel %vm13173_vm7, %v433_v32, %v441_v30  ;;  %v1824_v46 = vor.u32 %v1822_v24, %v13369_v34  ;;  %v446_v47 = vld [vmem:[#allocation3 + $0x2c] sm:$0x2]  ;;  %v486_v16 = vsel %vm13152_vm3, %v470_v63, %v485_v33  ;;  %v533_v6 = vld [vmem:[#allocation3 + $0x3c] sm:$0x8] }
  0x3e   : > { %995 = vst.msk [vmem:[#allocation3 + $0x4] sm:$0xf] %vm18180_vm0, %v989_v5  ;;  %406 = vst [vmem:[#allocation3 + $0x2c] sm:$0x1] %v405_v44  ;;  %v471_v12 = vrot.slane %v470_v63, 4  ;;  %v476_v50 = vshll.u32 %v13316_v29, 16  ;;  %v447_v56 = vsel %vm18183_vm13, %v13310_v41, %v446_v47  ;;  %v13401_v32 = vpack.c.bf16 %v597_v58, %v597_v58 }
  0x3f   : > { %443 = vst [vmem:[#allocation3 + $0x34] sm:$0x3] %v442_v45  ;;  %vm18182_vm9 = vcmask 24576   ;;  %v1826_v60 = vshll.u32 %v12932_v42, 16  ;;  %v1830_v51 = vshrl.u32 %v12932_v42, 16  ;;  %v512_v57 = vshll.u32 %v13338_v0, 16 }
  0x40   : > { %997 = vst.msk [vmem:[#allocation3 + $0x8] sm:$0x1] %vm18182_vm9, %v990_v15  ;;  %487 = vst [vmem:[#allocation3 + $0x34] sm:$0xc] %v486_v16  ;;  %v478_v61 = vrot.slane %v476_v50, 6  ;;  %v13393_v4 = vrot.slane %v476_v50, 9  ;;  %vm18185_vm10 = vnez %v18120_v39  ;;  %vm18187_vm9 = vnez %v18125_v52 }
  0x41   : > { %448 = vst [vmem:[#allocation3 + $0x2c] sm:$0x2] %v447_v56  ;;  %v515_v29 = vshrl.u32 %v13338_v0, 16  ;;  %v521_v8 = vshll.u32 %v13340_v2, 16  ;;  %v1828_v9 = vrot.slane %v1826_v60, 1  ;;  %v514_v21 = vrot.slane %v512_v57, 5 }
  0x42   : > { %v489_v19 = vld [vmem:[#allocation3 + $0x3c] sm:$0x7]  ;;  %v525_v23 = vshrl.u32 %v13340_v2, 16  ;;  %v558_v41 = vshrl.u32 %v13342_v3, 16  ;;  %v644_v24 = vld [vmem:[%s13122_s19 + $0x90] sm:$0xff]  ;;  %v479_v31 = vor.u32 %v478_v61, %v475_v36 }
  0x43   : > { %v645_v25 = vld [vmem:[%s13122_s19 + $0x98] sm:$0xff]  ;;  %v1668_v30 = vld [vmem:[#allocation3] sm:$0xf]  ;;  %v540_v37 = vrot.slane %v515_v29, 5  ;;  %v517_v62 = vrot.slane %v515_v29, 4  ;;  %v1832_v54 = vor.u32 %v1830_v51, %v1828_v9  ;;  %v534_v63 = vsel %vm13219_vm8, %v514_v21, %v533_v6 }
  0x44   : > { %vm18184_vm0 = vsmask.f32 7424  ;;  %v13406_v33 = vld [vmem:[#allocation3 + $0x20] sm:$0xff]   ;;  %v523_v5 = vrot.slane %v521_v8, 5  ;;  %v480_v36 = vsel %vm18185_vm10, %v471_v12, %v479_v31  ;;  %v481_v15 = vrot.slane %v479_v31, 4 }
  0x45   : > { %v13404_v0 = vsel %vm18184_vm0, %v1824_v46, %v1828_v9  ;;  %535 = vst [vmem:[#allocation3 + $0x3c] sm:$0x8] %v534_v63  ;;  %v518_v42 = vor.u32 %v517_v62, %v514_v21  ;;  %v527_v44 = vrot.slane %v525_v23, 4  ;;  %v13414_v45 = vld [vmem:[#allocation3 + $0x4] sm:$0xf]  ;;  %v1834_v46 = vshll.u32 %v13406_v33, 16 }
  0x46   : > { %v1838_v47 = vshrl.u32 %v13406_v33, 16  ;;  %v452_v16 = vld [vmem:[#allocation3 + $0x34] sm:$0x2]  ;;  %vm18186_vm0 = vcmask 27648   ;;  %v13419_v50 = vpack.c.bf16 %v644_v24, %v644_v24  ;;  %v13421_v60 = vpack.c.bf16 %v645_v25, %v645_v25  ;;  %v13054_v43 = vld [vmem:[#allocation3 + $0x20] sm:$0xff]  }
  0x47   : > { %488 = vst.msk [vmem:[#allocation3 + $0x38] sm:$0xf] %vm18186_vm0, %v480_v36  ;;  %v13424_v51 = vcombine.low %v1668_v30, %v13414_v45  ;;  %v13426_v12 = vld [vmem:[#allocation3 + $0x8] sm:$0xff]   ;;  %v453_v56 = vsel %vm13205_vm12, %v13335_v53, %v452_v16  ;;  %v494_v57 = vld [vmem:[#allocation3 + $0x34] sm:$0x4]  ;;  %v490_v58 = vsel %vm18187_vm9, %v481_v15, %v489_v19  ;;  %v519_v61 = vrot.slane %v518_v42, 4 }
  0x48   : > { %v1836_v29 = vrot.slane %v1834_v46, 1  ;;  %v13433_v6 = vld [vmem:[#allocation3 + $0x28] sm:$0xff]   ;;  %454 = vst [vmem:[#allocation3 + $0x34] sm:$0x2] %v453_v56  ;;  %vm18188_vm0 = vnez %v18137_v13  ;;  %491 = vst [vmem:[#allocation3 + $0x3c] sm:$0x7] %v490_v58  ;;  %v528_v21 = vor.u32 %v527_v44, %v523_v5 }
  0x49   : > { %v495_v9 = vsel %vm18188_vm0, %v13344_v14, %v494_v57  ;;  %v560_v23 = vrot.slane %v558_v41, 7  ;;  %v1803_v53 = vshrl.u32 %v13424_v51, 16  ;;  %v1805_v24 = vshll.u32 %v13424_v51, 16  ;;  %v537_v30 = vld [vmem:[#allocation3 + $0x44] sm:$0xf] }
  0x4a   : > { %v1810_v19 = vshll.u32 %v13426_v12, 16  ;;  %v1814_v25 = vshrl.u32 %v13426_v12, 16  ;;  %496 = vst [vmem:[#allocation3 + $0x34] sm:$0x4] %v495_v9  ;;  %vm18189_vm12 = vsmask.f32 7424  ;;  %v1840_v62 = vor.u32 %v1838_v47, %v1836_v29 }
  0x4b   : > { %v13445_v31 = vsel %vm18189_vm12, %v1832_v54, %v1836_v29  ;;  %v1842_v14 = vshll.u32 %v13433_v6, 16  ;;  %v1846_v63 = vshrl.u32 %v13433_v6, 16  ;;  %v1807_v36 = vrot.slane %v1805_v24, 1  ;;  %v577_v46 = vld [vmem:[#allocation3 + $0x48] sm:$0xf] }
  0x4c   : > { %v1812_v15 = vrot.slane %v1810_v19, 1  ;;  %vm18190_vm0 = vnez %v18145_v27  ;;  %v529_v44 = vrot.slane %v528_v21, 4  ;;  %v542_v56 = vld [vmem:[#allocation3 + $0x3c] sm:$0x8]  ;;  %vm18191_vm9 = vcmask 27648  }
  0x4d   : > { %v524_v42 = vsel %vm18190_vm0, %v519_v61, %v523_v5  ;;  %v1844_v16 = vrot.slane %v1842_v14, 1  ;;  %v561_v57 = vshll.u32 %v13342_v3, 16  ;;  %v564_v54 = vrot.slane %v560_v23, 4  ;;  %v581_v5 = vld [vmem:[#allocation3 + $0x50] sm:$0x1] }
  0x4e   : > { %536 = vst.msk [vmem:[#allocation3 + $0x40] sm:$0xf] %vm18191_vm9, %v524_v42  ;;  %v566_v47 = vshrl.u32 %v13346_v17, 16  ;;  %v1808_v58 = vor.u32 %v1807_v36, %v1803_v53  ;;  %v1816_v29 = vor.u32 %v1814_v25, %v1812_v15  ;;  %v543_v9 = vsel %vm13302_vm1, %v540_v37, %v542_v56  ;;  %v13464_v53 = vld [vmem:[%s17904_s1 + $0x4] sm:$0x3]  ;;  %vm18192_vm9 = vmmov %vm18189_vm12 }
  0x4f   : > { %v538_v24 = vsel %vm13254_vm5, %v529_v44, %v537_v30  ;;  %v13459_v61 = vsel %vm18189_vm12, %v1840_v62, %v1844_v16  ;;  %v1848_v21 = vor.u32 %v1846_v63, %v1844_v16  ;;  %544 = vst [vmem:[#allocation3 + $0x3c] sm:$0x8] %v543_v9  ;;  %v563_v19 = vor.u32 %v561_v57, %v560_v23  ;;  %vm18193_vm1 = vmmov %vm18192_vm9  ;;  %v500_v30 = vld [vmem:[#allocation3 + $0x3c] sm:$0x4] }
  0x50   : > { %539 = vst [vmem:[#allocation3 + $0x44] sm:$0xf] %v538_v24  ;;  %v568_v14 = vrot.slane %v566_v47, 7  ;;  %v1813_v25 = vsel %vm18192_vm9, %v1808_v58, %v1812_v15  ;;  %v1821_v37 = vsel %vm18193_vm1, %v1816_v29, %v13369_v34  ;;  %v569_v36 = vshll.u32 %v13346_v17, 16  ;;  %v626_v47 = vld [vmem:[#allocation3 + $0x50] sm:$0xe] }
  0x51   : > { %v605_v62 = vshrl.u32 %v13372_v40, 16  ;;  %vm18194_vm12 = vcmask 31744   ;;  %v13472_v63 = vld [vmem:[#allocation3 + $0x30] sm:$0xff]   ;;  %v501_v23 = vsel %vm13265_vm6, %v13393_v4, %v500_v30  ;;  %v578_v42 = vsel %vm13237_vm4, %v563_v19, %v577_v46  ;;  %v693_v24 = vld [vmem:[%s13122_s19 + $0xa8] sm:$0xff] }
  0x52   : > { %11572 = vmatprep.mubr.msk.bf16.mxu0 %vm18194_vm12, %v1813_v25  ;;  %v573_v15 = vrot.slane %v568_v14, 4  ;;  %v608_v44 = vshll.u32 %v13372_v40, 16  ;;  %vm18195_vm1 = vmmov %vm18194_vm12  ;;  %502 = vst [vmem:[#allocation3 + $0x3c] sm:$0x4] %v501_v23  ;;  %v571_v17 = vor.u32 %v569_v36, %v568_v14  ;;  %v13481_v34 = vrot.slane %v569_v36, 11 }
  0x53   : > { %11573 = vmatmul.mubr.msk.bf16.vlgmr.msra.gmra.mrb[0].mxu0 %vm18195_vm1, %v1821_v37  ;;  %579 = vst [vmem:[#allocation3 + $0x48] sm:$0xf] %v578_v42  ;;  %v607_v16 = vrot.slane %v605_v62, 6  ;;  %v614_v56 = vshrl.u32 %v13401_v32, 16  ;;  %vm18196_vm9 = vmmov %vm18195_vm1  ;;  %v1850_v4 = vshll.u32 %v13472_v63, 16  ;;  %v1854_v40 = vshrl.u32 %v13472_v63, 16 }
  0x54   : > { %11609 = vmatpush3.bf16.msra.mxu0 %v13133_v11  ;;  %11576 = vmatprep.mubr.msk.bf16.mxu0 %vm18196_vm9, %v13404_v0  ;;  %v582_v46 = vsel %vm13271_vm11, %v573_v15, %v581_v5  ;;  %v610_v57 = vrot.slane %v608_v44, 7  ;;  %v572_v58 = vsel %vm13292_vm2, %v564_v54, %v571_v17  ;;  %v617_v11 = vshll.u32 %v13401_v32, 16  ;;  %v692_v0 = vld [vmem:[%s13122_s19 + $0xa0] sm:$0xff]  ;;  %v738_v54 = vld [vmem:[%s13122_s19 + $0xb0] sm:$0xff]  ;;  %v674_v17 = vld [vmem:[#allocation3 + $0x58] sm:$0xc] }
  0x55   : > { %583 = vst [vmem:[#allocation3 + $0x50] sm:$0x1] %v582_v46  ;;  %v616_v29 = vrot.slane %v614_v56, 6  ;;  %v13494_v9 = vrot.slane %v605_v62, 7  ;;  %vm18197_vm12 = vcmask 1041408   ;;  %v1852_v19 = vrot.slane %v1850_v4, 1 }
  0x56   : > { %12832 = vmatprep.subr.msk.bf16.mxu0 %vm18197_vm12, %v13464_v53  ;;  %vm18198_vm1 = vcmask 27648   ;;  %v611_v5 = vor.u32 %v610_v57, %v607_v16  ;;  %v653_v14 = vshrl.u32 %v13419_v50, 16  ;;  %v656_v25 = vshll.u32 %v13419_v50, 16  ;;  %v630_v50 = vld [vmem:[#allocation3 + $0x58] sm:$0x3] }
  0x57   : > { %580 = vst.msk [vmem:[#allocation3 + $0x4c] sm:$0xf] %vm18198_vm1, %v572_v58  ;;  %v546_v37 = vld [vmem:[#allocation3 + $0x44] sm:$0x8]  ;;  %v619_v30 = vrot.slane %v617_v11, 7  ;;  %v13504_v36 = vrot.slane %v617_v11, 10  ;;  %v1856_v42 = vor.u32 %v1854_v40, %v1852_v19  ;;  %vm18200_vm12 = vnez %v18115_v26 }
  0x58   : > { %v662_v32 = vshrl.u32 %v13421_v60, 16  ;;  %v665_v62 = vshll.u32 %v13421_v60, 16  ;;  %vm18199_vm9 = vsmask.f32 7424  ;;  %v547_v15 = vsel %vm13219_vm8, %v521_v8, %v546_v37 }
  0x59   : > { %v13509_v23 = vsel %vm18199_vm9, %v1848_v21, %v1852_v19  ;;  %v612_v44 = vrot.slane %v611_v5, 4  ;;  %548 = vst [vmem:[#allocation3 + $0x44] sm:$0x8] %v547_v15  ;;  %v620_v16 = vor.u32 %v619_v30, %v616_v29  ;;  %v627_v56 = vsel %vm18200_vm12, %v611_v5, %v626_v47  ;;  %v13517_v60 = vld [vmem:[#allocation3 + $0x38] sm:$0xff]   ;;  %v722_v15 = vld [vmem:[#allocation3 + $0x60] sm:$0x8] }
  0x5a   : > { %v655_v4 = vrot.slane %v653_v14, 5  ;;  %v658_v46 = vrot.slane %v656_v25, 6  ;;  %v587_v21 = vld [vmem:[#allocation3 + $0x48] sm:$0x1]  ;;  %628 = vst [vmem:[#allocation3 + $0x50] sm:$0xe] %v627_v56  ;;  %v11148_v57 = vpack.c.bf16 %v692_v0, %v692_v0  ;;  %v13519_v2 = vpack.c.bf16 %v693_v24, %v693_v24 }
  0x5b   : > { %v664_v40 = vrot.slane %v662_v32, 5  ;;  %v13521_v58 = vpack.c.bf16 %v738_v54, %v738_v54  ;;  %vm18201_vm1 = vcmask 31744   ;;  %v588_v8 = vsel %vm13271_vm11, %v558_v41, %v587_v21  ;;  %v678_v54 = vld [vmem:[#allocation3 + $0x60] sm:$0x7] }
  0x5c   : > { %11577 = vmatmul.mubr.msk.bf16.gmra.mrb[4].mxu0 %vm18201_vm1, %v13445_v31  ;;  %v621_v47 = vsel %vm13137_vm15, %v612_v44, %v620_v16  ;;  %v622_v29 = vrot.slane %v620_v16, 4  ;;  %v659_v11 = vor.u32 %v658_v46, %v655_v4  ;;  %vm18202_vm9 = vmmov %vm18201_vm1  ;;  %v1858_v0 = vshll.u32 %v13517_v60, 16  ;;  %589 = vst [vmem:[#allocation3 + $0x48] sm:$0x1] %v588_v8  ;;  %v593_v19 = vld [vmem:[#allocation3 + $0x50] sm:$0x1] }
  0x5d   : > { %11580 = vmatprep.mubr.msk.bf16.mxu0 %vm18202_vm9, %v13459_v61  ;;  %v1862_v24 = vshrl.u32 %v13517_v60, 16  ;;  %vm18203_vm1 = vcmask 27648   ;;  %v667_v3 = vrot.slane %v665_v62, 6  ;;  %v681_v31 = vrot.slane %v653_v14, 6  ;;  %v739_v44 = vld [vmem:[%s13122_s19 + $0xb8] sm:$0xff]  ;;  %v785_v4 = vld [vmem:[%s13122_s19 + $0xc0] sm:$0xff] }
  0x5e   : > { %629 = vst.msk [vmem:[#allocation3 + $0x54] sm:$0xf] %vm18203_vm1, %v621_v47  ;;  %v594_v41 = vsel %vm13350_vm14, %v13481_v34, %v593_v19  ;;  %v631_v5 = vsel %vm13173_vm7, %v622_v29, %v630_v50  ;;  %v660_v25 = vrot.slane %v659_v11, 4  ;;  %v675_v61 = vsel %vm13152_vm3, %v659_v11, %v674_v17 }
  0x5f   : > { %v1860_v37 = vrot.slane %v1858_v0, 1  ;;  %595 = vst [vmem:[#allocation3 + $0x50] sm:$0x1] %v594_v41  ;;  %632 = vst [vmem:[#allocation3 + $0x58] sm:$0x3] %v631_v5  ;;  %v668_v30 = vor.u32 %v667_v3, %v664_v40  ;;  %v13543_v32 = vrot.slane %v665_v62, 9 }
  0x60   : > { %676 = vst [vmem:[#allocation3 + $0x58] sm:$0xc] %v675_v61  ;;  %v701_v14 = vshll.u32 %v11148_v57, 16  ;;  %v704_v34 = vshrl.u32 %v11148_v57, 16  ;;  %v710_v16 = vshll.u32 %v13519_v2, 16  ;;  %v714_v50 = vshrl.u32 %v13519_v2, 16 }
  0x61   : > { %v747_v56 = vshrl.u32 %v13521_v58, 16  ;;  %vm18204_vm9 = vsmask.f32 7424  ;;  %v13551_v46 = vld [vmem:[#allocation3 + $0x40] sm:$0xff]   ;;  %v1864_v21 = vor.u32 %v1862_v24, %v1860_v37  ;;  %v669_v62 = vsel %vm18185_vm10, %v660_v25, %v668_v30  ;;  %v635_v8 = vld [vmem:[#allocation3 + $0x50] sm:$0x2] }
  0x62   : > { %v1861_v17 = vsel %vm18204_vm9, %v1856_v42, %v1860_v37  ;;  %v670_v40 = vrot.slane %v668_v30, 4  ;;  %677 = vst.msk [vmem:[#allocation3 + $0x5c] sm:$0xf] %vm18203_vm1, %v669_v62  ;;  %v703_v57 = vrot.slane %v701_v14, 5  ;;  %v706_v47 = vrot.slane %v704_v34, 4 }
  0x63   : > { %v712_v29 = vrot.slane %v710_v16, 5  ;;  %v13558_v11 = vrot.slane %v704_v34, 5  ;;  %v1866_v0 = vshll.u32 %v13551_v46, 16  ;;  %v1870_v42 = vshrl.u32 %v13551_v46, 16  ;;  %v13569_v3 = vld [vmem:[#allocation3 + $0x48] sm:$0xff]  }
  0x64   : > { %v636_v24 = vsel %vm18183_vm13, %v13494_v9, %v635_v8  ;;  %vm18205_vm9 = vnez %v18125_v52  ;;  %vm18206_vm1 = vcmask 31744   ;;  %v707_v41 = vor.u32 %v706_v47, %v703_v57  ;;  %v786_v8 = vld [vmem:[%s13122_s19 + $0xc8] sm:$0xff] }
  0x65   : > { %v679_v19 = vsel %vm18205_vm9, %v670_v40, %v678_v54  ;;  %11581 = vmatmul.mubr.msk.bf16.gmra.mrb[8].mxu0 %vm18206_vm1, %v13509_v23  ;;  %637 = vst [vmem:[#allocation3 + $0x50] sm:$0x2] %v636_v24  ;;  %v723_v5 = vsel %vm13219_vm8, %v703_v57, %v722_v15  ;;  %v716_v25 = vrot.slane %v714_v50, 4  ;;  %v13573_v61 = vpack.c.bf16 %v739_v44, %v739_v44  ;;  %vm18207_vm10 = vmmov %vm18206_vm1  ;;  %v726_v54 = vld [vmem:[#allocation3 + $0x68] sm:$0xf] }
  0x66   : > { %680 = vst [vmem:[#allocation3 + $0x60] sm:$0x7] %v679_v19  ;;  %11584 = vmatprep.mubr.msk.bf16.mxu0 %vm18207_vm10, %v1861_v17  ;;  %v1868_v9 = vrot.slane %v1866_v0, 1  ;;  %724 = vst [vmem:[#allocation3 + $0x60] sm:$0x8] %v723_v5  ;;  %v749_v23 = vrot.slane %v747_v56, 7  ;;  %v13579_v30 = vpack.c.bf16 %v785_v4, %v785_v4  ;;  %vm18209_vm1 = vnez %v18130_v1 }
  0x67   : > { %v750_v37 = vshll.u32 %v13521_v58, 16  ;;  %v1874_v14 = vshll.u32 %v13569_v3, 16  ;;  %v1878_v15 = vshrl.u32 %v13569_v3, 16  ;;  %v641_v44 = vld [vmem:[#allocation3 + $0x58] sm:$0x2]  ;;  %v717_v50 = vor.u32 %v716_v25, %v712_v29  ;;  %v833_v5 = vld [vmem:[%s13122_s19 + $0xd0] sm:$0xff] }
  0x68   : > { %v683_v34 = vld [vmem:[#allocation3 + $0x58] sm:$0x4]  ;;  %vm18208_vm10 = vsmask.f32 7424  ;;  %v1872_v62 = vor.u32 %v1870_v42, %v1868_v9  ;;  %v642_v40 = vsel %vm18209_vm1, %v13504_v36, %v641_v44  ;;  %vm18210_vm9 = vnez %v18137_v13  ;;  %v766_v19 = vld [vmem:[#allocation3 + $0x6c] sm:$0xf] }
  0x69   : > { %v1869_v17 = vsel %vm18208_vm10, %v1864_v21, %v1868_v9  ;;  %v684_v4 = vsel %vm18210_vm9, %v681_v31, %v683_v34  ;;  %v1876_v57 = vrot.slane %v1874_v14, 1  ;;  %643 = vst [vmem:[#allocation3 + $0x58] sm:$0x2] %v642_v40  ;;  %v708_v47 = vrot.slane %v707_v41, 4  ;;  %v834_v36 = vld [vmem:[%s13122_s19 + $0xd8] sm:$0xff] }
  0x6a   : > { %685 = vst [vmem:[#allocation3 + $0x58] sm:$0x4] %v684_v4  ;;  %v718_v0 = vrot.slane %v717_v50, 4  ;;  %v752_v24 = vor.u32 %v750_v37, %v749_v23  ;;  %v753_v25 = vrot.slane %v749_v23, 4  ;;  %v755_v21 = vshrl.u32 %v13573_v61, 16 }
  0x6b   : > { %v758_v42 = vshll.u32 %v13573_v61, 16  ;;  %v17934_v9 = vshrl.u32 %v13579_v30, 16  ;;  %v1877_v44 = vsel %vm18208_vm10, %v1872_v62, %v1876_v57  ;;  %v713_v31 = vsel %vm18190_vm0, %v708_v47, %v712_v29  ;;  %v770_v40 = vld [vmem:[#allocation3 + $0x74] sm:$0x1] }
  0x6c   : > { %v727_v41 = vsel %vm13254_vm5, %v718_v0, %v726_v54  ;;  %v13600_v14 = vpack.c.bf16 %v786_v8, %v786_v8  ;;  %v13602_v37 = vld [vmem:[#allocation3 + $0x50] sm:$0xff]   ;;  %vm18211_vm9 = vcmask 27648   ;;  %v767_v61 = vsel %vm13237_vm4, %v752_v24, %v766_v19 }
  0x6d   : > { %v689_v23 = vld [vmem:[#allocation3 + $0x60] sm:$0x4]  ;;  %725 = vst.msk [vmem:[#allocation3 + $0x64] sm:$0xf] %vm18211_vm9, %v713_v31  ;;  %728 = vst [vmem:[#allocation3 + $0x68] sm:$0xf] %v727_v41  ;;  %v13607_v50 = vpack.c.bf16 %v833_v5, %v833_v5  ;;  %v1880_v29 = vor.u32 %v1878_v15, %v1876_v57  ;;  %v13623_v5 = vpack.c.bf16 %v834_v36, %v834_v36 }
  0x6e   : > { %v757_v34 = vrot.slane %v755_v21, 7  ;;  %vm18212_vm10 = vcmask 31744   ;;  %v690_v54 = vsel %vm13265_vm6, %v13543_v32, %v689_v23  ;;  %v731_v62 = vld [vmem:[#allocation3 + $0x60] sm:$0x8]  ;;  %768 = vst [vmem:[#allocation3 + $0x6c] sm:$0xf] %v767_v61 }
  0x6f   : > { %11585 = vmatmul.mubr.msk.bf16.gmra.mrb[12].mxu0 %vm18212_vm10, %v1869_v17  ;;  %v796_v4 = vrot.slane %v17934_v9, 6  ;;  %v797_v8 = vshll.u32 %v13579_v30, 16  ;;  %vm18213_vm9 = vmmov %vm18212_vm10  ;;  %v1882_v47 = vshll.u32 %v13602_v37, 16  ;;  %v1886_v17 = vshrl.u32 %v13602_v37, 16  ;;  %691 = vst [vmem:[#allocation3 + $0x60] sm:$0x4] %v690_v54 }
  0x70   : > { %11588 = vmatprep.mubr.msk.bf16.mxu0 %vm18213_vm9, %v1877_v44  ;;  %vm18214_vm10 = vnez %v18167_v7  ;;  %v760_v15 = vor.u32 %v758_v42, %v757_v34  ;;  %v815_v57 = vld [vmem:[#allocation3 + $0x74] sm:$0xe]  ;;  %v762_v0 = vrot.slane %v757_v34, 4  ;;  %v803_v19 = vshrl.u32 %v13600_v14, 16  ;;  %v881_v21 = vld [vmem:[%s13122_s19 + $0xe0] sm:$0xff] }
  0x71   : > { %v732_v32 = vsel %vm18214_vm10, %v13558_v11, %v731_v62  ;;  %v799_v24 = vrot.slane %v797_v8, 7  ;;  %v1884_v44 = vrot.slane %v1882_v47, 1  ;;  %v13626_v31 = vld [vmem:[#allocation3 + $0x58] sm:$0xff]   ;;  %v806_v23 = vshll.u32 %v13600_v14, 16 }
  0x72   : > { %733 = vst [vmem:[#allocation3 + $0x60] sm:$0x8] %v732_v32  ;;  %v761_v41 = vsel %vm13292_vm2, %v753_v25, %v760_v15  ;;  %v842_v11 = vshrl.u32 %v13607_v50, 16  ;;  %vm18215_vm9 = vcmask 27648   ;;  %v771_v61 = vsel %vm13271_vm11, %v762_v0, %v770_v40  ;;  %v863_v0 = vld [vmem:[#allocation3 + $0x7c] sm:$0xc] }
  0x73   : > { %769 = vst.msk [vmem:[#allocation3 + $0x70] sm:$0xf] %vm18215_vm9, %v761_v41  ;;  %v800_v34 = vor.u32 %v799_v24, %v796_v4  ;;  %v805_v54 = vrot.slane %v803_v19, 6  ;;  %v845_v36 = vshll.u32 %v13607_v50, 16  ;;  %vm18216_vm6 = vsmask.f32 7424 }
  0x74   : > { %v1885_v62 = vsel %vm18216_vm6, %v1880_v29, %v1884_v44  ;;  %v1888_v8 = vor.u32 %v1886_v17, %v1884_v44  ;;  %v1890_v47 = vshll.u32 %v13626_v31, 16  ;;  %772 = vst [vmem:[#allocation3 + $0x74] sm:$0x1] %v771_v61  ;;  %v10559_v25 = vrot.slane %v758_v42, 11  ;;  %v735_v32 = vld [vmem:[#allocation3 + $0x68] sm:$0x8] }
  0x75   : > { %v816_v14 = vsel %vm18200_vm12, %v800_v34, %v815_v57  ;;  %v801_v15 = vrot.slane %v800_v34, 4  ;;  %v808_v41 = vrot.slane %v806_v23, 7  ;;  %v13640_v9 = vpack.c.bf16 %v881_v21, %v881_v21  ;;  %v776_v29 = vld [vmem:[#allocation3 + $0x6c] sm:$0x1]  ;;  %v819_v42 = vld [vmem:[#allocation3 + $0x7c] sm:$0x3] }
  0x76   : > { %v1892_v40 = vrot.slane %v1890_v47, 1  ;;  %v1894_v4 = vshrl.u32 %v13626_v31, 16  ;;  %v736_v50 = vsel %vm13219_vm8, %v710_v16, %v735_v32  ;;  %817 = vst [vmem:[#allocation3 + $0x74] sm:$0xe] %v816_v14  ;;  %v844_v17 = vrot.slane %v842_v11, 5 }
  0x77   : > { %vm18217_vm6 = vcmask 31744   ;;  %737 = vst [vmem:[#allocation3 + $0x68] sm:$0x8] %v736_v50  ;;  %v777_v57 = vsel %vm13271_vm11, %v747_v56, %v776_v29  ;;  %v18218_v24 = vshrl.u32 %v13579_v30, 16  ;;  %v809_v19 = vor.u32 %v808_v41, %v805_v54  ;;  %v911_v14 = vld [vmem:[#allocation3 + $0x84] sm:$0x8] }
  0x78   : > { %11589 = vmatmul.mubr.msk.bf16.gmra.mrb[16].mxu0 %vm18217_vm6, %v1885_v62  ;;  %v847_v21 = vrot.slane %v845_v36, 6  ;;  %vm18219_vm9 = vsmask.f32 7424  ;;  %778 = vst [vmem:[#allocation3 + $0x6c] sm:$0x1] %v777_v57  ;;  %v13657_v61 = vrot.slane %v806_v23, 10 }
  0x79   : > { %v822_v2 = vrot.slane %v18218_v24, 7  ;;  %v1893_v16 = vsel %vm18219_vm9, %v1888_v8, %v1892_v40  ;;  %v13655_v44 = vld [vmem:[#allocation3 + $0x60] sm:$0xff]   ;;  %v851_v34 = vshrl.u32 %v13623_v5, 16  ;;  %v17935_v58 = vshll.u32 %v13623_v5, 16  ;;  %v882_v62 = vld [vmem:[%s13122_s19 + $0xe8] sm:$0xff]  ;;  %v927_v41 = vld [vmem:[%s13122_s19 + $0xf0] sm:$0xff] }
  0x7a   : > { %11592 = vmatprep.mubr.msk.bf16.mxu0 %vm18217_vm6, %v1893_v16  ;;  %v810_v56 = vsel %vm13137_vm15, %v801_v15, %v809_v19  ;;  %v811_v30 = vrot.slane %v809_v19, 4  ;;  %v848_v54 = vor.u32 %v847_v21, %v844_v17  ;;  %v890_v36 = vshll.u32 %v13640_v9, 16  ;;  %v867_v19 = vld [vmem:[#allocation3 + $0x84] sm:$0x7] }
  0x7b   : > { %v1896_v8 = vor.u32 %v1894_v4, %v1892_v40  ;;  %v1898_v47 = vshll.u32 %v13655_v44, 16  ;;  %vm18220_vm9 = vcmask 27648   ;;  %v853_v23 = vrot.slane %v851_v34, 5  ;;  %v782_v29 = vld [vmem:[#allocation3 + $0x74] sm:$0x1] }
  0x7c   : > { %818 = vst.msk [vmem:[#allocation3 + $0x78] sm:$0xf] %vm18220_vm9, %v810_v56  ;;  %v856_v32 = vrot.slane %v17935_v58, 6  ;;  %v1902_v50 = vshrl.u32 %v13655_v44, 16  ;;  %v820_v15 = vsel %vm13173_vm7, %v811_v30, %v819_v42  ;;  %v864_v17 = vsel %vm13152_vm3, %v848_v54, %v863_v0 }
  0x7d   : > { %v849_v40 = vrot.slane %v848_v54, 4  ;;  %v1900_v4 = vrot.slane %v1898_v47, 1  ;;  %v783_v57 = vsel %vm13350_vm14, %v10559_v25, %v782_v29  ;;  %821 = vst [vmem:[#allocation3 + $0x7c] sm:$0x3] %v820_v15  ;;  %865 = vst [vmem:[#allocation3 + $0x7c] sm:$0xc] %v864_v17  ;;  %v13679_v58 = vpack.c.bf16 %v882_v62, %v882_v62 }
  0x7e   : > { %v857_v24 = vor.u32 %v856_v32, %v853_v23  ;;  %v892_v21 = vrot.slane %v890_v36, 5  ;;  %784 = vst [vmem:[#allocation3 + $0x74] sm:$0x1] %v783_v57  ;;  %v824_v16 = vld [vmem:[#allocation3 + $0x74] sm:$0x2]  ;;  %v870_v34 = vrot.slane %v842_v11, 6  ;;  %v13681_v42 = vpack.c.bf16 %v927_v41, %v927_v41 }
  0x7f   : > { %v893_v56 = vshrl.u32 %v13640_v9, 16  ;;  %vm18221_vm3 = vsmask.f32 7424  ;;  %v825_v0 = vsel %vm18183_vm13, %v822_v2, %v824_v16  ;;  %vm18222_vm6 = vnez %v18120_v39  ;;  %v13689_v30 = vld [vmem:[#allocation3 + $0x68] sm:$0xff]  }
  0x80   : > { %v1901_v35 = vsel %vm18221_vm3, %v1896_v8, %v1900_v4  ;;  %v858_v25 = vsel %vm18222_vm6, %v849_v40, %v857_v24  ;;  %vm18223_vm9 = vcmask 31744   ;;  %v1904_v54 = vor.u32 %v1902_v50, %v1900_v4  ;;  %826 = vst [vmem:[#allocation3 + $0x74] sm:$0x2] %v825_v0  ;;  %v955_v50 = vld [vmem:[#allocation3 + $0x90] sm:$0xf] }
  0x81   : > { %11593 = vmatmul.mubr.msk.bf16.gmra.mrb[20].mxu0 %vm18223_vm9, %v1901_v35  ;;  %v859_v11 = vrot.slane %v857_v24, 4  ;;  %vm18224_vm7 = vcmask 27648   ;;  %v912_v9 = vsel %vm13219_vm8, %v892_v21, %v911_v14  ;;  %v895_v62 = vrot.slane %v893_v56, 4  ;;  %v915_v0 = vld [vmem:[#allocation3 + $0x8c] sm:$0xf] }
  0x82   : > { %866 = vst.msk [vmem:[#allocation3 + $0x80] sm:$0xf] %vm18224_vm7, %v858_v25  ;;  %913 = vst [vmem:[#allocation3 + $0x84] sm:$0x8] %v912_v9  ;;  %v899_v36 = vshll.u32 %v13679_v58, 16  ;;  %v903_v2 = vshrl.u32 %v13679_v58, 16  ;;  %vm18225_vm3 = vnez %v18125_v52  ;;  %vm18226_vm7 = vnez %v18137_v13 }
  0x83   : > { %v936_v39 = vshrl.u32 %v13681_v42, 16  ;;  %v939_v8 = vshll.u32 %v13681_v42, 16  ;;  %v1906_v47 = vshll.u32 %v13689_v30, 16  ;;  %v868_v23 = vsel %vm18225_vm3, %v859_v11, %v867_v19 }
  0x84   : > { %v918_v32 = vrot.slane %v893_v56, 5  ;;  %v896_v41 = vor.u32 %v895_v62, %v892_v21  ;;  %v1910_v14 = vshrl.u32 %v13689_v30, 16  ;;  %869 = vst [vmem:[#allocation3 + $0x84] sm:$0x7] %v868_v23  ;;  %v901_v29 = vrot.slane %v899_v36, 5 }
  0x85   : > { %v905_v15 = vrot.slane %v903_v2, 4  ;;  %v13702_v17 = vrot.slane %v936_v39, 7  ;;  %v1908_v58 = vrot.slane %v1906_v47, 1  ;;  %v830_v40 = vld [vmem:[#allocation3 + $0x7c] sm:$0x2]  ;;  %v18228_v56 = vshll.u32 %v13623_v5, 16 }
  0x86   : > { %v872_v4 = vld [vmem:[#allocation3 + $0x7c] sm:$0x4]  ;;  %v897_v57 = vrot.slane %v896_v41, 4  ;;  %v831_v24 = vsel %vm18209_vm1, %v13657_v61, %v830_v40  ;;  %vm18227_vm6 = vsmask.f32 7424  ;;  %vm18229_vm3 = vcmask 27648  }
  0x87   : > { %v873_v52 = vsel %vm18226_vm7, %v870_v34, %v872_v4  ;;  %v906_v19 = vor.u32 %v905_v15, %v901_v29  ;;  %v941_v21 = vor.u32 %v939_v8, %v13702_v17  ;;  %v1909_v16 = vsel %vm18227_vm6, %v1904_v54, %v1908_v58  ;;  %832 = vst [vmem:[#allocation3 + $0x7c] sm:$0x2] %v831_v24  ;;  %v13716_v61 = vld [vmem:[#allocation3 + $0x70] sm:$0xff]  }
  0x88   : > { %874 = vst [vmem:[#allocation3 + $0x7c] sm:$0x4] %v873_v52  ;;  %v10565_v42 = vrot.slane %v18228_v56, 9  ;;  %v902_v35 = vsel %vm18190_vm0, %v897_v57, %v901_v29  ;;  %11596 = vmatprep.mubr.msk.bf16.mxu0 %vm18223_vm9, %v1909_v16  ;;  %v1912_v11 = vor.u32 %v1910_v14, %v1908_v58  ;;  %v1914_v5 = vshll.u32 %v13716_v61, 16 }
  0x89   : > { %v907_v25 = vrot.slane %v906_v19, 4  ;;  %914 = vst.msk [vmem:[#allocation3 + $0x88] sm:$0xf] %vm18229_vm3, %v902_v35  ;;  %v956_v34 = vsel %vm13237_vm4, %v941_v21, %v955_v50  ;;  %v920_v54 = vld [vmem:[#allocation3 + $0x84] sm:$0x8]  ;;  %v1918_v8 = vshrl.u32 %v13716_v61, 16  ;;  %vm18230_vm0 = vnez %v18152_v28  ;;  %vm18231_vm4 = vmmov %vm18227_vm6 }
  0x8a   : > { %957 = vst [vmem:[#allocation3 + $0x90] sm:$0xf] %v956_v34  ;;  %v921_v27 = vsel %vm18214_vm10, %v918_v32, %v920_v54  ;;  %v1916_v2 = vrot.slane %v1914_v5, 1  ;;  %vm18232_vm6 = vmmov %vm18223_vm9  ;;  %vm18242_vm13 = vcmask 1041408  }
  0x8b   : > { %v916_v9 = vsel %vm13254_vm5, %v907_v25, %v915_v0  ;;  %v878_v62 = vld [vmem:[#allocation3 + $0x84] sm:$0x4]  ;;  %922 = vst [vmem:[#allocation3 + $0x84] sm:$0x8] %v921_v27  ;;  %vm18233_vm5 = vmmov %vm18231_vm4  ;;  %v2501_v5 = vsel %vm18242_vm13, %v13464_v53, 0 }
  0x8c   : > { %917 = vst [vmem:[#allocation3 + $0x8c] sm:$0xf] %v916_v9  ;;  %v879_v22 = vsel %vm18230_vm0, %v10565_v42, %v878_v62  ;;  %v1917_v47 = vsel %vm18231_vm4, %v1912_v11, %v1916_v2  ;;  %v1920_v32 = vor.u32 %v1918_v8, %v1916_v2  ;;  %vm18234_vm9 = vmmov %vm18232_vm6  ;;  %v10650_v27 = vld [vmem:[%s17904_s1 + $0x6] sm:$0x3]  ;;  %v13052_v9 = vld [vmem:[#allocation3 + $0x10] sm:$0xff]  }
  0x8d   : > { %880 = vst [vmem:[#allocation3 + $0x84] sm:$0x4] %v879_v22  ;;  %11597 = vmatmul.mubr.msk.bf16.gmra.mrb[24].mxu0 %vm18232_vm6, %v1917_v47  ;;  %vm18235_vm3 = vmmov %vm18231_vm4  ;;  %v13053_v62 = vld [vmem:[#allocation3 + $0x18] sm:$0xff]  }
  0x8e   : > { %vm18236_vm4 = vmmov %vm18232_vm6  ;;  %v959_v47 = vld [vmem:[#allocation3 + $0x98] sm:$0x1] }
  0x8f   : > { %v13730_v23 = vld [vmem:[#allocation3 + $0x78] sm:$0xff]   ;;  %vm18237_vm6 = vmmov %vm18235_vm3 }
  0x90   : > { %v1922_v38 = vshll.u32 %v13730_v23, 16  ;;  %v1926_v29 = vshrl.u32 %v13730_v23, 16 }
  0x91   : > { %v965_v41 = vld [vmem:[#allocation3 + $0x90] sm:$0x1] }
  0x92   : > { %v966_v50 = vsel %vm13271_vm11, %v936_v39, %v965_v41  ;;  %v1924_v14 = vrot.slane %v1922_v38, 1  ;;  %v2410_v38 = vrot.slane %v13426_v12, 1 }
  0x93   : > { %v924_v15 = vld [vmem:[#allocation3 + $0x8c] sm:$0x8]  ;;  %967 = vst [vmem:[#allocation3 + $0x90] sm:$0x1] %v966_v50 }
  0x94   : > { %v925_v58 = vsel %vm13219_vm8, %v899_v36, %v924_v15  ;;  %v1925_v40 = vsel %vm18233_vm5, %v1920_v32, %v1924_v14  ;;  %v13740_v4 = vld [vmem:[#allocation3 + $0x80] sm:$0xff]   ;;  %v1928_v57 = vor.u32 %v1926_v29, %v1924_v14  ;;  %vm18238_vm5 = vmmov %vm18236_vm4  ;;  %v942_v14 = vrot.slane %v13702_v17, 4 }
  0x95   : > { %926 = vst [vmem:[#allocation3 + $0x8c] sm:$0x8] %v925_v58  ;;  %11600 = vmatprep.mubr.msk.bf16.mxu0 %vm18234_vm9, %v1925_v40  ;;  %v1930_v24 = vshll.u32 %v13740_v4, 16  ;;  %v1934_v39 = vshrl.u32 %v13740_v4, 16  ;;  %vm18239_vm9 = vmmov %vm18235_vm3  ;;  %v2412_v15 = vrot.slane %v13052_v9, 1  ;;  %v2414_v40 = vrot.slane %v13053_v62, 1 }
  0x97   : > { %v1932_v52 = vrot.slane %v1930_v24, 1 }
  0x99   : > { %v1933_v21 = vsel %vm18235_vm3, %v1928_v57, %v1932_v52  ;;  %v1936_v56 = vor.u32 %v1934_v39, %v1932_v52  ;;  %vm18240_vm3 = vmmov %vm18236_vm4 }
  0x9a   : > { %v13745_v19 = vld [vmem:[#allocation3 + $0x90] ss:$0 sps:$4 sm:$0x11]   ;;  %11601 = vmatmul.mubr.msk.bf16.gmra.mrb[28].mxu0 %vm18236_vm4, %v1933_v21  ;;  %vm18241_vm4 = vmmov %vm18240_vm3  ;;  %v13817_v21 = vld [vmem:[%s17904_s1 + $0x8] sm:$0x3] }
  0x9b   : > { %v1946_v16 = vshll.u32 %v13745_v19, 16  ;;  %vm18243_vm8 = vmmov %vm18240_vm3 }
  0x9c   : > { %v13749_v36 = vld [vmem:[#allocation3 + $0x88] sm:$0xff]   ;;  %vm18250_vm10 = vmmov %vm18240_vm3 }
  0x9d   : > { %v1938_v42 = vshll.u32 %v13749_v36, 16  ;;  %v1942_v35 = vshrl.u32 %v13749_v36, 16  ;;  %v1948_v25 = vrot.slane %v1946_v16, 1  ;;  %v2416_v16 = vrot.slane %v13054_v43, 1 }
  0x9f   : > { %v1940_v0 = vrot.slane %v1938_v42, 1 }
  0xa1   : > { %v1941_v34 = vsel %vm18237_vm6, %v1936_v56, %v1940_v0  ;;  %v1944_v54 = vor.u32 %v1942_v35, %v1940_v0  ;;  %vm18244_vm6 = vmmov %vm18240_vm3  ;;  %v13055_v56 = vld [vmem:[#allocation3 + $0x28] sm:$0xff]  }
  0xa2   : > { %11604 = vmatprep.mubr.msk.bf16.mxu0 %vm18238_vm5, %v1941_v34  ;;  %vm18245_vm5 = vmmov %vm18242_vm13  ;;  %v2418_v42 = vrot.slane %v13055_v56, 1  ;;  %v2422_v34 = vrot.slane %v13517_v60, 1  ;;  %v13902_v56 = vld [vmem:[%s17904_s1 + $0xa] sm:$0x3] }
  0xa3   : > { %v1949_v11 = vsel %vm18239_vm9, %v1944_v54, %v1948_v25  ;;  %vm18246_vm9 = vmmov %vm18240_vm3  ;;  %v2420_v25 = vrot.slane %v13472_v63, 1 }
  0xa4   : > { %11605 = vmatmul.mubr.msk.bf16.gmra.mrb[32].mxu0 %vm18240_vm3, %v1949_v11  ;;  %vm18247_vm13 = vmmov %vm18240_vm3 }
  0xa5   : > { %11610 = vmatprep.mubr.msk.bf16.mxu0 %vm18241_vm4, %v13424_v51  ;;  %vm18248_vm4 = vmmov %vm18240_vm3 }
  0xac   : > { %11611 = vmatmul.mubr.msk.bf16.vlgmr.msra.gmra.mrb[0].mxu0 %vm18243_vm8, %v13426_v12  ;;  %vm18249_vm8 = vmmov %vm18240_vm3 }
  0xad   : > { %11647 = vmatpush3.bf16.msra.mxu0 %v2501_v5  ;;  %11614 = vmatprep.mubr.msk.bf16.mxu0 %vm18244_vm6, %v13052_v9  ;;  %vm18251_vm6 = vmmov %vm18240_vm3  ;;  %v2424_v5 = vrot.slane %v13551_v46, 1 }
  0xae   : > { %12833 = vmatprep.subr.msk.bf16.mxu0 %vm18245_vm5, %v10650_v27  ;;  %vm18252_vm5 = vmmov %vm18240_vm3 }
  0xb4   : > { %11615 = vmatmul.mubr.msk.bf16.gmra.mrb[4].mxu0 %vm18246_vm9, %v13053_v62  ;;  %vm18253_vm9 = vmmov %vm18240_vm3 }
  0xb5   : > { %11618 = vmatprep.mubr.msk.bf16.mxu0 %vm18240_vm3, %v13406_v33  ;;  %v928_v33 = vld [vmem:[%s13122_s19 + $0xf8] sm:$0xff] }
  0xb6   : > { %v11159_v51 = vpack.c.bf16 %v928_v33, %v928_v33 }
  0xb8   : > { %v944_v53 = vshrl.u32 %v11159_v51, 16 }
  0xba   : > { %v946_v8 = vrot.slane %v944_v53, 7 }
  0xbc   : > { %11619 = vmatmul.mubr.msk.bf16.gmra.mrb[8].mxu0 %vm18247_vm13, %v13433_v6  ;;  %vm18254_vm13 = vmmov %vm18240_vm3  ;;  %v2402_v6 = vld [vmem:[#allocation3] sm:$0xe]  ;;  %v951_v22 = vrot.slane %v946_v8, 4 }
  0xbd   : > { %11622 = vmatprep.mubr.msk.bf16.mxu0 %vm18248_vm4, %v13472_v63  ;;  %vm18255_vm4 = vmmov %vm18240_vm3  ;;  %v10631_v2 = vcombine.low %v2402_v6, %v13414_v45  ;;  %v947_v45 = vshll.u32 %v11159_v51, 16  ;;  %v2428_v63 = vrot.slane %v13602_v37, 1 }
  0xbe   : > { %v960_v41 = vsel %vm13271_vm11, %v951_v22, %v959_v47  ;;  %v2716_v22 = vld [vmem:[#allocation3 + $0x8] sm:$0xe]  ;;  %v13859_v47 = vld [vmem:[#allocation3 + $0xc] sm:$0xf] }
  0xbf   : > { %v2409_v32 = vrot.slane %v10631_v2, 1  ;;  %961 = vst [vmem:[#allocation3 + $0x98] sm:$0x1] %v960_v41  ;;  %v949_v29 = vor.u32 %v947_v45, %v946_v8  ;;  %v10571_v58 = vrot.slane %v947_v45, 11  ;;  %v13873_v45 = vld [vmem:[#allocation3 + $0x88] sm:$0xf] }
  0xc1   : > { %v950_v12 = vsel %vm13292_vm2, %v942_v14, %v949_v29  ;;  %vm18262_vm2 = vmmov %vm18255_vm4  ;;  %v13876_v29 = vld [vmem:[#allocation3 + $0x18] sm:$0xff]  }
  0xc4   : > { %11623 = vmatmul.mubr.msk.bf16.gmra.mrb[12].mxu0 %vm18249_vm8, %v13517_v60  ;;  %vm18257_vm8 = vmmov %vm18240_vm3  ;;  %v2430_v60 = vrot.slane %v13626_v31, 1 }
  0xc5   : > { %11626 = vmatprep.mubr.msk.bf16.mxu0 %vm18250_vm10, %v13551_v46  ;;  %vm18256_vm10 = vmmov %vm18240_vm3  ;;  %v2432_v46 = vrot.slane %v13655_v44, 1 }
  0xc6   : > { %v971_v57 = vld [vmem:[#allocation3 + $0x98] sm:$0x1] }
  0xc7   : > { %v972_v24 = vsel %vm13350_vm14, %v10571_v58, %v971_v57  ;;  %v1006_v58 = vrot.slane %v13873_v45, 6  ;;  %v2851_v57 = vrot.slane %v13876_v29, 1 }
  0xc8   : > { %973 = vst [vmem:[#allocation3 + $0x98] sm:$0x1] %v972_v24 }
  0xcc   : > { %11627 = vmatmul.mubr.msk.bf16.gmra.mrb[16].mxu0 %vm18251_vm6, %v13569_v3  ;;  %vm17941_vm6 = vcmask 1046528  }
  0xcd   : > { %11630 = vmatprep.mubr.msk.bf16.mxu0 %vm18252_vm5, %v13602_v37  ;;  %v2411_v50 = vsel %vm17941_vm6, %v2409_v32, %v2410_v38  ;;  %vm18258_vm5 = vmmov %vm18240_vm3  ;;  %v2413_v52 = vsel %vm17941_vm6, %v2410_v38, %v2412_v15  ;;  %v2415_v39 = vsel %vm17941_vm6, %v2412_v15, %v2414_v40  ;;  %v2417_v35 = vsel %vm17941_vm6, %v2414_v40, %v2416_v16  ;;  %v13866_v38 = vld [vmem:[#allocation3 + $0x10] sm:$0xff]  }
  0xce   : > { %v2419_v0 = vsel %vm17941_vm6, %v2416_v16, %v2418_v42  ;;  %v2421_v54 = vsel %vm17941_vm6, %v2418_v42, %v2420_v25  ;;  %v2423_v11 = vsel %vm17941_vm6, %v2420_v25, %v2422_v34  ;;  %v2425_v9 = vsel %vm17941_vm6, %v2422_v34, %v2424_v5  ;;  %v13897_v16 = vld [vmem:[#allocation3 + $0x30] sm:$0xff]   ;;  %v13914_v34 = vld [vmem:[#allocation3 + $0x40] sm:$0xff]  }
  0xcf   : > { %v2431_v51 = vsel %vm17941_vm6, %v2428_v63, %v2430_v60  ;;  %v2433_v6 = vsel %vm17941_vm6, %v2430_v60, %v2432_v46  ;;  %v2436_v37 = vrot.slane %v13716_v61, 1  ;;  %v2849_v41 = vrot.slane %v13866_v38, 1 }
  0xd4   : > { %11631 = vmatmul.mubr.msk.bf16.gmra.mrb[20].mxu0 %vm18253_vm9, %v13626_v31  ;;  %vm18259_vm9 = vmmov %vm18240_vm3  ;;  %v2438_v31 = vrot.slane %v13730_v23, 1 }
  0xd5   : > { %11634 = vmatprep.mubr.msk.bf16.mxu0 %vm18240_vm3, %v13655_v44  ;;  %vm18260_vm3 = vcmask 27648   ;;  %v2440_v44 = vrot.slane %v13740_v4, 1 }
  0xd6   : > { %958 = vst.msk [vmem:[#allocation3 + $0x94] sm:$0xf] %vm18260_vm3, %v950_v12  ;;  %vm18267_vm3 = vmmov %vm18262_vm2  ;;  %v2439_v8 = vsel %vm17941_vm6, %v2436_v37, %v2438_v31  ;;  %v13880_v12 = vld [vmem:[#allocation3 + $0x20] sm:$0xff]  }
  0xd7   : > { %v2441_v32 = vsel %vm17941_vm6, %v2438_v31, %v2440_v44  ;;  %v2853_v24 = vrot.slane %v13880_v12, 1  ;;  %v13941_v31 = vld [vmem:[#allocation3 + $0x68] sm:$0xff]  }
  0xd9   : > { %v2854_v43 = vsel %vm17941_vm6, %v2851_v57, %v2853_v24 }
  0xdc   : > { %11635 = vmatmul.mubr.msk.bf16.gmra.mrb[24].mxu0 %vm18254_vm13, %v13689_v30  ;;  %vm18261_vm13 = vcmask 1041408  }
  0xdd   : > { %11638 = vmatprep.mubr.msk.bf16.mxu0 %vm18255_vm4, %v13716_v61  ;;  %v2940_v17 = vsel %vm18261_vm13, %v10650_v27, 0  ;;  %v2426_v27 = vrot.slane %v13569_v3, 1  ;;  %v2434_v3 = vrot.slane %v13689_v30, 1  ;;  %v2442_v30 = vrot.slane %v13749_v36, 1 }
  0xdf   : > { %v2427_v62 = vsel %vm17941_vm6, %v2424_v5, %v2426_v27  ;;  %v2429_v33 = vsel %vm17941_vm6, %v2426_v27, %v2428_v63  ;;  %v2435_v53 = vsel %vm17941_vm6, %v2432_v46, %v2434_v3  ;;  %v2437_v2 = vsel %vm17941_vm6, %v2434_v3, %v2436_v37  ;;  %v13921_v27 = vld [vmem:[#allocation3 + $0x48] sm:$0xff]   ;;  %v13934_v3 = vld [vmem:[#allocation3 + $0x60] sm:$0xff]  }
  0xe0   : > { %v2443_v61 = vsel %vm17941_vm6, %v2440_v44, %v2442_v30  ;;  %v2863_v63 = vrot.slane %v13921_v27, 1  ;;  %v2871_v44 = vrot.slane %v13941_v31, 1 }
  0xe4   : > { %11639 = vmatmul.mubr.msk.bf16.gmra.mrb[28].mxu0 %vm18256_vm10, %v13730_v23  ;;  %vm18263_vm10 = vmmov %vm18261_vm13  ;;  %v13864_v23 = vcombine.low %v2716_v22, %v13859_v47 }
  0xe5   : > { %11642 = vmatprep.mubr.msk.bf16.mxu0 %vm18257_vm8, %v13740_v4  ;;  %vm18264_vm8 = vmmov %vm18262_vm2  ;;  %v2444_v4 = vrot.slane %v13745_v19, 1 }
  0xe6   : > { %vm18268_vm13 = vmmov %vm18262_vm2 }
  0xe7   : > { %v2445_v14 = vsel %vm17941_vm6, %v2442_v30, %v2444_v4  ;;  %v13954_v4 = vld [vmem:[#allocation3 + $0x80] sm:$0xff]  }
  0xec   : > { %11643 = vmatmul.mubr.msk.bf16.gmra.mrb[32].mxu0 %vm18258_vm5, %v13749_v36  ;;  %vm18265_vm5 = vmmov %vm18262_vm2  ;;  %v2848_v36 = vrot.slane %v13864_v23, 1 }
  0xed   : > { %11648 = vmatprep.mubr.msk.bf16.mxu0 %vm18259_vm9, %v2411_v50  ;;  %vm18266_vm9 = vmmov %vm18262_vm2  ;;  %v998_v50 = vld [vmem:[#allocation3 + $0x84] sm:$0x8] }
  0xee   : > { %v10573_v15 = vrot.slane %v998_v50, 10  ;;  %v2850_v40 = vsel %vm17941_vm6, %v2848_v36, %v2849_v41 }
  0xf4   : > { %11649 = vmatmul.mubr.msk.bf16.vlgmr.msra.gmra.mrb[0].mxu0 %vm18255_vm4, %v2413_v52  ;;  %vm18269_vm4 = vmmov %vm18262_vm2  ;;  %v2852_v52 = vsel %vm17941_vm6, %v2849_v41, %v2851_v57  ;;  %v2877_v41 = vrot.slane %v13954_v4, 1 }
  0xf5   : > { %11685 = vmatpush3.bf16.msra.mxu0 %v2940_v17  ;;  %11652 = vmatprep.mubr.msk.bf16.mxu0 %vm18262_vm2, %v2415_v39  ;;  %v13892_v17 = vld [vmem:[#allocation3 + $0x28] sm:$0xff]  }
  0xf6   : > { %12834 = vmatprep.subr.msk.bf16.mxu0 %vm18263_vm10, %v13817_v21  ;;  %vm18270_vm10 = vmmov %vm18262_vm2  ;;  %v2855_v42 = vrot.slane %v13892_v17, 1 }
  0xfc   : > { %11653 = vmatmul.mubr.msk.bf16.gmra.mrb[4].mxu0 %vm18264_vm8, %v2417_v35  ;;  %vm18271_vm8 = vmmov %vm18262_vm2  ;;  %v2857_v35 = vrot.slane %v13897_v16, 1 }
  0xfd   : > { %11656 = vmatprep.mubr.msk.bf16.mxu0 %vm18265_vm5, %v2419_v0  ;;  %vm18272_vm5 = vmmov %vm18262_vm2  ;;  %v13911_v0 = vld [vmem:[#allocation3 + $0x38] sm:$0xff]  }
  0xfe   : > { %v2858_v25 = vsel %vm17941_vm6, %v2855_v42, %v2857_v35 }
 0x104   : > { %11657 = vmatmul.mubr.msk.bf16.gmra.mrb[8].mxu0 %vm18266_vm9, %v2421_v54  ;;  %vm18273_vm9 = vmmov %vm18262_vm2  ;;  %v2859_v54 = vrot.slane %v13911_v0, 1 }
 0x105   : > { %11660 = vmatprep.mubr.msk.bf16.mxu0 %vm18267_vm3, %v2423_v11  ;;  %vm18274_vm3 = vmmov %vm18262_vm2  ;;  %v2861_v11 = vrot.slane %v13914_v34, 1 }
 0x106   : > { %v2860_v5 = vsel %vm17941_vm6, %v2857_v35, %v2859_v54 }
 0x10c   : > { %11661 = vmatmul.mubr.msk.bf16.gmra.mrb[12].mxu0 %vm18268_vm13, %v2425_v9  ;;  %vm18275_vm13 = vmmov %vm18262_vm2  ;;  %v2862_v9 = vsel %vm17941_vm6, %v2859_v54, %v2861_v11 }
 0x10d   : > { %11664 = vmatprep.mubr.msk.bf16.mxu0 %vm18269_vm4, %v2427_v62  ;;  %vm18276_vm4 = vmmov %vm18262_vm2  ;;  %v13924_v62 = vld [vmem:[#allocation3 + $0x50] sm:$0xff]  }
 0x10e   : > { %v2865_v60 = vrot.slane %v13924_v62, 1 }
 0x110   : > { %v2866_v46 = vsel %vm17941_vm6, %v2863_v63, %v2865_v60 }
 0x114   : > { %11665 = vmatmul.mubr.msk.bf16.gmra.mrb[16].mxu0 %vm18262_vm2, %v2429_v33  ;;  %vm18277_vm2 = vnez %v18173_v48  ;;  %v2864_v33 = vsel %vm17941_vm6, %v2861_v11, %v2863_v63  ;;  %v3183_v63 = vshll.u32 %v13876_v29, 16 }
 0x115   : > { %11668 = vmatprep.mubr.msk.bf16.mxu0 %vm18270_vm10, %v2431_v51  ;;  %v1007_v19 = vsel %vm18277_vm2, %v10573_v15, %v1006_v58  ;;  %vm18278_vm10 = vmmov %vm18274_vm3  ;;  %v13931_v51 = vld [vmem:[#allocation3 + $0x58] sm:$0xff]   ;;  %v13963_v15 = vld [vmem:[#allocation3 + $0x90] sm:$0xff]  }
 0x116   : > { %v2881_v57 = vrot.slane %v13963_v15, 1 }
 0x11c   : > { %11669 = vmatmul.mubr.msk.bf16.gmra.mrb[20].mxu0 %vm18271_vm8, %v2433_v6  ;;  %vm18279_vm8 = vcmask 27649   ;;  %v2867_v6 = vrot.slane %v13931_v51, 1 }
 0x11d   : > { %11672 = vmatprep.mubr.msk.bf16.mxu0 %vm18272_vm5, %v2435_v53  ;;  %1016 = vst.msk [vmem:[#allocation3 + $0x98] sm:$0xe] %vm18279_vm8, %v1007_v19  ;;  %vm18280_vm5 = vmmov %vm18274_vm3  ;;  %v2869_v53 = vrot.slane %v13934_v3, 1 }
 0x11e   : > { %vm18285_vm8 = vmmov %vm18274_vm3  ;;  %v2868_v37 = vsel %vm17941_vm6, %v2865_v60, %v2867_v6 }
 0x11f   : > { %v2872_v22 = vsel %vm17941_vm6, %v2869_v53, %v2871_v44 }
 0x124   : > { %11673 = vmatmul.mubr.msk.bf16.gmra.mrb[24].mxu0 %vm18273_vm9, %v2437_v2  ;;  %vm18281_vm9 = vcmask 1041408   ;;  %v2870_v2 = vsel %vm17941_vm6, %v2867_v6, %v2869_v53  ;;  %v3192_v6 = vshll.u32 %v13880_v12, 16 }
 0x125   : > { %11676 = vmatprep.mubr.msk.bf16.mxu0 %vm18274_vm3, %v2439_v8  ;;  %v3387_v39 = vsel %vm18281_vm9, %v13817_v21, 0  ;;  %v2856_v21 = vsel %vm17941_vm6, %v2853_v24, %v2855_v42  ;;  %v13944_v8 = vld [vmem:[#allocation3 + $0x70] sm:$0xff]   ;;  %v3163_v24 = vshrl.u32 %v13864_v23, 16 }
 0x126   : > { %v2873_v30 = vrot.slane %v13944_v8, 1 }
 0x12c   : > { %11677 = vmatmul.mubr.msk.bf16.gmra.mrb[28].mxu0 %vm18275_vm13, %v2441_v32  ;;  %vm18282_vm13 = vmmov %vm18274_vm3  ;;  %v13951_v32 = vld [vmem:[#allocation3 + $0x78] sm:$0xff]  }
 0x12d   : > { %11680 = vmatprep.mubr.msk.bf16.mxu0 %vm18276_vm4, %v2443_v61  ;;  %vm18283_vm4 = vmmov %vm18281_vm9  ;;  %v2874_v61 = vsel %vm17941_vm6, %v2871_v44, %v2873_v30  ;;  %v2875_v36 = vrot.slane %v13951_v32, 1 }
 0x12e   : > { %vm18287_vm9 = vmmov %vm18274_vm3 }
 0x12f   : > { %v2876_v50 = vsel %vm17941_vm6, %v2873_v30, %v2875_v36 }
 0x134   : > { %11681 = vmatmul.mubr.msk.bf16.gmra.mrb[32].mxu0 %vm18278_vm10, %v2445_v14  ;;  %vm18284_vm10 = vmmov %vm18274_vm3  ;;  %v13961_v14 = vld [vmem:[#allocation3 + $0x88] sm:$0xff]  }
 0x135   : > { %11686 = vmatprep.mubr.msk.bf16.mxu0 %vm18280_vm5, %v2850_v40  ;;  %vm18286_vm5 = vmmov %vm18274_vm3  ;;  %v2878_v40 = vsel %vm17941_vm6, %v2875_v36, %v2877_v41  ;;  %v2879_v19 = vrot.slane %v13961_v14, 1  ;;  %v3198_v36 = vshrl.u32 %v13892_v17, 16 }
 0x137   : > { %v2880_v42 = vsel %vm17941_vm6, %v2877_v41, %v2879_v19  ;;  %v2882_v35 = vsel %vm17941_vm6, %v2879_v19, %v2881_v57  ;;  %v3201_v41 = vshll.u32 %v13892_v17, 16  ;;  %v3210_v19 = vshll.u32 %v13897_v16, 16 }
 0x13c   : > { %11687 = vmatmul.mubr.msk.bf16.vlgmr.msra.gmra.mrb[0].mxu0 %vm18274_vm3, %v2852_v52  ;;  %v3166_v52 = vshll.u32 %v13864_v23, 16  ;;  %v3180_v23 = vshrl.u32 %v13876_v29, 16 }
 0x13d   : > { %11723 = vmatpush3.bf16.msra.mxu0 %v3387_v39  ;;  %11690 = vmatprep.mubr.msk.bf16.mxu0 %vm18282_vm13, %v2854_v43  ;;  %vm18288_vm13 = vmmov %vm18274_vm3  ;;  %v3171_v39 = vshrl.u32 %v13866_v38, 16  ;;  %v3174_v43 = vshll.u32 %v13866_v38, 16 }
 0x13e   : > { %12835 = vmatprep.subr.msk.bf16.mxu0 %vm18283_vm4, %v13902_v56  ;;  %vm18289_vm4 = vmmov %vm18274_vm3  ;;  %v3168_v54 = vrot.slane %v3166_v52, 2  ;;  %v3203_v52 = vrot.slane %v3201_v41, 2 }
 0x13f   : > { %v3173_v11 = vrot.slane %v3171_v39, 1 }
 0x144   : > { %11691 = vmatmul.mubr.msk.bf16.gmra.mrb[4].mxu0 %vm18284_vm10, %v2856_v21  ;;  %vm18290_vm10 = vmmov %vm18274_vm3  ;;  %v12966_v21 = vld [vmem:[#allocation3 + $0x98] ss:$0 sps:$4 sm:$0x11]  }
 0x145   : > { %11694 = vmatprep.mubr.msk.bf16.mxu0 %vm18285_vm8, %v2858_v25  ;;  %vm18291_vm8 = vmmov %vm18274_vm3  ;;  %v3165_v25 = vrot.slane %v3163_v24, 1  ;;  %v3200_v24 = vrot.slane %v3198_v36, 1 }
 0x147   : > { %v3169_v60 = vor.u32 %v3168_v54, %v3165_v25  ;;  %v3204_v25 = vor.u32 %v3203_v52, %v3200_v24  ;;  %v3216_v54 = vshrl.u32 %v13911_v0, 16  ;;  %v3252_v24 = vshrl.u32 %v13931_v51, 16 }
 0x148   : > { %v3255_v52 = vshll.u32 %v13931_v51, 16 }
 0x14c   : > { %11695 = vmatmul.mubr.msk.bf16.gmra.mrb[8].mxu0 %vm18286_vm5, %v2860_v5  ;;  %vm18292_vm5 = vmmov %vm18274_vm3  ;;  %v3176_v5 = vrot.slane %v3174_v43, 2 }
 0x14d   : > { %11698 = vmatprep.mubr.msk.bf16.mxu0 %vm18287_vm9, %v2862_v9  ;;  %vm18293_vm9 = vmmov %vm18274_vm3  ;;  %v2883_v9 = vrot.slane %v12966_v21, 1  ;;  %v13997_v21 = vld [vmem:[%s17904_s1 + $0xc] sm:$0x3] }
 0x14f   : > { %v2884_v53 = vsel %vm17941_vm6, %v2881_v57, %v2883_v9  ;;  %v3228_v9 = vshll.u32 %v13914_v34, 16 }
 0x154   : > { %11699 = vmatmul.mubr.msk.bf16.gmra.mrb[12].mxu0 %vm18274_vm3, %v2864_v33  ;;  %v3177_v33 = vor.u32 %v3176_v5, %v3173_v11  ;;  %v3219_v11 = vshll.u32 %v13911_v0, 16  ;;  %v3225_v5 = vshrl.u32 %v13914_v34, 16 }
 0x155   : > { %11702 = vmatprep.mubr.msk.bf16.mxu0 %vm18288_vm13, %v2866_v46  ;;  %vm18294_vm13 = vmmov %vm18274_vm3  ;;  %v3189_v46 = vshrl.u32 %v13880_v12, 16 }
 0x157   : > { %v3191_v30 = vrot.slane %v3189_v46, 1  ;;  %v3227_v46 = vrot.slane %v3225_v5, 1 }
 0x15c   : > { %11703 = vmatmul.mubr.msk.bf16.gmra.mrb[16].mxu0 %vm18289_vm4, %v2868_v37  ;;  %vm18295_vm4 = vmmov %vm18274_vm3  ;;  %v3182_v37 = vrot.slane %v3180_v23, 1 }
 0x15d   : > { %11706 = vmatprep.mubr.msk.bf16.mxu0 %vm18290_vm10, %v2870_v2  ;;  %vm17945_vm10 = vsmask.f32 6400  ;;  %v3185_v2 = vrot.slane %v3183_v63, 2  ;;  %v3218_v63 = vrot.slane %v3216_v54, 1  ;;  %v3257_v54 = vrot.slane %v3255_v52, 2 }
 0x15e   : > { %v3178_v44 = vsel %vm17945_vm10, %v3169_v60, %v3177_v33  ;;  %v3221_v60 = vrot.slane %v3219_v11, 2 }
 0x164   : > { %11707 = vmatmul.mubr.msk.bf16.gmra.mrb[20].mxu0 %vm18291_vm8, %v2872_v22  ;;  %v3194_v22 = vrot.slane %v3192_v6, 2  ;;  %vm18296_vm8 = vmmov %vm18274_vm3  ;;  %v3230_v6 = vrot.slane %v3228_v9, 2 }
 0x165   : > { %11710 = vmatprep.mubr.msk.bf16.mxu0 %vm18292_vm5, %v2874_v61  ;;  %vm18297_vm5 = vmmov %vm18274_vm3  ;;  %v3186_v61 = vor.u32 %v3185_v2, %v3182_v37  ;;  %v3234_v37 = vshrl.u32 %v13921_v27, 16  ;;  %v3237_v2 = vshll.u32 %v13921_v27, 16 }
 0x167   : > { %v3187_v57 = vsel %vm17945_vm10, %v3177_v33, %v3186_v61  ;;  %v3236_v36 = vrot.slane %v3234_v37, 1  ;;  %v3239_v41 = vrot.slane %v3237_v2, 2 }
 0x16c   : > { %11711 = vmatmul.mubr.msk.bf16.gmra.mrb[24].mxu0 %vm18293_vm9, %v2876_v50  ;;  %v3195_v50 = vor.u32 %v3194_v22, %v3191_v30  ;;  %vm18298_vm9 = vcmask 1041408   ;;  %v3243_v30 = vshrl.u32 %v13924_v62, 16  ;;  %v3246_v22 = vshll.u32 %v13924_v62, 16 }
 0x16d   : > { %11714 = vmatprep.mubr.msk.bf16.mxu0 %vm18274_vm3, %v2878_v40  ;;  %v3207_v40 = vshrl.u32 %v13897_v16, 16  ;;  %v3701_v39 = vsel %vm18298_vm9, %v13902_v56, 0 }
 0x16e   : > { %v3196_v43 = vsel %vm17945_vm10, %v3186_v61, %v3195_v50  ;;  %v3205_v23 = vsel %vm17945_vm10, %v3195_v50, %v3204_v25 }
 0x174   : > { %11715 = vmatmul.mubr.msk.bf16.gmra.mrb[28].mxu0 %vm18294_vm13, %v2880_v42  ;;  %v3209_v42 = vrot.slane %v3207_v40, 1  ;;  %vm18299_vm13 = vmmov %vm18274_vm3  ;;  %v3245_v40 = vrot.slane %v3243_v30, 1 }
 0x175   : > { %11718 = vmatprep.mubr.msk.bf16.mxu0 %vm18295_vm4, %v2882_v35  ;;  %v3212_v35 = vrot.slane %v3210_v19, 2  ;;  %vm18300_vm4 = vmmov %vm18298_vm9  ;;  %v3248_v19 = vrot.slane %v3246_v22, 2 }
 0x176   : > { %vm18303_vm9 = vmmov %vm18274_vm3 }
 0x177   : > { %v3213_v56 = vor.u32 %v3212_v35, %v3209_v42  ;;  %v3264_v42 = vshll.u32 %v13934_v3, 16 }
 0x179   : > { %v3214_v33 = vsel %vm17945_vm10, %v3204_v25, %v3213_v56  ;;  %v3254_v25 = vrot.slane %v3252_v24, 1  ;;  %v3266_v5 = vrot.slane %v3264_v42, 2 }
 0x17b   : > { %v3258_v9 = vor.u32 %v3257_v54, %v3254_v25  ;;  %v3309_v25 = vshll.u32 %v13961_v14, 16 }
 0x17c   : > { %11719 = vmatmul.mubr.msk.bf16.gmra.mrb[32].mxu0 %vm18296_vm8, %v2884_v53  ;;  %vm18301_vm8 = vmmov %vm18274_vm3  ;;  %v3222_v53 = vor.u32 %v3221_v60, %v3218_v63  ;;  %v3273_v63 = vshll.u32 %v13941_v31, 16 }
 0x17d   : > { %11724 = vmatprep.mubr.msk.bf16.mxu0 %vm18297_vm5, %v3178_v44  ;;  %vm18302_vm5 = vmmov %vm18274_vm3  ;;  %v3231_v44 = vor.u32 %v3230_v6, %v3227_v46  ;;  %v3282_v46 = vshll.u32 %v13944_v8, 16 }
 0x17e   : > { %v3223_v61 = vsel %vm17945_vm10, %v3213_v56, %v3222_v53  ;;  %v3275_v37 = vrot.slane %v3273_v63, 2  ;;  %v14048_v63 = vld [vmem:[#allocation3 + $0x98] ss:$0 sps:$4 sm:$0x33]  }
 0x17f   : > { %v3232_v50 = vsel %vm17945_vm10, %v3222_v53, %v3231_v44  ;;  %v3284_v30 = vrot.slane %v3282_v46, 2 }
 0x184   : > { %11725 = vmatmul.mubr.msk.bf16.vlgmr.msra.gmra.mrb[0].mxu0 %vm18274_vm3, %v3187_v57  ;;  %v3240_v57 = vor.u32 %v3239_v41, %v3236_v36  ;;  %v3291_v36 = vshll.u32 %v13951_v32, 16 }
 0x185   : > { %11761 = vmatpush3.bf16.msra.mxu0 %v3701_v39  ;;  %11728 = vmatprep.mubr.msk.bf16.mxu0 %vm18299_vm13, %v3196_v43  ;;  %v3249_v39 = vor.u32 %v3248_v19, %v3245_v40  ;;  %v3261_v43 = vshrl.u32 %v13934_v3, 16  ;;  %vm18304_vm13 = vmmov %vm18274_vm3  ;;  %v3300_v40 = vshll.u32 %v13954_v4, 16 }
 0x186   : > { %12836 = vmatprep.subr.msk.bf16.mxu0 %vm18300_vm4, %v13997_v21  ;;  %v3241_v35 = vsel %vm17945_vm10, %v3231_v44, %v3240_v57  ;;  %vm18305_vm4 = vmmov %vm18274_vm3  ;;  %v3293_v24 = vrot.slane %v3291_v36, 2 }
 0x187   : > { %v3250_v11 = vsel %vm17945_vm10, %v3240_v57, %v3249_v39  ;;  %v3263_v56 = vrot.slane %v3261_v43, 1  ;;  %v3259_v6 = vsel %vm17945_vm10, %v3249_v39, %v3258_v9  ;;  %v3302_v43 = vrot.slane %v3300_v40, 2 }
 0x189   : > { %v3267_v60 = vor.u32 %v3266_v5, %v3263_v56  ;;  %v3318_v56 = vshll.u32 %v13963_v15, 16 }
 0x18b   : > { %v3268_v2 = vsel %vm17945_vm10, %v3258_v9, %v3267_v60  ;;  %v3320_v46 = vrot.slane %v3318_v56, 2  ;;  %v3620_v56 = vrot.slane %v13911_v0, 2  ;;  %v3628_v0 = vrot.slane %v13931_v51, 2 }
 0x18c   : > { %11729 = vmatmul.mubr.msk.bf16.gmra.mrb[4].mxu0 %vm18301_vm8, %v3205_v23  ;;  %v3270_v23 = vshrl.u32 %v13941_v31, 16  ;;  %vm18306_vm8 = vmmov %vm18274_vm3  ;;  %v3636_v51 = vrot.slane %v13951_v32, 2 }
 0x18d   : > { %11732 = vmatprep.mubr.msk.bf16.mxu0 %vm18302_vm5, %v3214_v33  ;;  %v3279_v33 = vshrl.u32 %v13944_v8, 16  ;;  %vm18307_vm5 = vmmov %vm18274_vm3 }
 0x18e   : > { %v3272_v53 = vrot.slane %v3270_v23, 1  ;;  %v3311_v23 = vrot.slane %v3309_v25, 2 }
 0x18f   : > { %v3281_v44 = vrot.slane %v3279_v33, 1 }
 0x190   : > { %v3276_v22 = vor.u32 %v3275_v37, %v3272_v53  ;;  %v3324_v53 = vshrl.u32 %v14048_v63, 16  ;;  %v3327_v37 = vshll.u32 %v14048_v63, 16 }
 0x191   : > { %v3285_v41 = vor.u32 %v3284_v30, %v3281_v44  ;;  %v3602_v44 = vld [vmem:[#allocation3 + $0x8] sm:$0xc] }
 0x192   : > { %v3277_v19 = vsel %vm17945_vm10, %v3267_v60, %v3276_v22 }
 0x193   : > { %v3286_v52 = vsel %vm17945_vm10, %v3276_v22, %v3285_v41  ;;  %v3326_v22 = vrot.slane %v3324_v53, 1 }
 0x194   : > { %11733 = vmatmul.mubr.msk.bf16.gmra.mrb[8].mxu0 %vm18303_vm9, %v3223_v61  ;;  %v3288_v61 = vshrl.u32 %v13951_v32, 16  ;;  %vm18308_vm9 = vmmov %vm18274_vm3 }
 0x195   : > { %11736 = vmatprep.mubr.msk.bf16.mxu0 %vm18274_vm3, %v3232_v50  ;;  %v3297_v50 = vshrl.u32 %v13954_v4, 16 }
 0x196   : > { %v3290_v57 = vrot.slane %v3288_v61, 1  ;;  %v3329_v61 = vrot.slane %v3327_v37, 2 }
 0x197   : > { %v3299_v39 = vrot.slane %v3297_v50, 1 }
 0x198   : > { %v3294_v42 = vor.u32 %v3293_v24, %v3290_v57  ;;  %v3330_v50 = vor.u32 %v3329_v61, %v3326_v22  ;;  %v14124_v22 = vld [vmem:[#allocation3 + $0x14] sm:$0xf] }
 0x199   : > { %v3303_v54 = vor.u32 %v3302_v43, %v3299_v39  ;;  %v1008_v39 = vrot.slane %v1006_v58, 4  ;;  %v3612_v43 = vrot.slane %v13876_v29, 2  ;;  %v14080_v29 = vld [vmem:[%s17904_s1 + $0xe] sm:$0x3] }
 0x19a   : > { %v3295_v5 = vsel %vm17945_vm10, %v3285_v41, %v3294_v42  ;;  %v10709_v41 = vcombine.low %v3602_v44, %v13859_v47 }
 0x19b   : > { %v3304_v60 = vsel %vm17945_vm10, %v3294_v42, %v3303_v54  ;;  %v3614_v42 = vrot.slane %v13880_v12, 2  ;;  %v3616_v12 = vrot.slane %v13892_v17, 2 }
 0x19c   : > { %11737 = vmatmul.mubr.msk.bf16.gmra.mrb[12].mxu0 %vm18304_vm13, %v3241_v35  ;;  %v3306_v35 = vshrl.u32 %v13961_v14, 16  ;;  %vm18309_vm13 = vmmov %vm18274_vm3  ;;  %v3609_v40 = vrot.slane %v10709_v41, 2 }
 0x19d   : > { %11740 = vmatprep.mubr.msk.bf16.mxu0 %vm18305_vm4, %v3250_v11  ;;  %v3315_v11 = vshrl.u32 %v13963_v15, 16  ;;  %vm18310_vm4 = vmmov %vm18274_vm3 }
 0x19e   : > { %v3308_v9 = vrot.slane %v3306_v35, 1 }
 0x19f   : > { %v3317_v33 = vrot.slane %v3315_v11, 1 }
 0x1a4   : > { %11741 = vmatmul.mubr.msk.bf16.gmra.mrb[16].mxu0 %vm18306_vm8, %v3259_v6  ;;  %v3312_v6 = vor.u32 %v3311_v23, %v3308_v9  ;;  %vm18311_vm8 = vmmov %vm18274_vm3  ;;  %v3626_v23 = vrot.slane %v13924_v62, 2  ;;  %v3634_v62 = vrot.slane %v13944_v8, 2  ;;  %v3642_v8 = vrot.slane %v13963_v15, 2 }
 0x1a5   : > { %11744 = vmatprep.mubr.msk.bf16.mxu0 %vm18307_vm5, %v3268_v2  ;;  %v3321_v2 = vor.u32 %v3320_v46, %v3317_v33  ;;  %vm18312_vm5 = vmmov %vm18274_vm3 }
 0x1a6   : > { %v3313_v30 = vsel %vm17945_vm10, %v3303_v54, %v3312_v6  ;;  %v3618_v54 = vrot.slane %v13897_v16, 2  ;;  %v3624_v16 = vrot.slane %v13921_v27, 2  ;;  %v3632_v27 = vrot.slane %v13941_v31, 2 }
 0x1a7   : > { %v3322_v36 = vsel %vm17945_vm10, %v3312_v6, %v3321_v2  ;;  %v3331_v57 = vsel %vm17945_vm10, %v3321_v2, %v3330_v50  ;;  %v3640_v31 = vrot.slane %v13961_v14, 2  ;;  %v3644_v14 = vrot.slane %v14048_v63, 2 }
 0x1ac   : > { %11745 = vmatmul.mubr.msk.bf16.gmra.mrb[20].mxu0 %vm18308_vm9, %v3277_v19  ;;  %v3610_v19 = vrot.slane %v13866_v38, 2  ;;  %vm17944_vm9 = vcmask 1045504  }
 0x1ad   : > { %11748 = vmatprep.mubr.msk.bf16.mxu0 %vm18274_vm3, %v3286_v52  ;;  %v1000_v52 = vld [vmem:[#allocation3 + $0x8c] sm:$0xf]  ;;  %v3615_v58 = vsel %vm17944_vm9, %v3612_v43, %v3614_v42  ;;  %v3619_v11 = vsel %vm17944_vm9, %v3616_v12, %v3618_v54  ;;  %v3621_v9 = vsel %vm17944_vm9, %v3618_v54, %v3620_v56  ;;  %v3627_v33 = vsel %vm17944_vm9, %v3624_v16, %v3626_v23 }
 0x1ae   : > { %v3611_v24 = vsel %vm17944_vm9, %v3609_v40, %v3610_v19  ;;  %v1009_v47 = vrot.slane %v1000_v52, 6  ;;  %v3613_v25 = vsel %vm17944_vm9, %v3610_v19, %v3612_v43  ;;  %v3629_v46 = vsel %vm17944_vm9, %v3626_v23, %v3628_v0  ;;  %v14139_v40 = vld [vmem:[#allocation3 + $0x20] sm:$0xff]  }
 0x1af   : > { %v3635_v37 = vsel %vm17944_vm9, %v3632_v27, %v3634_v62  ;;  %v3637_v2 = vsel %vm17944_vm9, %v3634_v62, %v3636_v51  ;;  %v3643_v32 = vsel %vm17944_vm9, %v3640_v31, %v3642_v8  ;;  %v3645_v50 = vsel %vm17944_vm9, %v3642_v8, %v3644_v14 }
 0x1b0   : > { %v1010_v38 = vsel %vm18277_vm2, %v1008_v39, %v1009_v47  ;;  %v1011_v35 = vrot.slane %v1009_v47, 4  ;;  %v14149_v39 = vld [vmem:[#allocation3 + $0x30] sm:$0xff]  }
 0x1b4   : > { %11749 = vmatmul.mubr.msk.bf16.gmra.mrb[24].mxu0 %vm18309_vm13, %v3295_v5  ;;  %vm18313_vm13 = vmmov %vm18274_vm3  ;;  %v3622_v5 = vrot.slane %v13914_v34, 2  ;;  %v3630_v34 = vrot.slane %v13934_v3, 2  ;;  %v3638_v3 = vrot.slane %v13954_v4, 2 }
 0x1b5   : > { %11752 = vmatprep.mubr.msk.bf16.mxu0 %vm18310_vm4, %v3304_v60  ;;  %vm18314_vm4 = vcmask 27648  }
 0x1b6   : > { %1017 = vst.msk [vmem:[#allocation3 + $0x9c] sm:$0xf] %vm18314_vm4, %v1010_v38  ;;  %v3623_v17 = vsel %vm17944_vm9, %v3620_v56, %v3622_v5  ;;  %v3625_v60 = vsel %vm17944_vm9, %v3622_v5, %v3624_v16  ;;  %v3631_v6 = vsel %vm17944_vm9, %v3628_v0, %v3630_v34  ;;  %v3633_v53 = vsel %vm17944_vm9, %v3630_v34, %v3632_v27  ;;  %v14159_v38 = vld [vmem:[%s17904_s1 + $0x10] sm:$0x3]  ;;  %v14191_v0 = vld [vmem:[#allocation3 + $0x68] sm:$0xff]  }
 0x1b7   : > { %v3639_v44 = vsel %vm17944_vm9, %v3636_v51, %v3638_v3  ;;  %v3641_v61 = vsel %vm17944_vm9, %v3638_v3, %v3640_v31  ;;  %v14178_v56 = vld [vmem:[#allocation3 + $0x50] sm:$0xff]   ;;  %v14211_v31 = vld [vmem:[#allocation3 + $0x88] sm:$0xff]  }
 0x1b8   : > { %v14198_v27 = vld [vmem:[#allocation3 + $0x70] sm:$0xff]  }
 0x1bc   : > { %11753 = vmatmul.mubr.msk.bf16.gmra.mrb[28].mxu0 %vm18311_vm8, %v3313_v30  ;;  %vm18315_vm8 = vcmask 25600   ;;  %v3916_v30 = vld [vmem:[#allocation3 + $0x10] sm:$0xc] }
 0x1bd   : > { %11756 = vmatprep.mubr.msk.bf16.mxu0 %vm18312_vm5, %v3322_v36  ;;  %1018 = vst.msk [vmem:[#allocation3 + $0xa0] sm:$0x3] %vm18315_vm8, %v1011_v35  ;;  %vm18316_vm5 = vcmask 1041408   ;;  %vm18319_vm8 = vmmov %vm18274_vm3  ;;  %v14129_v4 = vcombine.low %v3916_v30, %v14124_v22  ;;  %v14131_v36 = vld [vmem:[#allocation3 + $0x18] sm:$0xff]   ;;  %v4055_v35 = vrot.slane %v14149_v39, 2  ;;  %v4077_v30 = vrot.slane %v14211_v31, 2 }
 0x1be   : > { %v4140_v45 = vsel %vm18316_vm5, %v13997_v21, 0  ;;  %vm18318_vm4 = vmmov %vm18316_vm5  ;;  %v3617_v21 = vsel %vm17944_vm9, %v3614_v42, %v3616_v12  ;;  %v4049_v41 = vrot.slane %v14131_v36, 2  ;;  %v14154_v42 = vld [vmem:[#allocation3 + $0x38] sm:$0xff]   ;;  %v14171_v12 = vld [vmem:[#allocation3 + $0x48] sm:$0xff]  }
 0x1bf   : > { %vm18320_vm5 = vmmov %vm18274_vm3  ;;  %v4048_v15 = vrot.slane %v14129_v4, 2  ;;  %v14220_v14 = vld [vmem:[#allocation3 + $0x98] sm:$0xff]  }
 0x1c1   : > { %v4050_v19 = vsel %vm17944_vm9, %v4048_v15, %v4049_v41 }
 0x1c4   : > { %11757 = vmatmul.mubr.msk.bf16.gmra.mrb[32].mxu0 %vm18274_vm3, %v3331_v57  ;;  %v14142_v57 = vld [vmem:[#allocation3 + $0x28] sm:$0xff]  }
 0x1c5   : > { %11762 = vmatprep.mubr.msk.bf16.mxu0 %vm18313_vm13, %v3611_v24  ;;  %vm18317_vm13 = vmmov %vm18274_vm3  ;;  %v4051_v24 = vrot.slane %v14139_v40, 2  ;;  %v4053_v63 = vrot.slane %v14142_v57, 2 }
 0x1c7   : > { %v4052_v52 = vsel %vm17944_vm9, %v4049_v41, %v4051_v24  ;;  %v4054_v43 = vsel %vm17944_vm9, %v4051_v24, %v4053_v63  ;;  %v4366_v24 = vshll.u32 %v14129_v4, 16 }
 0x1cc   : > { %11763 = vmatmul.mubr.msk.bf16.vlgmr.msra.gmra.mrb[0].mxu0 %vm18274_vm3, %v3613_v25  ;;  %v4057_v25 = vrot.slane %v14154_v42, 2 }
 0x1cd   : > { %11799 = vmatpush3.bf16.msra.mxu0 %v4140_v45  ;;  %11766 = vmatprep.mubr.msk.bf16.mxu0 %vm18317_vm13, %v3615_v58  ;;  %vm18321_vm13 = vmmov %vm18274_vm3  ;;  %v4056_v45 = vsel %vm17944_vm9, %v4053_v63, %v4055_v35  ;;  %v14168_v58 = vld [vmem:[#allocation3 + $0x40] sm:$0xff]   ;;  %v4371_v63 = vshrl.u32 %v14131_v36, 16 }
 0x1ce   : > { %12837 = vmatprep.subr.msk.bf16.mxu0 %vm18318_vm4, %v14080_v29  ;;  %vm18322_vm4 = vmmov %vm18274_vm3  ;;  %v4059_v54 = vrot.slane %v14168_v58, 2 }
 0x1d4   : > { %11767 = vmatmul.mubr.msk.bf16.gmra.mrb[4].mxu0 %vm18319_vm8, %v3617_v21  ;;  %vm18323_vm8 = vmmov %vm18274_vm3  ;;  %v4061_v21 = vrot.slane %v14171_v12, 2 }
 0x1d5   : > { %11770 = vmatprep.mubr.msk.bf16.mxu0 %vm18320_vm5, %v3619_v11  ;;  %vm18324_vm5 = vmmov %vm18274_vm3  ;;  %v4060_v11 = vsel %vm17944_vm9, %v4057_v25, %v4059_v54 }
 0x1d6   : > { %v4062_v5 = vsel %vm17944_vm9, %v4059_v54, %v4061_v21 }
 0x1dc   : > { %11771 = vmatmul.mubr.msk.bf16.gmra.mrb[8].mxu0 %vm18274_vm3, %v3621_v9  ;;  %v14181_v9 = vld [vmem:[#allocation3 + $0x58] sm:$0xff]  }
 0x1dd   : > { %11774 = vmatprep.mubr.msk.bf16.mxu0 %vm18321_vm13, %v3623_v17  ;;  %vm18325_vm13 = vmmov %vm18274_vm3  ;;  %v4063_v17 = vrot.slane %v14178_v56, 2  ;;  %v4065_v16 = vrot.slane %v14181_v9, 2 }
 0x1df   : > { %v4064_v23 = vsel %vm17944_vm9, %v4061_v21, %v4063_v17 }
 0x1e4   : > { %11775 = vmatmul.mubr.msk.bf16.gmra.mrb[12].mxu0 %vm18322_vm4, %v3625_v60  ;;  %vm18326_vm4 = vmmov %vm18274_vm3  ;;  %v14188_v60 = vld [vmem:[#allocation3 + $0x60] sm:$0xff]  }
 0x1e5   : > { %11778 = vmatprep.mubr.msk.bf16.mxu0 %vm18323_vm8, %v3627_v33  ;;  %vm18327_vm8 = vmmov %vm18274_vm3  ;;  %v4066_v33 = vsel %vm17944_vm9, %v4063_v17, %v4065_v16  ;;  %v4067_v34 = vrot.slane %v14188_v60, 2 }
 0x1ec   : > { %11779 = vmatmul.mubr.msk.bf16.gmra.mrb[16].mxu0 %vm18324_vm5, %v3629_v46  ;;  %vm18328_vm5 = vmmov %vm18274_vm3  ;;  %v4069_v46 = vrot.slane %v14191_v0, 2 }
 0x1ed   : > { %11782 = vmatprep.mubr.msk.bf16.mxu0 %vm18274_vm3, %v3631_v6  ;;  %v4068_v6 = vsel %vm17944_vm9, %v4065_v16, %v4067_v34  ;;  %v4389_v16 = vshrl.u32 %v14142_v57, 16 }
 0x1ee   : > { %v4070_v62 = vsel %vm17944_vm9, %v4067_v34, %v4069_v46 }
 0x1f4   : > { %11783 = vmatmul.mubr.msk.bf16.gmra.mrb[20].mxu0 %vm18325_vm13, %v3633_v53  ;;  %vm18329_vm13 = vmmov %vm18274_vm3  ;;  %v14201_v53 = vld [vmem:[#allocation3 + $0x78] sm:$0xff]  }
 0x1f5   : > { %11786 = vmatprep.mubr.msk.bf16.mxu0 %vm18326_vm4, %v3635_v37  ;;  %vm18330_vm4 = vmmov %vm18274_vm3  ;;  %v4071_v37 = vrot.slane %v14198_v27, 2  ;;  %v4073_v51 = vrot.slane %v14201_v53, 2 }
 0x1f7   : > { %v4072_v3 = vsel %vm17944_vm9, %v4069_v46, %v4071_v37 }
 0x1fc   : > { %11787 = vmatmul.mubr.msk.bf16.gmra.mrb[24].mxu0 %vm18327_vm8, %v3637_v2  ;;  %vm18331_vm8 = vmmov %vm18274_vm3  ;;  %v14208_v2 = vld [vmem:[#allocation3 + $0x80] sm:$0xff]  }
 0x1fd   : > { %11790 = vmatprep.mubr.msk.bf16.mxu0 %vm18328_vm5, %v3639_v44  ;;  %vm18332_vm5 = vcmask 1041408   ;;  %v4074_v44 = vsel %vm17944_vm9, %v4071_v37, %v4073_v51  ;;  %v4075_v8 = vrot.slane %v14208_v2, 2 }
 0x1fe   : > { %v4587_v47 = vsel %vm18332_vm5, %v14080_v29, 0  ;;  %v4058_v29 = vsel %vm17944_vm9, %v4055_v35, %v4057_v25  ;;  %v12986_v35 = vld [vmem:[#allocation3 + $0xa0] ss:$0 sps:$4 sm:$0x33]  }
 0x1ff   : > { %v4078_v15 = vsel %vm17944_vm9, %v4075_v8, %v4077_v30  ;;  %v4083_v21 = vrot.slane %v12986_v35, 2  ;;  %v4419_v35 = vshll.u32 %v14168_v58, 16 }
 0x204   : > { %11791 = vmatmul.mubr.msk.bf16.gmra.mrb[28].mxu0 %vm18274_vm3, %v3641_v61  ;;  %v4076_v61 = vsel %vm17944_vm9, %v4073_v51, %v4075_v8 }
 0x205   : > { %11794 = vmatprep.mubr.msk.bf16.mxu0 %vm18329_vm13, %v3643_v32  ;;  %vm18333_vm13 = vmmov %vm18274_vm3  ;;  %v14218_v32 = vld [vmem:[#allocation3 + $0x90] sm:$0xff]  }
 0x206   : > { %v4079_v41 = vrot.slane %v14218_v32, 2 }
 0x20c   : > { %11795 = vmatmul.mubr.msk.bf16.gmra.mrb[32].mxu0 %vm18330_vm4, %v3645_v50  ;;  %vm18334_vm4 = vmmov %vm18332_vm5  ;;  %v4081_v50 = vrot.slane %v14220_v14, 2 }
 0x20d   : > { %11800 = vmatprep.mubr.msk.bf16.mxu0 %vm18331_vm8, %v4050_v19  ;;  %vm18335_vm8 = vmmov %vm18274_vm3  ;;  %v4363_v19 = vshrl.u32 %v14129_v4, 16  ;;  %v4380_v4 = vshrl.u32 %v14139_v40, 16 }
 0x20e   : > { %vm18336_vm5 = vmmov %vm18274_vm3 }
 0x20f   : > { %v4365_v25 = vrot.slane %v4363_v19, 2  ;;  %v4382_v34 = vrot.slane %v4380_v4, 2 }
 0x214   : > { %11801 = vmatmul.mubr.msk.bf16.vlgmr.msra.gmra.mrb[0].mxu0 %vm18274_vm3, %v4052_v52  ;;  %v4374_v52 = vshll.u32 %v14131_v36, 16 }
 0x215   : > { %11837 = vmatpush3.bf16.msra.mxu0 %v4587_v47  ;;  %11804 = vmatprep.mubr.msk.bf16.mxu0 %vm18333_vm13, %v4054_v43  ;;  %vm18337_vm13 = vmmov %vm18274_vm3  ;;  %v4080_v47 = vsel %vm17944_vm9, %v4077_v30, %v4079_v41  ;;  %v4082_v43 = vsel %vm17944_vm9, %v4079_v41, %v4081_v50  ;;  %v4407_v30 = vshrl.u32 %v14154_v42, 16 }
 0x216   : > { %12838 = vmatprep.subr.msk.bf16.mxu0 %vm18334_vm4, %v14159_v38  ;;  %vm18338_vm4 = vmmov %vm18274_vm3  ;;  %v4376_v54 = vrot.slane %v4374_v52, 3 }
 0x21c   : > { %11805 = vmatmul.mubr.msk.bf16.gmra.mrb[4].mxu0 %vm18335_vm8, %v4056_v45  ;;  %vm18339_vm8 = vmmov %vm18274_vm3  ;;  %v4368_v45 = vrot.slane %v4366_v24, 3 }
 0x21d   : > { %11808 = vmatprep.mubr.msk.bf16.mxu0 %vm18336_vm5, %v4058_v29  ;;  %vm18340_vm5 = vmmov %vm18274_vm3  ;;  %v4373_v29 = vrot.slane %v4371_v63, 2  ;;  %v4409_v63 = vrot.slane %v4407_v30, 2  ;;  %v4452_v30 = vshrl.u32 %v14188_v60, 16 }
 0x21f   : > { %v4377_v17 = vor.u32 %v4376_v54, %v4373_v29  ;;  %v4428_v29 = vshll.u32 %v14171_v12, 16 }
 0x224   : > { %11809 = vmatmul.mubr.msk.bf16.gmra.mrb[8].mxu0 %vm18274_vm3, %v4060_v11  ;;  %v4383_v11 = vshll.u32 %v14139_v40, 16 }
 0x225   : > { %11812 = vmatprep.mubr.msk.bf16.mxu0 %vm18337_vm13, %v4062_v5  ;;  %vm18341_vm13 = vmmov %vm18274_vm3  ;;  %v4369_v5 = vor.u32 %v4368_v45, %v4365_v25  ;;  %v4425_v45 = vshrl.u32 %v14171_v12, 16 }
 0x226   : > { %v4385_v46 = vrot.slane %v4383_v11, 3 }
 0x227   : > { %v4427_v11 = vrot.slane %v4425_v45, 2  ;;  %v4473_v45 = vshll.u32 %v14198_v27, 16 }
 0x228   : > { %v4386_v51 = vor.u32 %v4385_v46, %v4382_v34  ;;  %v4443_v34 = vshrl.u32 %v14181_v9, 16  ;;  %v4446_v46 = vshll.u32 %v14181_v9, 16 }
 0x22c   : > { %11813 = vmatmul.mubr.msk.bf16.gmra.mrb[12].mxu0 %vm18338_vm4, %v4064_v23  ;;  %vm18342_vm4 = vmmov %vm18274_vm3  ;;  %v4392_v23 = vshll.u32 %v14142_v57, 16 }
 0x22d   : > { %11816 = vmatprep.mubr.msk.bf16.mxu0 %vm18339_vm8, %v4066_v33  ;;  %vm18343_vm8 = vmmov %vm18274_vm3  ;;  %v4084_v33 = vsel %vm17944_vm9, %v4081_v50, %v4083_v21  ;;  %v4421_v21 = vrot.slane %v4419_v35, 3 }
 0x22e   : > { %v4394_v37 = vrot.slane %v4392_v23, 3  ;;  %v4437_v23 = vshll.u32 %v14178_v56, 16 }
 0x234   : > { %11817 = vmatmul.mubr.msk.bf16.gmra.mrb[16].mxu0 %vm18340_vm5, %v4068_v6  ;;  %vm18344_vm5 = vmmov %vm18274_vm3 }
 0x235   : > { %11820 = vmatprep.mubr.msk.bf16.mxu0 %vm18274_vm3, %v4070_v62  ;;  %v4391_v62 = vrot.slane %v4389_v16, 2  ;;  %v4434_v16 = vshrl.u32 %v14178_v56, 16 }
 0x237   : > { %v4395_v8 = vor.u32 %v4394_v37, %v4391_v62  ;;  %v4436_v62 = vrot.slane %v4434_v16, 2  ;;  %v4439_v37 = vrot.slane %v4437_v23, 3 }
 0x23c   : > { %11821 = vmatmul.mubr.msk.bf16.gmra.mrb[20].mxu0 %vm18341_vm13, %v4072_v3  ;;  %vm18345_vm13 = vmmov %vm18274_vm3  ;;  %v4398_v3 = vshrl.u32 %v14149_v39, 16 }
 0x23d   : > { %11824 = vmatprep.mubr.msk.bf16.mxu0 %vm18342_vm4, %v4074_v44  ;;  %vm17942_vm4 = vsmask.f32 5376  ;;  %v4401_v44 = vshll.u32 %v14149_v39, 16 }
 0x23e   : > { %v4378_v6 = vsel %vm17942_vm4, %v4369_v5, %v4377_v17  ;;  %v4400_v41 = vrot.slane %v4398_v3, 2  ;;  %v4396_v24 = vsel %vm17942_vm4, %v4386_v51, %v4395_v8  ;;  %v4430_v5 = vrot.slane %v4428_v29, 3 }
 0x23f   : > { %v4403_v50 = vrot.slane %v4401_v44, 3  ;;  %v4445_v3 = vrot.slane %v4443_v34, 2  ;;  %v4448_v44 = vrot.slane %v4446_v46, 3  ;;  %v4491_v34 = vshll.u32 %v14208_v2, 16 }
 0x244   : > { %11825 = vmatmul.mubr.msk.bf16.gmra.mrb[24].mxu0 %vm18343_vm8, %v4076_v61  ;;  %vm18346_vm8 = vmmov %vm18274_vm3  ;;  %v4410_v61 = vshll.u32 %v14154_v42, 16 }
 0x245   : > { %11828 = vmatprep.mubr.msk.bf16.mxu0 %vm18344_vm5, %v4078_v15  ;;  %vm18347_vm5 = vmmov %vm18274_vm3  ;;  %v4387_v15 = vsel %vm17942_vm4, %v4377_v17, %v4386_v51 }
 0x246   : > { %v4412_v52 = vrot.slane %v4410_v61, 3  ;;  %v4455_v61 = vshll.u32 %v14188_v60, 16 }
 0x248   : > { %v4413_v25 = vor.u32 %v4412_v52, %v4409_v63  ;;  %v4457_v63 = vrot.slane %v4455_v61, 3 }
 0x24c   : > { %11829 = vmatmul.mubr.msk.bf16.gmra.mrb[28].mxu0 %vm18274_vm3, %v4080_v47  ;;  %vm18348_vm3 = vcmask 1041408   ;;  %v4404_v47 = vor.u32 %v4403_v50, %v4400_v41  ;;  %v4461_v41 = vshrl.u32 %v14191_v0, 16  ;;  %v4464_v50 = vshll.u32 %v14191_v0, 16 }
 0x24d   : > { %11832 = vmatprep.mubr.msk.bf16.mxu0 %vm18345_vm13, %v4082_v43  ;;  %v4901_v19 = vsel %vm18348_vm3, %v14159_v38, 0  ;;  %vm18349_vm13 = vmmov %vm18347_vm5  ;;  %v4416_v43 = vshrl.u32 %v14168_v58, 16 }
 0x24e   : > { %v4405_v38 = vsel %vm17942_vm4, %v4395_v8, %v4404_v47  ;;  %v4414_v4 = vsel %vm17942_vm4, %v4404_v47, %v4413_v25  ;;  %vm18351_vm3 = vmmov %vm18347_vm5  ;;  %v4440_v8 = vor.u32 %v4439_v37, %v4436_v62  ;;  %v4463_v47 = vrot.slane %v4461_v41, 2 }
 0x24f   : > { %v4418_v54 = vrot.slane %v4416_v43, 2  ;;  %v4466_v43 = vrot.slane %v4464_v50, 3  ;;  %v4500_v62 = vshll.u32 %v14211_v31, 16  ;;  %v4509_v41 = vshll.u32 %v14218_v32, 16  ;;  %vm18362_vm6 = vmmov %vm18351_vm3 }
 0x251   : > { %v4422_v17 = vor.u32 %v4421_v21, %v4418_v54  ;;  %v4467_v29 = vor.u32 %v4466_v43, %v4463_v47  ;;  %v4482_v54 = vshll.u32 %v14201_v53, 16  ;;  %v4511_v47 = vrot.slane %v4509_v41, 3  ;;  %v14298_v43 = vld [vmem:[#allocation3 + $0xa0] ss:$0 sps:$4 sm:$0x77]  }
 0x253   : > { %v4484_v16 = vrot.slane %v4482_v54, 3  ;;  %v4527_v54 = vshll.u32 %v14298_v43, 16 }
 0x254   : > { %11833 = vmatmul.mubr.msk.bf16.gmra.mrb[32].mxu0 %vm18346_vm8, %v4084_v33  ;;  %vm18350_vm8 = vmmov %vm18347_vm5  ;;  %v4431_v33 = vor.u32 %v4430_v5, %v4427_v11  ;;  %v4475_v11 = vrot.slane %v4473_v45, 3 }
 0x255   : > { %11838 = vmatprep.mubr.msk.bf16.mxu0 %vm18347_vm5, %v4378_v6  ;;  %v4423_v6 = vsel %vm17942_vm4, %v4413_v25, %v4422_v17  ;;  %v4470_v25 = vshrl.u32 %v14198_v27, 16 }
 0x256   : > { %v4432_v51 = vsel %vm17942_vm4, %v4422_v17, %v4431_v33 }
 0x25c   : > { %11839 = vmatmul.mubr.msk.bf16.vlgmr.msra.gmra.mrb[0].mxu0 %vm18349_vm13, %v4387_v15  ;;  %vm18352_vm13 = vmmov %vm18351_vm3  ;;  %v4449_v15 = vor.u32 %v4448_v44, %v4445_v3  ;;  %v4493_v3 = vrot.slane %v4491_v34, 3 }
 0x25d   : > { %11875 = vmatpush3.bf16.msra.mxu0 %v4901_v19  ;;  %11842 = vmatprep.mubr.msk.bf16.mxu0 %vm18350_vm8, %v4396_v24  ;;  %vm18353_vm8 = vmmov %vm18351_vm3  ;;  %v4441_v19 = vsel %vm17942_vm4, %v4431_v33, %v4440_v8  ;;  %v4454_v24 = vrot.slane %v4452_v30, 2  ;;  %v4488_v33 = vshrl.u32 %v14208_v2, 16  ;;  %v4502_v30 = vrot.slane %v4500_v62, 3 }
 0x25e   : > { %v4450_v52 = vsel %vm17942_vm4, %v4440_v8, %v4449_v15 }
 0x25f   : > { %v4458_v35 = vor.u32 %v4457_v63, %v4454_v24  ;;  %v4518_v24 = vshll.u32 %v14220_v14, 16 }
 0x261   : > { %v4459_v21 = vsel %vm17942_vm4, %v4449_v15, %v4458_v35  ;;  %v4468_v5 = vsel %vm17942_vm4, %v4458_v35, %v4467_v29  ;;  %v4506_v15 = vshrl.u32 %v14218_v32, 16  ;;  %v4520_v45 = vrot.slane %v4518_v24, 3 }
 0x264   : > { %11843 = vmatmul.mubr.msk.bf16.gmra.mrb[4].mxu0 %vm18347_vm5, %v4405_v38  ;;  %vm18354_vm5 = vmmov %vm18351_vm3  ;;  %v4479_v38 = vshrl.u32 %v14201_v53, 16 }
 0x265   : > { %11846 = vmatprep.mubr.msk.bf16.mxu0 %vm18351_vm3, %v4414_v4  ;;  %v4472_v4 = vrot.slane %v4470_v25, 2 }
 0x266   : > { %v4481_v17 = vrot.slane %v4479_v38, 2  ;;  %v4524_v38 = vshrl.u32 %v14298_v43, 16 }
 0x267   : > { %v4476_v23 = vor.u32 %v4475_v11, %v4472_v4  ;;  %v4802_v4 = vld [vmem:[#allocation3 + $0x10] sm:$0x8] }
 0x268   : > { %v4485_v46 = vor.u32 %v4484_v16, %v4481_v17  ;;  %v4529_v17 = vrot.slane %v4527_v54, 3 }
 0x269   : > { %v4477_v37 = vsel %vm17942_vm4, %v4467_v29, %v4476_v23 }
 0x26a   : > { %v4486_v44 = vsel %vm17942_vm4, %v4476_v23, %v4485_v46  ;;  %v10787_v23 = vcombine.low %v4802_v4, %v14124_v22  ;;  %v4814_v22 = vrot.slane %v14142_v57, 3  ;;  %v4822_v57 = vrot.slane %v14171_v12, 3 }
 0x26b   : > { %v4830_v12 = vrot.slane %v14191_v0, 3  ;;  %v4838_v0 = vrot.slane %v14211_v31, 3 }
 0x26c   : > { %11847 = vmatmul.mubr.msk.bf16.gmra.mrb[8].mxu0 %vm18352_vm13, %v4423_v6  ;;  %vm18355_vm13 = vmmov %vm18351_vm3  ;;  %v4497_v6 = vshrl.u32 %v14211_v31, 16  ;;  %v4809_v34 = vrot.slane %v10787_v23, 3 }
 0x26d   : > { %11850 = vmatprep.mubr.msk.bf16.mxu0 %vm18353_vm8, %v4432_v51  ;;  %vm18356_vm8 = vmmov %vm18351_vm3  ;;  %v4490_v51 = vrot.slane %v4488_v33, 2 }
 0x26e   : > { %v4499_v8 = vrot.slane %v4497_v6, 2 }
 0x26f   : > { %v4494_v61 = vor.u32 %v4493_v3, %v4490_v51 }
 0x270   : > { %v4503_v50 = vor.u32 %v4502_v30, %v4499_v8 }
 0x271   : > { %v4495_v63 = vsel %vm17942_vm4, %v4485_v46, %v4494_v61  ;;  %v4810_v46 = vrot.slane %v14131_v36, 3  ;;  %v4816_v36 = vrot.slane %v14149_v39, 3  ;;  %v4824_v39 = vrot.slane %v14178_v56, 3 }
 0x272   : > { %v4504_v35 = vsel %vm17942_vm4, %v4494_v61, %v4503_v50  ;;  %v4832_v56 = vrot.slane %v14198_v27, 3  ;;  %v4840_v27 = vrot.slane %v14218_v32, 3 }
 0x274   : > { %11851 = vmatmul.mubr.msk.bf16.gmra.mrb[12].mxu0 %vm18354_vm5, %v4441_v19  ;;  %vm18357_vm5 = vmmov %vm18351_vm3  ;;  %v4515_v19 = vshrl.u32 %v14220_v14, 16 }
 0x275   : > { %11854 = vmatprep.mubr.msk.bf16.mxu0 %vm18351_vm3, %v4450_v52  ;;  %v4508_v52 = vrot.slane %v4506_v15, 2 }
 0x276   : > { %v4517_v25 = vrot.slane %v4515_v19, 2 }
 0x277   : > { %v4512_v29 = vor.u32 %v4511_v47, %v4508_v52 }
 0x279   : > { %v4513_v11 = vsel %vm17942_vm4, %v4503_v50, %v4512_v29 }
 0x27c   : > { %11855 = vmatmul.mubr.msk.bf16.gmra.mrb[16].mxu0 %vm18355_vm13, %v4459_v21  ;;  %vm18358_vm13 = vmmov %vm18351_vm3  ;;  %v4521_v21 = vor.u32 %v4520_v45, %v4517_v25 }
 0x27d   : > { %11858 = vmatprep.mubr.msk.bf16.mxu0 %vm18356_vm8, %v4468_v5  ;;  %vm18359_vm8 = vmmov %vm18351_vm3  ;;  %v4526_v5 = vrot.slane %v4524_v38, 2 }
 0x27e   : > { %v4522_v16 = vsel %vm17942_vm4, %v4512_v29, %v4521_v21  ;;  %v1019_v29 = vlaneseq }
 0x27f   : > { %v4530_v33 = vor.u32 %v4529_v17, %v4526_v5 }
 0x280   : > { %v14366_v38 = vshrl.u32 %v1019_v29, 7 }
 0x281   : > { %v4531_v6 = vsel %vm17942_vm4, %v4521_v21, %v4530_v33  ;;  %vm18375_vm4 = vmmov %vm18351_vm3 }
 0x282   : > { %v1022_v32 = vadd.s32 16, %v14366_v38  ;;  %v14373_v21 = vmul.u32.u64.low 3817748708, %v14366_v38  ;;  %v14374_v4 = vmul.u32.u64.high 3817748708, %v14366_v38, %v14373_v21  ;;  %v1026_v5 = vadd.s32 48, %v14366_v38 }
 0x283   : > { %v1024_v33 = vadd.s32 32, %v14366_v38  ;;  %v14696_v49 = vadd.s32 160, %v14366_v38  ;;  %v14704_v59 = vadd.s32 184, %v14366_v38  ;;  %v14720_v18 = vadd.s32 208, %v14366_v38 }
 0x284   : > { %11859 = vmatmul.mubr.msk.bf16.gmra.mrb[20].mxu0 %vm18357_vm5, %v4477_v37  ;;  %vm18360_vm5 = vmmov %vm18351_vm3  ;;  %v4812_v37 = vrot.slane %v14139_v40, 3  ;;  %v4820_v40 = vrot.slane %v14168_v58, 3  ;;  %v4828_v58 = vrot.slane %v14188_v60, 3  ;;  %v4836_v60 = vrot.slane %v14208_v2, 3 }
 0x285   : > { %11862 = vmatprep.mubr.msk.bf16.mxu0 %vm18351_vm3, %v4486_v44  ;;  %v4818_v44 = vrot.slane %v14154_v42, 3  ;;  %v4826_v42 = vrot.slane %v14181_v9, 3  ;;  %v4834_v9 = vrot.slane %v14201_v53, 3  ;;  %v4842_v53 = vrot.slane %v14220_v14, 3 }
 0x286   : > { %v4844_v2 = vrot.slane %v14298_v43, 3  ;;  %v14369_v14 = vmul.u32.u64.low 3817748708, %v1022_v32  ;;  %v14370_v54 = vmul.u32.u64.high 3817748708, %v1022_v32, %v14369_v14  ;;  %v1021_v43 = vadd.s32 8, %v14366_v38 }
 0x287   : > { %v14770_v13 = vadd.s32 216, %v14366_v38 }
 0x288   : > { %v1084_v17 = vshrl.u32 %v14370_v54, 4 }
 0x28c   : > { %11863 = vmatmul.mubr.msk.bf16.gmra.mrb[24].mxu0 %vm18358_vm13, %v4495_v63  ;;  %vm17943_vm13 = vcmask 1044480  }
 0x28d   : > { %11866 = vmatprep.mubr.msk.bf16.mxu0 %vm18359_vm8, %v4504_v35  ;;  %v4811_v62 = vsel %vm17943_vm13, %v4809_v34, %v4810_v46  ;;  %vm18361_vm8 = vmmov %vm18351_vm3  ;;  %v4813_v51 = vsel %vm17943_vm13, %v4810_v46, %v4812_v37  ;;  %v4815_v3 = vsel %vm17943_vm13, %v4812_v37, %v4814_v22  ;;  %v4817_v8 = vsel %vm17943_vm13, %v4814_v22, %v4816_v36 }
 0x28e   : > { %v4819_v30 = vsel %vm17943_vm13, %v4816_v36, %v4818_v44  ;;  %v4821_v61 = vsel %vm17943_vm13, %v4818_v44, %v4820_v40  ;;  %v4823_v15 = vsel %vm17943_vm13, %v4820_v40, %v4822_v57  ;;  %v4825_v41 = vsel %vm17943_vm13, %v4822_v57, %v4824_v39 }
 0x28f   : > { %v4827_v50 = vsel %vm17943_vm13, %v4824_v39, %v4826_v42  ;;  %v4829_v19 = vsel %vm17943_vm13, %v4826_v42, %v4828_v58  ;;  %v4831_v24 = vsel %vm17943_vm13, %v4828_v58, %v4830_v12  ;;  %v4833_v63 = vsel %vm17943_vm13, %v4830_v12, %v4832_v56 }
 0x290   : > { %v4835_v52 = vsel %vm17943_vm13, %v4832_v56, %v4834_v9  ;;  %v4837_v47 = vsel %vm17943_vm13, %v4834_v9, %v4836_v60  ;;  %v4839_v35 = vsel %vm17943_vm13, %v4836_v60, %v4838_v0  ;;  %v4841_v25 = vsel %vm17943_vm13, %v4838_v0, %v4840_v27 }
 0x291   : > { %v4843_v45 = vsel %vm17943_vm13, %v4840_v27, %v4842_v53  ;;  %v4845_v31 = vsel %vm17943_vm13, %v4842_v53, %v4844_v2  ;;  %v14384_v34 = vmul.u32.u64.low 3817748708, %v1021_v43  ;;  %v14385_v46 = vmul.u32.u64.high 3817748708, %v1021_v43, %v14384_v34 }
 0x292   : > { %v1025_v22 = vadd.s32 40, %v14366_v38  ;;  %v14393_v36 = vmul.u32.u64.low 3817748708, %v1024_v33  ;;  %v14394_v44 = vmul.u32.u64.high 3817748708, %v1024_v33, %v14393_v36  ;;  %v14411_v58 = vadd.s32 64, %v14366_v38 }
 0x293   : > { %v1073_v42 = vshrl.u32 %v14385_v46, 4 }
 0x294   : > { %11867 = vmatmul.mubr.msk.bf16.gmra.mrb[28].mxu0 %vm18360_vm5, %v4513_v11  ;;  %vm18363_vm5 = vmmov %vm18351_vm3  ;;  %v1023_v11 = vadd.s32 24, %v14366_v38  ;;  %v14399_v40 = vmul.u32.u64.low 3817748708, %v1025_v22  ;;  %v14400_v57 = vmul.u32.u64.high 3817748708, %v1025_v22, %v14399_v40 }
 0x295   : > { %11870 = vmatprep.mubr.msk.bf16.mxu0 %vm18351_vm3, %v4522_v16  ;;  %v1074_v9 = vmul.u32 18, %v1073_v42  ;;  %v14432_v27 = vmul.u32.u64.low 3817748708, %v14411_v58  ;;  %v14433_v53 = vmul.u32.u64.high 3817748708, %v14411_v58, %v14432_v27 }
 0x296   : > { %v14380_v16 = vmul.u32.u64.low 3817748708, %v1023_v11  ;;  %v14381_v23 = vmul.u32.u64.high 3817748708, %v1023_v11, %v14380_v16  ;;  %v1117_v0 = vshrl.u32 %v14400_v57, 4 }
 0x297   : > { %v14445_v29 = vsub.s32 %v1021_v43, %v1074_v9  ;;  %v14457_v16 = vadd.s32 96, %v14366_v38  ;;  %v18395_v9 = vmov 0 }
 0x298   : > { %v1095_v39 = vshrl.u32 %v14381_v23, 4 }
 0x299   : > { %vm18389_vm10 = vcmp.ne.s32.totalorder %v14445_v29, 0  ;;  %vm18390_vm2 = vcmp.lt.s32.totalorder %v14445_v29, 0 }
 0x29a   : > { %vm14538_vm14 = vmand %vm18390_vm2, %vm18389_vm10 }
 0x29c   : > { %11871 = vmatmul.mubr.msk.bf16.gmra.mrb[32].mxu0 %vm18361_vm8, %v4531_v6  ;;  %vm18365_vm8 = vmmov %vm18351_vm3  ;;  %v1027_v6 = vadd.s32 56, %v14366_v38 }
 0x29d   : > { %11876 = vmatprep.mubr.msk.bf16.mxu0 %vm18362_vm6, %v4811_v62  ;;  %vm18364_vm6 = vmmov %vm18351_vm3  ;;  %v14388_v62 = vmul.u32.u64.low 3817748708, %v1026_v5  ;;  %v14389_v37 = vmul.u32.u64.high 3817748708, %v1026_v5, %v14388_v62 }
 0x2a4   : > { %11877 = vmatmul.mubr.msk.bf16.vlgmr.msra.gmra.mrb[0].mxu0 %vm18363_vm5, %v4813_v51  ;;  %vm18366_vm5 = vmmov %vm18351_vm3  ;;  %v1085_v51 = vmul.u32 18, %v1084_v17  ;;  %v1118_v17 = vmul.u32 18, %v1117_v0 }
 0x2a5   : > { %11880 = vmatprep.mubr.msk.bf16.mxu0 %vm18351_vm3, %v4815_v3  ;;  %v1062_v3 = vshrl.u32 %v14374_v4, 4 }
 0x2ac   : > { %11881 = vmatmul.mubr.msk.bf16.gmra.mrb[4].mxu0 %vm18364_vm6, %v4817_v8  ;;  %vm18367_vm6 = vmmov %vm18351_vm3 }
 0x2ad   : > { %11884 = vmatprep.mubr.msk.bf16.mxu0 %vm18365_vm8, %v4819_v30  ;;  %vm18368_vm8 = vmmov %vm18351_vm3  ;;  %v14396_v8 = vmul.u32.u64.low 3817748708, %v1027_v6  ;;  %v14397_v30 = vmul.u32.u64.high 3817748708, %v1027_v6, %v14396_v8 }
 0x2ae   : > { %v15104_v8 = vadd.s32 232, %v14366_v38 }
 0x2b0   : > { %18509 = vst [vmem:[#allocation54_spill] sm:$0xff] %v15104_v8 }
 0x2b4   : > { %11885 = vmatmul.mubr.msk.bf16.gmra.mrb[8].mxu0 %vm18366_vm5, %v4821_v61  ;;  %vm18369_vm5 = vmmov %vm18351_vm3  ;;  %v14402_v61 = vsub.s32 %v1022_v32, %v1085_v51  ;;  %v14481_v51 = vsub.s32 %v1025_v22, %v1118_v17  ;;  %v18481_v22 = vmov 0 }
 0x2b5   : > { %11888 = vmatprep.mubr.msk.bf16.mxu0 %vm18351_vm3, %v4823_v15  ;;  %v1063_v15 = vmul.u32 18, %v1062_v3 }
 0x2b6   : > { %v14420_v56 = vadd.s32 18, %v14402_v61  ;;  %18379 = vst [vmem:[#allocation20_spill] sm:$0xff] %v14481_v51  ;;  %vm1493_vm2 = vcmp.lt.s32.totalorder %v14481_v51, 0 }
 0x2b7   : > { %v14416_v12 = vsub.s32 %v14366_v38, %v1063_v15  ;;  %v14518_v15 = vadd.s32 104, %v14366_v38 }
 0x2b9   : > { %v14452_v21 = vadd.s32 18, %v14416_v12 }
 0x2bc   : > { %11889 = vmatmul.mubr.msk.bf16.gmra.mrb[12].mxu0 %vm18367_vm6, %v4825_v41  ;;  %vm18370_vm6 = vmmov %vm18351_vm3  ;;  %v1128_v41 = vshrl.u32 %v14389_v37, 4 }
 0x2bd   : > { %11892 = vmatprep.mubr.msk.bf16.mxu0 %vm18368_vm8, %v4827_v50  ;;  %vm18371_vm8 = vmmov %vm18351_vm3  ;;  %v14408_v50 = vadd.s32 80, %v14366_v38 }
 0x2be   : > { %v1129_v60 = vmul.u32 18, %v1128_v41  ;;  %v14532_v41 = vadd.s32 144, %v14366_v38 }
 0x2c0   : > { %v14454_v4 = vsub.s32 %v1026_v5, %v1129_v60  ;;  %v14473_v5 = vadd.s32 120, %v14366_v38 }
 0x2c2   : > { %18376 = vst [vmem:[#allocation17_spill] sm:$0xff] %v14454_v4  ;;  %v14514_v40 = vmul.u32.u64.low 3817748708, %v14473_v5  ;;  %v14515_v57 = vmul.u32.u64.high 3817748708, %v14473_v5, %v14514_v40  ;;  %vm18393_vm11 = vcmp.ne.s32.totalorder %v14454_v4, 0  ;;  %vm18394_vm1 = vcmp.lt.s32.totalorder %v14454_v4, 0 }
 0x2c3   : > { %vm14549_vm0 = vmand %vm18394_vm1, %vm18393_vm11 }
 0x2c4   : > { %11893 = vmatmul.mubr.msk.bf16.gmra.mrb[16].mxu0 %vm18369_vm5, %v4829_v19  ;;  %vm18372_vm5 = vmmov %vm18351_vm3  ;;  %v1096_v19 = vmul.u32 18, %v1095_v39  ;;  %v18396_v9 = vsel %vm14549_vm0, 4294967295, %v18395_v9  ;;  %v18485_v39 = vmov 0 }
 0x2c5   : > { %11896 = vmatprep.mubr.msk.bf16.mxu0 %vm18351_vm3, %v4831_v24  ;;  %v1106_v24 = vshrl.u32 %v14394_v44, 4  ;;  %v14485_v36 = vmul.u32.u64.low 3817748708, %v14457_v16  ;;  %v14486_v44 = vmul.u32.u64.high 3817748708, %v14457_v16, %v14485_v36  ;;  %18397 = vst [vmem:[#allocation22_spill] sm:$0xff] %v18396_v9 }
 0x2c6   : > { %v14443_v2 = vsub.s32 %v1023_v11, %v1096_v19  ;;  %v18490_v19 = vmov 0 }
 0x2c7   : > { %v1194_v36 = vshrl.u32 %v14486_v44, 4  ;;  %v1227_v44 = vshrl.u32 %v14515_v57, 4 }
 0x2c8   : > { %v14470_v46 = vadd.s32 18, %v14443_v2 }
 0x2cc   : > { %11897 = vmatmul.mubr.msk.bf16.gmra.mrb[20].mxu0 %vm18370_vm6, %v4833_v63  ;;  %vm18373_vm6 = vmmov %vm18351_vm3  ;;  %v1139_v63 = vshrl.u32 %v14397_v30, 4  ;;  %v14511_v30 = vadd.s32 18, %v14454_v4 }
 0x2cd   : > { %11900 = vmatprep.mubr.msk.bf16.mxu0 %vm18371_vm8, %v4835_v52  ;;  %vm18374_vm8 = vmmov %vm18351_vm3  ;;  %v14424_v52 = vadd.s32 88, %v14366_v38 }
 0x2ce   : > { %v1140_v32 = vmul.u32 18, %v1139_v63  ;;  %18384 = vst [vmem:[#allocation21_spill] sm:$0xff] %v14511_v30  ;;  %v14825_v30 = vmul.u32.u64.low 3817748708, %v14770_v13  ;;  %v14826_v9 = vmul.u32.u64.high 3817748708, %v14770_v13, %v14825_v30 }
 0x2cf   : > { %v14448_v14 = vmul.u32.u64.low 3817748708, %v14424_v52  ;;  %v14449_v54 = vmul.u32.u64.high 3817748708, %v14424_v52, %v14448_v14  ;;  %v18443_v30 = vmov 0 }
 0x2d0   : > { %v14479_v37 = vsub.s32 %v1027_v6, %v1140_v32  ;;  %v1150_v6 = vshrl.u32 %v14433_v53, 4  ;;  %v18403_v32 = vmov 0  ;;  %v14579_v14 = vadd.s32 18, %v14481_v51 }
 0x2d1   : > { %v1183_v42 = vshrl.u32 %v14449_v54, 4 }
 0x2d2   : > { %18378 = vst [vmem:[#allocation19_spill] sm:$0xff] %v14479_v37  ;;  %v1151_v63 = vmul.u32 18, %v1150_v6  ;;  %v14566_v27 = vadd.s32 18, %v14479_v37  ;;  %vm18402_vm11 = vcmp.ne.s32.totalorder %v14479_v37, 0  ;;  %18406 = vst [vmem:[#allocation25_spill] sm:$0xff] %v14579_v14 }
 0x2d3   : > { %v1184_v54 = vmul.u32 18, %v1183_v42 }
 0x2d4   : > { %11901 = vmatmul.mubr.msk.bf16.gmra.mrb[24].mxu0 %vm18372_vm5, %v4837_v47  ;;  %vm1490_vm5 = vcmp.lt.s32.totalorder %v14402_v61, 0  ;;  %18401 = vst [vmem:[#allocation23_spill] sm:$0xff] %v14566_v27  ;;  %v14610_v40 = vsub.s32 %v14411_v58, %v1151_v63  ;;  %v14645_v58 = vadd.s32 152, %v14366_v38 }
 0x2d5   : > { %11904 = vmatprep.mubr.msk.bf16.mxu0 %vm18351_vm3, %v4839_v35  ;;  %v14428_v47 = vmul.u32.u64.low 3817748708, %v14408_v50  ;;  %v14429_v35 = vmul.u32.u64.high 3817748708, %v14408_v50, %v14428_v47  ;;  %vm1452_vm3 = vcmp.ne.s32.totalorder %v14416_v12, 0  ;;  %v14637_v57 = vsub.s32 %v14424_v52, %v1184_v54 }
 0x2d6   : > { %v18399_v47 = vmov 0  ;;  %v1228_v54 = vmul.u32 18, %v1227_v44 }
 0x2d7   : > { %v1172_v3 = vshrl.u32 %v14429_v35, 4  ;;  %18410 = vst [vmem:[#allocation27_spill] sm:$0xff] %v14637_v57 }
 0x2dc   : > { %11905 = vmatmul.mubr.msk.bf16.gmra.mrb[28].mxu0 %vm18373_vm6, %v4841_v25  ;;  %v14436_v25 = vadd.s32 72, %v14366_v38  ;;  %vm1488_vm6 = vcmp.lt.s32.totalorder %v14416_v12, 0 }
 0x2dd   : > { %11908 = vmatprep.mubr.msk.bf16.mxu0 %vm18374_vm8, %v4843_v45  ;;  %v14439_v45 = vadd.s32 112, %v14366_v38  ;;  %vm14506_vm8 = vmand %vm1488_vm6, %vm1452_vm3  ;;  %vm1457_vm3 = vcmp.ne.s32.totalorder %v14481_v51, 0  ;;  %v14784_v51 = vmul.u32.u64.low 3817748708, %v14720_v18  ;;  %v14785_v14 = vmul.u32.u64.high 3817748708, %v14720_v18, %v14784_v51 }
 0x2de   : > { %v14460_v11 = vmul.u32.u64.low 3817748708, %v14436_v25  ;;  %v14461_v23 = vmul.u32.u64.high 3817748708, %v14436_v25, %v14460_v11  ;;  %v18435_v51 = vmov 0 }
 0x2df   : > { %v14464_v43 = vmul.u32.u64.low 3817748708, %v14439_v45  ;;  %v14465_v34 = vmul.u32.u64.high 3817748708, %v14439_v45, %v14464_v43  ;;  %v14582_v17 = vmul.u32.u64.low 3817748708, %v14532_v41  ;;  %v14583_v11 = vmul.u32.u64.high 3817748708, %v14532_v41, %v14582_v17 }
 0x2e0   : > { %v1161_v60 = vshrl.u32 %v14461_v23, 4 }
 0x2e1   : > { %v1216_v0 = vshrl.u32 %v14465_v34, 4  ;;  %v18407_v34 = vmov 0  ;;  %v1260_v43 = vshrl.u32 %v14583_v11, 4  ;;  %v14682_v11 = vadd.s32 176, %v14366_v38 }
 0x2e2   : > { %v1162_v42 = vmul.u32 18, %v1161_v60 }
 0x2e3   : > { %v1261_v44 = vmul.u32 18, %v1260_v43 }
 0x2e4   : > { %11909 = vmatmul.mubr.msk.bf16.gmra.mrb[32].mxu0 %vm18375_vm4, %v4845_v31  ;;  %vm1454_vm4 = vcmp.ne.s32.totalorder %v14402_v61, 0  ;;  %v1107_v31 = vmul.u32 18, %v1106_v24  ;;  %v1173_v24 = vmul.u32 18, %v1172_v3  ;;  %v14650_v60 = vsub.s32 %v14436_v25, %v1162_v42 }
 0x2e5   : > { %vm14492_vm13 = vmand %vm1490_vm5, %vm1454_vm4  ;;  %vm18385_vm4 = vcmp.ne.s32.totalorder %v14443_v2, 0  ;;  %vm18386_vm5 = vcmp.lt.s32.totalorder %v14443_v2, 0  ;;  %v14666_v25 = vadd.s32 136, %v14366_v38  ;;  %v14734_v10 = vsub.s32 %v14532_v41, %v1261_v44 }
 0x2e6   : > { %v14477_v62 = vsub.s32 %v1024_v33, %v1107_v31  ;;  %v14497_v33 = vadd.s32 18, %v14445_v29  ;;  %vm14524_vm9 = vmand %vm18386_vm5, %vm18385_vm4  ;;  %vm1495_vm5 = vcmp.lt.s32.totalorder %v14479_v37, 0  ;;  %v14602_v3 = vsub.s32 %v14408_v50, %v1173_v24 }
 0x2e7   : > { %v14569_v53 = vmul.u32.u64.low 3817748708, %v14518_v15  ;;  %v14570_v31 = vmul.u32.u64.high 3817748708, %v14518_v15, %v14569_v53  ;;  %vm14574_vm1 = vmand %vm1495_vm5, %vm18402_vm11  ;;  %v14622_v24 = vadd.s32 128, %v14366_v38  ;;  %v1195_v50 = vmul.u32 18, %v1194_v36  ;;  %18416 = vst [vmem:[#allocation31_spill] sm:$0xff] %v14734_v10 }
 0x2e8   : > { %18377 = vst [vmem:[#allocation18_spill] sm:$0xff] %v14477_v62  ;;  %vm1492_vm6 = vcmp.lt.s32.totalorder %v14477_v62, 0  ;;  %vm18398_vm10 = vcmp.ne.s32.totalorder %v14477_v62, 0  ;;  %v14563_v35 = vadd.s32 18, %v14477_v62  ;;  %v18404_v32 = vsel %vm14574_vm1, 4294967295, %v18403_v32 }
 0x2e9   : > { %vm14558_vm4 = vmand %vm1492_vm6, %vm18398_vm10  ;;  %18405 = vst [vmem:[#allocation24_spill] sm:$0xff] %v18404_v32  ;;  %v1217_v53 = vmul.u32 18, %v1216_v0  ;;  %vm1498_vm5 = vcmp.lt.s32.totalorder %v14602_v3, 0  ;;  %v14642_v0 = vadd.s32 18, %v14602_v3  ;;  %v1205_v63 = vshrl.u32 %v14570_v31, 4 }
 0x2ea   : > { %v18400_v47 = vsel %vm14558_vm4, 4294967295, %v18399_v47  ;;  %vm14597_vm6 = vmand %vm1493_vm2, %vm1457_vm3  ;;  %vm1462_vm3 = vcmp.ne.s32.totalorder %v14602_v3, 0  ;;  %v14657_v17 = vmul.u32.u64.low 3817748708, %v14622_v24  ;;  %v14658_v6 = vmul.u32.u64.high 3817748708, %v14622_v24, %v14657_v17 }
 0x2eb   : > { %v18408_v34 = vsel %vm14597_vm6, 4294967295, %v18407_v34  ;;  %v14653_v52 = vsub.s32 %v14439_v45, %v1217_v53  ;;  %v14661_v36 = vadd.s32 18, %v14610_v40  ;;  %v14670_v45 = vsub.s32 %v14457_v16, %v1195_v50  ;;  %vm14726_vm10 = vmand %vm1498_vm5, %vm1462_vm3 }
 0x2ec   : > { %18409 = vst [vmem:[#allocation26_spill] sm:$0xff] %v18408_v34  ;;  %v14673_v31 = vmul.u32.u64.low 3817748708, %v14645_v58  ;;  %v14674_v42 = vmul.u32.u64.high 3817748708, %v14645_v58, %v14673_v31  ;;  %v14677_v53 = vadd.s32 18, %v14637_v57  ;;  %v14685_v17 = vadd.s32 18, %v14650_v60 }
 0x2ed   : > { %18411 = vst [vmem:[#allocation28_spill] sm:$0xff] %v14670_v45  ;;  %v14689_v16 = vsub.s32 %v14473_v5, %v1228_v54  ;;  %v1206_v50 = vmul.u32 18, %v1205_v63  ;;  %v14692_v31 = vmul.u32.u64.low 3817748708, %v14666_v25  ;;  %v14693_v23 = vmul.u32.u64.high 3817748708, %v14666_v25, %v14692_v31 }
 0x2ee   : > { %18412 = vst [vmem:[#allocation29_spill] sm:$0xff] %v14677_v53  ;;  %v14700_v48 = vadd.s32 18, %v14653_v52  ;;  %v14708_v5 = vmul.u32.u64.low 3817748708, %v14682_v11  ;;  %v14709_v43 = vmul.u32.u64.high 3817748708, %v14682_v11, %v14708_v5  ;;  %v14712_v63 = vadd.s32 168, %v14366_v38 }
 0x2ef   : > { %18413 = vst [vmem:[#allocation30_spill] sm:$0xff] %v14689_v16  ;;  %v14715_v54 = vadd.s32 18, %v14670_v45  ;;  %v1238_v31 = vshrl.u32 %v14658_v6, 4  ;;  %v14731_v5 = vsub.s32 %v14518_v15, %v1206_v50  ;;  %vm18417_vm11 = vcmp.ne.s32.totalorder %v14610_v40, 0 }
 0x2f0   : > { %v14737_v7 = vmul.u32.u64.low 3817748708, %v14696_v49  ;;  %v14738_v6 = vmul.u32.u64.high 3817748708, %v14696_v49, %v14737_v7  ;;  %vm18418_vm2 = vcmp.lt.s32.totalorder %v14610_v40, 0  ;;  %v1271_v28 = vshrl.u32 %v14674_v42, 4 }
 0x2f1   : > { %vm14744_vm7 = vmand %vm18418_vm2, %vm18417_vm11  ;;  %v14750_v15 = vmul.u32.u64.low 3817748708, %v14704_v59  ;;  %v14751_v50 = vmul.u32.u64.high 3817748708, %v14704_v59, %v14750_v15  ;;  %v14754_v41 = vadd.s32 192, %v14366_v38  ;;  %vm18421_vm3 = vcmp.ne.s32.totalorder %v14637_v57, 0 }
 0x2f2   : > { %vm18422_vm5 = vcmp.lt.s32.totalorder %v14637_v57, 0  ;;  %v18423_v7 = vmov 0  ;;  %v14766_v44 = vmul.u32.u64.low 3817748708, %v14712_v63  ;;  %v14767_v42 = vmul.u32.u64.high 3817748708, %v14712_v63, %v14766_v44 }
 0x2f3   : > { %vm14760_vm12 = vmand %vm18422_vm5, %vm18421_vm3  ;;  %vm18425_vm11 = vcmp.ne.s32.totalorder %v14650_v60, 0  ;;  %vm18426_vm15 = vcmp.lt.s32.totalorder %v14650_v60, 0  ;;  %v18427_v15 = vmov 0  ;;  %v14781_v26 = vadd.s32 18, %v14689_v16 }
 0x2f4   : > { %v18424_v7 = vsel %vm14760_vm12, 4294967295, %v18423_v7  ;;  %vm14776_vm6 = vmand %vm18426_vm15, %vm18425_vm11  ;;  %v1239_v20 = vmul.u32 18, %v1238_v31  ;;  %vm18429_vm3 = vcmp.ne.s32.totalorder %v14653_v52, 0  ;;  %vm18430_vm5 = vcmp.lt.s32.totalorder %v14653_v52, 0 }
 0x2f5   : > { %v18428_v15 = vsel %vm14776_vm6, 4294967295, %v18427_v15  ;;  %vm14791_vm2 = vmand %vm18430_vm5, %vm18429_vm3  ;;  %v18431_v44 = vmov 0  ;;  %v14798_v34 = vadd.s32 18, %v14731_v5  ;;  %v1249_v31 = vshrl.u32 %v14693_v23, 4 }
 0x2f6   : > { %v18432_v44 = vsel %vm14791_vm2, 4294967295, %v18431_v44  ;;  %vm18433_vm1 = vcmp.ne.s32.totalorder %v14670_v45, 0  ;;  %vm18434_vm0 = vcmp.lt.s32.totalorder %v14670_v45, 0  ;;  %vm1470_vm3 = vcmp.ne.s32.totalorder %v14734_v10, 0 }
 0x2f7   : > { %vm14805_vm4 = vmand %vm18434_vm0, %vm18433_vm1  ;;  %v1272_v37 = vmul.u32 18, %v1271_v28  ;;  %v14811_v27 = vmul.u32.u64.low 3817748708, %v14754_v41  ;;  %v14812_v32 = vmul.u32.u64.high 3817748708, %v14754_v41, %v14811_v27  ;;  %vm18437_vm5 = vcmp.ne.s32.totalorder %v14689_v16, 0 }
 0x2f8   : > { %v18436_v51 = vsel %vm14805_vm4, 4294967295, %v18435_v51  ;;  %vm18438_vm11 = vcmp.lt.s32.totalorder %v14689_v16, 0  ;;  %v18439_v23 = vmov 0  ;;  %vm1506_vm0 = vcmp.lt.s32.totalorder %v14734_v10, 0 }
 0x2f9   : > { %vm14818_vm15 = vmand %vm18438_vm11, %vm18437_vm5  ;;  %v1304_v4 = vshrl.u32 %v14709_v43, 4  ;;  %vm18441_vm1 = vcmp.ne.s32.totalorder %v14731_v5, 0  ;;  %vm18442_vm11 = vcmp.lt.s32.totalorder %v14731_v5, 0  ;;  %v14849_v43 = vsub.s32 %v14622_v24, %v1239_v20 }
 0x2fa   : > { %v18440_v23 = vsel %vm14818_vm15, 4294967295, %v18439_v23  ;;  %vm14844_vm5 = vmand %vm18442_vm11, %vm18441_vm1  ;;  %v14856_v28 = vadd.s32 18, %v14734_v10  ;;  %v1250_v62 = vmul.u32 18, %v1249_v31  ;;  %v1282_v57 = vshrl.u32 %v14738_v6, 4 }
 0x2fb   : > { %v18444_v30 = vsel %vm14844_vm5, 4294967295, %v18443_v30  ;;  %vm14871_vm1 = vmand %vm1506_vm0, %vm1470_vm3  ;;  %v18446_v24 = vmov 0  ;;  %v14876_v6 = vsub.s32 %v14645_v58, %v1272_v37  ;;  %v1315_v31 = vshrl.u32 %v14751_v50, 4 }
 0x2fc   : > { %18445 = vst [vmem:[#allocation32_spill] sm:$0xff] %v14856_v28  ;;  %v18447_v24 = vsel %vm14871_vm1, 4294967295, %v18446_v24  ;;  %v1305_v27 = vmul.u32 18, %v1304_v4  ;;  %v1293_v45 = vshrl.u32 %v14767_v42, 4  ;;  %vm1468_vm3 = vcmp.ne.s32.totalorder %v14849_v43, 0 }
 0x2fd   : > { %18448 = vst [vmem:[#allocation33_spill] sm:$0xff] %v18447_v24  ;;  %18449 = vst [vmem:[#allocation34_spill] sm:$0xff] %v14876_v6  ;;  %v1348_v37 = vshrl.u32 %v14785_v14, 4  ;;  %v14892_v58 = vadd.s32 200, %v14366_v38  ;;  %v14899_v53 = vadd.s32 18, %v14849_v43  ;;  %v14902_v4 = vsub.s32 %v14666_v25, %v1250_v62 }
 0x2fe   : > { %v1283_v42 = vmul.u32 18, %v1282_v57  ;;  %v1316_v20 = vmul.u32 18, %v1315_v31  ;;  %v1326_v14 = vshrl.u32 %v14812_v32, 4  ;;  %v14907_v16 = vadd.s32 240, %v14366_v38 }
 0x2ff   : > { %v14911_v24 = vsub.s32 %v14682_v11, %v1305_v27  ;;  %v1294_v50 = vmul.u32 18, %v1293_v45  ;;  %v1359_v10 = vshrl.u32 %v14826_v9, 4  ;;  %v14915_v62 = vadd.s32 18, %v14876_v6 }
 0x300   : > { %v1349_v57 = vmul.u32 18, %v1348_v37  ;;  %v14918_v25 = vmul.u32.u64.low 3817748708, %v14892_v58  ;;  %v14919_v31 = vmul.u32.u64.high 3817748708, %v14892_v58, %v14918_v25  ;;  %vm18451_vm11 = vcmp.lt.s32.totalorder %v14849_v43, 0 }
 0x301   : > { %18450 = vst [vmem:[#allocation35_spill] sm:$0xff] %v14911_v24  ;;  %vm14925_vm1 = vmand %vm18451_vm11, %vm1468_vm3  ;;  %v18452_v32 = vmov 0  ;;  %v14932_v9 = vsub.s32 %v14696_v49, %v1283_v42  ;;  %v14935_v45 = vadd.s32 224, %v14366_v38  ;;  %v14938_v11 = vsub.s32 %v14704_v59, %v1316_v20 }
 0x302   : > { %v18453_v32 = vsel %vm14925_vm1, 4294967295, %v18452_v32  ;;  %v1327_v27 = vmul.u32 18, %v1326_v14  ;;  %v14941_v37 = vmul.u32.u64.low 3817748708, %v14907_v16  ;;  %v14942_v25 = vmul.u32.u64.high 3817748708, %v14907_v16, %v14941_v37 }
 0x303   : > { %18454 = vst [vmem:[#allocation36_spill] sm:$0xff] %v14932_v9  ;;  %18455 = vst [vmem:[#allocation37_spill] sm:$0xff] %v14938_v11  ;;  %vm18456_vm3 = vcmp.ne.s32.totalorder %v14876_v6, 0  ;;  %vm18457_vm11 = vcmp.lt.s32.totalorder %v14876_v6, 0  ;;  %v18458_v28 = vmov 0  ;;  %v14955_v49 = vsub.s32 %v14712_v63, %v1294_v50 }
 0x304   : > { %vm14948_vm0 = vmand %vm18457_vm11, %vm18456_vm3  ;;  %v1360_v59 = vmul.u32 18, %v1359_v10  ;;  %v14962_v42 = vadd.s32 18, %v14902_v4  ;;  %v14965_v14 = vadd.s32 18, %v14911_v24  ;;  %v14968_v37 = vsub.s32 %v14720_v18, %v1349_v57 }
 0x305   : > { %v18459_v28 = vsel %vm14948_vm0, 4294967295, %v18458_v28  ;;  %18460 = vst [vmem:[#allocation38_spill] sm:$0xff] %v14955_v49  ;;  %v18463_v63 = vsel %vm14492_vm13, %v14420_v56, %v14402_v61  ;;  %v18464_v10 = vmov 0  ;;  %v18467_v50 = vsel %vm14506_vm8, %v14452_v21, %v14416_v12 }
 0x306   : > { %18461 = vst [vmem:[#allocation39_spill] sm:$0xff] %v14965_v14  ;;  %18462 = vst [vmem:[#allocation40_spill] sm:$0xff] %v14968_v37  ;;  %vm14975_vm3 = vcmp.lt.s32.totalorder %v18463_v63, 16  ;;  %vm14984_vm11 = vcmp.lt.s32.totalorder %v18467_v50, 16  ;;  %v18468_v20 = vmov 0  ;;  %vm18471_vm5 = vcmp.ne.s32.totalorder %v14902_v4, 0 }
 0x307   : > { %v18465_v10 = vsel %vm14975_vm3, 4294967295, %v18464_v10  ;;  %v18469_v20 = vsel %vm14984_vm11, 4294967295, %v18468_v20  ;;  %vm18472_vm15 = vcmp.lt.s32.totalorder %v14902_v4, 0  ;;  %v18473_v18 = vmov 0 }
 0x308   : > { %18466 = vst [vmem:[#allocation41_spill] sm:$0xff] %v18465_v10  ;;  %18470 = vst [vmem:[#allocation42_spill] sm:$0xff] %v18469_v20  ;;  %vm1508_vm4 = vcmp.lt.s32.totalorder %v14932_v9, 0  ;;  %v14999_v61 = vmul.u32.u64.low 3817748708, %v14935_v45  ;;  %v15000_v56 = vmul.u32.u64.high 3817748708, %v14935_v45, %v14999_v61  ;;  %v18475_v12 = vsel %vm14524_vm9, %v14470_v46, %v14443_v2  ;;  %v18544_v10 = vld [vmem:[#allocation20_spill] sm:$0xff] }
 0x309   : > { %vm14992_vm1 = vmand %vm18472_vm15, %vm18471_vm5  ;;  %vm15007_vm8 = vcmp.lt.s32.totalorder %v18475_v12, 16  ;;  %v18476_v21 = vmov 0  ;;  %vm18479_vm15 = vcmp.ne.s32.totalorder %v14911_v24, 0  ;;  %vm18480_vm5 = vcmp.lt.s32.totalorder %v14911_v24, 0 }
 0x30a   : > { %v18474_v18 = vsel %vm14992_vm1, 4294967295, %v18473_v18  ;;  %v18477_v21 = vsel %vm15007_vm8, 4294967295, %v18476_v21  ;;  %vm15019_vm13 = vmand %vm18480_vm5, %vm18479_vm15  ;;  %v15026_v2 = vsub.s32 %v14754_v41, %v1327_v27  ;;  %v18484_v46 = vsel %vm14538_vm14, %v14497_v33, %v14445_v29 }
 0x30b   : > { %18478 = vst [vmem:[#allocation43_spill] sm:$0xff] %v18477_v21  ;;  %v18482_v22 = vsel %vm15019_vm13, 4294967295, %v18481_v22  ;;  %vm15033_vm0 = vcmp.lt.s32.totalorder %v18484_v46, 16  ;;  %v15038_v57 = vadd.s32 18, %v14932_v9  ;;  %vm1473_vm15 = vcmp.ne.s32.totalorder %v14955_v49, 0 }
 0x30c   : > { %18483 = vst [vmem:[#allocation44_spill] sm:$0xff] %v18482_v22  ;;  %v18486_v39 = vsel %vm15033_vm0, 4294967295, %v18485_v39  ;;  %vm1509_vm5 = vcmp.lt.s32.totalorder %v14955_v49, 0  ;;  %v15043_v63 = vsub.s32 %v14770_v13, %v1360_v59  ;;  %vm18489_vm9 = vcmp.ne.s32.totalorder %v14932_v9, 0  ;;  %v18520_v22 = vld [vmem:[#allocation21_spill] sm:$0xff] }
 0x30d   : > { %18487 = vst [vmem:[#allocation45_spill] sm:$0xff] %v18486_v39  ;;  %18488 = vst [vmem:[#allocation46_spill] sm:$0xff] %v15038_v57  ;;  %v1337_v29 = vshrl.u32 %v14919_v31, 4  ;;  %v15055_v33 = vadd.s32 248, %v14366_v38  ;;  %v18495_v27 = vmov 0  ;;  %v15074_v31 = vadd.s32 18, %v14938_v11 }
 0x30e   : > { %vm15047_vm2 = vmand %vm1508_vm4, %vm18489_vm9  ;;  %vm18493_vm4 = vcmp.ne.s32.totalorder %v14938_v11, 0  ;;  %vm18494_vm9 = vcmp.lt.s32.totalorder %v14938_v11, 0  ;;  %v15077_v59 = vadd.s32 18, %v14955_v49  ;;  %v18500_v50 = vmov 0  ;;  %v18511_v57 = vld [vmem:[#allocation18_spill] sm:$0xff] }
 0x30f   : > { %v18491_v19 = vsel %vm15047_vm2, 4294967295, %v18490_v19  ;;  %vm15069_vm12 = vmand %vm18494_vm9, %vm18493_vm4  ;;  %18498 = vst [vmem:[#allocation49_spill] sm:$0xff] %v15074_v31  ;;  %v15084_v61 = vadd.s32 18, %v14968_v37  ;;  %vm1476_vm13 = vcmp.ne.s32.totalorder %v15026_v2, 0  ;;  %vm1512_vm4 = vcmp.lt.s32.totalorder %v15026_v2, 0 }
 0x310   : > { %18492 = vst [vmem:[#allocation47_spill] sm:$0xff] %v18491_v19  ;;  %v18496_v27 = vsel %vm15069_vm12, 4294967295, %v18495_v27  ;;  %18499 = vst [vmem:[#allocation50_spill] sm:$0xff] %v15077_v59  ;;  %v1392_v12 = vshrl.u32 %v14942_v25, 4  ;;  %vm18504_vm9 = vcmp.ne.s32.totalorder %v14968_v37, 0  ;;  %v18506_v41 = vmov 0 }
 0x311   : > { %18497 = vst [vmem:[#allocation48_spill] sm:$0xff] %v18496_v27  ;;  %vm15079_vm14 = vmand %vm1509_vm5, %vm1473_vm15  ;;  %vm18505_vm15 = vcmp.lt.s32.totalorder %v14968_v37, 0  ;;  %vm1515_vm6 = vcmp.lt.s32.totalorder %v15043_v63, 0  ;;  %v15107_v25 = vadd.s32 18, %v15026_v2  ;;  %v1338_v13 = vmul.u32 18, %v1337_v29  ;;  %v18521_v27 = vld [vmem:[#allocation17_spill] sm:$0xff] }
 0x312   : > { %v18501_v50 = vsel %vm15079_vm14, 4294967295, %v18500_v50  ;;  %18503 = vst [vmem:[#allocation52_spill] sm:$0xff] %v15084_v61  ;;  %vm15097_vm5 = vmand %vm18505_vm15, %vm18504_vm9  ;;  %v15110_v46 = vmul.u32.u64.low 3817748708, %v15055_v33  ;;  %v15111_v9 = vmul.u32.u64.high 3817748708, %v15055_v33, %v15110_v46  ;;  %vm18510_vm9 = vnez %v18400_v47  ;;  %v18533_v59 = vld [vmem:[#allocation24_spill] sm:$0xff] }
 0x313   : > { %18502 = vst [vmem:[#allocation51_spill] sm:$0xff] %v18501_v50  ;;  %v18507_v41 = vsel %vm15097_vm5, 4294967295, %v18506_v41  ;;  %v18512_v19 = vsel %vm18510_vm9, %v14563_v35, %v18511_v57  ;;  %v18513_v24 = vmov 0  ;;  %vm15130_vm1 = vmand %vm1512_vm4, %vm1476_vm13  ;;  %v18516_v46 = vmov 0  ;;  %v18536_v50 = vld [vmem:[#allocation19_spill] sm:$0xff] }
 0x314   : > { %18508 = vst [vmem:[#allocation53_spill] sm:$0xff] %v18507_v41  ;;  %vm15118_vm15 = vcmp.lt.s32.totalorder %v18512_v19, 16  ;;  %v18517_v46 = vsel %vm15130_vm1, 4294967295, %v18516_v46  ;;  %v15135_v47 = vadd.s32 18, %v15043_v63  ;;  %v1370_v35 = vshrl.u32 %v15000_v56, 4  ;;  %v18518_v19 = vld [vmem:[#allocation22_spill] sm:$0xff] }
 0x315   : > { %v18514_v24 = vsel %vm15118_vm15, 4294967295, %v18513_v24  ;;  %vm18519_vm9 = vnez %v18518_v19  ;;  %v18523_v11 = vmov 0  ;;  %vm18526_vm13 = vcmp.ne.s32.totalorder %v15043_v63, 0 }
 0x316   : > { %18515 = vst [vmem:[#allocation18_spill] sm:$0xff] %v18514_v24  ;;  %v18522_v14 = vsel %vm18519_vm9, %v18520_v22, %v18521_v27  ;;  %vm15153_vm4 = vmand %vm1515_vm6, %vm18526_vm13  ;;  %v18527_v31 = vmov 0  ;;  %v1393_v56 = vmul.u32 18, %v1392_v12  ;;  %v15158_v19 = vadd.s32 272, %v14366_v38 }
 0x317   : > { %vm15143_vm12 = vcmp.lt.s32.totalorder %v18522_v14, 16  ;;  %v18528_v31 = vsel %vm15153_vm4, 4294967295, %v18527_v31  ;;  %v15161_v14 = vadd.s32 256, %v14366_v38  ;;  %vm18529_vm9 = vcmask 31744  }
 0x318   : > { %v18524_v11 = vsel %vm15143_vm12, 4294967295, %v18523_v11  ;;  %v15165_v27 = vmul.u32.u64.low 3817748708, %v15104_v8  ;;  %v15166_v41 = vmul.u32.u64.high 3817748708, %v15104_v8, %v15165_v27  ;;  %v15170_v29 = vadd.s32 280, %v14366_v38  ;;  %vm18532_vm6 = vmmov %vm18529_vm9  ;;  %v18535_v8 = vld [vmem:[#allocation23_spill] sm:$0xff] }
 0x319   : > { %18525 = vst [vmem:[#allocation22_spill] sm:$0xff] %v18524_v11  ;;  %v15173_v37 = vadd.s32 264, %v14366_v38  ;;  %vm18534_vm13 = vnez %v18533_v59  ;;  %v18538_v6 = vmov 0  ;;  %v18541_v38 = vld [vmem:[#allocation26_spill] sm:$0xff] }
 0x31a   : > { %18530 = vst [vmem:[#allocation21_spill] sm:$0xff] %v15170_v29  ;;  %v18537_v27 = vsel %vm18534_vm13, %v18535_v8, %v18536_v50  ;;  %vm18542_vm5 = vnez %v18541_v38  ;;  %v18546_v29 = vmov 0  ;;  %v15203_v8 = vsub.s32 %v14892_v58, %v1338_v13 }
 0x31b   : > { %18531 = vst [vmem:[#allocation17_spill] sm:$0xff] %v15173_v37  ;;  %v18543_v37 = vld [vmem:[#allocation25_spill] sm:$0xff]  ;;  %v15216_v58 = vsub.s32 %v14907_v16, %v1393_v56 }
 0x377   : > { %v11878_v57 = vpop.f32.mrb[0].mxu0 }
 0x378   : > { %5118 = vst.msk [vmem:[#allocation2 + $0x10] sm:$0xff] %vm18529_vm9, %v11878_v57  ;;  %v4937_v22 = vpop.f32.mrb[1].mxu0  ;;  %v5226_v12 = vsel %vm14975_vm3, %v11878_v57, 0.0  ;;  %vm15185_vm9 = vcmp.lt.s32.totalorder %v18537_v27, 16  ;;  %v18545_v57 = vsel %vm18542_vm5, %v18543_v37, %v18544_v10  ;;  %v1371_v10 = vmul.u32 18, %v1370_v35  ;;  %vm18549_vm5 = vmmov %vm18532_vm6 }
 0x379   : > { %5116 = vst.msk [vmem:[#allocation2] sm:$0xff] %vm18532_vm6, %v4937_v22  ;;  %v5224_v61 = vsel %vm14984_vm11, %v4937_v22, 0.0  ;;  %v11879_v49 = vpop.f32.mrb[2].mxu0  ;;  %v18539_v6 = vsel %vm15185_vm9, 4294967295, %v18538_v6  ;;  %vm15194_vm3 = vcmp.lt.s32.totalorder %v18545_v57, 16  ;;  %vm18550_vm13 = vmmov %vm18549_vm5 }
 0x37a   : > { %18540 = vst [vmem:[#allocation24_spill] sm:$0xff] %v18539_v6  ;;  %v18547_v29 = vsel %vm15194_vm3, 4294967295, %v18546_v29  ;;  %v5338_v50 = vmul.f32 %v5224_v61, %v5224_v61  ;;  %5119 = vst.msk [vmem:[#allocation2 + $0x18] sm:$0xff] %vm18532_vm6, %v11879_v49  ;;  %v5227_v22 = vsel %vm15007_vm8, %v11879_v49, 0.0  ;;  %v4940_v27 = vpop.f32.mrb[3].mxu0  ;;  %v5340_v49 = vmul.f32 %v5226_v12, %v5226_v12 }
 0x37b   : > { %18548 = vst [vmem:[#allocation23_spill] sm:$0xff] %v18547_v29  ;;  %5117 = vst.msk [vmem:[#allocation2 + $0x8] sm:$0xff] %vm18549_vm5, %v4940_v27  ;;  %v5225_v38 = vsel %vm15033_vm0, %v4940_v27, 0.0  ;;  %v15219_v13 = vmul.u32.u64.low 3817748708, %v15158_v19  ;;  %v15220_v57 = vmul.u32.u64.high 3817748708, %v15158_v19, %v15219_v13  ;;  %v5260_v59 = vsel %vm18550_vm13, %v5224_v61, 0.0 }
 0x37c   : > { %vm18551_vm6 = vmmov %vm18549_vm5  ;;  %v5339_v37 = vmul.f32 %v5225_v38, %v5225_v38  ;;  %v5341_v35 = vmul.f32 %v5227_v22, %v5227_v22  ;;  %v1403_v27 = vshrl.u32 %v15111_v9, 4  ;;  %v18555_v61 = vsel %vm14726_vm10, %v14642_v0, %v14602_v3 }
 0x37d   : > { %v5261_v21 = vsel %vm18551_vm6, %v5225_v38, 0.0  ;;  %vm18552_vm0 = vmmov %vm18549_vm5  ;;  %vm15235_vm13 = vcmp.lt.s32.totalorder %v18555_v61, 16  ;;  %v18556_v13 = vmov 0  ;;  %v18559_v9 = vsel %vm14744_vm7, %v14661_v36, %v14610_v40 }
 0x37e   : > { %v5262_v20 = vadd.f32 %v5261_v21, %v5260_v59  ;;  %v5263_v16 = vsel %vm18552_vm0, %v5226_v12, 0.0  ;;  %vm18553_vm8 = vmmov %vm18552_vm0  ;;  %v18557_v13 = vsel %vm15235_vm13, 4294967295, %v18556_v13  ;;  %vm15244_vm6 = vcmp.lt.s32.totalorder %v18559_v9, 16 }
 0x37f   : > { %v5374_v56 = vsel %vm18553_vm8, %v5338_v50, 0.0  ;;  %vm18554_vm11 = vmmov %vm18552_vm0  ;;  %18558 = vst [vmem:[#allocation19_spill] sm:$0xff] %v18557_v13  ;;  %v18560_v21 = vmov 0  ;;  %v11882_v59 = vpop.f32.mrb[4].mxu0  ;;  %v15250_v3 = vadd.s32 18, %v15203_v8  ;;  %v15253_v0 = vsub.s32 %v14935_v45, %v1371_v10  ;;  %v18575_v10 = vld [vmem:[#allocation27_spill] sm:$0xff] }
 0x380   : > { %v5375_v39 = vsel %vm18554_vm11, %v5339_v37, 0.0  ;;  %v18561_v21 = vsel %vm15244_vm6, 4294967295, %v18560_v21  ;;  %v5264_v12 = vadd.f32 %v5263_v16, %v5262_v20  ;;  %vm18563_vm10 = vmmov %vm18552_vm0  ;;  %v4953_v40 = vpop.f32.mrb[5].mxu0  ;;  %vm18565_vm7 = vnez %v18428_v15  ;;  %v18574_v15 = vld [vmem:[#allocation29_spill] sm:$0xff] }
 0x381   : > { %18562 = vst [vmem:[#allocation26_spill] sm:$0xff] %v18561_v21  ;;  %v5376_v55 = vadd.f32 %v5375_v39, %v5374_v56  ;;  %v5377_v1 = vsel %vm18563_vm10, %v5340_v49, 0.0  ;;  %vm18564_vm11 = vmmov %vm18552_vm0  ;;  %v18566_v36 = vsel %vm18565_vm7, %v14685_v17, %v14650_v60  ;;  %v18567_v20 = vmov 0  ;;  %v11883_v17 = vpop.f32.mrb[6].mxu0 }
 0x382   : > { %5122 = vst.msk [vmem:[#allocation2 + $0x30] sm:$0xff] %vm18564_vm11, %v11882_v59  ;;  %vm15262_vm8 = vcmp.lt.s32.totalorder %v18566_v36, 16  ;;  %v15269_v45 = vadd.s32 18, %v15216_v58  ;;  %vm18570_vm10 = vmmov %vm18552_vm0  ;;  %v5228_v60 = vsel %vm15118_vm15, %v4953_v40, 0.0  ;;  %vm18573_vm7 = vnez %v18424_v7  ;;  %v4956_v61 = vpop.f32.mrb[7].mxu0 }
 0x383   : > { %v18568_v20 = vsel %vm15262_vm8, 4294967295, %v18567_v20  ;;  %v5265_v39 = vsel %vm18570_vm10, %v5227_v22, 0.0  ;;  %vm18571_vm11 = vmmov %vm18552_vm0  ;;  %v5378_v37 = vadd.f32 %v5377_v1, %v5376_v55  ;;  %v18576_v38 = vsel %vm18573_vm7, %v18574_v15, %v18575_v10  ;;  %v18599_v10 = vld [vmem:[#allocation28_spill] sm:$0xff] }
 0x384   : > { %18569 = vst [vmem:[#allocation25_spill] sm:$0xff] %v18568_v20  ;;  %v5379_v50 = vsel %vm18571_vm11, %v5341_v35, 0.0  ;;  %vm18572_vm4 = vmmov %vm18552_vm0  ;;  %vm15281_vm5 = vcmp.lt.s32.totalorder %v18576_v38, 16  ;;  %v18577_v49 = vmov 0  ;;  %v5230_v22 = vsel %vm15143_vm12, %v11882_v59, 0.0 }
 0x385   : > { %5120 = vst.msk [vmem:[#allocation2 + $0x20] sm:$0xff] %vm18572_vm4, %v4953_v40  ;;  %v18578_v49 = vsel %vm15281_vm5, 4294967295, %v18577_v49  ;;  %v5266_v35 = vadd.f32 %v5265_v39, %v5264_v12  ;;  %vm18580_vm10 = vmmov %vm18552_vm0  ;;  %v5342_v56 = vmul.f32 %v5228_v60, %v5228_v60  ;;  %v5380_v9 = vadd.f32 %v5379_v50, %v5378_v37 }
 0x386   : > { %18579 = vst [vmem:[#allocation20_spill] sm:$0xff] %v18578_v49  ;;  %v5267_v16 = vsel %vm18580_vm10, %v5228_v60, 0.0  ;;  %vm18581_vm4 = vmmov %vm18552_vm0  ;;  %vm18584_vm7 = vcmp.lt.s32.totalorder %v15203_v8, 0  ;;  %v18585_v7 = vmov 0  ;;  %v1404_v12 = vmul.u32 18, %v1403_v27 }
 0x387   : > { %5123 = vst.msk [vmem:[#allocation2 + $0x38] sm:$0xff] %vm18581_vm4, %v11883_v17  ;;  %vm18582_vm11 = vmmov %vm18552_vm0  ;;  %vm18583_vm0 = vcmp.ne.s32.totalorder %v15203_v8, 0  ;;  %v5268_v55 = vadd.f32 %v5267_v16, %v5266_v35  ;;  %v5231_v1 = vsel %vm15185_vm9, %v11883_v17, 0.0  ;;  %v5229_v40 = vsel %vm15194_vm3, %v4956_v61, 0.0 }
 0x388   : > { %5121 = vst.msk [vmem:[#allocation2 + $0x28] sm:$0xff] %vm18582_vm11, %v4956_v61  ;;  %vm15294_vm15 = vmand %vm18584_vm7, %vm18583_vm0  ;;  %v5344_v36 = vmul.f32 %v5230_v22, %v5230_v22  ;;  %v5343_v37 = vmul.f32 %v5229_v40, %v5229_v40  ;;  %vm18590_vm11 = vcmp.lt.s32.totalorder %v15216_v58, 0  ;;  %v18595_v15 = vmov 0  ;;  %v11886_v61 = vpop.f32.mrb[8].mxu0 }
 0x389   : > { %v18586_v7 = vsel %vm15294_vm15, 4294967295, %v18585_v7  ;;  %vm18587_vm10 = vmmov %vm18581_vm4  ;;  %v18601_v35 = vmov 0 }
 0x38a   : > { %v5381_v59 = vsel %vm18587_vm10, %v5342_v56, 0.0  ;;  %vm18588_vm0 = vmmov %vm18581_vm4  ;;  %vm18589_vm4 = vcmp.ne.s32.totalorder %v15216_v58, 0  ;;  %vm18593_vm10 = vnez %v18432_v44  ;;  %v5345_v56 = vmul.f32 %v5231_v1, %v5231_v1 }
 0x38b   : > { %v5382_v39 = vadd.f32 %v5381_v59, %v5380_v9  ;;  %v5269_v50 = vsel %vm18588_vm0, %v5229_v40, 0.0  ;;  %vm15310_vm7 = vmand %vm18590_vm11, %vm18589_vm4  ;;  %v18594_v17 = vsel %vm18593_vm10, %v14700_v48, %v14653_v52  ;;  %vm18598_vm0 = vnez %v18436_v51  ;;  %v4969_v59 = vpop.f32.mrb[9].mxu0 }
 0x38c   : > { %v5270_v60 = vadd.f32 %v5269_v50, %v5268_v55  ;;  %vm15319_vm1 = vcmp.lt.s32.totalorder %v18594_v17, 16  ;;  %v18600_v38 = vsel %vm18598_vm0, %v14715_v54, %v18599_v10  ;;  %vm18604_vm4 = vcmask 31744   ;;  %v11887_v17 = vpop.f32.mrb[10].mxu0  ;;  %v18620_v10 = vld [vmem:[#allocation30_spill] sm:$0xff] }
 0x38d   : > { %v18596_v15 = vsel %vm15319_vm1, 4294967295, %v18595_v15  ;;  %vm15328_vm12 = vcmp.lt.s32.totalorder %v18600_v38, 16  ;;  %v15337_v48 = vmul.u32.u64.low 3817748708, %v15161_v14  ;;  %v15338_v52 = vmul.u32.u64.high 3817748708, %v15161_v14, %v15337_v48  ;;  %vm18605_vm11 = vmmov %vm18604_vm4 }
 0x38e   : > { %18597 = vst [vmem:[#allocation29_spill] sm:$0xff] %v18596_v15  ;;  %v18602_v35 = vsel %vm15328_vm12, 4294967295, %v18601_v35  ;;  %v5271_v16 = vsel %vm18604_vm4, %v5230_v22, 0.0  ;;  %v5383_v51 = vsel %vm18605_vm11, %v5343_v37, 0.0  ;;  %v15343_v54 = vadd.s32 18, %v15253_v0  ;;  %vm18606_vm10 = vmmov %vm18604_vm4  ;;  %v18633_v22 = vld [vmem:[#allocation31_spill] sm:$0xff] }
 0x38f   : > { %18603 = vst [vmem:[#allocation27_spill] sm:$0xff] %v18602_v35  ;;  %v5272_v9 = vadd.f32 %v5271_v16, %v5270_v60  ;;  %v5384_v55 = vadd.f32 %v5383_v51, %v5382_v39  ;;  %5126 = vst.msk [vmem:[#allocation2 + $0x50] sm:$0xff] %vm18606_vm10, %v11886_v61  ;;  %vm18607_vm0 = vnez %v18444_v30  ;;  %v18609_v50 = vmov 0  ;;  %v4972_v16 = vpop.f32.mrb[11].mxu0 }
 0x390   : > { %v18608_v40 = vsel %vm18607_vm0, %v14798_v34, %v14731_v5  ;;  %vm18612_vm4 = vcmp.ne.s32.totalorder %v15253_v0, 0  ;;  %vm18613_vm11 = vcmp.lt.s32.totalorder %v15253_v0, 0  ;;  %v15368_v30 = vsub.s32 %v15055_v33, %v1404_v12 }
 0x391   : > { %vm15351_vm3 = vcmp.lt.s32.totalorder %v18608_v40, 16  ;;  %vm15363_vm10 = vmand %vm18613_vm11, %vm18612_vm4  ;;  %vm18616_vm0 = vcmask 31744   ;;  %v5234_v37 = vsel %vm15235_vm13, %v11886_v61, 0.0  ;;  %v5232_v60 = vsel %vm15244_vm6, %v4969_v59, 0.0 }
 0x392   : > { %v18610_v50 = vsel %vm15351_vm3, 4294967295, %v18609_v50  ;;  %v5385_v34 = vsel %vm18616_vm0, %v5344_v36, 0.0  ;;  %vm18617_vm9 = vmmov %vm18616_vm0  ;;  %vm18619_vm4 = vnez %v18440_v23  ;;  %v18622_v33 = vmov 0  ;;  %5127 = vst.msk [vmem:[#allocation2 + $0x58] sm:$0xff] %vm18616_vm0, %v11887_v17 }
 0x393   : > { %18611 = vst [vmem:[#allocation28_spill] sm:$0xff] %v18610_v50  ;;  %v5273_v5 = vsel %vm18617_vm9, %v5231_v1, 0.0  ;;  %vm18618_vm15 = vmmov %vm18616_vm0  ;;  %v18621_v38 = vsel %vm18619_vm4, %v14781_v26, %v18620_v10  ;;  %v5386_v12 = vadd.f32 %v5385_v34, %v5384_v55  ;;  %v5346_v48 = vmul.f32 %v5232_v60, %v5232_v60  ;;  %v18632_v26 = vld [vmem:[#allocation32_spill] sm:$0xff] }
 0x394   : > { %5124 = vst.msk [vmem:[#allocation2 + $0x40] sm:$0xff] %vm18618_vm15, %v4969_v59  ;;  %vm15382_vm11 = vcmp.lt.s32.totalorder %v18621_v38, 16  ;;  %v5274_v1 = vadd.f32 %v5273_v5, %v5272_v9  ;;  %vm18625_vm9 = vmmov %vm18616_vm0  ;;  %v5233_v23 = vsel %vm15262_vm8, %v4972_v16, 0.0  ;;  %v1381_v61 = vshrl.u32 %v15166_v41, 4 }
 0x395   : > { %v18623_v33 = vsel %vm15382_vm11, 4294967295, %v18622_v33  ;;  %v5275_v36 = vsel %vm18625_vm9, %v5232_v60, 0.0  ;;  %vm18626_vm15 = vmmov %vm18616_vm0  ;;  %v5235_v40 = vsel %vm15281_vm5, %v11887_v17, 0.0  ;;  %v5347_v5 = vmul.f32 %v5233_v23, %v5233_v23 }
 0x396   : > { %18624 = vst [vmem:[#allocation30_spill] sm:$0xff] %v18623_v33  ;;  %v5387_v51 = vsel %vm18626_vm15, %v5345_v56, 0.0  ;;  %vm18627_vm6 = vmmov %vm18616_vm0  ;;  %v5276_v9 = vadd.f32 %v5275_v36, %v5274_v1  ;;  %v5348_v56 = vmul.f32 %v5234_v37, %v5234_v37  ;;  %v1436_v60 = vshrl.u32 %v15220_v57, 4 }
 0x397   : > { %5125 = vst.msk [vmem:[#allocation2 + $0x48] sm:$0xff] %vm18627_vm6, %v4972_v16  ;;  %v5388_v55 = vadd.f32 %v5387_v51, %v5386_v12  ;;  %vm18628_vm4 = vmmov %vm18616_vm0  ;;  %v18630_v16 = vld [vmem:[#allocation33_spill] sm:$0xff]  ;;  %v18635_v12 = vmov 0  ;;  %vm18638_vm15 = vnez %v18453_v32  ;;  %v18640_v1 = vmov 0  ;;  %v11890_v51 = vpop.f32.mrb[12].mxu0 }
 0x398   : > { %v5389_v59 = vsel %vm18628_vm4, %v5346_v48, 0.0  ;;  %vm18629_vm9 = vmmov %vm18616_vm0  ;;  %vm18631_vm6 = vnez %v18630_v16  ;;  %v18639_v17 = vsel %vm18638_vm15, %v14899_v53, %v14849_v43  ;;  %v1414_v57 = vshrl.u32 %v15338_v52, 4  ;;  %v4985_v53 = vpop.f32.mrb[13].mxu0 }
 0x399   : > { %v5277_v34 = vsel %vm18629_vm9, %v5233_v23, 0.0  ;;  %v5390_v10 = vadd.f32 %v5389_v59, %v5388_v55  ;;  %v18634_v41 = vsel %vm18631_vm6, %v18632_v26, %v18633_v22  ;;  %vm15416_vm4 = vcmp.lt.s32.totalorder %v18639_v17, 16  ;;  %vm18643_vm5 = vmmov %vm18629_vm9 }
 0x39a   : > { %v5278_v38 = vadd.f32 %v5277_v34, %v5276_v9  ;;  %vm15407_vm0 = vcmp.lt.s32.totalorder %v18634_v41, 16  ;;  %v18641_v1 = vsel %vm15416_vm4, 4294967295, %v18640_v1  ;;  %v5279_v36 = vsel %vm18643_vm5, %v5234_v37, 0.0  ;;  %vm18644_vm6 = vmmov %vm18643_vm5 }
 0x39b   : > { %v18636_v12 = vsel %vm15407_vm0, 4294967295, %v18635_v12  ;;  %18642 = vst [vmem:[#allocation32_spill] sm:$0xff] %v18641_v1  ;;  %v5349_v22 = vmul.f32 %v5235_v40, %v5235_v40  ;;  %v5391_v48 = vsel %vm18644_vm6, %v5347_v5, 0.0  ;;  %vm18645_vm13 = vmmov %vm18643_vm5  ;;  %vm18646_vm15 = vnez %v18474_v18  ;;  %v18654_v18 = vld [vmem:[#allocation34_spill] sm:$0xff] }
 0x39c   : > { %18637 = vst [vmem:[#allocation33_spill] sm:$0xff] %v18636_v12  ;;  %v5280_v32 = vadd.f32 %v5279_v36, %v5278_v38  ;;  %v5392_v23 = vadd.f32 %v5391_v48, %v5390_v10  ;;  %5130 = vst.msk [vmem:[#allocation2 + $0x70] sm:$0xff] %vm18645_vm13, %v11890_v51  ;;  %v18647_v43 = vsel %vm18646_vm15, %v14962_v42, %v14902_v4  ;;  %v18648_v52 = vmov 0  ;;  %v11891_v42 = vpop.f32.mrb[14].mxu0 }
 0x39d   : > { %vm15431_vm9 = vcmp.lt.s32.totalorder %v18647_v43, 16  ;;  %v15436_v37 = vadd.s32 18, %v15368_v30  ;;  %v1382_v26 = vmul.u32 18, %v1381_v61  ;;  %v5393_v9 = vsel %vm18643_vm5, %v5348_v56, 0.0  ;;  %vm18651_vm6 = vmmov %vm18643_vm5  ;;  %v4988_v38 = vpop.f32.mrb[15].mxu0 }
 0x39e   : > { %v18649_v52 = vsel %vm15431_vm9, 4294967295, %v18648_v52  ;;  %v5281_v55 = vsel %vm18651_vm6, %v5235_v40, 0.0  ;;  %v5238_v59 = vsel %vm15319_vm1, %v11890_v51, 0.0  ;;  %vm18652_vm13 = vmmov %vm18643_vm5  ;;  %v5236_v4 = vsel %vm15328_vm12, %v4985_v53, 0.0 }
 0x39f   : > { %18650 = vst [vmem:[#allocation31_spill] sm:$0xff] %v18649_v52  ;;  %5128 = vst.msk [vmem:[#allocation2 + $0x60] sm:$0xff] %vm18652_vm13, %v4985_v53  ;;  %vm18653_vm15 = vnez %v18459_v28  ;;  %v18656_v61 = vmov 0  ;;  %v5394_v56 = vadd.f32 %v5393_v9, %v5392_v23  ;;  %v5282_v40 = vadd.f32 %v5281_v55, %v5280_v32 }
 0x3a0   : > { %v18655_v34 = vsel %vm18653_vm15, %v14915_v62, %v18654_v18  ;;  %v5283_v5 = vsel %vm18643_vm5, %v5236_v4, 0.0  ;;  %v5350_v10 = vmul.f32 %v5236_v4, %v5236_v4  ;;  %vm18659_vm6 = vmmov %vm18643_vm5  ;;  %v5237_v28 = vsel %vm15351_vm3, %v4988_v38, 0.0  ;;  %v18662_v62 = vld [vmem:[#allocation21_spill] sm:$0xff]  ;;  %v18668_v18 = vld [vmem:[#allocation44_spill] sm:$0xff] }
 0x3a1   : > { %vm15450_vm8 = vcmp.lt.s32.totalorder %v18655_v34, 16  ;;  %5131 = vst.msk [vmem:[#allocation2 + $0x78] sm:$0xff] %vm18659_vm6, %v11891_v42  ;;  %vm18660_vm13 = vmmov %vm18643_vm5  ;;  %v15461_v41 = vmul.u32.u64.low 3817748708, %v18662_v62  ;;  %v15462_v17 = vmul.u32.u64.high 3817748708, %v18662_v62, %v15461_v41  ;;  %v5284_v36 = vadd.f32 %v5283_v5, %v5282_v40  ;;  %v18670_v34 = vld [vmem:[#allocation39_spill] sm:$0xff] }
 0x3a2   : > { %v18657_v61 = vsel %vm15450_vm8, 4294967295, %v18656_v61  ;;  %v5395_v16 = vsel %vm18660_vm13, %v5349_v22, 0.0  ;;  %vm18661_vm12 = vmmov %vm18643_vm5  ;;  %v5239_v32 = vsel %vm15382_vm11, %v11891_v42, 0.0  ;;  %v5352_v23 = vmul.f32 %v5238_v59, %v5238_v59 }
 0x3a3   : > { %18658 = vst [vmem:[#allocation34_spill] sm:$0xff] %v18657_v61  ;;  %5129 = vst.msk [vmem:[#allocation2 + $0x68] sm:$0xff] %vm18661_vm12, %v4988_v38  ;;  %v5396_v48 = vadd.f32 %v5395_v16, %v5394_v56  ;;  %v5285_v53 = vsel %vm18643_vm5, %v5237_v28, 0.0  ;;  %v5351_v22 = vmul.f32 %v5237_v28, %v5237_v28  ;;  %vm18664_vm12 = vcmp.ne.s32.totalorder %v15368_v30, 0  ;;  %v18671_v56 = vld [vmem:[#allocation35_spill] sm:$0xff]  ;;  %v18678_v38 = vld [vmem:[#allocation36_spill] sm:$0xff] }
 0x3a4   : > { %vm18663_vm15 = vmmov %vm18643_vm5  ;;  %vm18665_vm6 = vcmp.lt.s32.totalorder %v15368_v30, 0  ;;  %v1437_v9 = vmul.u32 18, %v1436_v60  ;;  %v5286_v4 = vadd.f32 %v5285_v53, %v5284_v36  ;;  %v18673_v40 = vmov 0  ;;  %v18683_v60 = vld [vmem:[#allocation17_spill] sm:$0xff] }
 0x3a5   : > { %v5397_v51 = vsel %vm18663_vm15, %v5350_v10, 0.0  ;;  %vm15472_vm13 = vmand %vm18665_vm6, %vm18664_vm12  ;;  %vm18669_vm15 = vnez %v18668_v18  ;;  %v18677_v10 = vld [vmem:[#allocation46_spill] sm:$0xff]  ;;  %v18680_v28 = vmov 0  ;;  %vm18684_vm12 = vcmask 31744   ;;  %v11894_v18 = vpop.f32.mrb[16].mxu0 }
 0x3a6   : > { %v5398_v55 = vadd.f32 %v5397_v51, %v5396_v48  ;;  %v18672_v42 = vsel %vm18669_vm15, %v18670_v34, %v18671_v56  ;;  %v18679_v16 = vsel %vm15047_vm2, %v18677_v10, %v18678_v38  ;;  %v5287_v48 = vsel %vm18684_vm12, %v5238_v59, 0.0  ;;  %vm18685_vm6 = vmmov %vm18684_vm12  ;;  %v5001_v5 = vpop.f32.mrb[17].mxu0  ;;  %v18688_v38 = vld [vmem:[#allocation50_spill] sm:$0xff]  ;;  %v18699_v10 = vld [vmem:[#allocation49_spill] sm:$0xff] }
 0x3a7   : > { %vm15481_vm11 = vcmp.lt.s32.totalorder %v18672_v42, 16  ;;  %vm15490_vm5 = vcmp.lt.s32.totalorder %v18679_v16, 16  ;;  %v15495_v41 = vmul.u32.u64.low 3817748708, %v18683_v60  ;;  %v15496_v36 = vmul.u32.u64.high 3817748708, %v18683_v60, %v15495_v41  ;;  %vm18686_vm15 = vmmov %vm18685_vm6  ;;  %v18689_v16 = vld [vmem:[#allocation38_spill] sm:$0xff] }
 0x3a8   : > { %v18674_v40 = vsel %vm15481_vm11, 4294967295, %v18673_v40  ;;  %v18681_v28 = vsel %vm15490_vm5, 4294967295, %v18680_v28  ;;  %v5353_v51 = vmul.f32 %v5239_v32, %v5239_v32  ;;  %v5399_v53 = vsel %vm18685_vm6, %v5351_v22, 0.0  ;;  %5134 = vst.msk [vmem:[#allocation2 + $0x90] sm:$0xff] %vm18686_vm15, %v11894_v18  ;;  %vm18695_vm12 = vmmov %vm18685_vm6 }
 0x3a9   : > { %18675 = vst [vmem:[#allocation21_spill] sm:$0xff] %v18674_v40  ;;  %18682 = vst [vmem:[#allocation44_spill] sm:$0xff] %v18681_v28  ;;  %v1415_v34 = vmul.u32 18, %v1414_v57  ;;  %v5288_v56 = vadd.f32 %v5287_v48, %v5286_v4  ;;  %v5400_v42 = vadd.f32 %v5399_v53, %v5398_v55  ;;  %v18690_v44 = vsel %vm15079_vm14, %v18688_v38, %v18689_v16  ;;  %v18694_v57 = vld [vmem:[#allocation54_spill] sm:$0xff]  ;;  %v11895_v48 = vpop.f32.mrb[18].mxu0  ;;  %v18697_v53 = vld [vmem:[#allocation48_spill] sm:$0xff] }
 0x3aa   : > { %vm15506_vm2 = vcmp.lt.s32.totalorder %v18690_v44, 16  ;;  %v18691_v33 = vmov 0  ;;  %v15515_v22 = vsub.s32 %v18694_v57, %v1382_v26  ;;  %v5401_v55 = vsel %vm18695_vm12, %v5352_v23, 0.0  ;;  %vm18696_vm14 = vmmov %vm18685_vm6  ;;  %v18700_v38 = vld [vmem:[#allocation37_spill] sm:$0xff]  ;;  %5135 = vst.msk [vmem:[#allocation2 + $0x98] sm:$0xff] %vm18685_vm6, %v11895_v48  ;;  %v5004_v59 = vpop.f32.mrb[19].mxu0 }
 0x3ab   : > { %v18692_v33 = vsel %vm15506_vm2, 4294967295, %v18691_v33  ;;  %v5289_v4 = vsel %vm18685_vm6, %v5239_v32, 0.0  ;;  %v5242_v41 = vsel %vm15407_vm0, %v11894_v18, 0.0  ;;  %5132 = vst.msk [vmem:[#allocation2 + $0x80] sm:$0xff] %vm18696_vm14, %v5001_v5  ;;  %v5240_v44 = vsel %vm15416_vm4, %v5001_v5, 0.0  ;;  %vm18705_vm12 = vmmov %vm18685_vm6 }
 0x3ac   : > { %18693 = vst [vmem:[#allocation39_spill] sm:$0xff] %v18692_v33  ;;  %vm18698_vm15 = vnez %v18697_v53  ;;  %v18702_v26 = vmov 0  ;;  %v5402_v23 = vadd.f32 %v5401_v55, %v5400_v42  ;;  %v5290_v32 = vadd.f32 %v5289_v4, %v5288_v56  ;;  %vm18706_vm14 = vmmov %vm18685_vm6 }
 0x3ad   : > { %v18701_v16 = vsel %vm18698_vm15, %v18699_v10, %v18700_v38  ;;  %v5291_v57 = vsel %vm18705_vm12, %v5240_v44, 0.0  ;;  %v5354_v18 = vmul.f32 %v5240_v44, %v5240_v44  ;;  %v5403_v5 = vsel %vm18706_vm14, %v5353_v51, 0.0  ;;  %vm18707_vm4 = vmmov %vm18685_vm6 }
 0x3ae   : > { %vm15529_vm3 = vcmp.lt.s32.totalorder %v18701_v16, 16  ;;  %5133 = vst.msk [vmem:[#allocation2 + $0x88] sm:$0xff] %vm18707_vm4, %v5004_v59  ;;  %v5241_v53 = vsel %vm15431_vm9, %v5004_v59, 0.0  ;;  %v15540_v10 = vsub.s32 %v15158_v19, %v1437_v9  ;;  %v15543_v38 = vsub.s32 %v15161_v14, %v1415_v34  ;;  %vm18708_vm15 = vmmov %vm18707_vm4  ;;  %v18710_v19 = vld [vmem:[#allocation53_spill] sm:$0xff]  ;;  %v18712_v9 = vld [vmem:[#allocation52_spill] sm:$0xff] }
 0x3af   : > { %v18703_v26 = vsel %vm15529_vm3, 4294967295, %v18702_v26  ;;  %v5292_v56 = vadd.f32 %v5291_v57, %v5290_v32  ;;  %v5404_v42 = vadd.f32 %v5403_v5, %v5402_v23  ;;  %v5405_v55 = vsel %vm18708_vm15, %v5354_v18, 0.0  ;;  %vm18709_vm12 = vmmov %vm18707_vm4  ;;  %v18713_v14 = vld [vmem:[#allocation40_spill] sm:$0xff] }
 0x3b0   : > { %18704 = vst [vmem:[#allocation35_spill] sm:$0xff] %v18703_v26  ;;  %v5243_v4 = vsel %vm15450_vm8, %v11895_v48, 0.0  ;;  %v5356_v44 = vmul.f32 %v5242_v41, %v5242_v41  ;;  %v5293_v51 = vsel %vm18709_vm12, %v5241_v53, 0.0  ;;  %v5355_v16 = vmul.f32 %v5241_v53, %v5241_v53  ;;  %vm18723_vm8 = vmmov %vm18707_vm4 }
 0x3b1   : > { %v5406_v59 = vadd.f32 %v5405_v55, %v5404_v42  ;;  %v5294_v52 = vadd.f32 %v5293_v51, %v5292_v56  ;;  %vm18711_vm6 = vnez %v18710_v19  ;;  %v18715_v23 = vmov 0  ;;  %v11898_v56 = vpop.f32.mrb[20].mxu0  ;;  %vm18725_vm9 = vmmov %vm18707_vm4 }
 0x3b2   : > { %v18714_v34 = vsel %vm18711_vm6, %v18712_v9, %v18713_v14  ;;  %vm18718_vm15 = vnez %v18517_v46  ;;  %v18720_v32 = vmov 0  ;;  %v1447_v57 = vshrl.u32 %v15462_v17, 4  ;;  %vm18724_vm6 = vmmov %vm18707_vm4  ;;  %5138 = vst.msk [vmem:[#allocation2 + $0xb0] sm:$0xff] %vm18725_vm9, %v11898_v56 }
 0x3b3   : > { %vm15555_vm14 = vcmp.lt.s32.totalorder %v18714_v34, 16  ;;  %v18719_v48 = vsel %vm18718_vm15, %v15107_v25, %v15026_v2  ;;  %v5295_v18 = vsel %vm18723_vm8, %v5242_v41, 0.0  ;;  %v5357_v5 = vmul.f32 %v5243_v4, %v5243_v4  ;;  %v5017_v2 = vpop.f32.mrb[21].mxu0  ;;  %vm18731_vm8 = vmmov %vm18724_vm6 }
 0x3b4   : > { %v18716_v23 = vsel %vm15555_vm14, 4294967295, %v18715_v23  ;;  %vm15564_vm12 = vcmp.lt.s32.totalorder %v18719_v48, 16  ;;  %v5407_v53 = vsel %vm18724_vm6, %v5355_v16, 0.0  ;;  %v1425_v42 = vshrl.u32 %v15496_v36, 4  ;;  %vm18732_vm9 = vmmov %vm18724_vm6 }
 0x3b5   : > { %18717 = vst [vmem:[#allocation47_spill] sm:$0xff] %v18716_v23  ;;  %v18721_v32 = vsel %vm15564_vm12, 4294967295, %v18720_v32  ;;  %v5296_v46 = vadd.f32 %v5295_v18, %v5294_v52  ;;  %v5408_v55 = vadd.f32 %v5407_v53, %v5406_v59  ;;  %vm18726_vm15 = vnez %v18586_v7  ;;  %5136 = vst.msk [vmem:[#allocation2 + $0xa0] sm:$0xff] %vm18732_vm9, %v5017_v2 }
 0x3b6   : > { %18722 = vst [vmem:[#allocation46_spill] sm:$0xff] %v18721_v32  ;;  %v18727_v25 = vsel %vm18726_vm15, %v15250_v3, %v15203_v8  ;;  %v18728_v17 = vmov 0  ;;  %v15584_v41 = vadd.s32 18, %v15515_v22  ;;  %v15587_v51 = vadd.s32 18, %v15540_v10  ;;  %v11899_v3 = vpop.f32.mrb[22].mxu0  ;;  %vm18740_vm1 = vmmov %vm18724_vm6 }
 0x3b7   : > { %vm15579_vm4 = vcmp.lt.s32.totalorder %v18727_v25, 16  ;;  %v5409_v52 = vsel %vm18731_vm8, %v5356_v44, 0.0  ;;  %v5297_v36 = vsel %vm18724_vm6, %v5243_v4, 0.0  ;;  %v5246_v7 = vsel %vm15481_vm11, %v11898_v56, 0.0  ;;  %vm18738_vm8 = vmmov %vm18724_vm6  ;;  %5139 = vst.msk [vmem:[#allocation2 + $0xb8] sm:$0xff] %vm18724_vm6, %v11899_v3  ;;  %v5020_v14 = vpop.f32.mrb[23].mxu0 }
 0x3b8   : > { %v18729_v17 = vsel %vm15579_vm4, 4294967295, %v18728_v17  ;;  %v5244_v8 = vsel %vm15490_vm5, %v5017_v2, 0.0  ;;  %vm18733_vm15 = vnez %v18528_v31  ;;  %v18735_v59 = vmov 0  ;;  %vm18739_vm11 = vmmov %vm18724_vm6  ;;  %5137 = vst.msk [vmem:[#allocation2 + $0xa8] sm:$0xff] %vm18740_vm1, %v5020_v14  ;;  %v11902_v39 = vpop.f32.mrb[24].mxu0 }
 0x3b9   : > { %18730 = vst [vmem:[#allocation36_spill] sm:$0xff] %v18729_v17  ;;  %v18734_v16 = vsel %vm18733_vm15, %v15135_v47, %v15043_v63  ;;  %v5410_v44 = vadd.f32 %v5409_v52, %v5408_v55  ;;  %v5298_v4 = vadd.f32 %v5297_v36, %v5296_v46  ;;  %v5299_v19 = vsel %vm18738_vm8, %v5244_v8, 0.0  ;;  %vm18745_vm6 = vmmov %vm18740_vm1 }
 0x3ba   : > { %vm15601_vm0 = vcmp.lt.s32.totalorder %v18734_v16, 16  ;;  %v5358_v9 = vmul.f32 %v5244_v8, %v5244_v8  ;;  %vm1486_vm9 = vcmp.ne.s32.totalorder %v15540_v10, 0  ;;  %vm1522_vm5 = vcmp.lt.s32.totalorder %v15540_v10, 0 }
 0x3bb   : > { %v18736_v59 = vsel %vm15601_vm0, 4294967295, %v18735_v59  ;;  %v5411_v31 = vsel %vm18739_vm11, %v5357_v5, 0.0  ;;  %v5245_v63 = vsel %vm15506_vm2, %v5020_v14, 0.0  ;;  %vm18741_vm15 = vcmp.ne.s32.totalorder %v15515_v22, 0 }
 0x3bc   : > { %18737 = vst [vmem:[#allocation17_spill] sm:$0xff] %v18736_v59  ;;  %vm18742_vm0 = vcmp.lt.s32.totalorder %v15515_v22, 0  ;;  %v1448_v34 = vmul.u32 18, %v1447_v57  ;;  %v1426_v48 = vmul.u32 18, %v1425_v42  ;;  %v5300_v18 = vadd.f32 %v5299_v19, %v5298_v4 }
 0x3bd   : > { %vm15617_vm8 = vmand %vm18742_vm0, %vm18741_vm15  ;;  %v5412_v53 = vadd.f32 %v5411_v31, %v5410_v44  ;;  %v5413_v56 = vsel %vm18745_vm6, %v5358_v9, 0.0  ;;  %v5247_v5 = vsel %vm15529_vm3, %v11899_v3, 0.0  ;;  %v5360_v46 = vmul.f32 %v5246_v7, %v5246_v7  ;;  %v5033_v44 = vpop.f32.mrb[25].mxu0 }
 0x3be   : > { %v5301_v55 = vsel %vm18740_vm1, %v5245_v63, 0.0  ;;  %v5359_v2 = vmul.f32 %v5245_v63, %v5245_v63  ;;  %v18746_v57 = vsel %vm15310_vm7, %v15269_v45, %v15216_v58  ;;  %v18747_v42 = vmov 0  ;;  %vm18754_vm6 = vmmov %vm18740_vm1  ;;  %5140 = vst.msk [vmem:[#allocation2 + $0xc0] sm:$0xff] %vm18740_vm1, %v5033_v44  ;;  %v11903_v9 = vpop.f32.mrb[26].mxu0 }
 0x3bf   : > { %v5414_v25 = vadd.f32 %v5413_v56, %v5412_v53  ;;  %v5302_v52 = vadd.f32 %v5301_v55, %v5300_v18  ;;  %vm15631_vm0 = vcmp.lt.s32.totalorder %v18746_v57, 16  ;;  %v18750_v36 = vsel %vm15363_vm10, %v15343_v54, %v15253_v0  ;;  %vm18755_vm10 = vmmov %vm18740_vm1 }
 0x3c0   : > { %v18748_v42 = vsel %vm15631_vm0, 4294967295, %v18747_v42  ;;  %vm15640_vm15 = vcmp.lt.s32.totalorder %v18750_v36, 16  ;;  %v18751_v8 = vmov 0  ;;  %v1625_v27 = vsel %vm15617_vm8, %v15584_v41, %v15515_v22  ;;  %5142 = vst.msk [vmem:[#allocation2 + $0xd0] sm:$0xff] %vm18755_vm10, %v11902_v39  ;;  %vm18756_vm8 = vmmov %vm18740_vm1 }
 0x3c1   : > { %18749 = vst [vmem:[#allocation51_spill] sm:$0xff] %v18748_v42  ;;  %v18752_v8 = vsel %vm15640_vm15, 4294967295, %v18751_v8  ;;  %v5303_v58 = vsel %vm18754_vm6, %v5246_v7, 0.0  ;;  %v5361_v45 = vmul.f32 %v5247_v5, %v5247_v5  ;;  %v5415_v3 = vsel %vm18740_vm1, %v5359_v2, 0.0  ;;  %vm18757_vm6 = vmmov %vm18740_vm1 }
 0x3c2   : > { %18753 = vst [vmem:[#allocation50_spill] sm:$0xff] %v18752_v8  ;;  %v15652_v16 = vsub.s32 %v18662_v62, %v1448_v34  ;;  %v5304_v0 = vadd.f32 %v5303_v58, %v5302_v52  ;;  %v5416_v54 = vadd.f32 %v5415_v3, %v5414_v25  ;;  %v15656_v4 = vadd.s32 18, %v15543_v38  ;;  %vm18764_vm7 = vmmov %vm18740_vm1 }
 0x3c3   : > { %v15659_v22 = vsub.s32 %v18683_v60, %v1426_v48  ;;  %v5417_v41 = vsel %vm18756_vm8, %v5360_v46, 0.0  ;;  %v5305_v7 = vsel %vm18757_vm6, %v5247_v5, 0.0  ;;  %v5250_v19 = vsel %vm15555_vm14, %v11902_v39, 0.0  ;;  %vm18762_vm8 = vmmov %vm18740_vm1  ;;  %v5036_v48 = vpop.f32.mrb[27].mxu0 }
 0x3c4   : > { %v5248_v62 = vsel %vm15564_vm12, %v5033_v44, 0.0  ;;  %v18758_v14 = vsel %vm15472_vm13, %v15436_v37, %v15368_v30  ;;  %v18759_v60 = vmov 0  ;;  %v5418_v31 = vadd.f32 %v5417_v41, %v5416_v54  ;;  %vm18763_vm6 = vmmov %vm18740_vm1  ;;  %5141 = vst.msk [vmem:[#allocation2 + $0xc8] sm:$0xff] %vm18764_vm7, %v5036_v48  ;;  %v11906_v3 = vpop.f32.mrb[28].mxu0 }
 0x3c5   : > { %vm15673_vm10 = vcmp.lt.s32.totalorder %v18758_v14, 16  ;;  %v5306_v63 = vadd.f32 %v5305_v7, %v5304_v0  ;;  %v5307_v47 = vsel %vm18762_vm8, %v5248_v62, 0.0  ;;  %v5362_v34 = vmul.f32 %v5248_v62, %v5248_v62  ;;  %5143 = vst.msk [vmem:[#allocation2 + $0xd8] sm:$0xff] %vm18763_vm6, %v11903_v9  ;;  %vm18768_vm8 = vmmov %vm18740_vm1  ;;  %v5049_v44 = vpop.f32.mrb[29].mxu0 }
 0x3c6   : > { %v18760_v60 = vsel %vm15673_vm10, 4294967295, %v18759_v60  ;;  %v5419_v18 = vsel %vm18740_vm1, %v5361_v45, 0.0  ;;  %v5249_v43 = vsel %vm15579_vm4, %v5036_v48, 0.0  ;;  %vm15683_vm13 = vcmp.lt.s32.totalorder %v1625_v27, 16  ;;  %vm15696_vm7 = vmand %vm1522_vm5, %vm1486_vm9 }
 0x3c7   : > { %18761 = vst [vmem:[#allocation38_spill] sm:$0xff] %v18760_v60  ;;  %v18765_v30 = vmov 0  ;;  %v5308_v37 = vadd.f32 %v5307_v47, %v5306_v63  ;;  %v5420_v53 = vadd.f32 %v5419_v18, %v5418_v31  ;;  %v5421_v56 = vsel %vm18768_vm8, %v5362_v34, 0.0  ;;  %vm18777_vm12 = vmmov %vm18740_vm1 }
 0x3c8   : > { %v18766_v30 = vsel %vm15683_vm13, 4294967295, %v18765_v30  ;;  %vm18769_vm6 = vnez %v18736_v59  ;;  %v5364_v46 = vmul.f32 %v5250_v19, %v5250_v19  ;;  %v5309_v55 = vsel %vm18740_vm1, %v5249_v43, 0.0  ;;  %5146 = vst.msk [vmem:[#allocation2 + $0xf0] sm:$0xff] %vm18777_vm12, %v11906_v3 }
 0x3c9   : > { %18767 = vst [vmem:[#allocation54_spill] sm:$0xff] %v18766_v30  ;;  %v5251_v5 = vsel %vm18769_vm6, %v11903_v9, 0.0  ;;  %v5363_v2 = vmul.f32 %v5249_v43, %v5249_v43  ;;  %v5422_v52 = vadd.f32 %v5421_v56, %v5420_v53  ;;  %v5310_v57 = vadd.f32 %v5309_v55, %v5308_v37  ;;  %vm18772_vm6 = vmmov %vm18740_vm1 }
 0x3ca   : > { %v1595_v36 = vadd.s32 18, %v15652_v16  ;;  %vm1485_vm8 = vcmp.ne.s32.totalorder %v15659_v22, 0  ;;  %v5311_v27 = vsel %vm18772_vm6, %v5250_v19, 0.0  ;;  %v5365_v58 = vmul.f32 %v5251_v5, %v5251_v5 }
 0x3cb   : > { %v5423_v45 = vsel %vm18740_vm1, %v5363_v2, 0.0  ;;  %vm18773_vm4 = vcmp.ne.s32.totalorder %v15543_v38, 0  ;;  %vm18774_vm5 = vcmp.lt.s32.totalorder %v15543_v38, 0  ;;  %v5312_v0 = vadd.f32 %v5311_v27, %v5310_v57 }
 0x3cc   : > { %vm15709_vm9 = vmand %vm18774_vm5, %vm18773_vm4  ;;  %v5424_v54 = vadd.f32 %v5423_v45, %v5422_v52  ;;  %v1630_v41 = vsel %vm15696_vm7, %v15587_v51, %v15540_v10  ;;  %vm18778_vm6 = vcmp.ne.s32.totalorder %v15652_v16, 0  ;;  %vm18779_vm1 = vcmp.lt.s32.totalorder %v15652_v16, 0  ;;  %v11907_v51 = vpop.f32.mrb[30].mxu0 }
 0x3cd   : > { %vm15723_vm4 = vmand %vm18779_vm1, %vm18778_vm6  ;;  %v1593_v19 = vadd.s32 18, %v15659_v22  ;;  %v5254_v14 = vsel %vm15631_vm0, %v11906_v3, 0.0  ;;  %v5252_v10 = vsel %vm15640_vm15, %v5049_v44, 0.0  ;;  %v5052_v48 = vpop.f32.mrb[31].mxu0  ;;  %v1628_v53 = vsel %vm15709_vm9, %v15656_v4, %v15543_v38 }
 0x3ce   : > { %vm18782_vm5 = vmmov %vm18739_vm11  ;;  %v5366_v34 = vmul.f32 %v5252_v10, %v5252_v10  ;;  %v5253_v37 = vsel %vm15683_vm13, %v5052_v48, 0.0  ;;  %v1631_v56 = vsel %vm15723_vm4, %v1595_v36, %v15652_v16  ;;  %v5255_v2 = vsel %vm15673_vm10, %v11907_v51, 0.0  ;;  %v11910_v39 = vpop.f32.mrb[32].mxu0 }
 0x3cf   : > { %v5425_v62 = vsel %vm18782_vm5, %v5364_v46, 0.0  ;;  %vm18783_vm11 = vmmov %vm18782_vm5  ;;  %v5427_v43 = vsel %vm18782_vm5, %v5365_v58, 0.0  ;;  %v5368_v25 = vmul.f32 %v5254_v14, %v5254_v14  ;;  %v5367_v57 = vmul.f32 %v5253_v37, %v5253_v37  ;;  %5150 = vst.msk [vmem:[#allocation2 + $0x110] sm:$0xff] %vm18782_vm5, %v11910_v39 }
 0x3d0   : > { %v5313_v9 = vsel %vm18783_vm11, %v5251_v5, 0.0  ;;  %vm18784_vm12 = vmmov %vm18782_vm5  ;;  %v5426_v31 = vadd.f32 %v5425_v62, %v5424_v54  ;;  %vm18787_vm11 = vcmp.lt.s32.totalorder %v15659_v22, 0  ;;  %vm15763_vm9 = vcmp.lt.s32.totalorder %v1630_v41, 16 }
 0x3d1   : > { %5144 = vst.msk [vmem:[#allocation2 + $0xe0] sm:$0xff] %vm18784_vm12, %v5049_v44  ;;  %v5314_v63 = vadd.f32 %v5313_v9, %v5312_v0  ;;  %vm18785_vm7 = vmmov %vm18782_vm5  ;;  %v18793_v58 = vmov 0  ;;  %vm15767_vm4 = vcmp.lt.s32.totalorder %v1628_v53, 16  ;;  %v18796_v16 = vmov 0 }
 0x3d2   : > { %v5315_v47 = vsel %vm18785_vm7, %v5252_v10, 0.0  ;;  %vm18786_vm6 = vmmov %vm18782_vm5  ;;  %v5428_v46 = vadd.f32 %v5427_v43, %v5426_v31  ;;  %v18794_v58 = vsel %vm15763_vm9, 4294967295, %v18793_v58  ;;  %v18797_v16 = vsel %vm15767_vm4, 4294967295, %v18796_v16 }
 0x3d3   : > { %5147 = vst.msk [vmem:[#allocation2 + $0xf8] sm:$0xff] %vm18786_vm6, %v11907_v51  ;;  %vm15741_vm1 = vmand %vm18787_vm11, %vm1485_vm8  ;;  %v5316_v5 = vadd.f32 %v5315_v47, %v5314_v63  ;;  %v5369_v45 = vmul.f32 %v5255_v2, %v5255_v2  ;;  %v18801_v44 = vmov 0  ;;  %v18804_v41 = vmov 0 }
 0x3d4   : > { %vm18790_vm12 = vmmov %vm18782_vm5  ;;  %v1629_v27 = vsel %vm15741_vm1, %v1593_v19, %v15659_v22  ;;  %18795 = vst [vmem:[#allocation48_spill] sm:$0xff] %v18794_v58  ;;  %v5065_v22 = vpop.f32.mrb[33].mxu0  ;;  %vm15774_vm1 = vcmp.lt.s32.totalorder %v1631_v56, 16  ;;  %v5258_v62 = vsel %vm15763_vm9, %v11910_v39, 0.0  ;;  %v10860_v39 = vld [vmem:[%s17905_s2 + $0x2] sm:$0x3] }
 0x3d5   : > { %5145 = vst.msk [vmem:[#allocation2 + $0xe8] sm:$0xff] %vm18790_vm12, %v5052_v48  ;;  %vm18791_vm8 = vmmov %vm18782_vm5  ;;  %v18802_v44 = vsel %vm15774_vm1, 4294967295, %v18801_v44  ;;  %vm15778_vm12 = vcmp.lt.s32.totalorder %v1629_v27, 16  ;;  %v5256_v9 = vsel %vm15767_vm4, %v5065_v22, 0.0  ;;  %v5372_v56 = vmul.f32 %v5258_v62, %v5258_v62 }
 0x3d6   : > { %v5429_v55 = vsel %vm18791_vm8, %v5366_v34, 0.0  ;;  %vm18792_vm7 = vmmov %vm18782_vm5  ;;  %18798 = vst [vmem:[#allocation49_spill] sm:$0xff] %v18797_v16  ;;  %v18805_v41 = vsel %vm15778_vm12, 4294967295, %v18804_v41  ;;  %v5370_v63 = vmul.f32 %v5256_v9, %v5256_v9  ;;  %v15925_v16 = vld [vmem:[#allocation2 + $0xc8] sm:$0xff]  ;;  %vm18879_vm10 = vcmask 27648  }
 0x3d7   : > { %v5317_v52 = vsel %vm18792_vm7, %v5253_v37, 0.0  ;;  %v5430_v38 = vadd.f32 %v5429_v55, %v5428_v46  ;;  %vm18799_vm6 = vmmov %vm18782_vm5  ;;  %18803 = vst [vmem:[#allocation37_spill] sm:$0xff] %v18802_v44  ;;  %v15915_v44 = vld [vmem:[#allocation2 + $0xd8] sm:$0xff]  ;;  %vm18883_vm0 = vcmask 24576  }
 0x3d8   : > { %v5318_v4 = vadd.f32 %v5317_v52, %v5316_v5  ;;  %v5319_v36 = vsel %vm18799_vm6, %v5254_v14, 0.0  ;;  %vm18800_vm11 = vmmov %vm18782_vm5  ;;  %18806 = vst [vmem:[#allocation53_spill] sm:$0xff] %v18805_v41  ;;  %v11911_v14 = vpop.f32.mrb[34].mxu0  ;;  %v15929_v58 = vld [vmem:[#allocation2 + $0xe0] sm:$0xff] }
 0x3d9   : > { %v5431_v3 = vsel %vm18800_vm11, %v5367_v57, 0.0  ;;  %vm18807_vm8 = vmmov %vm18782_vm5  ;;  %5151 = vst.msk [vmem:[#allocation2 + $0x118] sm:$0xff] %vm18782_vm5, %v11911_v14  ;;  %v5068_v47 = vpop.f32.mrb[35].mxu0  ;;  %v5259_v53 = vsel %vm15774_vm1, %v11911_v14, 0.0 }
 0x3da   : > { %v5320_v0 = vadd.f32 %v5319_v36, %v5318_v4  ;;  %v5432_v54 = vadd.f32 %v5431_v3, %v5430_v38  ;;  %v5433_v7 = vsel %vm18807_vm8, %v5368_v25, 0.0  ;;  %vm18808_vm7 = vmmov %vm18782_vm5  ;;  %v5257_v48 = vsel %vm15778_vm12, %v5068_v47, 0.0  ;;  %v15939_v30 = vld [vmem:[#allocation2 + $0xf8] sm:$0xff] }
 0x3db   : > { %v5321_v19 = vsel %vm18808_vm7, %v5255_v2, 0.0  ;;  %vm18809_vm6 = vmmov %vm18782_vm5  ;;  %v5371_v46 = vmul.f32 %v5257_v48, %v5257_v48  ;;  %v5327_v25 = vsel %vm18782_vm5, %v5258_v62, 0.0  ;;  %v5373_v52 = vmul.f32 %v5259_v53, %v5259_v53 }
 0x3dc   : > { %5148 = vst.msk [vmem:[#allocation2 + $0x100] sm:$0xff] %vm18809_vm6, %v5065_v22  ;;  %v5434_v10 = vadd.f32 %v5433_v7, %v5432_v54  ;;  %v5322_v51 = vadd.f32 %v5321_v19, %v5320_v0  ;;  %vm18810_vm11 = vmmov %vm18782_vm5 }
 0x3dd   : > { %v5323_v31 = vsel %vm18810_vm11, %v5256_v9, 0.0  ;;  %vm18811_vm8 = vmmov %vm18782_vm5 }
 0x3de   : > { %v5435_v34 = vsel %vm18811_vm8, %v5369_v45, 0.0  ;;  %vm18812_vm7 = vmmov %vm18782_vm5  ;;  %v5324_v18 = vadd.f32 %v5323_v31, %v5322_v51 }
 0x3df   : > { %5149 = vst.msk [vmem:[#allocation2 + $0x108] sm:$0xff] %vm18812_vm7, %v5068_v47  ;;  %v5436_v43 = vadd.f32 %v5435_v34, %v5434_v10  ;;  %vm18813_vm6 = vmmov %vm18782_vm5 }
 0x3e0   : > { %v5437_v37 = vsel %vm18813_vm6, %v5370_v63, 0.0  ;;  %vm18814_vm11 = vmmov %vm18782_vm5  ;;  %v15943_v8 = vld [vmem:[#allocation2 + $0x118] sm:$0xff] }
 0x3e1   : > { %v5325_v5 = vsel %vm18814_vm11, %v5257_v48, 0.0  ;;  %v5438_v55 = vadd.f32 %v5437_v37, %v5436_v43  ;;  %vm18815_vm8 = vmmov %vm18782_vm5  ;;  %vm18819_vm11 = vcmask 1041408  }
 0x3e2   : > { %v5326_v2 = vadd.f32 %v5325_v5, %v5324_v18  ;;  %v5439_v57 = vsel %vm18815_vm8, %v5371_v46, 0.0  ;;  %vm18816_vm7 = vmmov %vm18782_vm5  ;;  %12839 = vmatprep.subr.msk.bf16.mxu1 %vm18819_vm11, %v10860_v39  ;;  %v15813_v46 = vld [vmem:[#allocation2] sm:$0xff] }
 0x3e3   : > { %v5440_v38 = vadd.f32 %v5439_v57, %v5438_v55  ;;  %v5441_v4 = vsel %vm18816_vm7, %v5372_v56, 0.0  ;;  %vm18817_vm12 = vmmov %vm18782_vm5  ;;  %v15815_v55 = vld [vmem:[#allocation2 + $0x10] sm:$0xff]  ;;  %vm18828_vm7 = vcmask 27648  }
 0x3e4   : > { %v5328_v27 = vadd.f32 %v5327_v25, %v5326_v2  ;;  %v5329_v36 = vsel %vm18817_vm12, %v5259_v53, 0.0  ;;  %vm18818_vm6 = vmmov %vm18782_vm5  ;;  %v15817_v2 = vld [vmem:[#allocation2 + $0x18] sm:$0xff]  ;;  %v15819_v25 = vld [vmem:[#allocation2 + $0x8] sm:$0xff] }
 0x3e5   : > { %v5442_v3 = vadd.f32 %v5441_v4, %v5440_v38  ;;  %v5443_v0 = vsel %vm18818_vm6, %v5373_v52, 0.0  ;;  %vm18820_vm5 = vmmov %vm18819_vm11  ;;  %v15821_v52 = vld [vmem:[#allocation2 + $0x20] sm:$0xff]  ;;  %v15823_v57 = vld [vmem:[#allocation2 + $0x30] sm:$0xff] }
 0x3e6   : > { %v5330_v45 = vadd.f32 %v5329_v36, %v5328_v27  ;;  %v6765_v54 = vsel %vm18820_vm5, %v10860_v39, 0  ;;  %v15825_v27 = vld [vmem:[#allocation2 + $0x38] sm:$0xff]  ;;  %v15827_v38 = vld [vmem:[#allocation2 + $0x28] sm:$0xff]  ;;  %v15829_v4 = vld [vmem:[#allocation2 + $0x40] sm:$0xff] }
 0x3e7   : > { %v5444_v7 = vadd.f32 %v5443_v0, %v5442_v3  ;;  %11913 = vmatpush3.bf16.msra.mxu1 %v6765_v54  ;;  %v15831_v36 = vld [vmem:[#allocation2 + $0x110] sm:$0xff]  ;;  %v15835_v3 = vld [vmem:[#allocation2 + $0x108] sm:$0xff]  ;;  %v15839_v0 = vld [vmem:[#allocation2 + $0x58] sm:$0xff] }
 0x3e8   : > { %v5331_v22 = vrot.slane %v5330_v45, 4  ;;  %v15837_v39 = vld [vmem:[#allocation2 + $0x50] sm:$0xff]  ;;  %v15841_v54 = vld [vmem:[#allocation2 + $0x48] sm:$0xff]  ;;  %vm18821_vm12 = vmmov %vm18820_vm5 }
 0x3e9   : > { %v5445_v62 = vrot.slane %v5444_v7, 4  ;;  %vm18829_vm6 = vmmov %vm18828_vm7 }
 0x3ea   : > { %v5332_v19 = vadd.f32 %v5331_v22, %v5330_v45  ;;  %v15833_v45 = vld [vmem:[#allocation2 + $0x100] sm:$0xff]  ;;  %vm18832_vm11 = vmmov %vm18829_vm6 }
 0x3eb   : > { %v5446_v14 = vadd.f32 %v5445_v62, %v5444_v7  ;;  %vm18833_vm5 = vmmov %vm18829_vm6 }
 0x3ec   : > { %v5333_v9 = vrot.slane %v5332_v19, 2  ;;  %vm18868_vm1 = vmmov %vm18833_vm5 }
 0x3ed   : > { %v5447_v51 = vrot.slane %v5446_v14, 2  ;;  %vm18880_vm13 = vmmov %vm18879_vm10 }
 0x3ee   : > { %v5334_v10 = vadd.f32 %v5333_v9, %v5332_v19  ;;  %v6465_v9 = vld [vmem:[%s17905_s2] sm:$0x3] }
 0x3ef   : > { %v5448_v63 = vadd.f32 %v5447_v51, %v5446_v14  ;;  %v15854_v14 = vld [vmem:[#allocation2 + $0x70] sm:$0xff]  ;;  %v15858_v51 = vld [vmem:[#allocation2 + $0x78] sm:$0xff]  ;;  %12840 = vmatprep.subr.msk.bf16.mxu1 %vm18821_vm12, %v6465_v9  ;;  %vm18834_vm12 = vmmov %vm18833_vm5 }
 0x3f0   : > { %v5335_v31 = vrot.slane %v5334_v10, 1  ;;  %v15911_v9 = vld [vmem:[#allocation2 + $0xd0] sm:$0xff] }
 0x3f1   : > { %v5449_v34 = vrot.slane %v5448_v63, 1 }
 0x3f2   : > { %v5336_v47 = vadd.f32 %v5335_v31, %v5334_v10  ;;  %v15856_v10 = vld [vmem:[#allocation2 + $0x60] sm:$0xff] }
 0x3f3   : > { %v5450_v48 = vadd.f32 %v5449_v34, %v5448_v63 }
 0x3f4   : > { %v15809_v18 = vmul.f32 0.00390625, %v5336_v47 }
 0x3f5   : > { %v5454_v43 = vmul.f32 0.00390625, %v5450_v48  ;;  %v15869_v48 = vld [vmem:[#allocation2 + $0x68] sm:$0xff] }
 0x3f6   : > { %v5455_v37 = vmul.f32 %v15809_v18, %v15809_v18  ;;  %v5528_v22 = vsub.f32 %v15833_v45, %v15809_v18  ;;  %v5529_v7 = vsub.f32 %v15835_v3, %v15809_v18  ;;  %v5530_v19 = vsub.f32 %v15831_v36, %v15809_v18  ;;  %v15897_v36 = vld [vmem:[#allocation2 + $0xa0] sm:$0xff]  ;;  %v15901_v45 = vld [vmem:[#allocation2 + $0xa8] sm:$0xff] }
 0x3f7   : > { %v5496_v62 = vsub.f32 %v15813_v46, %v15809_v18  ;;  %v5497_v31 = vsub.f32 %v15819_v25, %v15809_v18  ;;  %v5498_v63 = vsub.f32 %v15815_v55, %v15809_v18  ;;  %v5499_v47 = vsub.f32 %v15817_v2, %v15809_v18  ;;  %v15883_v55 = vld [vmem:[#allocation2 + $0x98] sm:$0xff]  ;;  %v15885_v2 = vld [vmem:[#allocation2 + $0x88] sm:$0xff]  ;;  %v15887_v25 = vld [vmem:[#allocation2 + $0xb0] sm:$0xff] }
 0x3f8   : > { %v5456_v53 = vsub.f32 %v5454_v43, %v5455_v37  ;;  %v5500_v34 = vsub.f32 %v15821_v52, %v15809_v18  ;;  %v15871_v43 = vld [vmem:[#allocation2 + $0x90] sm:$0xff]  ;;  %v15873_v37 = vld [vmem:[#allocation2 + $0x80] sm:$0xff]  ;;  %v5504_v46 = vsub.f32 %v15829_v4, %v15809_v18  ;;  %v5505_v52 = vsub.f32 %v15841_v54, %v15809_v18  ;;  %v15899_v4 = vld [vmem:[#allocation2 + $0xb8] sm:$0xff] }
 0x3f9   : > { %v5509_v3 = vsub.f32 %v15869_v48, %v15809_v18  ;;  %v5510_v54 = vsub.f32 %v15854_v14, %v15809_v18  ;;  %v5513_v41 = vsub.f32 %v15885_v2, %v15809_v18  ;;  %v5514_v48 = vsub.f32 %v15871_v43, %v15809_v18 }
 0x3fa   : > { %v5457_v56 = vmax.f32 %v5456_v53, 0.0  ;;  %v5501_v53 = vsub.f32 %v15827_v38, %v15809_v18  ;;  %v5506_v38 = vsub.f32 %v15837_v39, %v15809_v18  ;;  %v5511_v39 = vsub.f32 %v15858_v51, %v15809_v18  ;;  %v15941_v51 = vld [vmem:[#allocation2 + $0xe8] sm:$0xff] }
 0x3fb   : > { %v5517_v60 = vsub.f32 %v15901_v45, %v15809_v18  ;;  %v5518_v2 = vsub.f32 %v15887_v25, %v15809_v18  ;;  %v5519_v43 = vsub.f32 %v15899_v4, %v15809_v18  ;;  %v5521_v42 = vsub.f32 %v15925_v16, %v15809_v18 }
 0x3fc   : > { %v5458_v5 = vadd.f32 1e-05, %v5457_v56  ;;  %v5502_v56 = vsub.f32 %v15823_v57, %v15809_v18  ;;  %v5507_v57 = vsub.f32 %v15839_v0, %v15809_v18  ;;  %v5512_v0 = vsub.f32 %v15873_v37, %v15809_v18  ;;  %v15927_v37 = vld [vmem:[#allocation2 + $0xf0] sm:$0xff] }
 0x3fd   : > { %v5522_v45 = vsub.f32 %v15911_v9, %v15809_v18  ;;  %v5523_v25 = vsub.f32 %v15915_v44, %v15809_v18  ;;  %v5524_v4 = vsub.f32 %v15929_v58, %v15809_v18  ;;  %v5526_v17 = vsub.f32 %v15927_v37, %v15809_v18 }
 0x3fe   : > { %13048 = vrsqrt.f32 %v5458_v5  ;;  %v5503_v5 = vsub.f32 %v15825_v27, %v15809_v18  ;;  %v5508_v27 = vsub.f32 %v15856_v10, %v15809_v18  ;;  %v15913_v10 = vld [vmem:[#allocation2 + $0xc0] sm:$0xff] }
 0x408   : > { %v15953_v59 = vpop.eup %13048 }
 0x409   : > { %v5564_v32 = vmul.f32 %v15953_v59, %v5528_v22  ;;  %v5565_v44 = vmul.f32 %v15953_v59, %v5529_v7  ;;  %v5566_v58 = vmul.f32 %v15953_v59, %v5530_v19  ;;  %v15967_v23 = vmul.f32 %v15953_v59, %v5496_v62 }
 0x40a   : > { %v15970_v14 = vmul.f32 %v15953_v59, %v5497_v31  ;;  %v15973_v37 = vmul.f32 %v15953_v59, %v5498_v63  ;;  %v15976_v16 = vmul.f32 %v15953_v59, %v5499_v47  ;;  %v15979_v9 = vmul.f32 %v15953_v59, %v5500_v34 }
 0x40b   : > { %v5600_v22 = vmax.f32 %v5564_v32, 0.0  ;;  %v5601_v26 = vmax.f32 %v5565_v44, 0.0  ;;  %v5602_v7 = vmax.f32 %v5566_v58, 0.0  ;;  %v15982_v19 = vmul.f32 %v15953_v59, %v5501_v53 }
 0x40c   : > { %v15985_v62 = vmul.f32 %v15953_v59, %v5502_v56  ;;  %v15988_v31 = vmul.f32 %v15953_v59, %v5503_v5  ;;  %v15991_v63 = vmul.f32 %v15953_v59, %v5504_v46  ;;  %v15994_v47 = vmul.f32 %v15953_v59, %v5505_v52 }
 0x40d   : > { %v11192_v34 = vpack.c.bf16 %v5600_v22, %v5600_v22  ;;  %v11193_v33 = vpack.c.bf16 %v5601_v26, %v5601_v26  ;;  %v11194_v32 = vpack.c.bf16 %v5602_v7, %v5602_v7  ;;  %v15997_v44 = vmul.f32 %v15953_v59, %v5506_v38 }
 0x40e   : > { %v16000_v53 = vmul.f32 %v15953_v59, %v5507_v57  ;;  %v16003_v56 = vmul.f32 %v15953_v59, %v5508_v27  ;;  %v16006_v5 = vmul.f32 %v15953_v59, %v5509_v3  ;;  %v16009_v46 = vmul.f32 %v15953_v59, %v5510_v54 }
 0x40f   : > { %v6032_v52 = vshrl.u32 %v11192_v34, 16  ;;  %v6035_v58 = vshll.u32 %v11192_v34, 16  ;;  %v6042_v22 = vshrl.u32 %v11193_v33, 16  ;;  %v6045_v26 = vshll.u32 %v11193_v33, 16 }
 0x410   : > { %v6052_v7 = vshrl.u32 %v11194_v32, 16  ;;  %v6055_v28 = vshll.u32 %v11194_v32, 16  ;;  %v16012_v38 = vmul.f32 %v15953_v59, %v5511_v39  ;;  %v16015_v57 = vmul.f32 %v15953_v59, %v5512_v0 }
 0x411   : > { %v6034_v27 = vrot.slane %v6032_v52, 6  ;;  %v6037_v40 = vrot.slane %v6035_v58, 7  ;;  %v6044_v61 = vrot.slane %v6042_v22, 6  ;;  %v6047_v3 = vrot.slane %v6045_v26, 7  ;;  %v18825_v26 = vld [vmem:[#allocation5_spill] sm:$0xff] }
 0x412   : > { %v6054_v1 = vrot.slane %v6052_v7, 6  ;;  %v6057_v12 = vrot.slane %v6055_v28, 7  ;;  %v16018_v54 = vmul.f32 %v15953_v59, %v5513_v41  ;;  %v16021_v34 = vmul.f32 %v15953_v59, %v5514_v48 }
 0x413   : > { %v16023_v33 = vor.u32 %v6037_v40, %v6034_v27  ;;  %v6048_v32 = vor.u32 %v6047_v3, %v6044_v61  ;;  %v18822_v39 = vsub.f32 %v15883_v55, %v15809_v18  ;;  %v18823_v52 = vsub.f32 %v15897_v36, %v15809_v18 }
 0x414   : > { %v16037_v41 = vor.u32 %v6057_v12, %v6054_v1  ;;  %v16040_v48 = vmul.f32 %v15953_v59, %v5517_v60  ;;  %v16043_v40 = vmul.f32 %v15953_v59, %v5518_v2  ;;  %v16046_v61 = vmul.f32 %v15953_v59, %v5519_v43 }
 0x415   : > { %v16029_v0 = vmul.f32 %v15953_v59, %v18822_v39  ;;  %v16035_v28 = vmul.f32 %v15953_v59, %v18823_v52  ;;  %v6040_v55 = vrot.slane %v16023_v33, 4  ;;  %v6050_v58 = vrot.slane %v6048_v32, 4 }
 0x416   : > { %v18824_v36 = vsub.f32 %v15913_v10, %v15809_v18  ;;  %v16056_v12 = vmul.f32 %v15953_v59, %v5521_v42  ;;  %v16060_v60 = vmul.f32 %v15953_v59, %v5522_v45  ;;  %v16063_v2 = vmul.f32 %v15953_v59, %v5523_v25 }
 0x417   : > { %v16066_v43 = vmul.f32 %v15953_v59, %v5524_v4  ;;  %vm18826_vm8 = vnez %v18825_v26  ;;  %v18827_v42 = vsub.f32 %v15941_v51, %v15809_v18  ;;  %v16080_v45 = vmul.f32 %v15953_v59, %v5526_v17 }
 0x418   : > { %v16053_v22 = vmul.f32 %v15953_v59, %v18824_v36  ;;  %v6049_v10 = vsel %vm18826_vm8, %v6040_v55, %v6048_v32  ;;  %v6059_v7 = vsel %vm18826_vm8, %v6050_v58, %v16037_v41  ;;  %v18830_v25 = vsub.f32 %v15939_v30, %v15809_v18 }
 0x419   : > { %v16077_v27 = vmul.f32 %v15953_v59, %v18827_v42  ;;  %6143 = vst.msk [vmem:[#allocation4 + $0x8c] sm:$0xf] %vm18828_vm7, %v6049_v10  ;;  %v18831_v3 = vsub.f32 %v15943_v8, %v15809_v18  ;;  %v5568_v32 = vmax.f32 %v15967_v23, 0.0  ;;  %v5569_v17 = vmax.f32 %v15970_v14, 0.0  ;;  %vm18835_vm7 = vmmov %vm18833_vm5 }
 0x41a   : > { %6144 = vst.msk [vmem:[#allocation4 + $0x90] sm:$0xf] %vm18829_vm6, %v6059_v7  ;;  %v16088_v4 = vmul.f32 %v15953_v59, %v18830_v25  ;;  %v5570_v39 = vmax.f32 %v15973_v37, 0.0  ;;  %v5571_v52 = vmax.f32 %v15976_v16, 0.0  ;;  %v5572_v55 = vmax.f32 %v15979_v9, 0.0  ;;  %vm18836_vm6 = vmmov %vm18833_vm5 }
 0x41b   : > { %v16094_v51 = vmul.f32 %v15953_v59, %v18831_v3  ;;  %v5573_v30 = vmax.f32 %v15982_v19, 0.0  ;;  %v5574_v58 = vmax.f32 %v15985_v62, 0.0  ;;  %v5575_v36 = vmax.f32 %v15988_v31, 0.0 }
 0x41c   : > { %v5576_v8 = vmax.f32 %v15991_v63, 0.0  ;;  %v5577_v59 = vmax.f32 %v15994_v47, 0.0  ;;  %v5578_v23 = vmax.f32 %v15997_v44, 0.0  ;;  %v5579_v18 = vmax.f32 %v16000_v53, 0.0 }
 0x41d   : > { %v5580_v14 = vmax.f32 %v16003_v56, 0.0  ;;  %v5581_v16 = vmax.f32 %v16006_v5, 0.0  ;;  %v5582_v9 = vmax.f32 %v16009_v46, 0.0  ;;  %v5583_v37 = vmax.f32 %v16012_v38, 0.0 }
 0x41e   : > { %v5584_v19 = vmax.f32 %v16015_v57, 0.0  ;;  %v5585_v62 = vmax.f32 %v16018_v54, 0.0  ;;  %v5586_v31 = vmax.f32 %v16021_v34, 0.0  ;;  %v5587_v63 = vmax.f32 %v16029_v0, 0.0 }
 0x41f   : > { %v5588_v47 = vmax.f32 %v16035_v28, 0.0  ;;  %v5589_v44 = vmax.f32 %v16040_v48, 0.0  ;;  %v5590_v53 = vmax.f32 %v16043_v40, 0.0  ;;  %v5591_v56 = vmax.f32 %v16046_v61, 0.0 }
 0x420   : > { %v5592_v5 = vmax.f32 %v16053_v22, 0.0  ;;  %v5593_v46 = vmax.f32 %v16056_v12, 0.0  ;;  %v5594_v38 = vmax.f32 %v16060_v60, 0.0  ;;  %v5595_v57 = vmax.f32 %v16063_v2, 0.0 }
 0x421   : > { %v5596_v54 = vmax.f32 %v16066_v43, 0.0  ;;  %v5597_v34 = vmax.f32 %v16077_v27, 0.0  ;;  %v5598_v0 = vmax.f32 %v16080_v45, 0.0  ;;  %v5599_v28 = vmax.f32 %v16088_v4, 0.0 }
 0x422   : > { %v5603_v48 = vmax.f32 %v16094_v51, 0.0  ;;  %v11160_v40 = vpack.c.bf16 %v5568_v32, %v5568_v32  ;;  %v11161_v61 = vpack.c.bf16 %v5569_v17, %v5569_v17  ;;  %v11162_v10 = vpack.c.bf16 %v5570_v39, %v5570_v39 }
 0x423   : > { %v11163_v22 = vpack.c.bf16 %v5571_v52, %v5571_v52  ;;  %v11164_v7 = vpack.c.bf16 %v5572_v55, %v5572_v55  ;;  %v11165_v12 = vpack.c.bf16 %v5573_v30, %v5573_v30  ;;  %v16129_v42 = vpack.c.bf16 %v5574_v58, %v5574_v58 }
 0x424   : > { %v16131_v60 = vpack.c.bf16 %v5575_v36, %v5575_v36  ;;  %v16133_v2 = vpack.c.bf16 %v5576_v8, %v5576_v8  ;;  %v16135_v43 = vpack.c.bf16 %v5577_v59, %v5577_v59  ;;  %v16137_v27 = vpack.c.bf16 %v5578_v23, %v5578_v23 }
 0x425   : > { %v16139_v45 = vpack.c.bf16 %v5579_v18, %v5579_v18  ;;  %v16141_v25 = vpack.c.bf16 %v5580_v14, %v5580_v14  ;;  %v16143_v4 = vpack.c.bf16 %v5581_v16, %v5581_v16  ;;  %v16145_v3 = vpack.c.bf16 %v5582_v9, %v5582_v9 }
 0x426   : > { %v16147_v51 = vpack.c.bf16 %v5583_v37, %v5583_v37  ;;  %v16149_v32 = vpack.c.bf16 %v5584_v19, %v5584_v19  ;;  %v16151_v17 = vpack.c.bf16 %v5585_v62, %v5585_v62  ;;  %v16153_v39 = vpack.c.bf16 %v5586_v31, %v5586_v31 }
 0x427   : > { %v16155_v52 = vpack.c.bf16 %v5587_v63, %v5587_v63  ;;  %v16157_v55 = vpack.c.bf16 %v5588_v47, %v5588_v47  ;;  %v16159_v30 = vpack.c.bf16 %v5589_v44, %v5589_v44  ;;  %v16161_v58 = vpack.c.bf16 %v5590_v53, %v5590_v53 }
 0x428   : > { %v16163_v36 = vpack.c.bf16 %v5591_v56, %v5591_v56  ;;  %v16165_v8 = vpack.c.bf16 %v5592_v5, %v5592_v5  ;;  %v16167_v59 = vpack.c.bf16 %v5593_v46, %v5593_v46  ;;  %v16169_v23 = vpack.c.bf16 %v5594_v38, %v5594_v38 }
 0x429   : > { %v16171_v18 = vpack.c.bf16 %v5595_v57, %v5595_v57  ;;  %v16173_v14 = vpack.c.bf16 %v5596_v54, %v5596_v54  ;;  %v16175_v16 = vpack.c.bf16 %v5597_v34, %v5597_v34  ;;  %v16177_v9 = vpack.c.bf16 %v5598_v0, %v5598_v0 }
 0x42a   : > { %v16179_v37 = vpack.c.bf16 %v5599_v28, %v5599_v28  ;;  %v16181_v19 = vpack.c.bf16 %v5603_v48, %v5603_v48  ;;  %v5713_v62 = vshrl.u32 %v11160_v40, 16  ;;  %v5716_v31 = vshll.u32 %v11160_v40, 16 }
 0x42b   : > { %v5722_v63 = vshrl.u32 %v11161_v61, 16  ;;  %v5725_v47 = vshll.u32 %v11161_v61, 16  ;;  %v5732_v44 = vshrl.u32 %v11162_v10, 16  ;;  %v5735_v53 = vshll.u32 %v11162_v10, 16 }
 0x42c   : > { %v5742_v56 = vshrl.u32 %v11163_v22, 16  ;;  %v5745_v5 = vshll.u32 %v11163_v22, 16  ;;  %v5715_v46 = vrot.slane %v5713_v62, 6  ;;  %v5718_v38 = vrot.slane %v5716_v31, 7 }
 0x42d   : > { %v5724_v57 = vrot.slane %v5722_v63, 6  ;;  %v5727_v54 = vrot.slane %v5725_v47, 7  ;;  %v5734_v34 = vrot.slane %v5732_v44, 6  ;;  %v5737_v1 = vrot.slane %v5735_v53, 7 }
 0x42e   : > { %v5744_v0 = vrot.slane %v5742_v56, 6  ;;  %v5747_v50 = vrot.slane %v5745_v5, 7  ;;  %v16183_v28 = vor.u32 %v5718_v38, %v5715_v46  ;;  %v5752_v35 = vshrl.u32 %v11164_v7, 16 }
 0x42f   : > { %v5728_v48 = vor.u32 %v5727_v54, %v5724_v57  ;;  %v5755_v15 = vshll.u32 %v11164_v7, 16  ;;  %v5738_v40 = vor.u32 %v5737_v1, %v5734_v34  ;;  %v5762_v61 = vshrl.u32 %v11165_v12, 16 }
 0x430   : > { %v5748_v49 = vor.u32 %v5747_v50, %v5744_v0  ;;  %v5765_v20 = vshll.u32 %v11165_v12, 16  ;;  %v5720_v10 = vrot.slane %v16183_v28, 4  ;;  %v5754_v62 = vrot.slane %v5752_v35, 6 }
 0x431   : > { %v5730_v22 = vrot.slane %v5728_v48, 4  ;;  %v5757_v31 = vrot.slane %v5755_v15, 7  ;;  %v5740_v63 = vrot.slane %v5738_v40, 4  ;;  %v5764_v44 = vrot.slane %v5762_v61, 6 }
 0x432   : > { %v5750_v47 = vrot.slane %v5748_v49, 4  ;;  %v5767_v53 = vrot.slane %v5765_v20, 7  ;;  %v5729_v56 = vsel %vm18826_vm8, %v5720_v10, %v5728_v48  ;;  %v5772_v50 = vshrl.u32 %v16129_v42, 16 }
 0x433   : > { %v5739_v5 = vsel %vm18826_vm8, %v5730_v22, %v5738_v40  ;;  %v5758_v7 = vor.u32 %v5757_v31, %v5754_v62  ;;  %v5749_v1 = vsel %vm18826_vm8, %v5740_v63, %v5748_v49  ;;  %v5775_v35 = vshll.u32 %v16129_v42, 16  ;;  %6111 = vst.msk [vmem:[#allocation4 + $0xc] sm:$0xf] %vm18833_vm5, %v5729_v56 }
 0x434   : > { %v5768_v12 = vor.u32 %v5767_v53, %v5764_v44  ;;  %v5782_v15 = vshrl.u32 %v16131_v60, 16  ;;  %6112 = vst.msk [vmem:[#allocation4 + $0x10] sm:$0xf] %vm18832_vm11, %v5739_v5  ;;  %v5774_v38 = vrot.slane %v5772_v50, 6  ;;  %v5785_v57 = vshll.u32 %v16131_v60, 16  ;;  %vm18837_vm11 = vmmov %vm18833_vm5 }
 0x435   : > { %v5759_v20 = vsel %vm18826_vm8, %v5750_v47, %v5758_v7  ;;  %v5760_v46 = vrot.slane %v5758_v7, 4  ;;  %6113 = vst.msk [vmem:[#allocation4 + $0x14] sm:$0xf] %vm18834_vm12, %v5749_v1  ;;  %v5777_v49 = vrot.slane %v5775_v35, 7  ;;  %v5792_v42 = vshrl.u32 %v16133_v2, 16  ;;  %vm18838_vm12 = vmmov %vm18833_vm5 }
 0x436   : > { %v5770_v54 = vrot.slane %v5768_v12, 4  ;;  %v5784_v34 = vrot.slane %v5782_v15, 6  ;;  %6114 = vst.msk [vmem:[#allocation4 + $0x18] sm:$0xf] %vm18835_vm7, %v5759_v20  ;;  %v5787_v48 = vrot.slane %v5785_v57, 7  ;;  %v5795_v40 = vshll.u32 %v16133_v2, 16  ;;  %vm18839_vm7 = vmmov %vm18833_vm5 }
 0x437   : > { %v5769_v0 = vsel %vm18826_vm8, %v5760_v46, %v5768_v12  ;;  %v5802_v61 = vshrl.u32 %v16135_v43, 16  ;;  %v5778_v10 = vor.u32 %v5777_v49, %v5774_v38  ;;  %v5794_v22 = vrot.slane %v5792_v42, 6 }
 0x438   : > { %v5805_v60 = vshll.u32 %v16135_v43, 16  ;;  %v5812_v62 = vshrl.u32 %v16137_v27, 16  ;;  %6115 = vst.msk [vmem:[#allocation4 + $0x1c] sm:$0xf] %vm18836_vm6, %v5769_v0  ;;  %v5788_v31 = vor.u32 %v5787_v48, %v5784_v34  ;;  %v5797_v63 = vrot.slane %v5795_v40, 7  ;;  %vm18840_vm6 = vmmov %vm18833_vm5 }
 0x439   : > { %v5804_v47 = vrot.slane %v5802_v61, 6  ;;  %v5815_v44 = vshll.u32 %v16137_v27, 16  ;;  %v5779_v53 = vsel %vm18826_vm8, %v5770_v54, %v5778_v10  ;;  %v5780_v56 = vrot.slane %v5778_v10, 4 }
 0x43a   : > { %v5807_v2 = vrot.slane %v5805_v60, 7  ;;  %v5814_v5 = vrot.slane %v5812_v62, 6  ;;  %v5790_v7 = vrot.slane %v5788_v31, 4  ;;  %v5798_v50 = vor.u32 %v5797_v63, %v5794_v22  ;;  %6116 = vst.msk [vmem:[#allocation4 + $0x20] sm:$0xf] %vm18837_vm11, %v5779_v53  ;;  %vm18841_vm11 = vmmov %vm18833_vm5 }
 0x43b   : > { %v5817_v1 = vrot.slane %v5815_v44, 7  ;;  %v5822_v43 = vshrl.u32 %v16139_v45, 16  ;;  %v5789_v12 = vsel %vm18826_vm8, %v5780_v56, %v5788_v31  ;;  %v5825_v15 = vshll.u32 %v16139_v45, 16 }
 0x43c   : > { %v5808_v35 = vor.u32 %v5807_v2, %v5804_v47  ;;  %v5832_v27 = vshrl.u32 %v16141_v25, 16  ;;  %v5799_v20 = vsel %vm18826_vm8, %v5790_v7, %v5798_v50  ;;  %v5800_v46 = vrot.slane %v5798_v50, 4  ;;  %6117 = vst.msk [vmem:[#allocation4 + $0x24] sm:$0xf] %vm18833_vm5, %v5789_v12 }
 0x43d   : > { %v5818_v38 = vor.u32 %v5817_v1, %v5814_v5  ;;  %v5824_v57 = vrot.slane %v5822_v43, 6  ;;  %v5827_v49 = vrot.slane %v5825_v15, 7  ;;  %v5835_v42 = vshll.u32 %v16141_v25, 16  ;;  %6118 = vst.msk [vmem:[#allocation4 + $0x28] sm:$0xf] %vm18838_vm12, %v5799_v20  ;;  %vm18842_vm12 = vmmov %vm18833_vm5 }
 0x43e   : > { %v5810_v54 = vrot.slane %v5808_v35, 4  ;;  %v5834_v34 = vrot.slane %v5832_v27, 6  ;;  %v5809_v45 = vsel %vm18826_vm8, %v5800_v46, %v5808_v35  ;;  %v5842_v48 = vshrl.u32 %v16143_v4, 16 }
 0x43f   : > { %v5820_v0 = vrot.slane %v5818_v38, 4  ;;  %v5845_v40 = vshll.u32 %v16143_v4, 16  ;;  %v5828_v10 = vor.u32 %v5827_v49, %v5824_v57  ;;  %v5837_v22 = vrot.slane %v5835_v42, 7  ;;  %6119 = vst.msk [vmem:[#allocation4 + $0x2c] sm:$0xf] %vm18839_vm7, %v5809_v45  ;;  %vm18843_vm7 = vmmov %vm18833_vm5 }
 0x440   : > { %v5819_v61 = vsel %vm18826_vm8, %v5810_v54, %v5818_v38  ;;  %v5852_v60 = vshrl.u32 %v16145_v3, 16  ;;  %v5844_v25 = vrot.slane %v5842_v48, 6  ;;  %v5855_v31 = vshll.u32 %v16145_v3, 16 }
 0x441   : > { %v5847_v62 = vrot.slane %v5845_v40, 7  ;;  %v5862_v63 = vshrl.u32 %v16147_v51, 16  ;;  %6120 = vst.msk [vmem:[#allocation4 + $0x30] sm:$0xf] %vm18840_vm6, %v5819_v61  ;;  %v5829_v4 = vsel %vm18826_vm8, %v5820_v0, %v5828_v10  ;;  %v5830_v47 = vrot.slane %v5828_v10, 4  ;;  %vm18844_vm6 = vmmov %vm18833_vm5 }
 0x442   : > { %v5838_v44 = vor.u32 %v5837_v22, %v5834_v34  ;;  %v5854_v53 = vrot.slane %v5852_v60, 6  ;;  %v5857_v2 = vrot.slane %v5855_v31, 7  ;;  %v5865_v7 = vshll.u32 %v16147_v51, 16  ;;  %6121 = vst.msk [vmem:[#allocation4 + $0x34] sm:$0xf] %vm18841_vm11, %v5829_v4  ;;  %vm18845_vm11 = vmmov %vm18833_vm5 }
 0x443   : > { %v5848_v56 = vor.u32 %v5847_v62, %v5844_v25  ;;  %v5864_v5 = vrot.slane %v5862_v63, 6  ;;  %v5872_v1 = vshrl.u32 %v16149_v32, 16  ;;  %v5875_v43 = vshll.u32 %v16149_v32, 16 }
 0x444   : > { %v5839_v3 = vsel %vm18826_vm8, %v5830_v47, %v5838_v44  ;;  %v5840_v50 = vrot.slane %v5838_v44, 4  ;;  %v5858_v35 = vor.u32 %v5857_v2, %v5854_v53  ;;  %v5867_v15 = vrot.slane %v5865_v7, 7 }
 0x445   : > { %v5850_v12 = vrot.slane %v5848_v56, 4  ;;  %v5882_v27 = vshrl.u32 %v16151_v17, 16  ;;  %6122 = vst.msk [vmem:[#allocation4 + $0x38] sm:$0xf] %vm18833_vm5, %v5839_v3  ;;  %v5874_v20 = vrot.slane %v5872_v1, 6  ;;  %v5877_v46 = vrot.slane %v5875_v43, 7 }
 0x446   : > { %v5849_v51 = vsel %vm18826_vm8, %v5840_v50, %v5848_v56  ;;  %v5885_v38 = vshll.u32 %v16151_v17, 16  ;;  %v5860_v54 = vrot.slane %v5858_v35, 4  ;;  %v5868_v49 = vor.u32 %v5867_v15, %v5864_v5 }
 0x447   : > { %v5859_v57 = vsel %vm18826_vm8, %v5850_v12, %v5858_v35  ;;  %v5884_v32 = vrot.slane %v5882_v27, 6  ;;  %6123 = vst.msk [vmem:[#allocation4 + $0x3c] sm:$0xf] %vm18842_vm12, %v5849_v51  ;;  %v5878_v34 = vor.u32 %v5877_v46, %v5874_v20  ;;  %v5892_v45 = vshrl.u32 %v16153_v39, 16  ;;  %vm18846_vm12 = vmmov %vm18833_vm5 }
 0x448   : > { %v5887_v42 = vrot.slane %v5885_v38, 7  ;;  %v5895_v0 = vshll.u32 %v16153_v39, 16  ;;  %6124 = vst.msk [vmem:[#allocation4 + $0x40] sm:$0xf] %vm18843_vm7, %v5859_v57  ;;  %v5869_v48 = vsel %vm18826_vm8, %v5860_v54, %v5868_v49  ;;  %v5870_v17 = vrot.slane %v5868_v49, 4  ;;  %vm18847_vm7 = vmmov %vm18833_vm5 }
 0x449   : > { %v5902_v40 = vshrl.u32 %v16155_v52, 16  ;;  %v5905_v61 = vshll.u32 %v16155_v52, 16  ;;  %v5880_v10 = vrot.slane %v5878_v34, 4  ;;  %v5894_v60 = vrot.slane %v5892_v45, 6  ;;  %6125 = vst.msk [vmem:[#allocation4 + $0x44] sm:$0xf] %vm18844_vm6, %v5869_v48  ;;  %vm18848_vm6 = vmmov %vm18833_vm5 }
 0x44a   : > { %v5888_v22 = vor.u32 %v5887_v42, %v5884_v32  ;;  %v5897_v25 = vrot.slane %v5895_v0, 7  ;;  %v5879_v62 = vsel %vm18826_vm8, %v5870_v17, %v5878_v34  ;;  %v5912_v63 = vshrl.u32 %v16157_v55, 16 }
 0x44b   : > { %v5904_v39 = vrot.slane %v5902_v40, 6  ;;  %v5907_v31 = vrot.slane %v5905_v61, 7  ;;  %v5915_v52 = vshll.u32 %v16157_v55, 16  ;;  %6126 = vst.msk [vmem:[#allocation4 + $0x48] sm:$0xf] %vm18845_vm11, %v5879_v62  ;;  %v5922_v2 = vshrl.u32 %v16159_v30, 16  ;;  %vm18849_vm11 = vmmov %vm18833_vm5 }
 0x44c   : > { %v5889_v4 = vsel %vm18826_vm8, %v5880_v10, %v5888_v22  ;;  %v5890_v47 = vrot.slane %v5888_v22, 4  ;;  %v5898_v44 = vor.u32 %v5897_v25, %v5894_v60  ;;  %v5914_v56 = vrot.slane %v5912_v63, 6 }
 0x44d   : > { %v5908_v53 = vor.u32 %v5907_v31, %v5904_v39  ;;  %v5925_v5 = vshll.u32 %v16159_v30, 16  ;;  %6127 = vst.msk [vmem:[#allocation4 + $0x4c] sm:$0xf] %vm18833_vm5, %v5889_v4  ;;  %v5917_v50 = vrot.slane %v5915_v52, 7  ;;  %v5932_v1 = vshrl.u32 %v16161_v58, 16 }
 0x44e   : > { %v5899_v7 = vsel %vm18826_vm8, %v5890_v47, %v5898_v44  ;;  %v5900_v3 = vrot.slane %v5898_v44, 4  ;;  %v5924_v12 = vrot.slane %v5922_v2, 6  ;;  %v5935_v35 = vshll.u32 %v16161_v58, 16 }
 0x44f   : > { %v5910_v43 = vrot.slane %v5908_v53, 4  ;;  %v5927_v55 = vrot.slane %v5925_v5, 7  ;;  %6128 = vst.msk [vmem:[#allocation4 + $0x50] sm:$0xf] %vm18846_vm12, %v5899_v7  ;;  %v5918_v30 = vor.u32 %v5917_v50, %v5914_v56  ;;  %v5934_v27 = vrot.slane %v5932_v1, 6  ;;  %vm18850_vm12 = vmmov %vm18833_vm5 }
 0x450   : > { %v5909_v15 = vsel %vm18826_vm8, %v5900_v3, %v5908_v53  ;;  %v5942_v51 = vshrl.u32 %v16163_v36, 16  ;;  %v5937_v46 = vrot.slane %v5935_v35, 7  ;;  %v5945_v38 = vshll.u32 %v16163_v36, 16 }
 0x451   : > { %v5928_v20 = vor.u32 %v5927_v55, %v5924_v12  ;;  %v5952_v57 = vshrl.u32 %v16165_v8, 16  ;;  %6129 = vst.msk [vmem:[#allocation4 + $0x54] sm:$0xf] %vm18847_vm7, %v5909_v15  ;;  %v5919_v58 = vsel %vm18826_vm8, %v5910_v43, %v5918_v30  ;;  %v5920_v54 = vrot.slane %v5918_v30, 4  ;;  %vm18851_vm7 = vmmov %vm18833_vm5 }
 0x452   : > { %v5944_v49 = vrot.slane %v5942_v51, 6  ;;  %v5955_v32 = vshll.u32 %v16165_v8, 16  ;;  %v5938_v42 = vor.u32 %v5937_v46, %v5934_v27  ;;  %v5947_v45 = vrot.slane %v5945_v38, 7  ;;  %6130 = vst.msk [vmem:[#allocation4 + $0x58] sm:$0xf] %vm18848_vm6, %v5919_v58  ;;  %vm18852_vm6 = vmmov %vm18833_vm5 }
 0x453   : > { %v5930_v34 = vrot.slane %v5928_v20, 4  ;;  %v5954_v0 = vrot.slane %v5952_v57, 6  ;;  %v5929_v36 = vsel %vm18826_vm8, %v5920_v54, %v5928_v20  ;;  %v5962_v17 = vshrl.u32 %v16167_v59, 16  ;;  %v6108_v27 = vld [vmem:[#allocation4 + $0x8] sm:$0xe] }
 0x454   : > { %v5957_v48 = vrot.slane %v5955_v32, 7  ;;  %v5965_v40 = vshll.u32 %v16167_v59, 16  ;;  %v5940_v10 = vrot.slane %v5938_v42, 4  ;;  %v5948_v22 = vor.u32 %v5947_v45, %v5944_v49  ;;  %6131 = vst.msk [vmem:[#allocation4 + $0x5c] sm:$0xf] %vm18849_vm11, %v5929_v36  ;;  %vm18853_vm11 = vmmov %vm18833_vm5 }
 0x455   : > { %v5939_v61 = vsel %vm18826_vm8, %v5930_v34, %v5938_v42  ;;  %v5972_v8 = vshrl.u32 %v16169_v23, 16  ;;  %v5964_v25 = vrot.slane %v5962_v17, 6  ;;  %v5975_v39 = vshll.u32 %v16169_v23, 16  ;;  %v6164_v49 = vld [vmem:[#allocation4 + $0x10] sm:$0x8] }
 0x456   : > { %v5958_v60 = vor.u32 %v5957_v48, %v5954_v0  ;;  %v5967_v62 = vrot.slane %v5965_v40, 7  ;;  %6132 = vst.msk [vmem:[#allocation4 + $0x60] sm:$0xf] %vm18833_vm5, %v5939_v61  ;;  %v5949_v31 = vsel %vm18826_vm8, %v5940_v10, %v5948_v22  ;;  %v5950_v59 = vrot.slane %v5948_v22, 4  ;;  %v16319_v0 = vld [vmem:[#allocation4 + $0x14] sm:$0xf] }
 0x457   : > { %v5974_v63 = vrot.slane %v5972_v8, 6  ;;  %v5982_v4 = vshrl.u32 %v16171_v18, 16  ;;  %v5977_v52 = vrot.slane %v5975_v39, 7  ;;  %v5985_v53 = vshll.u32 %v16171_v18, 16  ;;  %6133 = vst.msk [vmem:[#allocation4 + $0x64] sm:$0xf] %vm18850_vm12, %v5949_v31  ;;  %vm18854_vm12 = vmmov %vm18833_vm5 }
 0x458   : > { %v5960_v47 = vrot.slane %v5958_v60, 4  ;;  %v5968_v44 = vor.u32 %v5967_v62, %v5964_v25  ;;  %v5959_v56 = vsel %vm18826_vm8, %v5950_v59, %v5958_v60  ;;  %v5992_v2 = vshrl.u32 %v16173_v14, 16  ;;  %v6172_v40 = vld [vmem:[#allocation4 + $0x18] sm:$0x2]  ;;  %v6157_v60 = vld [vmem:[#allocation4 + $0x10] sm:$0x1] }
 0x459   : > { %v5984_v23 = vrot.slane %v5982_v4, 6  ;;  %v5995_v5 = vshll.u32 %v16173_v14, 16  ;;  %v5978_v50 = vor.u32 %v5977_v52, %v5974_v63  ;;  %v5987_v1 = vrot.slane %v5985_v53, 7  ;;  %6134 = vst.msk [vmem:[#allocation4 + $0x68] sm:$0xf] %vm18851_vm7, %v5959_v56  ;;  %v18855_v31 = vld [vmem:[#allocation6_spill] sm:$0xff] }
 0x45a   : > { %v5969_v7 = vsel %vm18826_vm8, %v5960_v47, %v5968_v44  ;;  %v5970_v3 = vrot.slane %v5968_v44, 4  ;;  %v5994_v43 = vrot.slane %v5992_v2, 6  ;;  %v6002_v12 = vshrl.u32 %v16175_v16, 16  ;;  %v6179_v25 = vld [vmem:[#allocation4 + $0x1c] sm:$0x1] }
 0x45b   : > { %v5997_v18 = vrot.slane %v5995_v5, 7  ;;  %v6005_v55 = vshll.u32 %v16175_v16, 16  ;;  %6135 = vst.msk [vmem:[#allocation4 + $0x6c] sm:$0xf] %vm18852_vm6, %v5969_v7  ;;  %v5980_v14 = vrot.slane %v5978_v50, 4  ;;  %v5988_v15 = vor.u32 %v5987_v1, %v5984_v23  ;;  %vm18857_vm6 = vmmov %vm18833_vm5  ;;  %v18858_v7 = vld [vmem:[#allocation11_spill] sm:$0xff] }
 0x45c   : > { %v5979_v35 = vsel %vm18826_vm8, %v5970_v3, %v5978_v50  ;;  %v6012_v30 = vshrl.u32 %v16177_v9, 16  ;;  %v6004_v20 = vrot.slane %v6002_v12, 6  ;;  %v6015_v38 = vshll.u32 %v16177_v9, 16  ;;  %v6176_v63 = vld [vmem:[#allocation4 + $0x18] sm:$0x4] }
 0x45d   : > { %v5998_v51 = vor.u32 %v5997_v18, %v5994_v43  ;;  %v6007_v46 = vrot.slane %v6005_v55, 7  ;;  %6136 = vst.msk [vmem:[#allocation4 + $0x70] sm:$0xf] %vm18853_vm11, %v5979_v35  ;;  %v5989_v16 = vsel %vm18826_vm8, %v5980_v14, %v5988_v15  ;;  %v5990_v57 = vrot.slane %v5988_v15, 4  ;;  %v6186_v4 = vld [vmem:[#allocation4 + $0x20] sm:$0x4] }
 0x45e   : > { %v6014_v58 = vrot.slane %v6012_v30, 6  ;;  %v6022_v54 = vshrl.u32 %v16179_v37, 16  ;;  %v6017_v42 = vrot.slane %v6015_v38, 7  ;;  %v6025_v45 = vshll.u32 %v16179_v37, 16  ;;  %6137 = vst.msk [vmem:[#allocation4 + $0x74] sm:$0xf] %vm18833_vm5, %v5989_v16 }
 0x45f   : > { %v6000_v32 = vrot.slane %v5998_v51, 4  ;;  %v6008_v34 = vor.u32 %v6007_v46, %v6004_v20  ;;  %v5999_v9 = vsel %vm18826_vm8, %v5990_v57, %v5998_v51  ;;  %v6062_v48 = vshrl.u32 %v16181_v19, 16  ;;  %v6169_v37 = vld [vmem:[#allocation4 + $0x10] sm:$0x4]  ;;  %v6193_v47 = vld [vmem:[#allocation4 + $0x24] sm:$0x2] }
 0x460   : > { %v6024_v36 = vrot.slane %v6022_v54, 6  ;;  %v6065_v17 = vshll.u32 %v16181_v19, 16  ;;  %v6018_v22 = vor.u32 %v6017_v42, %v6014_v58  ;;  %v6027_v8 = vrot.slane %v6025_v45, 7  ;;  %6138 = vst.msk [vmem:[#allocation4 + $0x78] sm:$0xf] %vm18854_vm12, %v5999_v9  ;;  %v18860_v35 = vld [vmem:[#allocation12_spill] sm:$0xff] }
 0x461   : > { %v6009_v61 = vsel %vm18826_vm8, %v6000_v32, %v6008_v34  ;;  %v6010_v10 = vrot.slane %v6008_v34, 4  ;;  %v6064_v62 = vrot.slane %v6062_v48, 6  ;;  %vm18856_vm7 = vnez %v18855_v31  ;;  %v6161_v23 = vld [vmem:[#allocation4 + $0x10] sm:$0x2]  ;;  %v6201_v2 = vld [vmem:[#allocation4 + $0x28] sm:$0x8] }
 0x462   : > { %v6067_v39 = vrot.slane %v6065_v17, 7  ;;  %v6109_v59 = vsel %vm18856_vm7, %v16183_v28, %v6108_v27  ;;  %6139 = vst.msk [vmem:[#allocation4 + $0x7c] sm:$0xf] %vm18857_vm6, %v6009_v61  ;;  %v10843_v19 = vrot.slane %v6164_v49, 9  ;;  %v6020_v52 = vrot.slane %v6018_v22, 4  ;;  %vm18863_vm7 = vmmov %vm18833_vm5  ;;  %v18864_v16 = vld [vmem:[#allocation9_spill] sm:$0xff] }
 0x463   : > { %v6019_v44 = vsel %vm18826_vm8, %v6010_v10, %v6018_v22  ;;  %v6028_v53 = vor.u32 %v6027_v8, %v6024_v36  ;;  %v6174_v56 = vrot.slane %v6172_v40, 7  ;;  %6110 = vst [vmem:[#allocation4 + $0x8] sm:$0xe] %v6109_v59  ;;  %vm18859_vm11 = vnez %v18858_v7  ;;  %v6183_v1 = vld [vmem:[#allocation4 + $0x18] sm:$0x8]  ;;  %v18866_v34 = vld [vmem:[#allocation14_spill] sm:$0xff] }
 0x464   : > { %v16334_v5 = vor.u32 %v6067_v39, %v6064_v62  ;;  %v6170_v28 = vsel %vm18859_vm11, %v10843_v19, %v6169_v37  ;;  %6140 = vst.msk [vmem:[#allocation4 + $0x80] sm:$0xf] %vm18833_vm5, %v6019_v44  ;;  %v6397_v3 = vrot.slane %v16319_v0, 6  ;;  %v6159_v50 = vrot.slane %v6157_v60, 7  ;;  %v6209_v43 = vld [vmem:[#allocation4 + $0x2c] sm:$0x4] }
 0x465   : > { %v6217_v18 = vld [vmem:[#allocation4 + $0x34] sm:$0x1]  ;;  %v6029_v12 = vsel %vm18826_vm8, %v6020_v52, %v6028_v53  ;;  %v6030_v55 = vrot.slane %v6028_v53, 4  ;;  %6171 = vst [vmem:[#allocation4 + $0x10] sm:$0x4] %v6170_v28  ;;  %vm18861_vm12 = vnez %v18860_v35  ;;  %v6181_v15 = vrot.slane %v6179_v25, 5 }
 0x466   : > { %v6177_v14 = vsel %vm18861_vm12, %v6174_v56, %v6176_v63  ;;  %v6224_v30 = vld [vmem:[#allocation4 + $0x34] sm:$0x8]  ;;  %v6232_v27 = vld [vmem:[#allocation4 + $0x3c] sm:$0x2]  ;;  %v18862_v51 = vrot.slane %v16037_v41, 4  ;;  %v6070_v46 = vrot.slane %v16334_v5, 4  ;;  %vm18865_vm6 = vnez %v18864_v16 }
 0x467   : > { %6141 = vst.msk [vmem:[#allocation4 + $0x84] sm:$0xf] %vm18863_vm7, %v6029_v12  ;;  %6178 = vst [vmem:[#allocation4 + $0x18] sm:$0x4] %v6177_v14  ;;  %v16353_v38 = vrot.slane %v6397_v3, 4  ;;  %v6162_v57 = vsel %vm18865_vm6, %v6159_v50, %v6161_v23  ;;  %v6039_v41 = vsel %vm18826_vm8, %v6030_v55, %v16023_v33  ;;  %vm18867_vm7 = vnez %v18866_v34  ;;  %v18869_v25 = vld [vmem:[#allocation10_spill] sm:$0xff] }
 0x468   : > { %v6069_v20 = vsel %vm18826_vm8, %v18862_v51, %v16334_v5  ;;  %v6190_v58 = vld [vmem:[#allocation4 + $0x20] sm:$0x8]  ;;  %v6198_v54 = vld [vmem:[#allocation4 + $0x24] sm:$0x1]  ;;  %v6239_v49 = vld [vmem:[#allocation4 + $0x40] sm:$0x1]  ;;  %v6184_v42 = vsel %vm18867_vm7, %v6181_v15, %v6183_v1  ;;  %vm18870_vm8 = vnez %v18869_v25 }
 0x469   : > { %v6246_v32 = vld [vmem:[#allocation4 + $0x44] sm:$0x4]  ;;  %6145 = vst.msk [vmem:[#allocation4 + $0x94] sm:$0xf] %vm18833_vm5, %v6069_v20  ;;  %6163 = vst [vmem:[#allocation4 + $0x10] sm:$0x2] %v6162_v57 }
 0x46a   : > { %v6188_v45 = vrot.slane %v6186_v4, 7  ;;  %v10844_v9 = vrot.slane %v6193_v47, 9  ;;  %v6206_v36 = vld [vmem:[#allocation4 + $0x2c] sm:$0x1]  ;;  %v6214_v48 = vld [vmem:[#allocation4 + $0x2c] sm:$0x2] }
 0x46b   : > { %v6221_v17 = vld [vmem:[#allocation4 + $0x34] sm:$0x2]  ;;  %v6229_v40 = vld [vmem:[#allocation4 + $0x34] sm:$0x4]  ;;  %v6253_v61 = vld [vmem:[#allocation4 + $0x48] sm:$0x2] }
 0x46c   : > { %v6261_v10 = vld [vmem:[#allocation4 + $0x4c] sm:$0x8]  ;;  %6142 = vst.msk [vmem:[#allocation4 + $0x88] sm:$0xf] %vm18868_vm1, %v6039_v41  ;;  %6185 = vst [vmem:[#allocation4 + $0x18] sm:$0x8] %v6184_v42  ;;  %v6191_v62 = vsel %vm18870_vm8, %v6188_v45, %v6190_v58 }
 0x46d   : > { %v10845_v22 = vrot.slane %v6201_v2, 11  ;;  %v10846_v26 = vrot.slane %v6209_v43, 9  ;;  %v6219_v33 = vrot.slane %v6217_v18, 7  ;;  %v10847_v8 = vrot.slane %v6224_v30, 9  ;;  %v6236_v37 = vld [vmem:[#allocation4 + $0x3c] sm:$0x4] }
 0x46e   : > { %v6243_v60 = vld [vmem:[#allocation4 + $0x3c] sm:$0x8]  ;;  %v18871_v39 = vld [vmem:[#allocation13_spill] sm:$0xff]  ;;  %v6234_v59 = vrot.slane %v6232_v27, 7  ;;  %v6241_v19 = vrot.slane %v6239_v49, 5  ;;  %v18873_v44 = vld [vmem:[#allocation16_spill] sm:$0xff] }
 0x46f   : > { %vm18872_vm5 = vnez %v18871_v39  ;;  %v6269_v63 = vld [vmem:[#allocation4 + $0x50] sm:$0x4]  ;;  %v6277_v4 = vld [vmem:[#allocation4 + $0x58] sm:$0x1]  ;;  %v6149_v47 = vld [vmem:[#allocation4 + $0x8] sm:$0x4]  ;;  %vm18874_vm1 = vnez %v18873_v44  ;;  %v6222_v23 = vsel %vm18865_vm6, %v6219_v33, %v6221_v17  ;;  %v6230_v2 = vsel %vm18859_vm11, %v10847_v8, %v6229_v40 }
 0x470   : > { %v6199_v31 = vsel %vm18872_vm5, %v10844_v9, %v6198_v54  ;;  %6192 = vst [vmem:[#allocation4 + $0x20] sm:$0x8] %v6191_v62  ;;  %v6207_v52 = vsel %vm18874_vm1, %v10845_v22, %v6206_v36  ;;  %v18875_v53 = vld [vmem:[#allocation8_spill] sm:$0xff]  ;;  %v6284_v50 = vld [vmem:[#allocation4 + $0x58] sm:$0x8]  ;;  %v10842_v43 = vrot.slane %v6149_v47, 9  ;;  %v6237_v12 = vsel %vm18861_vm12, %v6234_v59, %v6236_v37 }
 0x471   : > { %6200 = vst [vmem:[#allocation4 + $0x24] sm:$0x1] %v6199_v31  ;;  %vm18876_vm4 = vnez %v18875_v53  ;;  %v6250_v28 = vld [vmem:[#allocation4 + $0x44] sm:$0x8]  ;;  %v6292_v1 = vld [vmem:[#allocation4 + $0x60] sm:$0x2]  ;;  %v6244_v55 = vsel %vm18867_vm7, %v6241_v19, %v6243_v60 }
 0x472   : > { %v6215_v56 = vsel %vm18876_vm4, %v10846_v26, %v6214_v48  ;;  %v6154_v18 = vld [vmem:[#allocation4 + $0x8] sm:$0x2]  ;;  %6208 = vst [vmem:[#allocation4 + $0x2c] sm:$0x1] %v6207_v52  ;;  %6223 = vst [vmem:[#allocation4 + $0x34] sm:$0x2] %v6222_v23 }
 0x473   : > { %6216 = vst [vmem:[#allocation4 + $0x2c] sm:$0x2] %v6215_v56  ;;  %6231 = vst [vmem:[#allocation4 + $0x34] sm:$0x4] %v6230_v2  ;;  %v6248_v14 = vrot.slane %v6246_v32, 7  ;;  %v10848_v20 = vrot.slane %v6253_v61, 9  ;;  %v6155_v41 = vsel %vm18876_vm4, %v10842_v43, %v6154_v18 }
 0x474   : > { %v6258_v15 = vld [vmem:[#allocation4 + $0x48] sm:$0x1]  ;;  %v6266_v30 = vld [vmem:[#allocation4 + $0x50] sm:$0x1]  ;;  %v6274_v27 = vld [vmem:[#allocation4 + $0x50] sm:$0x2] }
 0x475   : > { %v6389_v51 = vld [vmem:[#allocation4 + $0x10] sm:$0xc]  ;;  %6238 = vst [vmem:[#allocation4 + $0x3c] sm:$0x4] %v6237_v12  ;;  %6245 = vst [vmem:[#allocation4 + $0x3c] sm:$0x8] %v6244_v55  ;;  %v6251_v9 = vsel %vm18870_vm8, %v6248_v14, %v6250_v28  ;;  %v6259_v17 = vsel %vm18872_vm5, %v10848_v20, %v6258_v15 }
 0x476   : > { %v10849_v57 = vrot.slane %v6261_v10, 11  ;;  %v10850_v58 = vrot.slane %v6269_v63, 9  ;;  %v6279_v54 = vrot.slane %v6277_v4, 7  ;;  %v6146_v49 = vld [vmem:[#allocation4 + $0x98] sm:$0x3]  ;;  %v10858_v45 = vrot.slane %v6389_v51, 10 }
 0x477   : > { %v6391_v42 = vld [vmem:[#allocation4 + $0x18] sm:$0x7]  ;;  %v10851_v36 = vrot.slane %v6284_v50, 9  ;;  %6156 = vst [vmem:[#allocation4 + $0x8] sm:$0x2] %v6155_v41  ;;  %v6294_v37 = vrot.slane %v6292_v1, 7 }
 0x478   : > { %v6281_v32 = vld [vmem:[#allocation4 + $0x58] sm:$0x2]  ;;  %v6400_v48 = vrot.slane %v6391_v42, 6  ;;  %6252 = vst [vmem:[#allocation4 + $0x44] sm:$0x8] %v6251_v9  ;;  %v6267_v40 = vsel %vm18874_vm1, %v10849_v57, %v6266_v30  ;;  %v6275_v61 = vsel %vm18876_vm4, %v10850_v58, %v6274_v27  ;;  %v16410_v19 = vld [vmem:[#allocation4 + $0x10] sm:$0xff]  }
 0x479   : > { %v6289_v10 = vld [vmem:[#allocation4 + $0x58] sm:$0x4]  ;;  %6260 = vst [vmem:[#allocation4 + $0x48] sm:$0x1] %v6259_v17  ;;  %6268 = vst [vmem:[#allocation4 + $0x50] sm:$0x1] %v6267_v40  ;;  %v6282_v33 = vsel %vm18865_vm6, %v6279_v54, %v6281_v32 }
 0x47a   : > { %v18877_v22 = vld [vmem:[#allocation15_spill] sm:$0xff]  ;;  %6276 = vst [vmem:[#allocation4 + $0x50] sm:$0x2] %v6275_v61  ;;  %v6290_v8 = vsel %vm18859_vm11, %v10851_v36, %v6289_v10  ;;  %v6402_v62 = vrot.slane %v6400_v48, 4  ;;  %6283 = vst [vmem:[#allocation4 + $0x58] sm:$0x2] %v6282_v33 }
 0x47b   : > { %vm18878_vm9 = vnez %v18877_v22  ;;  %6291 = vst [vmem:[#allocation4 + $0x58] sm:$0x4] %v6290_v8  ;;  %v6296_v0 = vld [vmem:[#allocation4 + $0x60] sm:$0x4]  ;;  %v18881_v31 = vld [vmem:[#allocation7_spill] sm:$0xff]  ;;  %v16424_v1 = vld [vmem:[#allocation4 + $0x28] sm:$0xff]  }
 0x47c   : > { %v6398_v26 = vsel %vm18878_vm9, %v10858_v45, %v6397_v3  ;;  %v6401_v60 = vsel %vm18878_vm9, %v16353_v38, %v6400_v48  ;;  %v6297_v3 = vsel %vm18861_vm12, %v6294_v37, %v6296_v0  ;;  %vm18882_vm15 = vnez %v18881_v31  ;;  %6408 = vst.msk [vmem:[#allocation4 + $0x8] sm:$0x1] %vm18883_vm0, %v6402_v62  ;;  %v16413_v63 = vld [vmem:[#allocation4 + $0x18] sm:$0xff]   ;;  %v16415_v52 = vld [vmem:[#allocation4 + $0x20] sm:$0xff]   ;;  %v6306_v43 = vld [vmem:[#allocation4 + $0x68] sm:$0x4] }
 0x47d   : > { %6406 = vst.msk [vmem:[#allocation4] sm:$0xf] %vm18879_vm10, %v6398_v26  ;;  %v6147_v59 = vsel %vm18882_vm15, %v6070_v46, %v6146_v49  ;;  %6298 = vst [vmem:[#allocation4 + $0x60] sm:$0x4] %v6297_v3  ;;  %v6578_v38 = vshll.u32 %v16410_v19, 16  ;;  %v6586_v46 = vshll.u32 %v16413_v63, 16 }
 0x47e   : > { %6407 = vst.msk [vmem:[#allocation4 + $0x4] sm:$0xf] %vm18880_vm13, %v6401_v60  ;;  %6148 = vst [vmem:[#allocation4 + $0x98] sm:$0x3] %v6147_v59  ;;  %v6299_v2 = vld [vmem:[#allocation4 + $0x64] sm:$0x1] }
 0x47f   : > { %v6580_v23 = vrot.slane %v6578_v38, 1  ;;  %v13056_v18 = vld [vmem:[%s17905_s2] sm:$0x3]  ;;  %vm18884_vm0 = vcmask 1041408   ;;  %v6582_v55 = vshrl.u32 %v16410_v19, 16  ;;  %v6590_v14 = vshrl.u32 %v16413_v63, 16 }
 0x480   : > { %v6981_v12 = vsel %vm18884_vm0, %v13056_v18, 0  ;;  %v6594_v15 = vshll.u32 %v16415_v52, 16  ;;  %v6313_v30 = vld [vmem:[#allocation4 + $0x6c] sm:$0x2]  ;;  %v6303_v58 = vld [vmem:[#allocation4 + $0x60] sm:$0x8] }
 0x481   : > { %v6321_v54 = vld [vmem:[#allocation4 + $0x70] sm:$0x8]  ;;  %v6329_v49 = vld [vmem:[#allocation4 + $0x74] sm:$0x4]  ;;  %v6584_v41 = vor.u32 %v6582_v55, %v6580_v23  ;;  %v6588_v42 = vrot.slane %v6586_v46, 1  ;;  %v6598_v45 = vshrl.u32 %v16415_v52, 16 }
 0x482   : > { %v6301_v9 = vrot.slane %v6299_v2, 5  ;;  %v6310_v32 = vld [vmem:[#allocation4 + $0x68] sm:$0x8]  ;;  %v6337_v36 = vld [vmem:[#allocation4 + $0x7c] sm:$0x1]  ;;  %v6602_v26 = vshll.u32 %v16424_v1, 16 }
 0x483   : > { %v16419_v5 = vld [vmem:[#allocation4 + $0x8] sm:$0xff]   ;;  %v6344_v48 = vld [vmem:[#allocation4 + $0x7c] sm:$0x8]  ;;  %v6352_v17 = vld [vmem:[#allocation4 + $0x84] sm:$0x2]  ;;  %v6308_v33 = vrot.slane %v6306_v43, 7  ;;  %v6592_v53 = vor.u32 %v6590_v14, %v6588_v42 }
 0x484   : > { %v6429_v4 = vld [vmem:[#allocation4] sm:$0xf]  ;;  %v6570_v50 = vshll.u32 %v16419_v5, 16  ;;  %v6574_v57 = vshrl.u32 %v16419_v5, 16  ;;  %v6359_v40 = vld [vmem:[#allocation4 + $0x88] sm:$0x1]  ;;  %v6304_v0 = vsel %vm18867_vm7, %v6301_v9, %v6303_v58 }
 0x485   : > { %v6430_v47 = vld [vmem:[#allocation4 + $0x4] sm:$0xf]  ;;  %v6318_v8 = vld [vmem:[#allocation4 + $0x6c] sm:$0x1]  ;;  %v6366_v37 = vld [vmem:[#allocation4 + $0x8c] sm:$0x4] }
 0x486   : > { %v16417_v56 = vcombine.low %v6429_v4, %v6430_v47  ;;  %v6572_v20 = vrot.slane %v6570_v50, 1  ;;  %v6373_v60 = vld [vmem:[#allocation4 + $0x90] sm:$0x2]  ;;  %v6596_v62 = vrot.slane %v6594_v15, 1  ;;  %v10852_v3 = vrot.slane %v6313_v30, 9  ;;  %v16582_v44 = vld [vmem:[#allocation4 + $0x40] sm:$0xff]  }
 0x487   : > { %v16442_v31 = vld [vmem:[%s17905_s2 + $0x4] sm:$0x3]  ;;  %vm18885_vm15 = vsmask.f32 7424  ;;  %v16446_v4 = vld [vmem:[#allocation4 + $0x30] sm:$0xff]   ;;  %v6311_v47 = vsel %vm18870_vm8, %v6308_v33, %v6310_v32  ;;  %vm18887_vm13 = vcmask 31744  }
 0x488   : > { %v6565_v28 = vshll.u32 %v16417_v56, 16  ;;  %v6563_v27 = vshrl.u32 %v16417_v56, 16  ;;  %v6576_v10 = vor.u32 %v6574_v57, %v6572_v20  ;;  %vm18886_vm10 = vmmov %vm18885_vm15  ;;  %6305 = vst [vmem:[#allocation4 + $0x60] sm:$0x8] %v6304_v0  ;;  %v6326_v46 = vld [vmem:[#allocation4 + $0x74] sm:$0x1]  ;;  %v6319_v50 = vsel %vm18872_vm5, %v10852_v3, %v6318_v8 }
 0x489   : > { %v6334_v2 = vld [vmem:[#allocation4 + $0x74] sm:$0x2]  ;;  %vm18888_vm0 = vmmov %vm18886_vm10  ;;  %6312 = vst [vmem:[#allocation4 + $0x68] sm:$0x8] %v6311_v47  ;;  %v10853_v43 = vrot.slane %v6321_v54, 11  ;;  %v10854_v18 = vrot.slane %v6329_v49, 9  ;;  %v6600_v16 = vor.u32 %v6598_v45, %v6596_v62 }
 0x48a   : > { %v6567_v51 = vrot.slane %v6565_v28, 1  ;;  %v6581_v38 = vsel %vm18886_vm10, %v6576_v10, %v6580_v23  ;;  %v6589_v28 = vsel %vm18888_vm0, %v6584_v41, %v6588_v42  ;;  %v6341_v55 = vld [vmem:[#allocation4 + $0x7c] sm:$0x2]  ;;  %v6349_v23 = vld [vmem:[#allocation4 + $0x7c] sm:$0x4]  ;;  %v6339_v30 = vrot.slane %v6337_v36, 7  ;;  %vm18890_vm10 = vmmov %vm18887_vm13 }
 0x48b   : > { %v6356_v15 = vld [vmem:[#allocation4 + $0x84] sm:$0x4]  ;;  %6320 = vst [vmem:[#allocation4 + $0x6c] sm:$0x1] %v6319_v50  ;;  %v6370_v57 = vld [vmem:[#allocation4 + $0x8c] sm:$0x8]  ;;  %v6327_v41 = vsel %vm18874_vm1, %v10853_v43, %v6326_v46  ;;  %v6335_v54 = vsel %vm18876_vm4, %v10854_v18, %v6334_v2  ;;  %vm18892_vm4 = vmmov %vm18888_vm0 }
 0x48c   : > { %v6568_v61 = vor.u32 %v6567_v51, %v6563_v27  ;;  %v10855_v27 = vrot.slane %v6344_v48, 9  ;;  %v6354_v51 = vrot.slane %v6352_v17, 7  ;;  %v6378_v58 = vld [vmem:[#allocation4 + $0x90] sm:$0x1]  ;;  %v6363_v49 = vld [vmem:[#allocation4 + $0x84] sm:$0x8]  ;;  %v6342_v36 = vsel %vm18865_vm6, %v6339_v30, %v6341_v55  ;;  %vm18895_vm6 = vmmov %vm18890_vm10 }
 0x48d   : > { %v6368_v9 = vrot.slane %v6366_v37, 7  ;;  %v10856_v32 = vrot.slane %v6373_v60, 9  ;;  %6328 = vst [vmem:[#allocation4 + $0x74] sm:$0x1] %v6327_v41  ;;  %6336 = vst [vmem:[#allocation4 + $0x74] sm:$0x2] %v6335_v54  ;;  %v6597_v14 = vsel %vm18892_vm4, %v6592_v53, %v6596_v62 }
 0x48e   : > { %v6573_v59 = vsel %vm18885_vm15, %v6568_v61, %v6572_v20  ;;  %vm18889_vm15 = vmmov %vm18887_vm13  ;;  %v6361_v20 = vrot.slane %v6359_v40, 5  ;;  %v6350_v48 = vsel %vm18859_vm11, %v10855_v27, %v6349_v23  ;;  %6343 = vst [vmem:[#allocation4 + $0x7c] sm:$0x2] %v6342_v36  ;;  %v6610_v34 = vshll.u32 %v16446_v4, 16  ;;  %v16479_v61 = vld [vmem:[#allocation4 + $0x38] sm:$0xff]   ;;  %v16482_v42 = vld [vmem:[#allocation4 + $0x40] sm:$0xff]  }
 0x48f   : > { %11914 = vmatprep.mubr.msk.bf16.mxu1 %vm18887_vm13, %v6573_v59  ;;  %vm18891_vm13 = vcmask 1041408   ;;  %6351 = vst [vmem:[#allocation4 + $0x7c] sm:$0x4] %v6350_v48  ;;  %v6371_v7 = vsel %vm18870_vm8, %v6368_v9, %v6370_v57  ;;  %v6379_v35 = vsel %vm18872_vm5, %v10856_v32, %v6378_v58  ;;  %v6604_v40 = vrot.slane %v6602_v26, 1  ;;  %vm18893_vm11 = vmmov %vm18890_vm10  ;;  %v16486_v10 = vld [vmem:[#allocation4 + $0x48] sm:$0xff]   ;;  %v16493_v60 = vld [vmem:[#allocation4 + $0x50] sm:$0xff]  }
 0x490   : > { %11915 = vmatmul.mubr.msk.bf16.vlgmr.msra.gmra.mrb[0].mxu1 %vm18889_vm15, %v6581_v38  ;;  %v6364_v17 = vsel %vm18867_vm7, %v6361_v20, %v6363_v49  ;;  %6372 = vst [vmem:[#allocation4 + $0x8c] sm:$0x8] %v6371_v7  ;;  %6380 = vst [vmem:[#allocation4 + $0x90] sm:$0x1] %v6379_v35  ;;  %v6612_v39 = vrot.slane %v6610_v34, 1  ;;  %v6606_v45 = vshrl.u32 %v16424_v1, 16 }
 0x491   : > { %11951 = vmatpush3.bf16.msra.mxu1 %v6981_v12  ;;  %11918 = vmatprep.mubr.msk.bf16.mxu1 %vm18890_vm10, %v6589_v28  ;;  %v6357_v12 = vsel %vm18861_vm12, %v6354_v51, %v6356_v15  ;;  %6365 = vst [vmem:[#allocation4 + $0x84] sm:$0x8] %v6364_v17  ;;  %vm18894_vm12 = vmmov %vm18888_vm0  ;;  %v6614_v33 = vshrl.u32 %v16446_v4, 16  ;;  %v6618_v26 = vshll.u32 %v16479_v61, 16  ;;  %v6626_v37 = vshll.u32 %v16482_v42, 16  ;;  %v16496_v3 = vld [vmem:[#allocation4 + $0x58] sm:$0xff]  }
 0x492   : > { %12841 = vmatprep.subr.msk.bf16.mxu1 %vm18891_vm13, %v16442_v31  ;;  %6358 = vst [vmem:[#allocation4 + $0x84] sm:$0x4] %v6357_v12  ;;  %v6605_v25 = vsel %vm18894_vm12, %v6600_v16, %v6604_v40  ;;  %v6608_v8 = vor.u32 %v6606_v45, %v6604_v40  ;;  %v6634_v0 = vshll.u32 %v16486_v10, 16  ;;  %v16498_v59 = vld [vmem:[#allocation4 + $0x60] sm:$0xff]   ;;  %v16500_v38 = vld [vmem:[#allocation4 + $0x68] sm:$0xff]   ;;  %v6622_v46 = vshrl.u32 %v16479_v61, 16  ;;  %vm18896_vm7 = vmmov %vm18888_vm0 }
 0x493   : > { %v6616_v62 = vor.u32 %v6614_v33, %v6612_v39  ;;  %v6620_v47 = vrot.slane %v6618_v26, 1  ;;  %v6630_v2 = vshrl.u32 %v16482_v42, 16  ;;  %v6628_v43 = vrot.slane %v6626_v37, 1  ;;  %vm18897_vm8 = vmmov %vm18895_vm6  ;;  %v7473_v26 = vld [vmem:[#allocation4 + $0x8] sm:$0xe] }
 0x494   : > { %v16504_v28 = vld [vmem:[#allocation4 + $0x70] sm:$0xff]   ;;  %v6613_v50 = vsel %vm18896_vm7, %v6608_v8, %v6612_v39  ;;  %v6642_v18 = vshll.u32 %v16493_v60, 16  ;;  %vm18898_vm5 = vmmov %vm18888_vm0  ;;  %v6636_v23 = vrot.slane %v6634_v0, 1  ;;  %v6650_v15 = vshll.u32 %v16496_v3, 16 }
 0x495   : > { %v6621_v55 = vsel %vm18898_vm5, %v6616_v62, %v6620_v47  ;;  %v6658_v30 = vshll.u32 %v16498_v59, 16  ;;  %vm18899_vm0 = vmmov %vm18895_vm6  ;;  %v6666_v27 = vshll.u32 %v16500_v38, 16  ;;  %v6674_v20 = vshll.u32 %v16504_v28, 16 }
 0x496   : > { %v16514_v51 = vld [vmem:[#allocation4 + $0x78] sm:$0xff]   ;;  %v6624_v58 = vor.u32 %v6622_v46, %v6620_v47  ;;  %v6638_v41 = vshrl.u32 %v16486_v10, 16  ;;  %v6644_v54 = vrot.slane %v6642_v18, 1  ;;  %v6632_v49 = vor.u32 %v6630_v2, %v6628_v43  ;;  %vm18901_vm15 = vmmov %vm18892_vm4  ;;  %v16536_v47 = vld [vmem:[#allocation4 + $0xc] sm:$0xf] }
 0x497   : > { %v6652_v9 = vrot.slane %v6650_v15, 1  ;;  %v16520_v32 = vld [vmem:[#allocation4 + $0x88] sm:$0xff]   ;;  %v6660_v36 = vrot.slane %v6658_v30, 1  ;;  %v6668_v48 = vrot.slane %v6666_v27, 1  ;;  %v6646_v12 = vshrl.u32 %v16493_v60, 16  ;;  %vm18903_vm10 = vmmov %vm18899_vm0  ;;  %v16538_v46 = vld [vmem:[#allocation4 + $0x10] sm:$0xff]  }
 0x498   : > { %11919 = vmatmul.mubr.msk.bf16.gmra.mrb[4].mxu1 %vm18893_vm11, %v6597_v14  ;;  %18900 = vst [vmem:[#allocation52_spill] sm:$0xff] %v16520_v32  ;;  %v6676_v17 = vrot.slane %v6674_v20, 1  ;;  %v6682_v53 = vshll.u32 %v16514_v51, 16  ;;  %v6629_v35 = vsel %vm18901_vm15, %v6624_v58, %v6628_v43  ;;  %v6654_v16 = vshrl.u32 %v16496_v3, 16  ;;  %vm18904_vm13 = vmmov %vm18892_vm4  ;;  %v6381_v27 = vld [vmem:[#allocation4 + $0x94] sm:$0x8] }
 0x499   : > { %11922 = vmatprep.mubr.msk.bf16.mxu1 %vm18895_vm6, %v6605_v25  ;;  %v16517_v57 = vld [vmem:[#allocation4 + $0x80] sm:$0xff]   ;;  %v6662_v34 = vshrl.u32 %v16498_v59, 16  ;;  %v6670_v40 = vshrl.u32 %v16500_v38, 16  ;;  %v16529_v14 = vld [vmem:[#allocation4 + $0x90] ss:$0 sps:$4 sm:$0x11]   ;;  %v6637_v25 = vsel %vm18904_vm13, %v6632_v49, %v6636_v23  ;;  %v6640_v39 = vor.u32 %v6638_v41, %v6636_v23  ;;  %vm18905_vm4 = vmmov %vm18899_vm0 }
 0x49a   : > { %v6690_v7 = vshll.u32 %v16517_v57, 16  ;;  %18902 = vst [vmem:[#allocation40_spill] sm:$0xff] %v16529_v14  ;;  %v6678_v45 = vshrl.u32 %v16504_v28, 16  ;;  %v6698_v33 = vshll.u32 %v16520_v32, 16  ;;  %v6648_v8 = vor.u32 %v6646_v12, %v6644_v54  ;;  %vm18907_vm11 = vmmov %vm18898_vm5  ;;  %v16552_v49 = vld [vmem:[#allocation4 + $0x20] sm:$0xff]  }
 0x49b   : > { %v6656_v37 = vor.u32 %v6654_v16, %v6652_v9  ;;  %v6664_v62 = vor.u32 %v6662_v34, %v6660_v36  ;;  %v6672_v0 = vor.u32 %v6670_v40, %v6668_v48  ;;  %v6686_v43 = vshrl.u32 %v16514_v51, 16  ;;  %vm18908_vm12 = vmmov %vm18898_vm5  ;;  %v16560_v16 = vld [vmem:[#allocation4 + $0x28] sm:$0xff]   ;;  %v6386_v34 = vld [vmem:[#allocation4 + $0x98] sm:$0x1] }
 0x49c   : > { %v6680_v2 = vor.u32 %v6678_v45, %v6676_v17  ;;  %v16541_v18 = vrot.slane %v6690_v7, 1  ;;  %v6694_v23 = vshrl.u32 %v16517_v57, 16  ;;  %v6706_v15 = vshll.u32 %v16529_v14, 16  ;;  %vm18909_vm6 = vmmov %vm18898_vm5 }
 0x49d   : > { %v16548_v30 = vcombine.low %v7473_v26, %v16536_v47  ;;  %v6645_v20 = vsel %vm18907_vm11, %v6640_v39, %v6644_v54  ;;  %v6700_v58 = vrot.slane %v6698_v33, 1  ;;  %v6702_v41 = vshrl.u32 %v16520_v32, 16  ;;  %vm18910_vm7 = vmmov %vm18898_vm5  ;;  %v16566_v39 = vld [vmem:[#allocation4 + $0x30] sm:$0xff]   ;;  %v16572_v26 = vld [vmem:[#allocation4 + $0x38] sm:$0xff]  }
 0x49e   : > { %v6653_v12 = vsel %vm18908_vm12, %v6648_v8, %v6652_v9  ;;  %v6669_v7 = vsel %vm18910_vm7, %v6664_v62, %v6668_v48  ;;  %v10857_v45 = vrot.slane %v6381_v27, 11  ;;  %v6708_v9 = vrot.slane %v6706_v15, 1  ;;  %vm18912_vm15 = vmmov %vm18899_vm0 }
 0x49f   : > { %18906 = vst [vmem:[#allocation5_spill] sm:$0xff] %v16548_v30  ;;  %v7922_v48 = vshll.u32 %v16548_v30, 16  ;;  %v6704_v33 = vor.u32 %v6702_v41, %v6700_v58  ;;  %v7945_v27 = vshrl.u32 %v16552_v49, 16  ;;  %v7966_v6 = vshll.u32 %v16566_v39, 16  ;;  %vm18917_vm13 = vmmov %vm18899_vm0 }
 0x4a0   : > { %11923 = vmatmul.mubr.msk.bf16.gmra.mrb[8].mxu1 %vm18897_vm8, %v6613_v50  ;;  %v6684_v50 = vrot.slane %v6682_v53, 1  ;;  %v6661_v53 = vsel %vm18909_vm6, %v6656_v37, %v6660_v36  ;;  %vm18911_vm8 = vmmov %vm18898_vm5  ;;  %v7919_v36 = vshrl.u32 %v16548_v30, 16  ;;  %v6387_v8 = vsel %vm18874_vm1, %v10857_v45, %v6386_v34 }
 0x4a1   : > { %11926 = vmatprep.mubr.msk.bf16.mxu1 %vm18899_vm0, %v6621_v55  ;;  %v16543_v55 = vld [vmem:[#allocation4 + $0x18] sm:$0xff]   ;;  %v7930_v37 = vshll.u32 %v16538_v46, 16  ;;  %6388 = vst [vmem:[#allocation4 + $0x98] sm:$0x1] %v6387_v8  ;;  %v7954_v45 = vshrl.u32 %v16560_v16, 16  ;;  %v16586_v8 = vld [vmem:[#allocation4 + $0x48] sm:$0xff]   ;;  %vm18922_vm6 = vmmov %vm18899_vm0 }
 0x4a2   : > { %v16563_v40 = vsel %vm18898_vm5, %v6680_v2, %v6684_v50  ;;  %v6688_v54 = vor.u32 %v6686_v43, %v6684_v50  ;;  %v7936_v62 = vshrl.u32 %v16543_v55, 16  ;;  %v7924_v2 = vrot.slane %v7922_v48, 2 }
 0x4a3   : > { %v7939_v43 = vshll.u32 %v16543_v55, 16  ;;  %v7947_v48 = vrot.slane %v7945_v27, 1  ;;  %v7956_v13 = vrot.slane %v7954_v45, 1  ;;  %vm18913_vm1 = vsmask.f32 6400  ;;  %v16610_v45 = vld [vmem:[#allocation4 + $0x60] sm:$0xff]  }
 0x4a4   : > { %v7938_v15 = vrot.slane %v7936_v62, 1  ;;  %v16589_v62 = vld [vmem:[#allocation4 + $0x50] sm:$0xff]   ;;  %v7972_v11 = vshrl.u32 %v16572_v26, 16  ;;  %v7968_v27 = vrot.slane %v7966_v6, 2  ;;  %vm18920_vm12 = vmmov %vm18913_vm1 }
 0x4a5   : > { %v7941_v34 = vrot.slane %v7939_v43, 2  ;;  %vm18923_vm7 = vmmov %vm18913_vm1 }
 0x4a7   : > { %v7942_v21 = vor.u32 %v7941_v34, %v7938_v15  ;;  %v16608_v34 = vld [vmem:[#allocation4 + $0x58] sm:$0xff]  }
 0x4a8   : > { %11927 = vmatmul.mubr.msk.bf16.gmra.mrb[12].mxu1 %vm18903_vm10, %v6629_v35  ;;  %v16558_v35 = vsel %vm18911_vm8, %v6672_v0, %v6676_v17  ;;  %v7927_v17 = vshrl.u32 %v16538_v46, 16  ;;  %v7921_v0 = vrot.slane %v7919_v36, 1  ;;  %vm18915_vm10 = vmmov %vm18913_vm1 }
 0x4a9   : > { %11930 = vmatprep.mubr.msk.bf16.mxu1 %vm18905_vm4, %v6637_v25  ;;  %v6696_v25 = vor.u32 %v6694_v23, %v16541_v18  ;;  %v7932_v23 = vrot.slane %v7930_v37, 2  ;;  %v7963_v37 = vshrl.u32 %v16566_v39, 16  ;;  %vm18918_vm4 = vmmov %vm18898_vm5 }
 0x4aa   : > { %v7929_v50 = vrot.slane %v7927_v17, 1  ;;  %v7925_v41 = vor.u32 %v7924_v2, %v7921_v0  ;;  %v16603_v15 = vsel %vm18918_vm4, %v6688_v54, %v16541_v18  ;;  %vm18919_vm11 = vmmov %vm18918_vm4  ;;  %v7981_v18 = vshrl.u32 %v16582_v44, 16  ;;  %v16620_v54 = vld [vmem:[#allocation4 + $0x8] sm:$0xc] }
 0x4ab   : > { %v7965_v43 = vrot.slane %v7963_v37, 1  ;;  %vm18925_vm8 = vmmov %vm18918_vm4  ;;  %v7999_v37 = vshrl.u32 %v16589_v62, 16 }
 0x4ac   : > { %v7933_v36 = vor.u32 %v7932_v23, %v7929_v50  ;;  %vm18926_vm5 = vmmov %vm18913_vm1 }
 0x4ae   : > { %v16593_v0 = vsel %vm18913_vm1, %v7925_v41, %v7933_v36  ;;  %v16597_v50 = vsel %vm18915_vm10, %v7933_v36, %v7942_v21  ;;  %v16606_v41 = vsel %vm18919_vm11, %v6696_v25, %v6700_v58  ;;  %v16623_v58 = vsel %vm18925_vm8, %v6704_v33, %v6708_v9  ;;  %v16625_v25 = vld [vmem:[#allocation4 + $0x68] sm:$0xff]  }
 0x4af   : > { %18914 = vst [vmem:[#allocation6_spill] sm:$0xff] %v16593_v0  ;;  %18916 = vst [vmem:[#allocation11_spill] sm:$0xff] %v16597_v50  ;;  %v16662_v50 = vld [vmem:[#allocation4 + $0x88] sm:$0xff]  }
 0x4b0   : > { %11931 = vmatmul.mubr.msk.bf16.gmra.mrb[16].mxu1 %vm18899_vm0, %v6645_v20  ;;  %v7948_v20 = vshll.u32 %v16552_v49, 16  ;;  %vm18928_vm0 = vmmov %vm18913_vm1  ;;  %18936 = vst [vmem:[#allocation8_spill] sm:$0xff] %v16662_v50 }
 0x4b1   : > { %11934 = vmatprep.mubr.msk.bf16.mxu1 %vm18912_vm15, %v6653_v12  ;;  %v7957_v12 = vshll.u32 %v16560_v16, 16  ;;  %vm18930_vm15 = vmmov %vm18922_vm6 }
 0x4b2   : > { %v7950_v17 = vrot.slane %v7948_v20, 2  ;;  %v7975_v20 = vshll.u32 %v16572_v26, 16  ;;  %vm18931_vm1 = vmmov %vm18928_vm0 }
 0x4b3   : > { %v7959_v29 = vrot.slane %v7957_v12, 2  ;;  %vm18933_vm10 = vmmov %vm18928_vm0 }
 0x4b4   : > { %v7951_v2 = vor.u32 %v7950_v17, %v7947_v48  ;;  %v7983_v17 = vrot.slane %v7981_v18, 1  ;;  %vm18938_vm4 = vmmov %vm18928_vm0 }
 0x4b5   : > { %v7960_v23 = vor.u32 %v7959_v29, %v7956_v13  ;;  %v7974_v29 = vrot.slane %v7972_v11, 1  ;;  %v7969_v13 = vor.u32 %v7968_v27, %v7965_v43  ;;  %v7990_v11 = vshrl.u32 %v16586_v8, 16  ;;  %vm18940_vm11 = vmmov %vm18928_vm0 }
 0x4b6   : > { %v16613_v12 = vsel %vm18920_vm12, %v7942_v21, %v7951_v2  ;;  %v7984_v21 = vshll.u32 %v16582_v44, 16  ;;  %v8020_v27 = vshll.u32 %v16610_v45, 16  ;;  %vm18942_vm12 = vmmov %vm18928_vm0 }
 0x4b7   : > { %18921 = vst [vmem:[#allocation12_spill] sm:$0xff] %v16613_v12  ;;  %v16617_v6 = vsel %vm18923_vm7, %v7951_v2, %v7960_v23  ;;  %v16631_v36 = vsel %vm18926_vm5, %v7960_v23, %v7969_v13  ;;  %v16634_v2 = vld [vmem:[#allocation4 + $0x70] sm:$0xff]   ;;  %v7992_v9 = vrot.slane %v7990_v11, 1  ;;  %v8002_v23 = vshll.u32 %v16589_v62, 16  ;;  %vm18947_vm8 = vmmov %vm18928_vm0 }
 0x4b8   : > { %11935 = vmatmul.mubr.msk.bf16.gmra.mrb[20].mxu1 %vm18917_vm13, %v6661_v53  ;;  %18924 = vst [vmem:[#allocation9_spill] sm:$0xff] %v16617_v6  ;;  %v7977_v53 = vrot.slane %v7975_v20, 2  ;;  %18927 = vst [vmem:[#allocation14_spill] sm:$0xff] %v16631_v36  ;;  %v7986_v43 = vrot.slane %v7984_v21, 2  ;;  %v16638_v20 = vld [vmem:[#allocation4 + $0x78] sm:$0xff]   ;;  %v8001_v6 = vrot.slane %v7999_v37, 1 }
 0x4b9   : > { %11938 = vmatprep.mubr.msk.bf16.mxu1 %vm18922_vm6, %v6669_v7  ;;  %v7993_v7 = vshll.u32 %v16586_v8, 16  ;;  %v8011_v36 = vshll.u32 %v16608_v34, 16  ;;  %v8017_v21 = vshrl.u32 %v16610_v45, 16  ;;  %v8004_v11 = vrot.slane %v8002_v23, 2  ;;  %vm18935_vm13 = vmmov %vm18922_vm6 }
 0x4ba   : > { %v7978_v48 = vor.u32 %v7977_v53, %v7974_v29  ;;  %v8008_v29 = vshrl.u32 %v16608_v34, 16  ;;  %v7987_v53 = vor.u32 %v7986_v43, %v7983_v17  ;;  %v8026_v12 = vshrl.u32 %v16625_v25, 16  ;;  %vm18944_vm6 = vmmov %vm18928_vm0 }
 0x4bb   : > { %v7995_v33 = vrot.slane %v7993_v7, 2  ;;  %v8013_v17 = vrot.slane %v8011_v36, 2  ;;  %v8019_v43 = vrot.slane %v8017_v21, 1  ;;  %v8022_v23 = vrot.slane %v8020_v27, 2  ;;  %v16667_v21 = vld [vmem:[#allocation4 + $0x90] sm:$0xff]   ;;  %vm18946_vm7 = vmmov %vm18935_vm13 }
 0x4bc   : > { %v16641_v24 = vsel %vm18928_vm0, %v7969_v13, %v7978_v48  ;;  %v8010_v7 = vrot.slane %v8008_v29, 1  ;;  %v16652_v13 = vsel %vm18931_vm1, %v7978_v48, %v7987_v53  ;;  %v8028_v29 = vrot.slane %v8026_v12, 1  ;;  %18937 = vst [vmem:[#allocation15_spill] sm:$0xff] %v16667_v21  ;;  %vm18949_vm5 = vmmov %vm18946_vm7 }
 0x4bd   : > { %18929 = vst [vmem:[#allocation10_spill] sm:$0xff] %v16641_v24  ;;  %v7996_v18 = vor.u32 %v7995_v33, %v7992_v9  ;;  %18932 = vst [vmem:[#allocation13_spill] sm:$0xff] %v16652_v13  ;;  %v16659_v9 = vld [vmem:[#allocation4 + $0x80] sm:$0xff]   ;;  %v8005_v33 = vor.u32 %v8004_v11, %v8001_v6  ;;  %v8029_v24 = vshll.u32 %v16625_v25, 16  ;;  %v8035_v48 = vshrl.u32 %v16634_v2, 16 }
 0x4be   : > { %v8044_v36 = vshrl.u32 %v16638_v20, 16  ;;  %v8047_v12 = vshll.u32 %v16638_v20, 16  ;;  %v8053_v14 = vshrl.u32 %v16659_v9, 16  ;;  %vm18954_vm1 = vmmov %vm18928_vm0 }
 0x4bf   : > { %v16655_v37 = vsel %vm18933_vm10, %v7987_v53, %v7996_v18  ;;  %v8038_v53 = vshll.u32 %v16634_v2, 16  ;;  %v8031_v6 = vrot.slane %v8029_v24, 2  ;;  %v8037_v11 = vrot.slane %v8035_v48, 1 }
 0x4c0   : > { %11939 = vmatmul.mubr.msk.bf16.gmra.mrb[24].mxu1 %vm18930_vm15, %v16558_v35  ;;  %18934 = vst [vmem:[#allocation16_spill] sm:$0xff] %v16655_v37  ;;  %v8014_v35 = vor.u32 %v8013_v17, %v8010_v7  ;;  %v8023_v37 = vor.u32 %v8022_v23, %v8019_v43  ;;  %v8046_v17 = vrot.slane %v8044_v36, 1  ;;  %v8049_v30 = vrot.slane %v8047_v12, 2  ;;  %v6409_v23 = vld [vmem:[#allocation4 + $0x84] sm:$0x8]  ;;  %vm18952_vm15 = vmmov %vm18928_vm0 }
 0x4c1   : > { %11942 = vmatprep.mubr.msk.bf16.mxu1 %vm18935_vm13, %v16563_v40  ;;  %v16670_v40 = vsel %vm18938_vm4, %v7996_v18, %v8005_v33  ;;  %v8040_v7 = vrot.slane %v8038_v53, 2  ;;  %v8032_v0 = vor.u32 %v8031_v6, %v8028_v29  ;;  %v8056_v18 = vshll.u32 %v16659_v9, 16  ;;  %v16687_v36 = vld [vmem:[#allocation4 + $0x88] sm:$0xf] }
 0x4c2   : > { %18939 = vst [vmem:[#allocation7_spill] sm:$0xff] %v16670_v40  ;;  %v16674_v27 = vsel %vm18940_vm11, %v8005_v33, %v8014_v35  ;;  %v16677_v13 = vsel %vm18942_vm12, %v8014_v35, %v8023_v37  ;;  %v8062_v24 = vshrl.u32 %v16662_v50, 16  ;;  %v8065_v43 = vshll.u32 %v16662_v50, 16 }
 0x4c3   : > { %18941 = vst [vmem:[#allocation55_spill] sm:$0xff] %v16674_v27  ;;  %18943 = vst [vmem:[#allocation56_spill] sm:$0xff] %v16677_v13  ;;  %v8041_v32 = vor.u32 %v8040_v7, %v8037_v11  ;;  %v16684_v33 = vsel %vm18944_vm6, %v8023_v37, %v8032_v0  ;;  %v8050_v48 = vor.u32 %v8049_v30, %v8046_v17  ;;  %v8055_v53 = vrot.slane %v8053_v14, 1  ;;  %v16909_v13 = vld [vmem:[#allocation4 + $0x88] sm:$0xff]  }
 0x4c4   : > { %18945 = vst [vmem:[#allocation57_spill] sm:$0xff] %v16684_v33  ;;  %v8071_v35 = vshrl.u32 %v16667_v21, 16  ;;  %v8058_v6 = vrot.slane %v8056_v18, 2  ;;  %v8064_v12 = vrot.slane %v8062_v24, 1  ;;  %v8067_v11 = vrot.slane %v8065_v43, 2  ;;  %vm18966_vm6 = vmmov %vm18928_vm0 }
 0x4c5   : > { %v16692_v29 = vsel %vm18947_vm8, %v8032_v0, %v8041_v32  ;;  %v16697_v37 = vsel %vm18928_vm0, %v8041_v32, %v8050_v48  ;;  %v8074_v30 = vshll.u32 %v16667_v21, 16  ;;  %v10859_v7 = vrot.slane %v6409_v23, 10 }
 0x4c6   : > { %18948 = vst [vmem:[#allocation58_spill] sm:$0xff] %v16692_v29  ;;  %18950 = vst [vmem:[#allocation59_spill] sm:$0xff] %v16697_v37  ;;  %v8073_v14 = vrot.slane %v8071_v35, 1  ;;  %v8059_v17 = vor.u32 %v8058_v6, %v8055_v53  ;;  %v8068_v33 = vor.u32 %v8067_v11, %v8064_v12  ;;  %v18951_v0 = vcombine.low %v16620_v54, %v16536_v47 }
 0x4c7   : > { %v8076_v24 = vrot.slane %v8074_v30, 2  ;;  %v8365_v43 = vrot.slane %v16538_v46, 2  ;;  %v8369_v32 = vrot.slane %v16552_v49, 2  ;;  %vm18957_vm10 = vcmask 27649  }
 0x4c8   : > { %11943 = vmatmul.mubr.msk.bf16.gmra.mrb[28].mxu1 %vm18946_vm7, %v16603_v15  ;;  %v6417_v15 = vrot.slane %v16687_v36, 6  ;;  %v8364_v18 = vrot.slane %v18951_v0, 2  ;;  %v16708_v35 = vsel %vm18952_vm15, %v8050_v48, %v8059_v17  ;;  %v16711_v23 = vsel %vm18954_vm1, %v8059_v17, %v8068_v33  ;;  %vm18968_vm7 = vmmov %vm18949_vm5 }
 0x4c9   : > { %11946 = vmatprep.mubr.msk.bf16.mxu1 %vm18949_vm5, %v16606_v41  ;;  %v8367_v41 = vrot.slane %v16543_v55, 2  ;;  %18953 = vst [vmem:[#allocation60_spill] sm:$0xff] %v16708_v35  ;;  %18955 = vst [vmem:[#allocation61_spill] sm:$0xff] %v16711_v23  ;;  %v8371_v36 = vrot.slane %v16560_v16, 2  ;;  %v16716_v47 = vor.u32 %v8076_v24, %v8073_v14  ;;  %vm18958_vm13 = vcmask 1045504  }
 0x4ca   : > { %v6418_v53 = vsel %vm18878_vm9, %v10859_v7, %v6417_v15  ;;  %v16720_v54 = vsel %vm18958_vm13, %v8364_v18, %v8365_v43  ;;  %vm18960_vm4 = vmmov %vm18958_vm13  ;;  %v8373_v11 = vrot.slane %v16566_v39, 2  ;;  %v8375_v30 = vrot.slane %v16572_v26, 2 }
 0x4cb   : > { %18956 = vst [vmem:[#allocation62_spill] sm:$0xff] %v16716_v47  ;;  %6426 = vst.msk [vmem:[#allocation4 + $0x98] sm:$0xe] %vm18957_vm10, %v6418_v53  ;;  %v16723_v6 = vsel %vm18960_vm4, %v8365_v43, %v8367_v41  ;;  %v8377_v14 = vrot.slane %v16582_v44, 2  ;;  %v16736_v7 = vsel %vm18966_vm6, %v8068_v33, %v16716_v47  ;;  %v8379_v17 = vrot.slane %v16586_v8, 2 }
 0x4cc   : > { %18959 = vst [vmem:[#allocation63_spill] sm:$0xff] %v16720_v54  ;;  %18961 = vst [vmem:[#allocation64_spill] sm:$0xff] %v16723_v6  ;;  %v8381_v0 = vrot.slane %v16589_v62, 2  ;;  %v8383_v18 = vrot.slane %v16608_v34, 2  ;;  %v8385_v33 = vrot.slane %v16610_v45, 2 }
 0x4cd   : > { %vm18962_vm11 = vmmov %vm18960_vm4  ;;  %18967 = vst [vmem:[#allocation67_spill] sm:$0xff] %v16736_v7 }
 0x4ce   : > { %v16726_v48 = vsel %vm18962_vm11, %v8367_v41, %v8369_v32  ;;  %vm18964_vm12 = vmmov %vm18960_vm4 }
 0x4cf   : > { %18963 = vst [vmem:[#allocation65_spill] sm:$0xff] %v16726_v48  ;;  %v16729_v12 = vsel %vm18964_vm12, %v8369_v32, %v8371_v36  ;;  %vm18969_vm8 = vmmov %vm18960_vm4 }
 0x4d0   : > { %18965 = vst [vmem:[#allocation66_spill] sm:$0xff] %v16729_v12  ;;  %11947 = vmatmul.mubr.msk.bf16.gmra.mrb[32].mxu1 %vm18968_vm7, %v16623_v58  ;;  %v16744_v24 = vsel %vm18969_vm8, %v8371_v36, %v8373_v11  ;;  %vm18971_vm5 = vmmov %vm18960_vm4  ;;  %v8387_v36 = vrot.slane %v16625_v25, 2 }
 0x4d1   : > { %18970 = vst [vmem:[#allocation68_spill] sm:$0xff] %v16744_v24  ;;  %v16747_v43 = vsel %vm18971_vm5, %v8373_v11, %v8375_v30  ;;  %vm18973_vm0 = vmmov %vm18960_vm4 }
 0x4d2   : > { %18972 = vst [vmem:[#allocation69_spill] sm:$0xff] %v16747_v43  ;;  %v16750_v41 = vsel %vm18973_vm0, %v8375_v30, %v8377_v14  ;;  %vm18975_vm15 = vmmov %vm18968_vm7  ;;  %v8389_v30 = vrot.slane %v16634_v2, 2 }
 0x4d3   : > { %18974 = vst [vmem:[#allocation70_spill] sm:$0xff] %v16750_v41  ;;  %11952 = vmatprep.mubr.msk.bf16.mxu1 %vm18975_vm15, %v16417_v56  ;;  %vm18976_vm1 = vmmov %vm18973_vm0  ;;  %v8391_v41 = vrot.slane %v16638_v20, 2  ;;  %v8393_v56 = vrot.slane %v16659_v9, 2 }
 0x4d4   : > { %v16756_v32 = vsel %vm18976_vm1, %v8377_v14, %v8379_v17  ;;  %vm18978_vm10 = vmmov %vm18973_vm0 }
 0x4d5   : > { %18977 = vst [vmem:[#allocation71_spill] sm:$0xff] %v16756_v32  ;;  %v16759_v53 = vsel %vm18978_vm10, %v8379_v17, %v8381_v0  ;;  %vm18980_vm13 = vmmov %vm18973_vm0  ;;  %v8395_v17 = vrot.slane %v16662_v50, 2  ;;  %v9251_v50 = vshrl.u32 %v16909_v13, 16 }
 0x4d6   : > { %18979 = vst [vmem:[#allocation72_spill] sm:$0xff] %v16759_v53  ;;  %v16762_v58 = vsel %vm18980_vm13, %v8381_v0, %v8383_v18  ;;  %vm18982_vm4 = vmmov %vm18973_vm0  ;;  %v8397_v53 = vrot.slane %v16667_v21, 2  ;;  %v16776_v0 = vld [vmem:[#allocation4 + $0x98] ss:$0 sps:$4 sm:$0x33]  }
 0x4d7   : > { %18981 = vst [vmem:[#allocation73_spill] sm:$0xff] %v16762_v58  ;;  %v16766_v11 = vsel %vm18982_vm4, %v8383_v18, %v8385_v33  ;;  %vm18984_vm11 = vmmov %vm18973_vm0  ;;  %v8399_v43 = vrot.slane %v16776_v0, 2 }
 0x4d8   : > { %18983 = vst [vmem:[#allocation74_spill] sm:$0xff] %v16766_v11  ;;  %v16772_v14 = vsel %vm18984_vm11, %v8385_v33, %v8387_v36  ;;  %18986 = vst [vmem:[#allocation76_spill] sm:$0xff] %v16776_v0  ;;  %11953 = vmatmul.mubr.msk.bf16.vlgmr.msra.gmra.mrb[0].mxu1 %vm18975_vm15, %v16419_v5  ;;  %v16817_v5 = vld [vmem:[#allocation4 + $0x20] sm:$0xff]   ;;  %v16847_v0 = vld [vmem:[#allocation4 + $0x48] sm:$0xff]  }
 0x4d9   : > { %18985 = vst [vmem:[#allocation75_spill] sm:$0xff] %v16772_v14  ;;  %vm18987_vm12 = vmmov %vm18973_vm0  ;;  %v9134_v24 = vshrl.u32 %v16817_v5, 16 }
 0x4da   : > { %v16779_v58 = vsel %vm18987_vm12, %v8387_v36, %v8389_v30  ;;  %vm18989_vm6 = vmmov %vm18973_vm0  ;;  %v16799_v36 = vld [vmem:[%s17905_s2 + $0x6] sm:$0x3]  ;;  %vm19004_vm12 = vcmask 27648  }
 0x4db   : > { %18988 = vst [vmem:[#allocation77_spill] sm:$0xff] %v16779_v58  ;;  %v16782_v18 = vsel %vm18989_vm6, %v8389_v30, %v8391_v41  ;;  %vm18991_vm7 = vmmov %vm18973_vm0  ;;  %v8671_v30 = vld [vmem:[#allocation4 + $0x10] sm:$0xc]  ;;  %vm19005_vm6 = vcmask 25600  }
 0x4dc   : > { %18990 = vst [vmem:[#allocation78_spill] sm:$0xff] %v16782_v18  ;;  %v16785_v11 = vsel %vm18991_vm7, %v8391_v41, %v8393_v56  ;;  %vm18993_vm8 = vmmov %vm18973_vm0  ;;  %v16804_v41 = vsel %vm18976_vm1, %v8397_v53, %v8399_v43  ;;  %v16819_v43 = vld [vmem:[#allocation4 + $0x28] sm:$0xff]  }
 0x4dd   : > { %18992 = vst [vmem:[#allocation79_spill] sm:$0xff] %v16785_v11  ;;  %v16788_v32 = vsel %vm18993_vm8, %v8393_v56, %v8395_v17  ;;  %vm18995_vm5 = vmmov %vm18973_vm0  ;;  %vm18997_vm0 = vcmask 1041408  }
 0x4de   : > { %18994 = vst [vmem:[#allocation80_spill] sm:$0xff] %v16788_v32  ;;  %v16791_v33 = vsel %vm18995_vm5, %v8395_v17, %v8397_v53  ;;  %v7258_v14 = vsel %vm18997_vm0, %v16442_v31, 0  ;;  %18998 = vst [vmem:[#allocation82_spill] sm:$0xff] %v16804_v41  ;;  %v16810_v31 = vld [vmem:[#allocation4 + $0x14] sm:$0xf]  ;;  %v6419_v53 = vrot.slane %v6417_v15, 4 }
 0x4df   : > { %18996 = vst [vmem:[#allocation81_spill] sm:$0xff] %v16791_v33  ;;  %11989 = vmatpush3.bf16.msra.mxu1 %v7258_v14  ;;  %vm18999_vm10 = vmmov %vm18975_vm15  ;;  %v16813_v56 = vcombine.low %v8671_v30, %v16810_v31  ;;  %v6411_v17 = vld [vmem:[#allocation4 + $0x8c] sm:$0xf]  ;;  %v16815_v33 = vld [vmem:[#allocation4 + $0x18] sm:$0xff]  }
 0x4e0   : > { %11956 = vmatprep.mubr.msk.bf16.mxu1 %vm18999_vm10, %v16410_v19  ;;  %vm19000_vm13 = vmmov %vm18997_vm0  ;;  %v6420_v14 = vrot.slane %v6411_v17, 6  ;;  %v16821_v41 = vld [vmem:[#allocation4 + $0x30] sm:$0xff]   ;;  %v9125_v18 = vshrl.u32 %v16815_v33, 16  ;;  %v16832_v15 = vld [vmem:[#allocation4 + $0x38] sm:$0xff]  }
 0x4e1   : > { %12842 = vmatprep.subr.msk.bf16.mxu1 %vm19000_vm13, %v16799_v36  ;;  %19001 = vst [vmem:[#allocation83_spill] sm:$0xff] %v16813_v56  ;;  %v9117_v19 = vshrl.u32 %v16813_v56, 16  ;;  %v9120_v32 = vshll.u32 %v16813_v56, 16  ;;  %vm19002_vm4 = vmmov %vm18999_vm10  ;;  %v9128_v56 = vshll.u32 %v16815_v33, 16  ;;  %v9155_v47 = vshll.u32 %v16821_v41, 16 }
 0x4e2   : > { %11957 = vmatmul.mubr.msk.bf16.gmra.mrb[4].mxu1 %vm19002_vm4, %v16413_v63  ;;  %v6421_v30 = vsel %vm18878_vm9, %v6419_v53, %v6420_v14  ;;  %v6422_v11 = vrot.slane %v6420_v14, 4  ;;  %vm19003_vm11 = vmmov %vm19002_vm4  ;;  %v16837_v63 = vld [vmem:[#allocation4 + $0x40] sm:$0xff]   ;;  %v9127_v22 = vrot.slane %v9125_v18, 2  ;;  %v9137_v53 = vshll.u32 %v16817_v5, 16 }
 0x4e3   : > { %11960 = vmatprep.mubr.msk.bf16.mxu1 %vm19003_vm11, %v16415_v52  ;;  %6427 = vst.msk [vmem:[#allocation4 + $0x9c] sm:$0xf] %vm19004_vm12, %v6421_v30  ;;  %v9119_v17 = vrot.slane %v9117_v19, 2  ;;  %v9122_v58 = vrot.slane %v9120_v32, 3  ;;  %v9143_v14 = vshrl.u32 %v16819_v43, 16  ;;  %v9146_v52 = vshll.u32 %v16819_v43, 16  ;;  %vm19008_vm7 = vmmov %vm19002_vm4 }
 0x4e4   : > { %6428 = vst.msk [vmem:[#allocation4 + $0xa0] sm:$0x3] %vm19005_vm6, %v6422_v11  ;;  %v9130_v48 = vrot.slane %v9128_v56, 3  ;;  %v9136_v30 = vrot.slane %v9134_v24, 2  ;;  %v9152_v32 = vshrl.u32 %v16821_v41, 16  ;;  %v9139_v19 = vrot.slane %v9137_v53, 3  ;;  %vm19013_vm0 = vmmov %vm19002_vm4 }
 0x4e5   : > { %v9123_v12 = vor.u32 %v9122_v58, %v9119_v17  ;;  %v9145_v6 = vrot.slane %v9143_v14, 2  ;;  %v9148_v54 = vrot.slane %v9146_v52, 3  ;;  %v9161_v11 = vshrl.u32 %v16832_v15, 16  ;;  %v16850_v56 = vld [vmem:[#allocation4 + $0x50] sm:$0xff]   ;;  %vm19020_vm13 = vmmov %vm19013_vm0 }
 0x4e6   : > { %v9131_v7 = vor.u32 %v9130_v48, %v9127_v22  ;;  %v9154_v23 = vrot.slane %v9152_v32, 2  ;;  %v9164_v18 = vshll.u32 %v16832_v15, 16  ;;  %v9140_v35 = vor.u32 %v9139_v19, %v9136_v30  ;;  %v16874_v19 = vld [vmem:[#allocation4 + $0x10] sm:$0x8]  ;;  %vm19021_vm4 = vmmov %vm19013_vm0 }
 0x4e7   : > { %v9149_v37 = vor.u32 %v9148_v54, %v9145_v6  ;;  %v9157_v58 = vrot.slane %v9155_v47, 3  ;;  %v9170_v24 = vshrl.u32 %v16837_v63, 16  ;;  %vm19006_vm9 = vsmask.f32 5376  ;;  %v16866_v6 = vld [vmem:[#allocation4 + $0x58] sm:$0xff]  }
 0x4e8   : > { %v16853_v17 = vsel %vm19006_vm9, %v9123_v12, %v9131_v7  ;;  %v9163_v53 = vrot.slane %v9161_v11, 2  ;;  %v9166_v14 = vrot.slane %v9164_v18, 3  ;;  %v9173_v48 = vshll.u32 %v16837_v63, 16  ;;  %vm19009_vm8 = vmmov %vm19006_vm9  ;;  %v16868_v12 = vld [vmem:[#allocation4 + $0x60] sm:$0xff]  }
 0x4e9   : > { %19007 = vst [vmem:[#allocation84_spill] sm:$0xff] %v16853_v17  ;;  %v16859_v22 = vsel %vm19009_vm8, %v9131_v7, %v9140_v35  ;;  %vm19011_vm5 = vmmov %vm19009_vm8  ;;  %v9158_v47 = vor.u32 %v9157_v58, %v9154_v23  ;;  %v9172_v30 = vrot.slane %v9170_v24, 2  ;;  %v9179_v7 = vshrl.u32 %v16847_v0, 16 }
 0x4ea   : > { %11961 = vmatmul.mubr.msk.bf16.gmra.mrb[8].mxu1 %vm19008_vm7, %v16424_v1  ;;  %19010 = vst [vmem:[#allocation85_spill] sm:$0xff] %v16859_v22  ;;  %v16862_v54 = vsel %vm19011_vm5, %v9140_v35, %v9149_v37  ;;  %v9167_v52 = vor.u32 %v9166_v14, %v9163_v53  ;;  %vm19014_vm15 = vmmov %vm19011_vm5  ;;  %v9175_v1 = vrot.slane %v9173_v48, 3  ;;  %v16876_v35 = vld [vmem:[#allocation4 + $0x68] sm:$0xff]   ;;  %v9188_v11 = vshrl.u32 %v16850_v56, 16 }
 0x4eb   : > { %19012 = vst [vmem:[#allocation86_spill] sm:$0xff] %v16862_v54  ;;  %11964 = vmatprep.mubr.msk.bf16.mxu1 %vm19013_vm0, %v16446_v4  ;;  %v16871_v32 = vsel %vm19014_vm15, %v9149_v37, %v9158_v47  ;;  %vm19016_vm1 = vmmov %vm19011_vm5  ;;  %v9182_v4 = vshll.u32 %v16847_v0, 16  ;;  %v9181_v58 = vrot.slane %v9179_v7, 2  ;;  %v9191_v24 = vshll.u32 %v16850_v56, 16  ;;  %v16884_v37 = vld [vmem:[#allocation4 + $0x70] sm:$0xff]  }
 0x4ec   : > { %19015 = vst [vmem:[#allocation87_spill] sm:$0xff] %v16871_v32  ;;  %v16879_v23 = vsel %vm19016_vm1, %v9158_v47, %v9167_v52  ;;  %v9176_v18 = vor.u32 %v9175_v1, %v9172_v30  ;;  %v9190_v14 = vrot.slane %v9188_v11, 2  ;;  %v9197_v48 = vshrl.u32 %v16866_v6, 16  ;;  %vm19018_vm10 = vmmov %vm19016_vm1  ;;  %v16894_v1 = vld [vmem:[#allocation4 + $0x78] sm:$0xff]   ;;  %v16900_v32 = vld [vmem:[#allocation4 + $0x80] sm:$0xff]  }
 0x4ed   : > { %19017 = vst [vmem:[#allocation88_spill] sm:$0xff] %v16879_v23  ;;  %v9184_v53 = vrot.slane %v9182_v4, 3  ;;  %v9193_v23 = vrot.slane %v9191_v24, 3  ;;  %v9200_v54 = vshll.u32 %v16866_v6, 16  ;;  %v9206_v30 = vshrl.u32 %v16868_v12, 16  ;;  %vm19022_vm11 = vmmov %vm19016_vm1 }
 0x4ee   : > { %v16890_v47 = vsel %vm19018_vm10, %v9167_v52, %v9176_v18  ;;  %v9199_v22 = vrot.slane %v9197_v48, 2  ;;  %v9209_v4 = vshll.u32 %v16868_v12, 16  ;;  %v9215_v11 = vshrl.u32 %v16876_v35, 16  ;;  %vm19024_vm12 = vmmov %vm19016_vm1 }
 0x4ef   : > { %19019 = vst [vmem:[#allocation89_spill] sm:$0xff] %v16890_v47  ;;  %v9185_v7 = vor.u32 %v9184_v53, %v9181_v58  ;;  %v9194_v52 = vor.u32 %v9193_v23, %v9190_v14  ;;  %v9202_v47 = vrot.slane %v9200_v54, 3  ;;  %v9208_v24 = vrot.slane %v9206_v30, 2  ;;  %v16915_v30 = vld [vmem:[#allocation4 + $0x90] sm:$0xff]   ;;  %vm19026_vm6 = vmmov %vm19016_vm1 }
 0x4f0   : > { %v9218_v17 = vshll.u32 %v16876_v35, 16  ;;  %v9211_v53 = vrot.slane %v9209_v4, 3  ;;  %v9217_v48 = vrot.slane %v9215_v11, 2  ;;  %v9224_v29 = vshrl.u32 %v16884_v37, 16  ;;  %v16919_v11 = vld [vmem:[#allocation4 + $0x98] sm:$0xff]   ;;  %vm19028_vm9 = vmmov %vm19016_vm1 }
 0x4f1   : > { %v16906_v58 = vsel %vm19022_vm11, %v9176_v18, %v9185_v7  ;;  %v9203_v23 = vor.u32 %v9202_v47, %v9199_v22  ;;  %v9227_v14 = vshll.u32 %v16884_v37, 16  ;;  %v9233_v18 = vshrl.u32 %v16894_v1, 16  ;;  %vm19029_vm7 = vmmov %vm19016_vm1 }
 0x4f2   : > { %11965 = vmatmul.mubr.msk.bf16.gmra.mrb[12].mxu1 %vm19020_vm13, %v16479_v61  ;;  %19023 = vst [vmem:[#allocation90_spill] sm:$0xff] %v16906_v58  ;;  %v16912_v61 = vsel %vm19024_vm12, %v9185_v7, %v9194_v52  ;;  %v9220_v54 = vrot.slane %v9218_v17, 3  ;;  %v9212_v27 = vor.u32 %v9211_v53, %v9208_v24  ;;  %v9236_v4 = vshll.u32 %v16894_v1, 16  ;;  %vm19031_vm8 = vmmov %vm19013_vm0 }
 0x4f3   : > { %11968 = vmatprep.mubr.msk.bf16.mxu1 %vm19021_vm4, %v16482_v42  ;;  %19025 = vst [vmem:[#allocation91_spill] sm:$0xff] %v16912_v61  ;;  %v9226_v42 = vrot.slane %v9224_v29, 2  ;;  %v16922_v58 = vsel %vm19026_vm6, %v9194_v52, %v9203_v23  ;;  %v9229_v7 = vrot.slane %v9227_v14, 3  ;;  %v9242_v22 = vshrl.u32 %v16900_v32, 16  ;;  %vm19032_vm5 = vmmov %vm19016_vm1 }
 0x4f4   : > { %19027 = vst [vmem:[#allocation92_spill] sm:$0xff] %v16922_v58  ;;  %v9221_v40 = vor.u32 %v9220_v54, %v9217_v48  ;;  %v16926_v17 = vsel %vm19028_vm9, %v9203_v23, %v9212_v27  ;;  %v9235_v47 = vrot.slane %v9233_v18, 2  ;;  %v9238_v61 = vrot.slane %v9236_v4, 3  ;;  %vm19034_vm15 = vmmov %vm19016_vm1 }
 0x4f5   : > { %v9245_v29 = vshll.u32 %v16900_v32, 16  ;;  %v9230_v53 = vor.u32 %v9229_v7, %v9226_v42  ;;  %v9244_v21 = vrot.slane %v9242_v22, 2  ;;  %v9254_v48 = vshll.u32 %v16909_v13, 16  ;;  %vm19036_vm10 = vmmov %vm19016_vm1 }
 0x4f6   : > { %v16930_v24 = vsel %vm19029_vm7, %v9212_v27, %v9221_v40  ;;  %v9239_v52 = vor.u32 %v9238_v61, %v9235_v47  ;;  %v9260_v54 = vshrl.u32 %v16915_v30, 16  ;;  %v9253_v14 = vrot.slane %v9251_v50, 2  ;;  %vm19037_vm13 = vmmov %vm19016_vm1 }
 0x4f7   : > { %19030 = vst [vmem:[#allocation93_spill] sm:$0xff] %v16930_v24  ;;  %v9247_v58 = vrot.slane %v9245_v29, 3  ;;  %v16938_v23 = vsel %vm19032_vm5, %v9221_v40, %v9230_v53  ;;  %v9263_v27 = vshll.u32 %v16915_v30, 16  ;;  %v9269_v42 = vshrl.u32 %v16919_v11, 16  ;;  %vm19041_vm6 = vmmov %vm19013_vm0 }
 0x4f8   : > { %19033 = vst [vmem:[#allocation94_spill] sm:$0xff] %v16938_v23  ;;  %v16945_v61 = vsel %vm19034_vm15, %v9230_v53, %v9239_v52  ;;  %v9256_v4 = vrot.slane %v9254_v48, 3  ;;  %v9262_v7 = vrot.slane %v9260_v54, 2  ;;  %v19035_v24 = vcombine.low %v16874_v19, %v16810_v31  ;;  %vm19042_vm9 = vmmov %vm19016_vm1 }
 0x4f9   : > { %v9248_v18 = vor.u32 %v9247_v58, %v9244_v21  ;;  %v9265_v22 = vrot.slane %v9263_v27, 3  ;;  %v9271_v47 = vrot.slane %v9269_v42, 2  ;;  %v9563_v53 = vrot.slane %v16815_v33, 3 }
 0x4fa   : > { %11969 = vmatmul.mubr.msk.bf16.gmra.mrb[16].mxu1 %vm19031_vm8, %v16486_v10  ;;  %v9272_v10 = vshll.u32 %v16919_v11, 16  ;;  %v9257_v50 = vor.u32 %v9256_v4, %v9253_v14  ;;  %v9565_v58 = vrot.slane %v16817_v5, 3  ;;  %v9567_v48 = vrot.slane %v16819_v43, 3  ;;  %vm19044_vm8 = vmmov %vm19013_vm0 }
 0x4fb   : > { %11972 = vmatprep.mubr.msk.bf16.mxu1 %vm19013_vm0, %v16493_v60  ;;  %v16949_v40 = vsel %vm19016_vm1, %v9239_v52, %v9248_v18  ;;  %v9266_v29 = vor.u32 %v9265_v22, %v9262_v7  ;;  %v9562_v60 = vrot.slane %v19035_v24, 3  ;;  %vm19038_vm4 = vcmask 1044480  }
 0x4fc   : > { %v9274_v23 = vrot.slane %v9272_v10, 3  ;;  %v16956_v21 = vsel %vm19036_vm10, %v9248_v18, %v9257_v50  ;;  %v9569_v31 = vrot.slane %v16821_v41, 3  ;;  %vm19039_vm11 = vmmov %vm19038_vm4  ;;  %v9571_v27 = vrot.slane %v16832_v15, 3 }
 0x4fd   : > { %v16961_v54 = vsel %vm19037_vm13, %v9257_v50, %v9266_v29  ;;  %v16966_v14 = vsel %vm19038_vm4, %v9562_v60, %v9563_v53  ;;  %v16970_v19 = vsel %vm19039_vm11, %v9563_v53, %v9565_v58  ;;  %vm19040_vm12 = vmmov %vm19038_vm4  ;;  %v9573_v18 = vrot.slane %v16837_v63, 3 }
 0x4fe   : > { %v16963_v52 = vor.u32 %v9274_v23, %v9271_v47  ;;  %v16973_v24 = vsel %vm19040_vm12, %v9565_v58, %v9567_v48  ;;  %vm19043_vm7 = vmmov %vm19038_vm4  ;;  %v9575_v4 = vrot.slane %v16847_v0, 3  ;;  %v9577_v22 = vrot.slane %v16850_v56, 3  ;;  %v16994_v47 = vld [vmem:[#allocation4 + $0xa0] ss:$0 sps:$4 sm:$0x77]  }
 0x4ff   : > { %v16983_v42 = vsel %vm19043_vm7, %v9567_v48, %v9569_v31  ;;  %vm19045_vm5 = vmmov %vm19038_vm4  ;;  %v9583_v60 = vrot.slane %v16876_v35, 3  ;;  %v9585_v58 = vrot.slane %v16884_v37, 3  ;;  %v9587_v48 = vrot.slane %v16894_v1, 3 }
 0x500   : > { %v16980_v23 = vsel %vm19042_vm9, %v9266_v29, %v16963_v52  ;;  %v16990_v7 = vsel %vm19045_vm5, %v9569_v31, %v9571_v27  ;;  %vm19046_vm0 = vmmov %vm19038_vm4  ;;  %v9581_v29 = vrot.slane %v16868_v12, 3  ;;  %vm19066_vm5 = vcmask 31744  }
 0x501   : > { %v16997_v10 = vsel %vm19046_vm0, %v9571_v27, %v9573_v18  ;;  %vm19047_vm15 = vmmov %vm19046_vm0 }
 0x502   : > { %11973 = vmatmul.mubr.msk.bf16.gmra.mrb[20].mxu1 %vm19041_vm6, %v16496_v3  ;;  %v9579_v3 = vrot.slane %v16866_v6, 3  ;;  %v17000_v50 = vsel %vm19047_vm15, %v9573_v18, %v9575_v4  ;;  %vm19049_vm1 = vmmov %vm19046_vm0  ;;  %v9589_v18 = vrot.slane %v16900_v32, 3 }
 0x503   : > { %11976 = vmatprep.mubr.msk.bf16.mxu1 %vm19044_vm8, %v16498_v59  ;;  %19048 = vst [vmem:[#allocation95_spill] sm:$0xff] %v17000_v50  ;;  %v17005_v59 = vsel %vm19049_vm1, %v9575_v4, %v9577_v22  ;;  %vm19051_vm10 = vmmov %vm19046_vm0  ;;  %v9591_v50 = vrot.slane %v16909_v13, 3 }
 0x504   : > { %19050 = vst [vmem:[#allocation96_spill] sm:$0xff] %v17005_v59  ;;  %v17008_v53 = vsel %vm19051_vm10, %v9577_v22, %v9579_v3  ;;  %vm19053_vm13 = vmmov %vm19046_vm0  ;;  %v9595_v59 = vrot.slane %v16919_v11, 3 }
 0x505   : > { %19052 = vst [vmem:[#allocation97_spill] sm:$0xff] %v17008_v53  ;;  %v17013_v31 = vsel %vm19053_vm13, %v9579_v3, %v9581_v29  ;;  %vm19055_vm4 = vmmov %vm19046_vm0  ;;  %v9593_v53 = vrot.slane %v16915_v30, 3 }
 0x506   : > { %19054 = vst [vmem:[#allocation98_spill] sm:$0xff] %v17013_v31  ;;  %v17016_v27 = vsel %vm19055_vm4, %v9581_v29, %v9583_v60  ;;  %vm19057_vm11 = vmmov %vm19046_vm0  ;;  %vm19073_vm4 = vcmask 1046528  }
 0x507   : > { %19056 = vst [vmem:[#allocation99_spill] sm:$0xff] %v17016_v27  ;;  %v17021_v4 = vsel %vm19057_vm11, %v9583_v60, %v9585_v58  ;;  %vm19058_vm12 = vmmov %vm19046_vm0  ;;  %v9597_v27 = vrot.slane %v16994_v47, 3 }
 0x508   : > { %v17024_v22 = vsel %vm19058_vm12, %v9585_v58, %v9587_v48  ;;  %vm19059_vm6 = vmmov %vm19046_vm0  ;;  %vm19075_vm12 = vcmask 1041408  }
 0x509   : > { %v17029_v3 = vsel %vm19059_vm6, %v9587_v48, %v9589_v18  ;;  %vm19060_vm9 = vmmov %vm19046_vm0  ;;  %v17044_v58 = vsel %vm19046_vm0, %v9595_v59, %v9597_v27  ;;  %v7160_v48 = vld [vmem:[#allocation4] sm:$0xe]  ;;  %v13060_v27 = vld [vmem:[#allocation4 + $0x18] sm:$0xff]  }
 0x50a   : > { %v17032_v29 = vsel %vm19060_vm9, %v9589_v18, %v9591_v50  ;;  %vm19062_vm7 = vmmov %vm19046_vm0  ;;  %11977 = vmatmul.mubr.msk.bf16.gmra.mrb[24].mxu1 %vm19066_vm5, %v16500_v38  ;;  %19067 = vst [vmem:[#allocation103_spill] sm:$0xff] %v17044_v58  ;;  %v13057_v18 = vld [vmem:[#allocation4 + $0x4] sm:$0xf]  ;;  %v7171_v58 = vrot.slane %v13060_v27, 1 }
 0x50b   : > { %19061 = vst [vmem:[#allocation100_spill] sm:$0xff] %v17032_v29  ;;  %v17036_v31 = vsel %vm19062_vm7, %v9591_v50, %v9593_v53  ;;  %vm19064_vm8 = vmmov %vm19046_vm0  ;;  %v10917_v29 = vcombine.low %v7160_v48, %v13057_v18 }
 0x50c   : > { %19063 = vst [vmem:[#allocation101_spill] sm:$0xff] %v17036_v31  ;;  %v17039_v60 = vsel %vm19064_vm8, %v9593_v53, %v9595_v59  ;;  %vm19068_vm15 = vmmov %vm19066_vm5  ;;  %v13058_v53 = vld [vmem:[#allocation4 + $0x8] sm:$0xff]   ;;  %v19071_v31 = vld [vmem:[#allocation52_spill] sm:$0xff] }
 0x50d   : > { %19065 = vst [vmem:[#allocation102_spill] sm:$0xff] %v17039_v60  ;;  %11980 = vmatprep.mubr.msk.bf16.mxu1 %vm19068_vm15, %v16504_v28  ;;  %vm19069_vm1 = vmmov %vm19066_vm5  ;;  %v7166_v50 = vrot.slane %v10917_v29, 1  ;;  %v7167_v60 = vrot.slane %v13058_v53, 1  ;;  %v13059_v28 = vld [vmem:[#allocation4 + $0x10] sm:$0xff]   ;;  %v13061_v29 = vld [vmem:[#allocation4 + $0x20] sm:$0xff]  }
 0x50e   : > { %vm19070_vm10 = vmmov %vm19069_vm1  ;;  %v7169_v59 = vrot.slane %v13059_v28, 1  ;;  %v7173_v18 = vrot.slane %v13061_v29, 1  ;;  %v13066_v29 = vld [vmem:[#allocation4 + $0x48] sm:$0xff]  }
 0x50f   : > { %vm19072_vm13 = vmmov %vm19069_vm1  ;;  %v7168_v38 = vsel %vm19073_vm4, %v7166_v50, %v7167_v60 }
 0x510   : > { %vm19074_vm11 = vmmov %vm19069_vm1 }
 0x511   : > { %vm19076_vm6 = vmmov %vm19073_vm4 }
 0x512   : > { %11981 = vmatmul.mubr.msk.bf16.gmra.mrb[28].mxu1 %vm19069_vm1, %v16514_v51  ;;  %v7697_v51 = vsel %vm19075_vm12, %v16799_v36, 0  ;;  %v7170_v48 = vsel %vm19076_vm6, %v7167_v60, %v7169_v59  ;;  %vm19077_vm9 = vmmov %vm19069_vm1  ;;  %v13062_v36 = vld [vmem:[#allocation4 + $0x28] sm:$0xff]  }
 0x513   : > { %11984 = vmatprep.mubr.msk.bf16.mxu1 %vm19070_vm10, %v16517_v57  ;;  %v17062_v57 = vld [vmem:[%s17905_s2 + $0x8] sm:$0x3]  ;;  %vm19078_vm7 = vmmov %vm19073_vm4  ;;  %v7175_v50 = vrot.slane %v13062_v36, 1  ;;  %v7183_v36 = vrot.slane %v13066_v29, 1 }
 0x514   : > { %vm19079_vm8 = vmmov %vm19069_vm1 }
 0x515   : > { %vm19080_vm5 = vmmov %vm19075_vm12 }
 0x516   : > { %vm19081_vm0 = vmmov %vm19073_vm4 }
 0x517   : > { %v7174_v60 = vsel %vm19081_vm0, %v7171_v58, %v7173_v18  ;;  %vm19082_vm15 = vmmov %vm19069_vm1 }
 0x518   : > { %vm19083_vm1 = vmmov %vm19081_vm0 }
 0x519   : > { %v7176_v53 = vsel %vm19083_vm1, %v7173_v18, %v7175_v50  ;;  %vm19084_vm10 = vmmov %vm19079_vm8 }
 0x51a   : > { %11985 = vmatmul.mubr.msk.bf16.gmra.mrb[32].mxu1 %vm19072_vm13, %v19071_v31  ;;  %v7172_v31 = vsel %vm19078_vm7, %v7169_v59, %v7171_v58  ;;  %v13064_v59 = vld [vmem:[#allocation4 + $0x38] sm:$0xff]   ;;  %vm19085_vm13 = vmmov %vm19081_vm0 }
 0x51b   : > { %11990 = vmatprep.mubr.msk.bf16.mxu1 %vm19074_vm11, %v7168_v38  ;;  %v13063_v38 = vld [vmem:[#allocation4 + $0x30] sm:$0xff]   ;;  %v7179_v27 = vrot.slane %v13064_v59, 1  ;;  %vm19086_vm4 = vmmov %vm19079_vm8 }
 0x51c   : > { %v7177_v28 = vrot.slane %v13063_v38, 1  ;;  %vm19087_vm11 = vmmov %vm19081_vm0  ;;  %v13068_v38 = vld [vmem:[#allocation4 + $0x58] sm:$0xff]  }
 0x51d   : > { %vm19088_vm12 = vmmov %vm19086_vm4  ;;  %v7187_v59 = vrot.slane %v13068_v38, 1 }
 0x51e   : > { %vm19089_vm6 = vmmov %vm19081_vm0 }
 0x51f   : > { %vm19091_vm7 = vmmov %vm19081_vm0 }
 0x522   : > { %11991 = vmatmul.mubr.msk.bf16.vlgmr.msra.gmra.mrb[0].mxu1 %vm19077_vm9, %v7170_v48  ;;  %v7180_v48 = vsel %vm19087_vm11, %v7177_v28, %v7179_v27  ;;  %vm19090_vm9 = vmmov %vm19086_vm4 }
 0x523   : > { %12027 = vmatpush3.bf16.msra.mxu1 %v7697_v51  ;;  %11994 = vmatprep.mubr.msk.bf16.mxu1 %vm19079_vm8, %v7172_v31  ;;  %v7178_v51 = vsel %vm19085_vm13, %v7175_v50, %v7177_v28  ;;  %v13065_v31 = vld [vmem:[#allocation4 + $0x40] sm:$0xff]   ;;  %vm19092_vm8 = vmmov %vm19086_vm4 }
 0x524   : > { %12843 = vmatprep.subr.msk.bf16.mxu1 %vm19080_vm5, %v17062_v57  ;;  %v7181_v58 = vrot.slane %v13065_v31, 1  ;;  %vm19093_vm5 = vmmov %vm19081_vm0  ;;  %v13070_v31 = vld [vmem:[#allocation4 + $0x68] sm:$0xff]  }
 0x525   : > { %vm19094_vm0 = vmmov %vm19086_vm4  ;;  %v7191_v29 = vrot.slane %v13070_v31, 1 }
 0x526   : > { %v7182_v18 = vsel %vm19089_vm6, %v7179_v27, %v7181_v58  ;;  %vm19098_vm13 = vmmov %vm19094_vm0 }
 0x527   : > { %vm19100_vm11 = vmmov %vm19094_vm0 }
 0x528   : > { %vm19102_vm6 = vmmov %vm19094_vm0 }
 0x52a   : > { %11995 = vmatmul.mubr.msk.bf16.gmra.mrb[4].mxu1 %vm19082_vm15, %v7174_v60  ;;  %v7184_v60 = vsel %vm19091_vm7, %v7181_v58, %v7183_v36  ;;  %vm19095_vm15 = vmmov %vm19083_vm1 }
 0x52b   : > { %11998 = vmatprep.mubr.msk.bf16.mxu1 %vm19084_vm10, %v7176_v53  ;;  %v13067_v53 = vld [vmem:[#allocation4 + $0x50] sm:$0xff]   ;;  %vm19096_vm1 = vmmov %vm19094_vm0 }
 0x52c   : > { %v7185_v50 = vrot.slane %v13067_v53, 1  ;;  %vm19097_vm10 = vmmov %vm19093_vm5  ;;  %v13072_v53 = vld [vmem:[#allocation4 + $0x78] sm:$0xff]  }
 0x52d   : > { %v7195_v38 = vrot.slane %v13072_v53, 1  ;;  %vm19104_vm7 = vmmov %vm19094_vm0 }
 0x52e   : > { %v7186_v28 = vsel %vm19093_vm5, %v7183_v36, %v7185_v50 }
 0x532   : > { %11999 = vmatmul.mubr.msk.bf16.gmra.mrb[8].mxu1 %vm19086_vm4, %v7178_v51  ;;  %v7188_v51 = vsel %vm19095_vm15, %v7185_v50, %v7187_v59  ;;  %vm19099_vm4 = vmmov %vm19093_vm5 }
 0x533   : > { %12002 = vmatprep.mubr.msk.bf16.mxu1 %vm19088_vm12, %v7180_v48  ;;  %v13069_v48 = vld [vmem:[#allocation4 + $0x60] sm:$0xff]   ;;  %vm19101_vm12 = vmmov %vm19099_vm4 }
 0x534   : > { %v7189_v27 = vrot.slane %v13069_v48, 1  ;;  %v13074_v48 = vld [vmem:[#allocation4 + $0x88] sm:$0xff]   ;;  %vm19106_vm5 = vmmov %vm19094_vm0 }
 0x535   : > { %v7199_v31 = vrot.slane %v13074_v48, 1  ;;  %vm19108_vm15 = vmmov %vm19096_vm1 }
 0x536   : > { %v7190_v58 = vsel %vm19097_vm10, %v7187_v59, %v7189_v27  ;;  %vm19112_vm10 = vmmov %vm19106_vm5 }
 0x53a   : > { %12003 = vmatmul.mubr.msk.bf16.gmra.mrb[12].mxu1 %vm19090_vm9, %v7182_v18  ;;  %v7192_v18 = vsel %vm19099_vm4, %v7189_v27, %v7191_v29  ;;  %vm19103_vm9 = vmmov %vm19099_vm4 }
 0x53b   : > { %12006 = vmatprep.mubr.msk.bf16.mxu1 %vm19092_vm8, %v7184_v60  ;;  %v13071_v60 = vld [vmem:[#allocation4 + $0x70] sm:$0xff]   ;;  %vm19105_vm8 = vmmov %vm19099_vm4 }
 0x53c   : > { %v7193_v36 = vrot.slane %v13071_v60, 1  ;;  %v19110_v60 = vld [vmem:[#allocation5_spill] sm:$0xff] }
 0x53d   : > { %v7605_v53 = vrot.slane %v19110_v60, 1  ;;  %v7622_v60 = vrot.slane %v16589_v62, 1  ;;  %v7628_v62 = vrot.slane %v16625_v25, 1 }
 0x53e   : > { %v7194_v50 = vsel %vm19101_vm12, %v7191_v29, %v7193_v36 }
 0x542   : > { %12007 = vmatmul.mubr.msk.bf16.gmra.mrb[16].mxu1 %vm19094_vm0, %v7186_v28  ;;  %v7196_v28 = vsel %vm19103_vm9, %v7193_v36, %v7195_v38  ;;  %vm19107_vm0 = vmmov %vm19099_vm4  ;;  %v7606_v36 = vrot.slane %v16538_v46, 1  ;;  %v10994_v46 = vld [vmem:[%s17905_s2 + $0xa] sm:$0x3] }
 0x543   : > { %12010 = vmatprep.mubr.msk.bf16.mxu1 %vm19096_vm1, %v7188_v51  ;;  %v13073_v51 = vld [vmem:[#allocation4 + $0x80] sm:$0xff]   ;;  %vm19111_vm1 = vmmov %vm19107_vm0 }
 0x544   : > { %v7197_v59 = vrot.slane %v13073_v51, 1  ;;  %vm19114_vm4 = vmmov %vm19106_vm5  ;;  %v7610_v51 = vrot.slane %v16552_v49, 1  ;;  %v7614_v49 = vrot.slane %v16566_v39, 1  ;;  %v7620_v39 = vrot.slane %v16586_v8, 1 }
 0x545   : > { %vm19116_vm12 = vmmov %vm19107_vm0 }
 0x546   : > { %v7198_v27 = vsel %vm19105_vm8, %v7195_v38, %v7197_v59  ;;  %v7608_v38 = vrot.slane %v16543_v55, 1  ;;  %vm19118_vm9 = vmmov %vm19107_vm0  ;;  %v7612_v55 = vrot.slane %v16560_v16, 1 }
 0x548   : > { %v7609_v48 = vsel %vm19116_vm12, %v7606_v36, %v7608_v38 }
 0x54a   : > { %12011 = vmatmul.mubr.msk.bf16.gmra.mrb[20].mxu1 %vm19098_vm13, %v7190_v58  ;;  %v7200_v58 = vsel %vm19107_vm0, %v7197_v59, %v7199_v31  ;;  %vm19113_vm13 = vmmov %vm19107_vm0 }
 0x54b   : > { %12014 = vmatprep.mubr.msk.bf16.mxu1 %vm19100_vm11, %v7192_v18  ;;  %v19109_v18 = vld [vmem:[#allocation40_spill] sm:$0xff]  ;;  %vm19115_vm11 = vcmask 1041408  }
 0x54c   : > { %v7201_v29 = vrot.slane %v19109_v18, 1  ;;  %v8143_v59 = vsel %vm19115_vm11, %v17062_v57, 0  ;;  %vm19120_vm8 = vmmov %vm19115_vm11  ;;  %v7618_v18 = vrot.slane %v16582_v44, 1  ;;  %v7624_v44 = vrot.slane %v16608_v34, 1 }
 0x552   : > { %12015 = vmatmul.mubr.msk.bf16.gmra.mrb[24].mxu1 %vm19102_vm6, %v7194_v50  ;;  %v7202_v50 = vsel %vm19111_vm1, %v7199_v31, %v7201_v29  ;;  %vm19117_vm6 = vmmov %vm19114_vm4  ;;  %v7611_v31 = vsel %vm19118_vm9, %v7608_v38, %v7610_v51 }
 0x553   : > { %12018 = vmatprep.mubr.msk.bf16.mxu1 %vm19104_vm7, %v7196_v28  ;;  %v7607_v28 = vsel %vm19113_vm13, %v7605_v53, %v7606_v36  ;;  %vm19119_vm7 = vmmov %vm19114_vm4  ;;  %v7626_v36 = vrot.slane %v16610_v45, 1  ;;  %v7632_v45 = vrot.slane %v16638_v20, 1 }
 0x55a   : > { %12019 = vmatmul.mubr.msk.bf16.gmra.mrb[28].mxu1 %vm19106_vm5, %v7198_v27  ;;  %vm19121_vm5 = vmmov %vm19107_vm0 }
 0x55b   : > { %12022 = vmatprep.mubr.msk.bf16.mxu1 %vm19108_vm15, %v7200_v58  ;;  %v7613_v57 = vsel %vm19121_vm5, %v7610_v51, %v7612_v55  ;;  %vm19122_vm0 = vmmov %vm19114_vm4  ;;  %v7616_v58 = vrot.slane %v16572_v26, 1  ;;  %v7634_v51 = vrot.slane %v16659_v9, 1 }
 0x55c   : > { %vm19123_vm15 = vmmov %vm19111_vm1 }
 0x55d   : > { %v7615_v27 = vsel %vm19123_vm15, %v7612_v55, %v7614_v49  ;;  %vm19124_vm1 = vmmov %vm19122_vm0 }
 0x55e   : > { %vm19126_vm13 = vmmov %vm19122_vm0 }
 0x55f   : > { %vm19128_vm11 = vmmov %vm19122_vm0 }
 0x560   : > { %vm19136_vm15 = vmmov %vm19124_vm1 }
 0x562   : > { %12023 = vmatmul.mubr.msk.bf16.gmra.mrb[32].mxu1 %vm19112_vm10, %v7202_v50  ;;  %vm19125_vm10 = vmmov %vm19121_vm5 }
 0x563   : > { %12028 = vmatprep.mubr.msk.bf16.mxu1 %vm19114_vm4, %v7607_v28  ;;  %v7617_v29 = vsel %vm19125_vm10, %v7614_v49, %v7616_v58  ;;  %vm19127_vm4 = vmmov %vm19121_vm5  ;;  %v7630_v28 = vrot.slane %v16634_v2, 1  ;;  %v19145_v2 = vld [vmem:[#allocation8_spill] sm:$0xff] }
 0x564   : > { %v7619_v16 = vsel %vm19127_vm4, %v7616_v58, %v7618_v18  ;;  %vm19129_vm12 = vmmov %vm19127_vm4  ;;  %v19153_v58 = vld [vmem:[#allocation6_spill] sm:$0xff] }
 0x565   : > { %v7621_v53 = vsel %vm19129_vm12, %v7618_v18, %v7620_v39  ;;  %vm19131_vm9 = vmmov %vm19127_vm4 }
 0x566   : > { %v7623_v26 = vsel %vm19131_vm9, %v7620_v39, %v7622_v60  ;;  %vm19134_vm5 = vmmov %vm19122_vm0  ;;  %v19158_v39 = vld [vmem:[#allocation12_spill] sm:$0xff] }
 0x567   : > { %vm19138_vm10 = vmmov %vm19134_vm5 }
 0x56a   : > { %12029 = vmatmul.mubr.msk.bf16.vlgmr.msra.gmra.mrb[0].mxu1 %vm19117_vm6, %v7609_v48  ;;  %vm19130_vm6 = vmmov %vm19122_vm0  ;;  %v7636_v48 = vrot.slane %v19145_v2, 1 }
 0x56b   : > { %12065 = vmatpush3.bf16.msra.mxu1 %v8143_v59  ;;  %12032 = vmatprep.mubr.msk.bf16.mxu1 %vm19119_vm7, %v7611_v31  ;;  %vm19132_vm7 = vmmov %vm19122_vm0  ;;  %v19146_v31 = vld [vmem:[#allocation15_spill] sm:$0xff] }
 0x56c   : > { %12844 = vmatprep.subr.msk.bf16.mxu1 %vm19120_vm8, %v10994_v46  ;;  %vm19133_vm8 = vmmov %vm19127_vm4  ;;  %v7638_v55 = vrot.slane %v19146_v31, 1  ;;  %v19187_v31 = vld [vmem:[#allocation67_spill] sm:$0xff] }
 0x56d   : > { %v7625_v50 = vsel %vm19133_vm8, %v7622_v60, %v7624_v44  ;;  %v19161_v60 = vld [vmem:[#allocation9_spill] sm:$0xff] }
 0x572   : > { %12033 = vmatmul.mubr.msk.bf16.gmra.mrb[4].mxu1 %vm19122_vm0, %v7613_v57  ;;  %vm19135_vm0 = vmmov %vm19127_vm4  ;;  %v13026_v57 = vld [vmem:[#allocation4 + $0x98] ss:$0 sps:$4 sm:$0x11]  }
 0x573   : > { %12036 = vmatprep.mubr.msk.bf16.mxu1 %vm19124_vm1, %v7615_v27  ;;  %v7627_v8 = vsel %vm19135_vm0, %v7624_v44, %v7626_v36  ;;  %vm19137_vm1 = vmmov %vm19135_vm0  ;;  %v7640_v9 = vrot.slane %v13026_v57, 1  ;;  %v19169_v44 = vld [vmem:[#allocation16_spill] sm:$0xff] }
 0x574   : > { %v7629_v38 = vsel %vm19137_vm1, %v7626_v36, %v7628_v62  ;;  %vm19140_vm4 = vmmov %vm19134_vm5  ;;  %v19171_v36 = vld [vmem:[#allocation7_spill] sm:$0xff] }
 0x575   : > { %vm19142_vm12 = vmmov %vm19140_vm4 }
 0x576   : > { %vm19144_vm9 = vmmov %vm19140_vm4 }
 0x577   : > { %vm19148_vm8 = vmmov %vm19140_vm4 }
 0x57a   : > { %12037 = vmatmul.mubr.msk.bf16.gmra.mrb[8].mxu1 %vm19126_vm13, %v7617_v29  ;;  %vm19139_vm13 = vmmov %vm19135_vm0  ;;  %v11014_v29 = vld [vmem:[%s17905_s2 + $0xc] sm:$0x3] }
 0x57b   : > { %12040 = vmatprep.mubr.msk.bf16.mxu1 %vm19128_vm11, %v7619_v16  ;;  %v7631_v34 = vsel %vm19139_vm13, %v7628_v62, %v7630_v28  ;;  %vm19141_vm11 = vmmov %vm19135_vm0  ;;  %vm19155_vm13 = vcmask 1041408   ;;  %v19156_v16 = vld [vmem:[#allocation11_spill] sm:$0xff]  ;;  %v19176_v62 = vld [vmem:[#allocation57_spill] sm:$0xff] }
 0x57c   : > { %v7633_v59 = vsel %vm19141_vm11, %v7630_v28, %v7632_v45  ;;  %v8456_v18 = vsel %vm19155_vm13, %v10994_v46, 0  ;;  %v19165_v46 = vld [vmem:[#allocation10_spill] sm:$0xff] }
 0x57d   : > { %v19178_v28 = vld [vmem:[#allocation58_spill] sm:$0xff] }
 0x582   : > { %12041 = vmatmul.mubr.msk.bf16.gmra.mrb[12].mxu1 %vm19130_vm6, %v7621_v53  ;;  %vm19143_vm6 = vmmov %vm19135_vm0  ;;  %v19163_v53 = vld [vmem:[#allocation14_spill] sm:$0xff] }
 0x583   : > { %12044 = vmatprep.mubr.msk.bf16.mxu1 %vm19132_vm7, %v7623_v26  ;;  %v7635_v25 = vsel %vm19143_vm6, %v7632_v45, %v7634_v51  ;;  %vm19147_vm7 = vmmov %vm19135_vm0  ;;  %v19167_v26 = vld [vmem:[#allocation13_spill] sm:$0xff]  ;;  %v19184_v45 = vld [vmem:[#allocation76_spill] sm:$0xff] }
 0x584   : > { %v7637_v49 = vsel %vm19147_vm7, %v7634_v51, %v7636_v48  ;;  %v8080_v51 = vshrl.u32 %v19184_v45, 16 }
 0x58a   : > { %12045 = vmatmul.mubr.msk.bf16.gmra.mrb[16].mxu1 %vm19134_vm5, %v7625_v50  ;;  %vm19149_vm5 = vmmov %vm19135_vm0  ;;  %v19172_v50 = vld [vmem:[#allocation55_spill] sm:$0xff] }
 0x58b   : > { %12048 = vmatprep.mubr.msk.bf16.mxu1 %vm19136_vm15, %v7627_v8  ;;  %v7639_v20 = vsel %vm19149_vm5, %v7636_v48, %v7638_v55  ;;  %vm19150_vm0 = vmmov %vm19140_vm4  ;;  %v19174_v8 = vld [vmem:[#allocation56_spill] sm:$0xff]  ;;  %v19185_v48 = vld [vmem:[#allocation61_spill] sm:$0xff] }
 0x58c   : > { %vm19151_vm15 = vmmov %vm19137_vm1 }
 0x58d   : > { %v7641_v27 = vsel %vm19151_vm15, %v7638_v55, %v7640_v9  ;;  %vm19152_vm1 = vmmov %vm19150_vm0 }
 0x58e   : > { %vm19159_vm11 = vmmov %vm19150_vm0 }
 0x58f   : > { %vm19162_vm6 = vmmov %vm19150_vm0 }
 0x590   : > { %vm19166_vm7 = vmmov %vm19150_vm0 }
 0x591   : > { %vm19170_vm5 = vmmov %vm19150_vm0 }
 0x592   : > { %12049 = vmatmul.mubr.msk.bf16.gmra.mrb[20].mxu1 %vm19138_vm10, %v7629_v38  ;;  %vm19154_vm10 = vmmov %vm19150_vm0  ;;  %v19180_v38 = vld [vmem:[#allocation59_spill] sm:$0xff] }
 0x593   : > { %12052 = vmatprep.mubr.msk.bf16.mxu1 %vm19140_vm4, %v7631_v34  ;;  %vm19157_vm4 = vmmov %vm19150_vm0  ;;  %v19182_v34 = vld [vmem:[#allocation60_spill] sm:$0xff] }
 0x594   : > { %vm19173_vm15 = vmmov %vm19150_vm0 }
 0x59a   : > { %12053 = vmatmul.mubr.msk.bf16.gmra.mrb[24].mxu1 %vm19142_vm12, %v7633_v59  ;;  %vm19160_vm12 = vmmov %vm19155_vm13  ;;  %v8083_v59 = vshll.u32 %v19184_v45, 16 }
 0x59b   : > { %12056 = vmatprep.mubr.msk.bf16.mxu1 %vm19144_vm9, %v7635_v25  ;;  %vm19164_vm9 = vmmov %vm19150_vm0  ;;  %v8082_v25 = vrot.slane %v8080_v51, 1  ;;  %v8804_v51 = vrot.slane %v16815_v33, 2 }
 0x59c   : > { %vm19179_vm13 = vmmov %vm19150_vm0  ;;  %v8085_v2 = vrot.slane %v8083_v59, 2  ;;  %v19227_v59 = vld [vmem:[#allocation82_spill] sm:$0xff] }
 0x59e   : > { %v8086_v55 = vor.u32 %v8085_v2, %v8082_v25  ;;  %v8806_v2 = vrot.slane %v16817_v5, 2  ;;  %v8810_v5 = vrot.slane %v16821_v41, 2 }
 0x5a2   : > { %12057 = vmatmul.mubr.msk.bf16.gmra.mrb[28].mxu1 %vm19148_vm8, %v7637_v49  ;;  %vm19168_vm8 = vmmov %vm19150_vm0  ;;  %v19189_v49 = vld [vmem:[#allocation62_spill] sm:$0xff] }
 0x5a3   : > { %12060 = vmatprep.mubr.msk.bf16.mxu1 %vm19150_vm0, %v7639_v20  ;;  %v19192_v20 = vld [vmem:[#allocation63_spill] sm:$0xff] }
 0x5aa   : > { %12061 = vmatmul.mubr.msk.bf16.gmra.mrb[32].mxu1 %vm19152_vm1, %v7641_v27  ;;  %vm19175_vm1 = vmmov %vm19150_vm0  ;;  %v11052_v27 = vld [vmem:[%s17905_s2 + $0xe] sm:$0x3] }
 0x5ab   : > { %12066 = vmatprep.mubr.msk.bf16.mxu1 %vm19154_vm10, %v19153_v58  ;;  %vm19177_vm10 = vmmov %vm19150_vm0  ;;  %v19195_v58 = vld [vmem:[#allocation64_spill] sm:$0xff] }
 0x5b2   : > { %12067 = vmatmul.mubr.msk.bf16.vlgmr.msra.gmra.mrb[0].mxu1 %vm19157_vm4, %v19156_v16  ;;  %vm19181_vm4 = vmmov %vm19150_vm0  ;;  %v19199_v16 = vld [vmem:[#allocation66_spill] sm:$0xff] }
 0x5b3   : > { %12103 = vmatpush3.bf16.msra.mxu1 %v8456_v18  ;;  %12070 = vmatprep.mubr.msk.bf16.mxu1 %vm19159_vm11, %v19158_v39  ;;  %vm19183_vm11 = vmmov %vm19150_vm0  ;;  %v19196_v18 = vld [vmem:[#allocation65_spill] sm:$0xff]  ;;  %v19201_v39 = vld [vmem:[#allocation68_spill] sm:$0xff] }
 0x5b4   : > { %12845 = vmatprep.subr.msk.bf16.mxu1 %vm19160_vm12, %v11014_v29  ;;  %vm19186_vm12 = vmmov %vm19150_vm0 }
 0x5ba   : > { %12071 = vmatmul.mubr.msk.bf16.gmra.mrb[4].mxu1 %vm19162_vm6, %v19161_v60  ;;  %vm19188_vm6 = vmmov %vm19150_vm0  ;;  %v19205_v60 = vld [vmem:[#allocation70_spill] sm:$0xff] }
 0x5bb   : > { %12074 = vmatprep.mubr.msk.bf16.mxu1 %vm19164_vm9, %v19163_v53  ;;  %vm19190_vm9 = vsmask.f32 6400  ;;  %v19207_v53 = vld [vmem:[#allocation71_spill] sm:$0xff] }
 0x5bc   : > { %v8087_v57 = vsel %vm19190_vm9, %v19189_v49, %v8086_v55  ;;  %vm19212_vm9 = vmmov %vm19150_vm0  ;;  %v11072_v49 = vld [vmem:[%s17905_s2 + $0x10] sm:$0x3] }
 0x5c2   : > { %12075 = vmatmul.mubr.msk.bf16.gmra.mrb[8].mxu1 %vm19166_vm7, %v19165_v46  ;;  %vm19191_vm7 = vmmov %vm19150_vm0  ;;  %v19209_v46 = vld [vmem:[#allocation72_spill] sm:$0xff] }
 0x5c3   : > { %12078 = vmatprep.mubr.msk.bf16.mxu1 %vm19168_vm8, %v19167_v26  ;;  %vm19193_vm8 = vmmov %vm19150_vm0  ;;  %v19211_v26 = vld [vmem:[#allocation73_spill] sm:$0xff] }
 0x5ca   : > { %12079 = vmatmul.mubr.msk.bf16.gmra.mrb[12].mxu1 %vm19170_vm5, %v19169_v44  ;;  %vm19194_vm5 = vcmask 1041408   ;;  %v19213_v44 = vld [vmem:[#allocation74_spill] sm:$0xff] }
 0x5cb   : > { %12082 = vmatprep.mubr.msk.bf16.mxu1 %vm19150_vm0, %v19171_v36  ;;  %v8895_v9 = vsel %vm19194_vm5, %v11014_v29, 0  ;;  %v19203_v29 = vld [vmem:[#allocation69_spill] sm:$0xff]  ;;  %v19215_v36 = vld [vmem:[#allocation75_spill] sm:$0xff] }
 0x5d2   : > { %12083 = vmatmul.mubr.msk.bf16.gmra.mrb[16].mxu1 %vm19173_vm15, %v19172_v50  ;;  %vm19197_vm15 = vmmov %vm19150_vm0  ;;  %v19217_v50 = vld [vmem:[#allocation77_spill] sm:$0xff] }
 0x5d3   : > { %12086 = vmatprep.mubr.msk.bf16.mxu1 %vm19175_vm1, %v19174_v8  ;;  %vm19198_vm1 = vmmov %vm19194_vm5  ;;  %v19219_v8 = vld [vmem:[#allocation78_spill] sm:$0xff] }
 0x5d4   : > { %vm19218_vm5 = vmmov %vm19150_vm0 }
 0x5da   : > { %12087 = vmatmul.mubr.msk.bf16.gmra.mrb[20].mxu1 %vm19177_vm10, %v19176_v62  ;;  %vm19200_vm10 = vmmov %vm19150_vm0  ;;  %v19220_v62 = vld [vmem:[#allocation79_spill] sm:$0xff] }
 0x5db   : > { %12090 = vmatprep.mubr.msk.bf16.mxu1 %vm19179_vm13, %v19178_v28  ;;  %vm19202_vm13 = vmmov %vm19150_vm0  ;;  %v19222_v28 = vld [vmem:[#allocation80_spill] sm:$0xff] }
 0x5e2   : > { %12091 = vmatmul.mubr.msk.bf16.gmra.mrb[24].mxu1 %vm19181_vm4, %v19180_v38  ;;  %vm19204_vm4 = vmmov %vm19150_vm0  ;;  %v19224_v38 = vld [vmem:[#allocation81_spill] sm:$0xff] }
 0x5e3   : > { %12094 = vmatprep.mubr.msk.bf16.mxu1 %vm19183_vm11, %v19182_v34  ;;  %vm19206_vm11 = vmmov %vm19150_vm0  ;;  %v19226_v34 = vld [vmem:[#allocation83_spill] sm:$0xff] }
 0x5e4   : > { %v8803_v45 = vrot.slane %v19226_v34, 2  ;;  %v19276_v34 = vld [vmem:[#allocation88_spill] sm:$0xff] }
 0x5ea   : > { %12095 = vmatmul.mubr.msk.bf16.gmra.mrb[28].mxu1 %vm19186_vm12, %v19185_v48  ;;  %vm19208_vm12 = vmmov %vm19150_vm0  ;;  %v8808_v48 = vrot.slane %v16819_v43, 2  ;;  %v8812_v43 = vrot.slane %v16832_v15, 2  ;;  %v8818_v15 = vrot.slane %v16850_v56, 2 }
 0x5eb   : > { %12098 = vmatprep.mubr.msk.bf16.mxu1 %vm19188_vm6, %v19187_v31  ;;  %vm19210_vm6 = vmmov %vm19150_vm0 }
 0x5f2   : > { %12099 = vmatmul.mubr.msk.bf16.gmra.mrb[32].mxu1 %vm19191_vm7, %v8087_v57  ;;  %vm19214_vm7 = vmmov %vm19150_vm0 }
 0x5f3   : > { %12104 = vmatprep.mubr.msk.bf16.mxu1 %vm19193_vm8, %v19192_v20  ;;  %vm19216_vm8 = vmmov %vm19150_vm0 }
 0x5fa   : > { %12105 = vmatmul.mubr.msk.bf16.vlgmr.msra.gmra.mrb[0].mxu1 %vm19150_vm0, %v19195_v58 }
 0x5fb   : > { %12141 = vmatpush3.bf16.msra.mxu1 %v8895_v9  ;;  %12108 = vmatprep.mubr.msk.bf16.mxu1 %vm19197_vm15, %v19196_v18  ;;  %vm19221_vm15 = vmmov %vm19150_vm0  ;;  %v8814_v9 = vrot.slane %v16837_v63, 2  ;;  %v8820_v18 = vrot.slane %v16866_v6, 2  ;;  %v8826_v6 = vrot.slane %v16884_v37, 2 }
 0x5fc   : > { %12846 = vmatprep.subr.msk.bf16.mxu1 %vm19198_vm1, %v11052_v27  ;;  %vm19223_vm1 = vmmov %vm19150_vm0 }
 0x602   : > { %12109 = vmatmul.mubr.msk.bf16.gmra.mrb[4].mxu1 %vm19200_vm10, %v19199_v16  ;;  %vm19225_vm10 = vmmov %vm19150_vm0 }
 0x603   : > { %12112 = vmatprep.mubr.msk.bf16.mxu1 %vm19202_vm13, %v19201_v39  ;;  %vm19228_vm13 = vmmov %vm19150_vm0  ;;  %v8824_v39 = vrot.slane %v16876_v35, 2  ;;  %v8830_v35 = vrot.slane %v16900_v32, 2 }
 0x60a   : > { %12113 = vmatmul.mubr.msk.bf16.gmra.mrb[8].mxu1 %vm19204_vm4, %v19203_v29  ;;  %vm19229_vm4 = vcmask 1045504  }
 0x60b   : > { %12116 = vmatprep.mubr.msk.bf16.mxu1 %vm19206_vm11, %v19205_v60  ;;  %v8805_v25 = vsel %vm19229_vm4, %v8803_v45, %v8804_v51  ;;  %vm19230_vm11 = vmmov %vm19150_vm0  ;;  %v8828_v60 = vrot.slane %v16894_v1, 2  ;;  %v8834_v1 = vrot.slane %v16915_v30, 2  ;;  %v19278_v45 = vld [vmem:[#allocation89_spill] sm:$0xff] }
 0x612   : > { %12117 = vmatmul.mubr.msk.bf16.gmra.mrb[12].mxu1 %vm19208_vm12, %v19207_v53  ;;  %vm19231_vm12 = vcmask 1041408  }
 0x613   : > { %12120 = vmatprep.mubr.msk.bf16.mxu1 %vm19210_vm6, %v19209_v46  ;;  %v9341_v31 = vsel %vm19231_vm12, %v11052_v27, 0  ;;  %vm19232_vm6 = vmmov %vm19229_vm4  ;;  %v8816_v27 = vrot.slane %v16847_v0, 2  ;;  %v8822_v0 = vrot.slane %v16868_v12, 2  ;;  %v8832_v46 = vrot.slane %v16909_v13, 2 }
 0x614   : > { %v8807_v55 = vsel %vm19232_vm6, %v8804_v51, %v8806_v2  ;;  %v19280_v51 = vld [vmem:[#allocation90_spill] sm:$0xff] }
 0x61a   : > { %12121 = vmatmul.mubr.msk.bf16.gmra.mrb[16].mxu1 %vm19212_vm9, %v19211_v26  ;;  %vm19233_vm9 = vmmov %vm19150_vm0 }
 0x61b   : > { %12124 = vmatprep.mubr.msk.bf16.mxu1 %vm19214_vm7, %v19213_v44  ;;  %vm19234_vm7 = vmmov %vm19229_vm4  ;;  %v8836_v44 = vrot.slane %v16919_v11, 2  ;;  %v19270_v11 = vld [vmem:[#allocation85_spill] sm:$0xff] }
 0x61c   : > { %v8809_v33 = vsel %vm19234_vm7, %v8806_v2, %v8808_v48  ;;  %v19286_v2 = vld [vmem:[#allocation93_spill] sm:$0xff] }
 0x622   : > { %12125 = vmatmul.mubr.msk.bf16.gmra.mrb[20].mxu1 %vm19216_vm8, %v19215_v36  ;;  %vm19235_vm8 = vmmov %vm19150_vm0 }
 0x623   : > { %12128 = vmatprep.mubr.msk.bf16.mxu1 %vm19218_vm5, %v19217_v50  ;;  %vm19236_vm5 = vmmov %vm19231_vm12  ;;  %v13046_v50 = vld [vmem:[#allocation4 + $0xa0] ss:$0 sps:$4 sm:$0x33]  }
 0x624   : > { %v8838_v13 = vrot.slane %v13046_v50, 2  ;;  %v19345_v50 = vld [vmem:[#allocation22_spill] sm:$0xff] }
 0x62a   : > { %12129 = vmatmul.mubr.msk.bf16.gmra.mrb[24].mxu1 %vm19150_vm0, %v19219_v8  ;;  %vm19237_vm0 = vmmov %vm19229_vm4 }
 0x62b   : > { %12132 = vmatprep.mubr.msk.bf16.mxu1 %vm19221_vm15, %v19220_v62  ;;  %v8811_v57 = vsel %vm19237_vm0, %v8808_v48, %v8810_v5  ;;  %vm19238_vm15 = vmmov %vm19223_vm1  ;;  %v19267_v62 = vld [vmem:[#allocation84_spill] sm:$0xff]  ;;  %v19288_v48 = vld [vmem:[#allocation94_spill] sm:$0xff] }
 0x62c   : > { %vm19242_vm4 = vmmov %vm19235_vm8 }
 0x62d   : > { %vm19244_vm12 = vmmov %vm19242_vm4 }
 0x62e   : > { %vm19245_vm6 = vmmov %vm19237_vm0 }
 0x62f   : > { %v8819_v16 = vsel %vm19245_vm6, %v8816_v27, %v8818_v15  ;;  %vm19247_vm7 = vmmov %vm19237_vm0 }
 0x630   : > { %v8821_v63 = vsel %vm19247_vm7, %v8818_v15, %v8820_v18 }
 0x632   : > { %12133 = vmatmul.mubr.msk.bf16.gmra.mrb[28].mxu1 %vm19223_vm1, %v19222_v28  ;;  %vm19239_vm1 = vmmov %vm19237_vm0  ;;  %v19272_v28 = vld [vmem:[#allocation86_spill] sm:$0xff] }
 0x633   : > { %12136 = vmatprep.mubr.msk.bf16.mxu1 %vm19225_vm10, %v19224_v38  ;;  %v8813_v20 = vsel %vm19239_vm1, %v8810_v5, %v8812_v43  ;;  %vm19240_vm10 = vmmov %vm19235_vm8  ;;  %v19274_v38 = vld [vmem:[#allocation87_spill] sm:$0xff] }
 0x63a   : > { %12137 = vmatmul.mubr.msk.bf16.gmra.mrb[32].mxu1 %vm19228_vm13, %v19227_v59  ;;  %vm19241_vm13 = vmmov %vm19237_vm0  ;;  %v19282_v59 = vld [vmem:[#allocation91_spill] sm:$0xff] }
 0x63b   : > { %12142 = vmatprep.mubr.msk.bf16.mxu1 %vm19230_vm11, %v8805_v25  ;;  %v8815_v58 = vsel %vm19241_vm13, %v8812_v43, %v8814_v9  ;;  %vm19243_vm11 = vmmov %vm19237_vm0  ;;  %v19283_v25 = vld [vmem:[#allocation92_spill] sm:$0xff] }
 0x63c   : > { %v8817_v41 = vsel %vm19243_vm11, %v8814_v9, %v8816_v27  ;;  %v19332_v27 = vld [vmem:[#allocation45_spill] sm:$0xff] }
 0x642   : > { %12143 = vmatmul.mubr.msk.bf16.vlgmr.msra.gmra.mrb[0].mxu1 %vm19233_vm9, %v8807_v55  ;;  %vm19246_vm9 = vmmov %vm19242_vm4  ;;  %v9281_v55 = vshll.u32 %v16994_v47, 16 }
 0x643   : > { %12179 = vmatpush3.bf16.msra.mxu1 %v9341_v31  ;;  %12146 = vmatprep.mubr.msk.bf16.mxu1 %vm19235_vm8, %v8809_v33  ;;  %vm19248_vm8 = vmmov %vm19242_vm4  ;;  %v9278_v31 = vshrl.u32 %v16994_v47, 16 }
 0x644   : > { %12847 = vmatprep.subr.msk.bf16.mxu1 %vm19236_vm5, %v11072_v49  ;;  %vm19249_vm5 = vmmov %vm19237_vm0 }
 0x645   : > { %v8823_v29 = vsel %vm19249_vm5, %v8820_v18, %v8822_v0  ;;  %vm19250_vm0 = vmmov %vm19242_vm4 }
 0x646   : > { %vm19254_vm13 = vmmov %vm19250_vm0 }
 0x647   : > { %vm19256_vm11 = vmmov %vm19250_vm0 }
 0x648   : > { %vm19258_vm6 = vmmov %vm19250_vm0 }
 0x649   : > { %vm19260_vm7 = vmmov %vm19250_vm0 }
 0x64a   : > { %12147 = vmatmul.mubr.msk.bf16.gmra.mrb[4].mxu1 %vm19238_vm15, %v8811_v57  ;;  %vm19251_vm15 = vmmov %vm19239_vm1  ;;  %v19329_v57 = vld [vmem:[#allocation43_spill] sm:$0xff] }
 0x64b   : > { %12150 = vmatprep.mubr.msk.bf16.mxu1 %vm19240_vm10, %v8813_v20  ;;  %v8825_v56 = vsel %vm19251_vm15, %v8822_v0, %v8824_v39  ;;  %vm19252_vm1 = vmmov %vm19250_vm0 }
 0x64c   : > { %vm19253_vm10 = vmmov %vm19249_vm5 }
 0x64d   : > { %v8827_v53 = vsel %vm19253_vm10, %v8824_v39, %v8826_v6  ;;  %vm19264_vm15 = vmmov %vm19252_vm1 }
 0x652   : > { %12151 = vmatmul.mubr.msk.bf16.gmra.mrb[8].mxu1 %vm19242_vm4, %v8815_v58  ;;  %vm19255_vm4 = vmmov %vm19249_vm5 }
 0x653   : > { %12154 = vmatprep.mubr.msk.bf16.mxu1 %vm19244_vm12, %v8817_v41  ;;  %v8829_v12 = vsel %vm19255_vm4, %v8826_v6, %v8828_v60  ;;  %vm19257_vm12 = vmmov %vm19255_vm4 }
 0x654   : > { %v8831_v26 = vsel %vm19257_vm12, %v8828_v60, %v8830_v35  ;;  %vm19262_vm5 = vmmov %vm19250_vm0 }
 0x655   : > { %vm19266_vm10 = vmmov %vm19262_vm5 }
 0x656   : > { %vm19273_vm12 = vmmov %vm19262_vm5 }
 0x65a   : > { %12155 = vmatmul.mubr.msk.bf16.gmra.mrb[12].mxu1 %vm19246_vm9, %v8819_v16  ;;  %vm19259_vm9 = vmmov %vm19255_vm4 }
 0x65b   : > { %12158 = vmatprep.mubr.msk.bf16.mxu1 %vm19248_vm8, %v8821_v63  ;;  %v8833_v37 = vsel %vm19259_vm9, %v8830_v35, %v8832_v46  ;;  %vm19261_vm8 = vmmov %vm19255_vm4 }
 0x65c   : > { %v8835_v36 = vsel %vm19261_vm8, %v8832_v46, %v8834_v1  ;;  %vm19277_vm9 = vmmov %vm19262_vm5 }
 0x65d   : > { %vm19281_vm8 = vmmov %vm19262_vm5 }
 0x662   : > { %12159 = vmatmul.mubr.msk.bf16.gmra.mrb[16].mxu1 %vm19250_vm0, %v8823_v29  ;;  %vm19263_vm0 = vmmov %vm19255_vm4  ;;  %vm19269_vm4 = vcmask 1041408  }
 0x663   : > { %12162 = vmatprep.mubr.msk.bf16.mxu1 %vm19252_vm1, %v8825_v56  ;;  %v8837_v32 = vsel %vm19263_vm0, %v8834_v1, %v8836_v44  ;;  %vm19265_vm1 = vmmov %vm19263_vm0  ;;  %v9654_v30 = vsel %vm19269_vm4, %v11072_v49, 0  ;;  %v9283_v49 = vrot.slane %v9281_v55, 3  ;;  %v19343_v1 = vld [vmem:[#allocation18_spill] sm:$0xff] }
 0x664   : > { %v8839_v8 = vsel %vm19265_vm1, %v8836_v44, %v8838_v13  ;;  %vm19284_vm0 = vmmov %vm19262_vm5 }
 0x665   : > { %vm19287_vm1 = vmmov %vm19284_vm0 }
 0x666   : > { %vm19291_vm4 = vmmov %vm19284_vm0 }
 0x66a   : > { %12163 = vmatmul.mubr.msk.bf16.gmra.mrb[20].mxu1 %vm19254_vm13, %v8827_v53  ;;  %vm19268_vm13 = vmmov %vm19262_vm5 }
 0x66b   : > { %12166 = vmatprep.mubr.msk.bf16.mxu1 %vm19256_vm11, %v8829_v12  ;;  %vm19271_vm11 = vmmov %vm19262_vm5 }
 0x672   : > { %12167 = vmatmul.mubr.msk.bf16.gmra.mrb[24].mxu1 %vm19258_vm6, %v8831_v26  ;;  %vm19275_vm6 = vmmov %vm19262_vm5 }
 0x673   : > { %12170 = vmatprep.mubr.msk.bf16.mxu1 %vm19260_vm7, %v8833_v37  ;;  %vm19279_vm7 = vmmov %vm19262_vm5 }
 0x67a   : > { %12171 = vmatmul.mubr.msk.bf16.gmra.mrb[28].mxu1 %vm19262_vm5, %v8835_v36 }
 0x67b   : > { %12174 = vmatprep.mubr.msk.bf16.mxu1 %vm19264_vm15, %v8837_v32  ;;  %vm19285_vm15 = vmmov %vm19284_vm0 }
 0x682   : > { %12175 = vmatmul.mubr.msk.bf16.gmra.mrb[32].mxu1 %vm19266_vm10, %v8839_v8  ;;  %vm19289_vm10 = vmmov %vm19284_vm0 }
 0x683   : > { %12180 = vmatprep.mubr.msk.bf16.mxu1 %vm19268_vm13, %v19267_v62  ;;  %vm19290_vm13 = vmmov %vm19284_vm0 }
 0x68a   : > { %12181 = vmatmul.mubr.msk.bf16.vlgmr.msra.gmra.mrb[0].mxu1 %vm19271_vm11, %v19270_v11  ;;  %vm19292_vm11 = vmmov %vm19284_vm0 }
 0x68b   : > { %12217 = vmatpush3.bf16.msra.mxu1 %v9654_v30  ;;  %12184 = vmatprep.mubr.msk.bf16.mxu1 %vm19273_vm12, %v19272_v28  ;;  %vm19293_vm12 = vmmov %vm19284_vm0 }
 0x692   : > { %12185 = vmatmul.mubr.msk.bf16.gmra.mrb[4].mxu1 %vm19275_vm6, %v19274_v38  ;;  %vm19294_vm6 = vmmov %vm19284_vm0 }
 0x693   : > { %12188 = vmatprep.mubr.msk.bf16.mxu1 %vm19277_vm9, %v19276_v34  ;;  %vm19295_vm9 = vsmask.f32 5376  ;;  %v19350_v34 = vld [vmem:[#allocation24_spill] sm:$0xff] }
 0x69a   : > { %12189 = vmatmul.mubr.msk.bf16.gmra.mrb[8].mxu1 %vm19279_vm7, %v19278_v45  ;;  %vm19296_vm7 = vmmov %vm19284_vm0 }
 0x69b   : > { %12192 = vmatprep.mubr.msk.bf16.mxu1 %vm19281_vm8, %v19280_v51  ;;  %vm19297_vm8 = vmmov %vm19284_vm0  ;;  %v19352_v51 = vld [vmem:[#allocation23_spill] sm:$0xff] }
 0x6a2   : > { %12193 = vmatmul.mubr.msk.bf16.gmra.mrb[12].mxu1 %vm19262_vm5, %v19282_v59  ;;  %vm19298_vm5 = vmmov %vm19284_vm0 }
 0x6a3   : > { %12196 = vmatprep.mubr.msk.bf16.mxu1 %vm19284_vm0, %v19283_v25 }
 0x6aa   : > { %12197 = vmatmul.mubr.msk.bf16.gmra.mrb[16].mxu1 %vm19285_vm15, %v16926_v17  ;;  %v9280_v17 = vrot.slane %v9278_v31, 2  ;;  %vm19299_vm15 = vmmov %vm19284_vm0 }
 0x6ab   : > { %12200 = vmatprep.mubr.msk.bf16.mxu1 %vm19287_vm1, %v19286_v2  ;;  %vm19300_vm1 = vmmov %vm19284_vm0 }
 0x6ac   : > { %v9284_v33 = vor.u32 %v9283_v49, %v9280_v17 }
 0x6b2   : > { %12201 = vmatmul.mubr.msk.bf16.gmra.mrb[20].mxu1 %vm19289_vm10, %v19288_v48  ;;  %vm19301_vm10 = vmmov %vm19284_vm0 }
 0x6b3   : > { %12204 = vmatprep.mubr.msk.bf16.mxu1 %vm19290_vm13, %v16945_v61  ;;  %v9285_v61 = vsel %vm19295_vm9, %v16963_v52, %v9284_v33  ;;  %vm19303_vm13 = vmmov %vm19284_vm0  ;;  %v19308_v52 = vld [vmem:[#allocation98_spill] sm:$0xff] }
 0x6b4   : > { %vm19312_vm9 = vmmov %vm19284_vm0 }
 0x6ba   : > { %12205 = vmatmul.mubr.msk.bf16.gmra.mrb[24].mxu1 %vm19291_vm4, %v16949_v40  ;;  %v19302_v40 = vld [vmem:[#allocation95_spill] sm:$0xff]  ;;  %vm19305_vm4 = vmmov %vm19284_vm0 }
 0x6bb   : > { %12208 = vmatprep.mubr.msk.bf16.mxu1 %vm19292_vm11, %v16956_v21  ;;  %v19304_v21 = vld [vmem:[#allocation96_spill] sm:$0xff]  ;;  %vm19307_vm11 = vmmov %vm19284_vm0 }
 0x6c2   : > { %12209 = vmatmul.mubr.msk.bf16.gmra.mrb[28].mxu1 %vm19293_vm12, %v16961_v54  ;;  %v19306_v54 = vld [vmem:[#allocation97_spill] sm:$0xff]  ;;  %vm19309_vm12 = vmmov %vm19284_vm0 }
 0x6c3   : > { %12212 = vmatprep.mubr.msk.bf16.mxu1 %vm19294_vm6, %v16980_v23  ;;  %vm19311_vm6 = vmmov %vm19284_vm0  ;;  %v19318_v23 = vld [vmem:[#allocation102_spill] sm:$0xff] }
 0x6ca   : > { %12213 = vmatmul.mubr.msk.bf16.gmra.mrb[32].mxu1 %vm19296_vm7, %v9285_v61  ;;  %vm19313_vm7 = vmmov %vm19284_vm0 }
 0x6cb   : > { %12218 = vmatprep.mubr.msk.bf16.mxu1 %vm19297_vm8, %v16966_v14  ;;  %v19310_v14 = vld [vmem:[#allocation99_spill] sm:$0xff]  ;;  %vm19314_vm8 = vmmov %vm19284_vm0 }
 0x6d2   : > { %12219 = vmatmul.mubr.msk.bf16.vlgmr.msra.gmra.mrb[0].mxu1 %vm19298_vm5, %v16970_v19  ;;  %v19315_v19 = vld [vmem:[#allocation100_spill] sm:$0xff]  ;;  %vm19316_vm5 = vmmov %vm19284_vm0 }
 0x6d3   : > { %12222 = vmatprep.mubr.msk.bf16.mxu1 %vm19284_vm0, %v16973_v24  ;;  %v19317_v24 = vld [vmem:[#allocation101_spill] sm:$0xff] }
 0x6da   : > { %12223 = vmatmul.mubr.msk.bf16.gmra.mrb[4].mxu1 %vm19299_vm15, %v16983_v42  ;;  %vm19319_vm15 = vmmov %vm19284_vm0  ;;  %v19320_v42 = vld [vmem:[#allocation103_spill] sm:$0xff] }
 0x6db   : > { %12226 = vmatprep.mubr.msk.bf16.mxu1 %vm19300_vm1, %v16990_v7  ;;  %vm19321_vm1 = vmmov %vm19284_vm0 }
 0x6e2   : > { %12227 = vmatmul.mubr.msk.bf16.gmra.mrb[8].mxu1 %vm19301_vm10, %v16997_v10  ;;  %vm19322_vm10 = vmmov %vm19284_vm0  ;;  %v19323_v10 = vld [vmem:[#allocation41_spill] sm:$0xff] }
 0x6e3   : > { %12230 = vmatprep.mubr.msk.bf16.mxu1 %vm19303_vm13, %v19302_v40  ;;  %vm19324_vm13 = vnez %v19323_v10 }
 0x6ea   : > { %12231 = vmatmul.mubr.msk.bf16.gmra.mrb[12].mxu1 %vm19305_vm4, %v19304_v21  ;;  %vm19325_vm4 = vmmov %vm19284_vm0 }
 0x6eb   : > { %12234 = vmatprep.mubr.msk.bf16.mxu1 %vm19307_vm11, %v19306_v54 }
 0x6f2   : > { %12235 = vmatmul.mubr.msk.bf16.gmra.mrb[16].mxu1 %vm19309_vm12, %v19308_v52  ;;  %vm19328_vm12 = vmmov %vm19284_vm0 }
 0x6f3   : > { %12238 = vmatprep.mubr.msk.bf16.mxu1 %vm19311_vm6, %v19310_v14  ;;  %vm19330_vm6 = vnez %v19329_v57 }
 0x6fa   : > { %12239 = vmatmul.mubr.msk.bf16.gmra.mrb[20].mxu1 %vm19312_vm9, %v17021_v4  ;;  %vm19331_vm9 = vmmov %vm19284_vm0 }
 0x6fb   : > { %12242 = vmatprep.mubr.msk.bf16.mxu1 %vm19313_vm7, %v17024_v22  ;;  %v19326_v22 = vld [vmem:[#allocation42_spill] sm:$0xff]  ;;  %vm19333_vm7 = vnez %v19332_v27 }
 0x6fc   : > { %vm19327_vm11 = vnez %v19326_v22 }
 0x702   : > { %12243 = vmatmul.mubr.msk.bf16.gmra.mrb[24].mxu1 %vm19314_vm8, %v17029_v3  ;;  %vm19334_vm8 = vmmov %vm19284_vm0 }
 0x703   : > { %12246 = vmatprep.mubr.msk.bf16.mxu1 %vm19316_vm5, %v19315_v19  ;;  %vm19335_vm5 = vmmov %vm19284_vm0  ;;  %v19360_v19 = vld [vmem:[#allocation19_spill] sm:$0xff] }
 0x70a   : > { %12247 = vmatmul.mubr.msk.bf16.gmra.mrb[28].mxu1 %vm19284_vm0, %v19317_v24 }
 0x70b   : > { %12250 = vmatprep.mubr.msk.bf16.mxu1 %vm19319_vm15, %v19318_v23  ;;  %vm19336_vm15 = vmmov %vm19284_vm0  ;;  %v19363_v23 = vld [vmem:[#allocation26_spill] sm:$0xff] }
 0x712   : > { %12251 = vmatmul.mubr.msk.bf16.gmra.mrb[32].mxu1 %vm19321_vm1, %v19320_v42  ;;  %vm19337_vm1 = vmmov %vm19284_vm0 }
 0x7a5   : > { %v12220_v7 = vpop.f32.mrb[0].mxu1 }
 0x7a6   : > { %9871 = vst.msk [vmem:[#allocation2 + $0x10] sm:$0xff] %vm19322_vm10, %v12220_v7  ;;  %v9690_v47 = vpop.f32.mrb[1].mxu1  ;;  %v9907_v4 = vsel %vm19324_vm13, %v12220_v7, 0.0  ;;  %vm19338_vm10 = vmmov %vm19284_vm0 }
 0x7a7   : > { %9869 = vst.msk [vmem:[#allocation2] sm:$0xff] %vm19325_vm4, %v9690_v47  ;;  %v9905_v3 = vsel %vm19327_vm11, %v9690_v47, 0.0  ;;  %v12221_v5 = vpop.f32.mrb[2].mxu1  ;;  %v10021_v41 = vmul.f32 %v9907_v4, %v9907_v4  ;;  %v9944_v39 = vsel %vm19284_vm0, %v9907_v4, 0.0  ;;  %vm19339_vm13 = vmmov %vm19284_vm0 }
 0x7a8   : > { %v10019_v43 = vmul.f32 %v9905_v3, %v9905_v3  ;;  %9872 = vst.msk [vmem:[#allocation2 + $0x18] sm:$0xff] %vm19328_vm12, %v12221_v5  ;;  %v9908_v20 = vsel %vm19330_vm6, %v12221_v5, 0.0  ;;  %v9693_v9 = vpop.f32.mrb[3].mxu1  ;;  %v9941_v15 = vsel %vm19334_vm8, %v9905_v3, 0.0  ;;  %vm19340_vm4 = vmmov %vm19284_vm0  ;;  %vm19344_vm6 = vnez %v19343_v1  ;;  %v19381_v1 = vld [vmem:[#allocation27_spill] sm:$0xff] }
 0x7a9   : > { %9870 = vst.msk [vmem:[#allocation2 + $0x8] sm:$0xff] %vm19331_vm9, %v9693_v9  ;;  %v9906_v58 = vsel %vm19333_vm7, %v9693_v9, 0.0  ;;  %v10022_v63 = vmul.f32 %v9908_v20, %v9908_v20  ;;  %v10058_v12 = vsel %vm19338_vm10, %v10021_v41, 0.0  ;;  %v9946_v46 = vsel %vm19340_vm4, %v9908_v20, 0.0  ;;  %vm19341_vm11 = vmmov %vm19284_vm0 }
 0x7aa   : > { %v9942_v18 = vsel %vm19335_vm5, %v9906_v58, 0.0  ;;  %v10020_v16 = vmul.f32 %v9906_v58, %v9906_v58  ;;  %v10055_v29 = vsel %vm19336_vm15, %v10019_v43, 0.0  ;;  %vm19342_vm12 = vmmov %vm19284_vm0  ;;  %vm19346_vm9 = vnez %v19345_v50  ;;  %v19368_v43 = vld [vmem:[#allocation25_spill] sm:$0xff]  ;;  %v19371_v58 = vld [vmem:[#allocation20_spill] sm:$0xff] }
 0x7ab   : > { %v9943_v0 = vadd.f32 %v9942_v18, %v9941_v15  ;;  %v10060_v26 = vsel %vm19341_vm11, %v10022_v63, 0.0  ;;  %vm19347_vm7 = vmmov %vm19284_vm0  ;;  %vm19351_vm15 = vnez %v19350_v34 }
 0x7ac   : > { %v10056_v56 = vsel %vm19337_vm1, %v10020_v16, 0.0  ;;  %vm19348_vm8 = vmmov %vm19284_vm0  ;;  %vm19353_vm1 = vnez %v19352_v51  ;;  %v19390_v51 = vld [vmem:[#allocation30_spill] sm:$0xff] }
 0x7ad   : > { %v9945_v6 = vadd.f32 %v9944_v39, %v9943_v0  ;;  %v10057_v60 = vadd.f32 %v10056_v56, %v10055_v29  ;;  %v12224_v53 = vpop.f32.mrb[4].mxu1  ;;  %vm19349_vm5 = vmmov %vm19284_vm0 }
 0x7ae   : > { %9875 = vst.msk [vmem:[#allocation2 + $0x30] sm:$0xff] %vm19339_vm13, %v12224_v53  ;;  %v9706_v35 = vpop.f32.mrb[5].mxu1  ;;  %v9911_v32 = vsel %vm19346_vm9, %v12224_v53, 0.0  ;;  %vm19354_vm10 = vmmov %vm19284_vm0  ;;  %vm19361_vm9 = vnez %v19360_v19  ;;  %v19397_v19 = vld [vmem:[#allocation33_spill] sm:$0xff] }
 0x7af   : > { %v10059_v37 = vadd.f32 %v10058_v12, %v10057_v60  ;;  %9873 = vst.msk [vmem:[#allocation2 + $0x20] sm:$0xff] %vm19342_vm12, %v9706_v35  ;;  %v9909_v44 = vsel %vm19344_vm6, %v9706_v35, 0.0  ;;  %v12225_v36 = vpop.f32.mrb[6].mxu1  ;;  %v9947_v13 = vadd.f32 %v9946_v46, %v9945_v6  ;;  %v10025_v25 = vmul.f32 %v9911_v32, %v9911_v32  ;;  %vm19355_vm13 = vmmov %vm19284_vm0 }
 0x7b0   : > { %v9948_v8 = vsel %vm19347_vm7, %v9909_v44, 0.0  ;;  %v10023_v62 = vmul.f32 %v9909_v44, %v9909_v44  ;;  %9876 = vst.msk [vmem:[#allocation2 + $0x38] sm:$0xff] %vm19348_vm8, %v12225_v36  ;;  %v9709_v30 = vpop.f32.mrb[7].mxu1  ;;  %v9912_v45 = vsel %vm19351_vm15, %v12225_v36, 0.0  ;;  %v9952_v17 = vsel %vm19355_vm13, %v9911_v32, 0.0  ;;  %vm19356_vm4 = vmmov %vm19284_vm0 }
 0x7b1   : > { %v10061_v11 = vadd.f32 %v10060_v26, %v10059_v37  ;;  %9874 = vst.msk [vmem:[#allocation2 + $0x28] sm:$0xff] %vm19349_vm5, %v9709_v30  ;;  %v9949_v28 = vadd.f32 %v9948_v8, %v9947_v13  ;;  %v9910_v59 = vsel %vm19353_vm1, %v9709_v30, 0.0  ;;  %v10026_v49 = vmul.f32 %v9912_v45, %v9912_v45  ;;  %vm19357_vm11 = vmmov %vm19284_vm0  ;;  %v19379_v26 = vld [vmem:[#allocation29_spill] sm:$0xff] }
 0x7b2   : > { %v10062_v38 = vsel %vm19284_vm0, %v10023_v62, 0.0  ;;  %v9950_v48 = vsel %vm19354_vm10, %v9910_v59, 0.0  ;;  %v10024_v31 = vmul.f32 %v9910_v59, %v9910_v59  ;;  %vm19358_vm12 = vmmov %vm19284_vm0  ;;  %vm19364_vm8 = vnez %v19363_v23  ;;  %v19400_v23 = vld [vmem:[#allocation32_spill] sm:$0xff] }
 0x7b3   : > { %v10063_v2 = vadd.f32 %v10062_v38, %v10061_v11  ;;  %v9951_v55 = vadd.f32 %v9950_v48, %v9949_v28  ;;  %v10066_v52 = vsel %vm19358_vm12, %v10025_v25, 0.0  ;;  %vm19359_vm6 = vmmov %vm19284_vm0  ;;  %vm19369_vm10 = vnez %v19368_v43  ;;  %v19387_v11 = vld [vmem:[#allocation28_spill] sm:$0xff]  ;;  %v19406_v43 = vld [vmem:[#allocation31_spill] sm:$0xff] }
 0x7b4   : > { %v10064_v33 = vsel %vm19356_vm4, %v10024_v31, 0.0  ;;  %v9954_v14 = vsel %vm19359_vm6, %v9912_v45, 0.0  ;;  %vm19362_vm7 = vmmov %vm19284_vm0  ;;  %vm19372_vm4 = vnez %v19371_v58  ;;  %v19409_v58 = vld [vmem:[#allocation34_spill] sm:$0xff] }
 0x7b5   : > { %v12228_v61 = vpop.f32.mrb[8].mxu1  ;;  %v9953_v40 = vadd.f32 %v9952_v17, %v9951_v55  ;;  %v10065_v21 = vadd.f32 %v10064_v33, %v10063_v2  ;;  %vm19365_vm5 = vmmov %vm19284_vm0 }
 0x7b6   : > { %9879 = vst.msk [vmem:[#allocation2 + $0x50] sm:$0xff] %vm19357_vm11, %v12228_v61  ;;  %v9722_v54 = vpop.f32.mrb[9].mxu1  ;;  %v9915_v24 = vsel %vm19361_vm9, %v12228_v61, 0.0  ;;  %vm19366_vm15 = vmmov %vm19284_vm0 }
 0x7b7   : > { %9877 = vst.msk [vmem:[#allocation2 + $0x40] sm:$0xff] %vm19362_vm7, %v9722_v54  ;;  %v9913_v42 = vsel %vm19364_vm8, %v9722_v54, 0.0  ;;  %v12229_v7 = vpop.f32.mrb[10].mxu1  ;;  %v10067_v47 = vadd.f32 %v10066_v52, %v10065_v21  ;;  %v9955_v10 = vadd.f32 %v9954_v14, %v9953_v40  ;;  %v10068_v5 = vsel %vm19366_vm15, %v10026_v49, 0.0  ;;  %vm19367_vm1 = vmmov %vm19284_vm0 }
 0x7b8   : > { %v9956_v4 = vsel %vm19365_vm5, %v9913_v42, 0.0  ;;  %v10027_v22 = vmul.f32 %v9913_v42, %v9913_v42  ;;  %9880 = vst.msk [vmem:[#allocation2 + $0x58] sm:$0xff] %vm19284_vm0, %v12229_v7  ;;  %v9725_v3 = vpop.f32.mrb[11].mxu1  ;;  %vm19370_vm13 = vmmov %vm19284_vm0  ;;  %v9916_v41 = vsel %vm19372_vm4, %v12229_v7, 0.0  ;;  %v10029_v15 = vmul.f32 %v9915_v24, %v9915_v24 }
 0x7b9   : > { %9878 = vst.msk [vmem:[#allocation2 + $0x48] sm:$0xff] %vm19367_vm1, %v9725_v3  ;;  %v9914_v57 = vsel %vm19369_vm10, %v9725_v3, 0.0  ;;  %v9957_v20 = vadd.f32 %v9956_v4, %v9955_v10  ;;  %v10069_v9 = vadd.f32 %v10068_v5, %v10067_v47  ;;  %vm19373_vm11 = vmmov %vm19284_vm0  ;;  %v10030_v29 = vmul.f32 %v9916_v41, %v9916_v41 }
 0x7ba   : > { %v10070_v27 = vsel %vm19370_vm13, %v10027_v22, 0.0  ;;  %v9958_v18 = vsel %vm19373_vm11, %v9914_v57, 0.0  ;;  %v10028_v16 = vmul.f32 %v9914_v57, %v9914_v57  ;;  %vm19374_vm12 = vmmov %vm19284_vm0  ;;  %vm19380_vm5 = vnez %v19379_v26  ;;  %v19416_v26 = vld [vmem:[#allocation21_spill] sm:$0xff] }
 0x7bb   : > { %v10071_v63 = vadd.f32 %v10070_v27, %v10069_v9  ;;  %v9959_v0 = vadd.f32 %v9958_v18, %v9957_v20  ;;  %v9960_v39 = vsel %vm19374_vm12, %v9915_v24, 0.0  ;;  %vm19375_vm6 = vmmov %vm19284_vm0  ;;  %vm19382_vm15 = vnez %v19381_v1  ;;  %v19419_v1 = vld [vmem:[#allocation44_spill] sm:$0xff] }
 0x7bc   : > { %v10072_v56 = vsel %vm19375_vm6, %v10028_v16, 0.0  ;;  %vm19376_vm9 = vmmov %vm19284_vm0  ;;  %vm19388_vm11 = vnez %v19387_v11  ;;  %vm19391_vm6 = vnez %v19390_v51  ;;  %v19460_v11 = vld [vmem:[#allocation54_spill] sm:$0xff] }
 0x7bd   : > { %v12232_v6 = vpop.f32.mrb[12].mxu1  ;;  %v9961_v60 = vadd.f32 %v9960_v39, %v9959_v0  ;;  %v10073_v53 = vadd.f32 %v10072_v56, %v10071_v63  ;;  %vm19377_vm7 = vmmov %vm19284_vm0  ;;  %v19463_v51 = vld [vmem:[#allocation38_spill] sm:$0xff] }
 0x7be   : > { %9883 = vst.msk [vmem:[#allocation2 + $0x70] sm:$0xff] %vm19376_vm9, %v12232_v6  ;;  %v9738_v12 = vpop.f32.mrb[13].mxu1  ;;  %v10074_v35 = vsel %vm19377_vm7, %v10029_v15, 0.0  ;;  %vm19378_vm8 = vmmov %vm19284_vm0  ;;  %v9919_v37 = vsel %vm19380_vm5, %v12232_v6, 0.0 }
 0x7bf   : > { %v9962_v46 = vsel %vm19378_vm8, %v9916_v41, 0.0  ;;  %9881 = vst.msk [vmem:[#allocation2 + $0x60] sm:$0xff] %vm19284_vm0, %v9738_v12  ;;  %v9917_v44 = vsel %vm19382_vm15, %v9738_v12, 0.0  ;;  %v12233_v36 = vpop.f32.mrb[14].mxu1  ;;  %v10075_v50 = vadd.f32 %v10074_v35, %v10073_v53  ;;  %vm19383_vm1 = vmmov %vm19284_vm0  ;;  %v10033_v25 = vmul.f32 %v9919_v37, %v9919_v37 }
 0x7c0   : > { %v9963_v32 = vadd.f32 %v9962_v46, %v9961_v60  ;;  %v9964_v13 = vsel %vm19383_vm1, %v9917_v44, 0.0  ;;  %v10031_v8 = vmul.f32 %v9917_v44, %v9917_v44  ;;  %vm19384_vm10 = vmmov %vm19284_vm0  ;;  %v9741_v62 = vpop.f32.mrb[15].mxu1  ;;  %v9920_v59 = vsel %vm19391_vm6, %v12233_v36, 0.0 }
 0x7c1   : > { %9884 = vst.msk [vmem:[#allocation2 + $0x78] sm:$0xff] %vm19384_vm10, %v12233_v36  ;;  %vm19385_vm13 = vmmov %vm19284_vm0  ;;  %v9918_v28 = vsel %vm19388_vm11, %v9741_v62, 0.0  ;;  %v10034_v49 = vmul.f32 %v9920_v59, %v9920_v59  ;;  %v10082_v52 = vsel %vm19284_vm0, %v10033_v25, 0.0  ;;  %vm19398_vm1 = vnez %v19397_v19  ;;  %v19470_v19 = vld [vmem:[#allocation48_spill] sm:$0xff] }
 0x7c2   : > { %v10076_v30 = vsel %vm19385_vm13, %v10030_v29, 0.0  ;;  %vm19386_vm4 = vmmov %vm19284_vm0  ;;  %v9965_v38 = vadd.f32 %v9964_v13, %v9963_v32  ;;  %v10032_v48 = vmul.f32 %v9918_v28, %v9918_v28  ;;  %vm19401_vm13 = vnez %v19400_v23  ;;  %v19435_v23 = vld [vmem:[#allocation46_spill] sm:$0xff] }
 0x7c3   : > { %9882 = vst.msk [vmem:[#allocation2 + $0x68] sm:$0xff] %vm19386_vm4, %v9741_v62  ;;  %v10077_v34 = vadd.f32 %v10076_v30, %v10075_v50  ;;  %vm19389_vm12 = vmmov %vm19284_vm0 }
 0x7c4   : > { %v10078_v45 = vsel %vm19389_vm12, %v10031_v8, 0.0  ;;  %vm19392_vm9 = vmmov %vm19284_vm0 }
 0x7c5   : > { %v9966_v2 = vsel %vm19392_vm9, %v9918_v28, 0.0  ;;  %v10079_v31 = vadd.f32 %v10078_v45, %v10077_v34  ;;  %vm19393_vm7 = vmmov %vm19284_vm0  ;;  %v12236_v61 = vpop.f32.mrb[16].mxu1  ;;  %vm19407_vm9 = vnez %v19406_v43  ;;  %v19441_v43 = vld [vmem:[#allocation36_spill] sm:$0xff] }
 0x7c6   : > { %v9967_v55 = vadd.f32 %v9966_v2, %v9965_v38  ;;  %v9968_v17 = vsel %vm19393_vm7, %v9919_v37, 0.0  ;;  %vm19394_vm8 = vmmov %vm19284_vm0  ;;  %v9754_v54 = vpop.f32.mrb[17].mxu1  ;;  %v9923_v24 = vsel %vm19398_vm1, %v12236_v61, 0.0 }
 0x7c7   : > { %v10080_v33 = vsel %vm19394_vm8, %v10032_v48, 0.0  ;;  %vm19395_vm5 = vmmov %vm19284_vm0  ;;  %v9921_v42 = vsel %vm19401_vm13, %v9754_v54, 0.0  ;;  %v12237_v7 = vpop.f32.mrb[18].mxu1  ;;  %vm19410_vm8 = vnez %v19409_v58  ;;  %v10037_v15 = vmul.f32 %v9923_v24, %v9923_v24  ;;  %v19444_v58 = vld [vmem:[#allocation17_spill] sm:$0xff] }
 0x7c8   : > { %v9969_v40 = vadd.f32 %v9968_v17, %v9967_v55  ;;  %v10081_v21 = vadd.f32 %v10080_v33, %v10079_v31  ;;  %9887 = vst.msk [vmem:[#allocation2 + $0x90] sm:$0xff] %vm19395_vm5, %v12236_v61  ;;  %vm19396_vm15 = vmmov %vm19284_vm0  ;;  %v10035_v22 = vmul.f32 %v9921_v42, %v9921_v42  ;;  %v9757_v3 = vpop.f32.mrb[19].mxu1  ;;  %v9924_v41 = vsel %vm19410_vm8, %v12237_v7, 0.0 }
 0x7c9   : > { %v9970_v14 = vsel %vm19396_vm15, %v9920_v59, 0.0  ;;  %vm19399_vm10 = vmmov %vm19284_vm0  ;;  %v9922_v57 = vsel %vm19407_vm9, %v9757_v3, 0.0  ;;  %v9976_v39 = vsel %vm19284_vm0, %v9923_v24, 0.0  ;;  %v10038_v29 = vmul.f32 %v9924_v41, %v9924_v41 }
 0x7ca   : > { %9885 = vst.msk [vmem:[#allocation2 + $0x80] sm:$0xff] %vm19399_vm10, %v9754_v54  ;;  %v10083_v47 = vadd.f32 %v10082_v52, %v10081_v21  ;;  %v9971_v10 = vadd.f32 %v9970_v14, %v9969_v40  ;;  %vm19402_vm4 = vmmov %vm19284_vm0  ;;  %v10036_v16 = vmul.f32 %v9922_v57, %v9922_v57 }
 0x7cb   : > { %v9972_v4 = vsel %vm19402_vm4, %v9921_v42, 0.0  ;;  %vm19403_vm11 = vmmov %vm19284_vm0  ;;  %vm19417_vm4 = vnez %v19416_v26  ;;  %v19451_v26 = vld [vmem:[#allocation51_spill] sm:$0xff] }
 0x7cc   : > { %9888 = vst.msk [vmem:[#allocation2 + $0x98] sm:$0xff] %vm19403_vm11, %v12237_v7  ;;  %vm19404_vm12 = vmmov %vm19284_vm0  ;;  %v9973_v20 = vadd.f32 %v9972_v4, %v9971_v10 }
 0x7cd   : > { %v10084_v5 = vsel %vm19404_vm12, %v10034_v49, 0.0  ;;  %vm19405_vm6 = vmmov %vm19284_vm0  ;;  %v12240_v6 = vpop.f32.mrb[20].mxu1  ;;  %vm19420_vm12 = vnez %v19419_v1  ;;  %v19454_v1 = vld [vmem:[#allocation50_spill] sm:$0xff] }
 0x7ce   : > { %9886 = vst.msk [vmem:[#allocation2 + $0x88] sm:$0xff] %vm19405_vm6, %v9757_v3  ;;  %v10085_v9 = vadd.f32 %v10084_v5, %v10083_v47  ;;  %vm19408_vm7 = vmmov %vm19284_vm0  ;;  %v9770_v12 = vpop.f32.mrb[21].mxu1  ;;  %v9927_v37 = vsel %vm19417_vm4, %v12240_v6, 0.0  ;;  %vm19436_vm4 = vnez %v19435_v23  ;;  %v19473_v23 = vld [vmem:[#allocation49_spill] sm:$0xff] }
 0x7cf   : > { %v10086_v27 = vsel %vm19408_vm7, %v10035_v22, 0.0  ;;  %vm19411_vm5 = vmmov %vm19284_vm0  ;;  %v9925_v44 = vsel %vm19420_vm12, %v9770_v12, 0.0  ;;  %v12241_v36 = vpop.f32.mrb[22].mxu1  ;;  %v10041_v25 = vmul.f32 %v9927_v37, %v9927_v37 }
 0x7d0   : > { %v9974_v18 = vsel %vm19411_vm5, %v9922_v57, 0.0  ;;  %v10087_v63 = vadd.f32 %v10086_v27, %v10085_v9  ;;  %vm19412_vm15 = vmmov %vm19284_vm0  ;;  %v10039_v8 = vmul.f32 %v9925_v44, %v9925_v44  ;;  %v9773_v62 = vpop.f32.mrb[23].mxu1  ;;  %v9928_v59 = vsel %vm15529_vm3, %v12241_v36, 0.0 }
 0x7d1   : > { %v9975_v0 = vadd.f32 %v9974_v18, %v9973_v20  ;;  %v10088_v56 = vsel %vm19412_vm15, %v10036_v16, 0.0  ;;  %vm19413_vm1 = vmmov %vm19284_vm0  ;;  %v9926_v28 = vsel %vm15506_vm2, %v9773_v62, 0.0  ;;  %v10042_v49 = vmul.f32 %v9928_v59, %v9928_v59 }
 0x7d2   : > { %v10089_v53 = vadd.f32 %v10088_v56, %v10087_v63  ;;  %9891 = vst.msk [vmem:[#allocation2 + $0xb0] sm:$0xff] %vm19413_vm1, %v12240_v6  ;;  %vm19414_vm10 = vmmov %vm19284_vm0  ;;  %v9982_v2 = vsel %vm19284_vm0, %v9926_v28, 0.0  ;;  %v10040_v48 = vmul.f32 %v9926_v28, %v9926_v28 }
 0x7d3   : > { %v9977_v60 = vadd.f32 %v9976_v39, %v9975_v0  ;;  %v10090_v35 = vsel %vm19414_vm10, %v10037_v15, 0.0  ;;  %vm19415_vm13 = vmmov %vm19284_vm0 }
 0x7d4   : > { %v9978_v46 = vsel %vm19415_vm13, %v9924_v41, 0.0  ;;  %vm19418_vm11 = vmmov %vm19284_vm0  ;;  %v10091_v50 = vadd.f32 %v10090_v35, %v10089_v53 }
 0x7d5   : > { %9889 = vst.msk [vmem:[#allocation2 + $0xa0] sm:$0xff] %vm19418_vm11, %v9770_v12  ;;  %v9979_v32 = vadd.f32 %v9978_v46, %v9977_v60  ;;  %vm19421_vm6 = vmmov %vm19284_vm0  ;;  %v12244_v61 = vpop.f32.mrb[24].mxu1 }
 0x7d6   : > { %v9980_v13 = vsel %vm19421_vm6, %v9925_v44, 0.0  ;;  %vm19422_vm9 = vmmov %vm19284_vm0  ;;  %v9786_v54 = vpop.f32.mrb[25].mxu1  ;;  %v9931_v24 = vsel %vm15555_vm14, %v12244_v61, 0.0  ;;  %vm19442_vm14 = vnez %v19441_v43  ;;  %v19479_v43 = vld [vmem:[#allocation53_spill] sm:$0xff] }
 0x7d7   : > { %9892 = vst.msk [vmem:[#allocation2 + $0xb8] sm:$0xff] %vm19422_vm9, %v12241_v36  ;;  %vm19423_vm7 = vmmov %vm19284_vm0  ;;  %v9981_v38 = vadd.f32 %v9980_v13, %v9979_v32  ;;  %v9929_v42 = vsel %vm19436_vm4, %v9786_v54, 0.0  ;;  %v12245_v7 = vpop.f32.mrb[26].mxu1  ;;  %v10045_v15 = vmul.f32 %v9931_v24, %v9931_v24  ;;  %v9992_v39 = vsel %vm19284_vm0, %v9931_v24, 0.0 }
 0x7d8   : > { %v10092_v30 = vsel %vm19423_vm7, %v10038_v29, 0.0  ;;  %vm19424_vm8 = vmmov %vm19284_vm0  ;;  %v10043_v22 = vmul.f32 %v9929_v42, %v9929_v42  ;;  %v9789_v3 = vpop.f32.mrb[27].mxu1  ;;  %vm19455_vm4 = vnez %v19454_v1 }
 0x7d9   : > { %9890 = vst.msk [vmem:[#allocation2 + $0xa8] sm:$0xff] %vm19424_vm8, %v9773_v62  ;;  %v10093_v34 = vadd.f32 %v10092_v30, %v10091_v50  ;;  %vm19426_vm5 = vmmov %vm19284_vm0  ;;  %v9983_v55 = vadd.f32 %v9982_v2, %v9981_v38  ;;  %v9930_v57 = vsel %vm19442_vm14, %v9789_v3, 0.0  ;;  %vm19445_vm8 = vnez %v19444_v58  ;;  %v19482_v58 = vld [vmem:[#allocation37_spill] sm:$0xff] }
 0x7da   : > { %v10094_v45 = vsel %vm19426_vm5, %v10039_v8, 0.0  ;;  %vm19428_vm15 = vmmov %vm19284_vm0  ;;  %v9932_v41 = vsel %vm19445_vm8, %v12245_v7, 0.0  ;;  %v10044_v16 = vmul.f32 %v9930_v57, %v9930_v57  ;;  %vm19461_vm14 = vnez %v19460_v11 }
 0x7db   : > { %v10095_v31 = vadd.f32 %v10094_v45, %v10093_v34  ;;  %v9984_v17 = vsel %vm19428_vm15, %v9927_v37, 0.0  ;;  %vm19429_vm1 = vmmov %vm19284_vm0  ;;  %v10046_v29 = vmul.f32 %v9932_v41, %v9932_v41  ;;  %vm19464_vm8 = vnez %v19463_v51 }
 0x7dc   : > { %v10096_v33 = vsel %vm19429_vm1, %v10040_v48, 0.0  ;;  %v9985_v40 = vadd.f32 %v9984_v17, %v9983_v55  ;;  %vm19430_vm2 = vmmov %vm19284_vm0 }
 0x7dd   : > { %v10097_v21 = vadd.f32 %v10096_v33, %v10095_v31  ;;  %9895 = vst.msk [vmem:[#allocation2 + $0xd0] sm:$0xff] %vm19430_vm2, %v12244_v61  ;;  %vm19431_vm10 = vmmov %vm19284_vm0  ;;  %v12248_v6 = vpop.f32.mrb[28].mxu1 }
 0x7de   : > { %v10098_v52 = vsel %vm19431_vm10, %v10041_v25, 0.0  ;;  %vm19432_vm3 = vmmov %vm19284_vm0  ;;  %v9802_v12 = vpop.f32.mrb[29].mxu1 }
 0x7df   : > { %v9986_v14 = vsel %vm19432_vm3, %v9928_v59, 0.0  ;;  %vm19434_vm13 = vmmov %vm19284_vm0  ;;  %v10099_v47 = vadd.f32 %v10098_v52, %v10097_v21  ;;  %vm19452_vm3 = vnez %v19451_v26  ;;  %v9933_v44 = vsel %vm19455_vm4, %v9802_v12, 0.0  ;;  %v12249_v36 = vpop.f32.mrb[30].mxu1 }
 0x7e0   : > { %9893 = vst.msk [vmem:[#allocation2 + $0xc0] sm:$0xff] %vm19434_vm13, %v9786_v54  ;;  %v9987_v10 = vadd.f32 %v9986_v14, %v9985_v40  ;;  %vm19437_vm11 = vmmov %vm19284_vm0  ;;  %v9935_v37 = vsel %vm19452_vm3, %v12248_v6, 0.0  ;;  %v10047_v8 = vmul.f32 %v9933_v44, %v9933_v44  ;;  %v9805_v62 = vpop.f32.mrb[31].mxu1  ;;  %v9936_v59 = vsel %vm19464_vm8, %v12249_v36, 0.0 }
 0x7e1   : > { %v9988_v4 = vsel %vm19437_vm11, %v9929_v42, 0.0  ;;  %vm19438_vm12 = vmmov %vm19284_vm0  ;;  %v9934_v28 = vsel %vm19461_vm14, %v9805_v62, 0.0  ;;  %v10049_v25 = vmul.f32 %v9935_v37, %v9935_v37  ;;  %v10000_v17 = vsel %vm19284_vm0, %v9935_v37, 0.0 }
 0x7e2   : > { %9896 = vst.msk [vmem:[#allocation2 + $0xd8] sm:$0xff] %vm19438_vm12, %v12245_v7  ;;  %vm19439_vm6 = vmmov %vm19284_vm0  ;;  %v9989_v20 = vadd.f32 %v9988_v4, %v9987_v10  ;;  %v10048_v48 = vmul.f32 %v9934_v28, %v9934_v28  ;;  %vm19471_vm3 = vnez %v19470_v19  ;;  %vm19474_vm4 = vnez %v19473_v23  ;;  %v17588_v19 = vld [vmem:[#allocation2 + $0x62] sm:$0xff] }
 0x7e3   : > { %v10100_v5 = vsel %vm19439_vm6, %v10042_v49, 0.0  ;;  %vm19440_vm9 = vmmov %vm19284_vm0  ;;  %v10050_v49 = vmul.f32 %v9936_v59, %v9936_v59  ;;  %vm19480_vm14 = vnez %v19479_v43  ;;  %vm19483_vm8 = vnez %v19482_v58 }
 0x7e4   : > { %9894 = vst.msk [vmem:[#allocation2 + $0xc8] sm:$0xff] %vm19440_vm9, %v9789_v3  ;;  %v10101_v9 = vadd.f32 %v10100_v5, %v10099_v47  ;;  %vm19443_vm7 = vmmov %vm19284_vm0 }
 0x7e5   : > { %v10102_v27 = vsel %vm19443_vm7, %v10043_v22, 0.0  ;;  %vm19446_vm5 = vmmov %vm19284_vm0  ;;  %v12252_v61 = vpop.f32.mrb[32].mxu1 }
 0x7e6   : > { %v9990_v18 = vsel %vm19446_vm5, %v9930_v57, 0.0  ;;  %v10103_v63 = vadd.f32 %v10102_v27, %v10101_v9  ;;  %vm19447_vm15 = vmmov %vm19284_vm0  ;;  %v9818_v54 = vpop.f32.mrb[33].mxu1  ;;  %v9939_v24 = vsel %vm19471_vm3, %v12252_v61, 0.0  ;;  %vm19489_vm3 = vcmask 27648  }
 0x7e7   : > { %v9991_v0 = vadd.f32 %v9990_v18, %v9989_v20  ;;  %v10104_v56 = vsel %vm19447_vm15, %v10044_v16, 0.0  ;;  %vm19448_vm1 = vmmov %vm19284_vm0  ;;  %v9937_v42 = vsel %vm19474_vm4, %v9818_v54, 0.0  ;;  %v12253_v7 = vpop.f32.mrb[34].mxu1 }
 0x7e8   : > { %v10105_v53 = vadd.f32 %v10104_v56, %v10103_v63  ;;  %9899 = vst.msk [vmem:[#allocation2 + $0xf0] sm:$0xff] %vm19448_vm1, %v12248_v6  ;;  %vm19449_vm2 = vmmov %vm19284_vm0  ;;  %v10051_v22 = vmul.f32 %v9937_v42, %v9937_v42  ;;  %v9821_v3 = vpop.f32.mrb[35].mxu1 }
 0x7e9   : > { %v9993_v60 = vadd.f32 %v9992_v39, %v9991_v0  ;;  %v10106_v35 = vsel %vm19449_vm2, %v10045_v15, 0.0  ;;  %vm19450_vm10 = vmmov %vm19284_vm0  ;;  %v9938_v57 = vsel %vm19480_vm14, %v9821_v3, 0.0  ;;  %v10053_v15 = vmul.f32 %v9939_v24, %v9939_v24 }
 0x7ea   : > { %v9994_v46 = vsel %vm19450_vm10, %v9932_v41, 0.0  ;;  %vm19453_vm13 = vmmov %vm19284_vm0  ;;  %v10107_v50 = vadd.f32 %v10106_v35, %v10105_v53  ;;  %v9940_v41 = vsel %vm19483_vm8, %v12253_v7, 0.0  ;;  %v10052_v16 = vmul.f32 %v9938_v57, %v9938_v57 }
 0x7eb   : > { %9897 = vst.msk [vmem:[#allocation2 + $0xe0] sm:$0xff] %vm19453_vm13, %v9802_v12  ;;  %v9995_v32 = vadd.f32 %v9994_v46, %v9993_v60  ;;  %vm19456_vm11 = vmmov %vm19284_vm0  ;;  %v10008_v39 = vsel %vm19284_vm0, %v9939_v24, 0.0  ;;  %v17590_v24 = vld [vmem:[#allocation2 + $0x6c] sm:$0xff] }
 0x7ec   : > { %v9996_v13 = vsel %vm19456_vm11, %v9933_v44, 0.0  ;;  %vm19457_vm12 = vmmov %vm19284_vm0 }
 0x7ed   : > { %9900 = vst.msk [vmem:[#allocation2 + $0xf8] sm:$0xff] %vm19457_vm12, %v12249_v36  ;;  %vm19458_vm6 = vmmov %vm19284_vm0  ;;  %v9997_v38 = vadd.f32 %v9996_v13, %v9995_v32 }
 0x7ee   : > { %v10108_v30 = vsel %vm19458_vm6, %v10046_v29, 0.0  ;;  %vm19459_vm9 = vmmov %vm19284_vm0  ;;  %v10054_v29 = vmul.f32 %v9940_v41, %v9940_v41 }
 0x7ef   : > { %9898 = vst.msk [vmem:[#allocation2 + $0xe8] sm:$0xff] %vm19459_vm9, %v9805_v62  ;;  %v10109_v34 = vadd.f32 %v10108_v30, %v10107_v50  ;;  %vm19462_vm7 = vmmov %vm19284_vm0 }
 0x7f0   : > { %v10110_v45 = vsel %vm19462_vm7, %v10047_v8, 0.0  ;;  %vm19465_vm5 = vmmov %vm19284_vm0 }
 0x7f1   : > { %v9998_v2 = vsel %vm19465_vm5, %v9934_v28, 0.0  ;;  %v10111_v31 = vadd.f32 %v10110_v45, %v10109_v34  ;;  %vm19466_vm15 = vmmov %vm19284_vm0 }
 0x7f2   : > { %v9999_v55 = vadd.f32 %v9998_v2, %v9997_v38  ;;  %v10112_v33 = vsel %vm19466_vm15, %v10048_v48, 0.0  ;;  %vm19467_vm1 = vmmov %vm19284_vm0  ;;  %v17564_v48 = vld [vmem:[#allocation2] sm:$0xff] }
 0x7f3   : > { %v10113_v21 = vadd.f32 %v10112_v33, %v10111_v31  ;;  %9903 = vst.msk [vmem:[#allocation2 + $0x110] sm:$0xff] %vm19467_vm1, %v12252_v61  ;;  %vm19468_vm2 = vmmov %vm19284_vm0  ;;  %v17566_v31 = vld [vmem:[#allocation2 + $0x12] sm:$0xff]  ;;  %v17574_v33 = vld [vmem:[#allocation2 + $0x24] sm:$0xff] }
 0x7f4   : > { %v10001_v40 = vadd.f32 %v10000_v17, %v9999_v55  ;;  %v10114_v52 = vsel %vm19468_vm2, %v10049_v25, 0.0  ;;  %vm19469_vm10 = vmmov %vm19284_vm0  ;;  %v17568_v55 = vld [vmem:[#allocation2 + $0x8] sm:$0xff]  ;;  %v17570_v17 = vld [vmem:[#allocation2 + $0x1a] sm:$0xff] }
 0x7f5   : > { %v10002_v14 = vsel %vm19469_vm10, %v9936_v59, 0.0  ;;  %vm19472_vm13 = vmmov %vm19284_vm0  ;;  %v10115_v47 = vadd.f32 %v10114_v52, %v10113_v21  ;;  %v17576_v61 = vld [vmem:[#allocation2 + $0x2c] sm:$0xff]  ;;  %v17580_v21 = vld [vmem:[#allocation2 + $0x3e] sm:$0xff] }
 0x7f6   : > { %9901 = vst.msk [vmem:[#allocation2 + $0x100] sm:$0xff] %vm19472_vm13, %v9818_v54  ;;  %v10003_v10 = vadd.f32 %v10002_v14, %v10001_v40  ;;  %vm19475_vm11 = vmmov %vm19284_vm0  ;;  %v17578_v40 = vld [vmem:[#allocation2 + $0x50] sm:$0xff]  ;;  %v17582_v54 = vld [vmem:[#allocation2 + $0x48] sm:$0xff] }
 0x7f7   : > { %v10004_v4 = vsel %vm19475_vm11, %v9937_v42, 0.0  ;;  %vm19476_vm12 = vmmov %vm19284_vm0  ;;  %v17584_v52 = vld [vmem:[#allocation2 + $0x5a] sm:$0xff] }
 0x7f8   : > { %9904 = vst.msk [vmem:[#allocation2 + $0x118] sm:$0xff] %vm19476_vm12, %v12253_v7  ;;  %vm19477_vm6 = vmmov %vm19284_vm0  ;;  %v10005_v20 = vadd.f32 %v10004_v4, %v10003_v10  ;;  %v17586_v14 = vld [vmem:[#allocation2 + $0x74] sm:$0xff]  ;;  %v17602_v4 = vld [vmem:[#allocation2 + $0x7e] sm:$0xff] }
 0x7f9   : > { %v10116_v5 = vsel %vm19477_vm6, %v10050_v49, 0.0  ;;  %vm19478_vm9 = vmmov %vm19284_vm0  ;;  %v17572_v49 = vld [vmem:[#allocation2 + $0x36] sm:$0xff] }
 0x7fa   : > { %9902 = vst.msk [vmem:[#allocation2 + $0x108] sm:$0xff] %vm19478_vm9, %v9821_v3  ;;  %v10117_v9 = vadd.f32 %v10116_v5, %v10115_v47  ;;  %vm19481_vm7 = vmmov %vm19284_vm0  ;;  %v17600_v10 = vld [vmem:[#allocation2 + $0x90] sm:$0xff] }
 0x7fb   : > { %v10118_v27 = vsel %vm19481_vm7, %v10051_v22, 0.0  ;;  %vm19484_vm5 = vmmov %vm19284_vm0  ;;  %v17604_v22 = vld [vmem:[#allocation2 + $0x98] sm:$0xff] }
 0x7fc   : > { %v10006_v18 = vsel %vm19484_vm5, %v9938_v57, 0.0  ;;  %v10119_v63 = vadd.f32 %v10118_v27, %v10117_v9  ;;  %vm19485_vm15 = vmmov %vm19284_vm0  ;;  %v17616_v9 = vld [vmem:[#allocation2 + $0xb4] sm:$0xff]  ;;  %v17618_v27 = vld [vmem:[#allocation2 + $0xa2] sm:$0xff] }
 0x7fd   : > { %v10007_v0 = vadd.f32 %v10006_v18, %v10005_v20  ;;  %v10120_v56 = vsel %vm19485_vm15, %v10052_v16, 0.0  ;;  %vm19486_vm1 = vmmov %vm19284_vm0  ;;  %v17614_v20 = vld [vmem:[#allocation2 + $0x86] sm:$0xff] }
 0x7fe   : > { %v10121_v60 = vadd.f32 %v10120_v56, %v10119_v63  ;;  %v10122_v53 = vsel %vm19486_vm1, %v10053_v15, 0.0  ;;  %vm19487_vm2 = vmmov %vm19284_vm0  ;;  %v17628_v16 = vld [vmem:[#allocation2 + $0xaa] sm:$0xff]  ;;  %v17630_v63 = vld [vmem:[#allocation2 + $0xbc] sm:$0xff] }
 0x7ff   : > { %v10009_v6 = vadd.f32 %v10008_v39, %v10007_v0  ;;  %v10010_v12 = vsel %vm19487_vm2, %v9940_v41, 0.0  ;;  %vm19488_vm10 = vmmov %vm19284_vm0  ;;  %v17632_v0 = vld [vmem:[#allocation2 + $0xd8] sm:$0xff] }
 0x800   : > { %v10123_v46 = vadd.f32 %v10122_v53, %v10121_v60  ;;  %v10124_v26 = vsel %vm19488_vm10, %v10054_v29, 0.0  ;;  %v17642_v60 = vld [vmem:[#allocation2 + $0xc6] sm:$0xff]  ;;  %v17644_v53 = vld [vmem:[#allocation2 + $0xce] sm:$0xff]  ;;  %vm19490_vm13 = vmmov %vm19489_vm3 }
 0x801   : > { %v10011_v35 = vadd.f32 %v10010_v12, %v10009_v6  ;;  %v17646_v12 = vld [vmem:[#allocation2 + $0xe0] sm:$0xff]  ;;  %vm19491_vm4 = vmmov %vm19489_vm3 }
 0x802   : > { %v10125_v1 = vadd.f32 %v10124_v26, %v10123_v46  ;;  %vm19492_vm11 = vmmov %vm19489_vm3 }
 0x803   : > { %v10012_v37 = vrot.slane %v10011_v35, 4  ;;  %vm19493_vm12 = vmmov %vm19489_vm3 }
 0x804   : > { %v10126_v36 = vrot.slane %v10125_v1, 4  ;;  %vm19494_vm6 = vmmov %vm19489_vm3 }
 0x805   : > { %v10013_v44 = vadd.f32 %v10012_v37, %v10011_v35  ;;  %vm19495_vm9 = vmmov %vm19489_vm3 }
 0x806   : > { %v10127_v32 = vadd.f32 %v10126_v36, %v10125_v1  ;;  %v17656_v1 = vld [vmem:[#allocation2 + $0xf2] sm:$0xff]  ;;  %v17660_v36 = vld [vmem:[#allocation2 + $0xfc] sm:$0xff]  ;;  %vm19496_vm14 = vmmov %vm19489_vm3 }
 0x807   : > { %v10014_v50 = vrot.slane %v10013_v44, 2  ;;  %vm19497_vm7 = vmmov %vm19489_vm3 }
 0x808   : > { %v10128_v8 = vrot.slane %v10127_v32, 2  ;;  %vm19498_vm8 = vmmov %vm19489_vm3 }
 0x809   : > { %v10015_v13 = vadd.f32 %v10014_v50, %v10013_v44  ;;  %v17658_v44 = vld [vmem:[#allocation2 + $0xea] sm:$0xff]  ;;  %v10146_v50 = vld [vmem:[%s13122_s19] sm:$0xff]  ;;  %vm19499_vm5 = vmmov %vm19489_vm3 }
 0x80a   : > { %v10129_v30 = vadd.f32 %v10128_v8, %v10127_v32  ;;  %v10147_v32 = vld [vmem:[%s13122_s19 + $0x8] sm:$0xff]  ;;  %vm19500_vm0 = vmmov %vm19489_vm3 }
 0x80b   : > { %v10016_v62 = vrot.slane %v10015_v13, 1  ;;  %vm19501_vm15 = vmmov %vm19500_vm0 }
 0x80c   : > { %v10130_v28 = vrot.slane %v10129_v30, 1  ;;  %vm19502_vm1 = vmmov %vm19500_vm0 }
 0x80d   : > { %v10017_v11 = vadd.f32 %v10016_v62, %v10015_v13  ;;  %vm19503_vm2 = vmmov %vm19500_vm0 }
 0x80e   : > { %v10131_v38 = vadd.f32 %v10130_v28, %v10129_v30  ;;  %v10187_v28 = vld [vmem:[%s13122_s19 + $0x28] sm:$0xff]  ;;  %v10207_v30 = vld [vmem:[%s13122_s19 + $0x38] sm:$0xff]  ;;  %vm19504_vm10 = vmmov %vm19500_vm0 }
 0x80f   : > { %v17560_v34 = vmul.f32 0.00390625, %v10017_v11  ;;  %v17672_v11 = vld [vmem:[#allocation2 + $0x116] sm:$0xff] }
 0x810   : > { %v10134_v45 = vmul.f32 0.00390625, %v10131_v38 }
 0x811   : > { %v10135_v51 = vmul.f32 %v17560_v34, %v17560_v34  ;;  %v10142_v23 = vsub.f32 %v17564_v48, %v17560_v34  ;;  %v10143_v42 = vsub.f32 %v17568_v55, %v17560_v34  ;;  %v10162_v7 = vsub.f32 %v17566_v31, %v17560_v34  ;;  %v10166_v48 = vld [vmem:[%s13122_s19 + $0x10] sm:$0xff]  ;;  %v10167_v31 = vld [vmem:[%s13122_s19 + $0x18] sm:$0xff]  ;;  %v10186_v55 = vld [vmem:[%s13122_s19 + $0x20] sm:$0xff] }
 0x812   : > { %v10163_v47 = vsub.f32 %v17570_v17, %v17560_v34  ;;  %v10182_v3 = vsub.f32 %v17574_v33, %v17560_v34  ;;  %v10183_v5 = vsub.f32 %v17576_v61, %v17560_v34  ;;  %v10202_v43 = vsub.f32 %v17572_v49, %v17560_v34  ;;  %v10206_v17 = vld [vmem:[%s13122_s19 + $0x30] sm:$0xff] }
 0x813   : > { %v10136_v59 = vsub.f32 %v10134_v45, %v10135_v51  ;;  %v10203_v57 = vsub.f32 %v17580_v21, %v17560_v34  ;;  %v10222_v58 = vsub.f32 %v17582_v54, %v17560_v34  ;;  %v10223_v41 = vsub.f32 %v17578_v40, %v17560_v34  ;;  %v10287_v54 = vld [vmem:[%s13122_s19 + $0x78] sm:$0xff] }
 0x814   : > { %v10242_v15 = vsub.f32 %v17584_v52, %v17560_v34  ;;  %v10243_v18 = vsub.f32 %v17588_v19, %v17560_v34  ;;  %v10262_v39 = vsub.f32 %v17590_v24, %v17560_v34  ;;  %v10263_v29 = vsub.f32 %v17586_v14, %v17560_v34 }
 0x815   : > { %v10137_v25 = vmax.f32 %v10136_v59, 0.0  ;;  %v10282_v56 = vsub.f32 %v17602_v4, %v17560_v34  ;;  %v10283_v6 = vsub.f32 %v17614_v20, %v17560_v34  ;;  %v10302_v35 = vsub.f32 %v17600_v10, %v17560_v34  ;;  %v17682_v59 = vld [vmem:[#allocation2 + $0x104] sm:$0xff]  ;;  %v10367_v10 = vld [vmem:[%s13122_s19 + $0xb8] sm:$0xff] }
 0x816   : > { %v10303_v46 = vsub.f32 %v17604_v22, %v17560_v34  ;;  %v10322_v26 = vsub.f32 %v17618_v27, %v17560_v34  ;;  %v10323_v37 = vsub.f32 %v17628_v16, %v17560_v34  ;;  %v19505_v22 = vsub.f32 %v17616_v9, %v17560_v34 }
 0x817   : > { %v10138_v2 = vadd.f32 1e-05, %v10137_v25  ;;  %v17684_v25 = vld [vmem:[#allocation2 + $0x10e] sm:$0xff]  ;;  %v19506_v16 = vsub.f32 %v17630_v63, %v17560_v34 }
 0x819   : > { %13050 = vrsqrt.f32 %v10138_v2 }
 0x823   : > { %v17686_v2 = vpop.eup %13050 }
 0x824   : > { %v10144_v21 = vmul.f32 %v17686_v2, %v10142_v23  ;;  %v10145_v51 = vmul.f32 %v17686_v2, %v10143_v42  ;;  %v10164_v45 = vmul.f32 %v17686_v2, %v10162_v7  ;;  %v10165_v38 = vmul.f32 %v17686_v2, %v10163_v47 }
 0x825   : > { %v10184_v49 = vmul.f32 %v17686_v2, %v10182_v3  ;;  %v10185_v62 = vmul.f32 %v17686_v2, %v10183_v5  ;;  %v10204_v33 = vmul.f32 %v17686_v2, %v10202_v43  ;;  %v10205_v61 = vmul.f32 %v17686_v2, %v10203_v57 }
 0x826   : > { %v10148_v23 = vadd.f32 %v10146_v50, %v10144_v21  ;;  %v10149_v8 = vadd.f32 %v10147_v32, %v10145_v51  ;;  %v10168_v42 = vadd.f32 %v10166_v48, %v10164_v45  ;;  %v10169_v13 = vadd.f32 %v10167_v31, %v10165_v38  ;;  %v10226_v38 = vld [vmem:[%s13122_s19 + $0x40] sm:$0xff]  ;;  %v10227_v45 = vld [vmem:[%s13122_s19 + $0x48] sm:$0xff] }
 0x827   : > { %v10188_v7 = vadd.f32 %v10186_v55, %v10184_v49  ;;  %v10189_v47 = vadd.f32 %v10187_v28, %v10185_v62  ;;  %v10208_v3 = vadd.f32 %v10206_v17, %v10204_v33  ;;  %v10209_v5 = vadd.f32 %v10207_v30, %v10205_v61  ;;  %v10246_v28 = vld [vmem:[%s13122_s19 + $0x50] sm:$0xff]  ;;  %v10247_v30 = vld [vmem:[%s13122_s19 + $0x58] sm:$0xff]  ;;  %v10266_v55 = vld [vmem:[%s13122_s19 + $0x60] sm:$0xff] }
 0x828   : > { %v11196_v43 = vpack.c.bf16 %v10148_v23, %v10148_v23  ;;  %v11197_v57 = vpack.c.bf16 %v10149_v8, %v10149_v8  ;;  %v11198_v50 = vpack.c.bf16 %v10168_v42, %v10168_v42  ;;  %v11199_v32 = vpack.c.bf16 %v10169_v13, %v10169_v13  ;;  %v10267_v33 = vld [vmem:[%s13122_s19 + $0x68] sm:$0xff]  ;;  %v10286_v61 = vld [vmem:[%s13122_s19 + $0x70] sm:$0xff] }
 0x829   : > { %v11200_v51 = vpack.c.bf16 %v10188_v7, %v10188_v7  ;;  %v11201_v48 = vpack.c.bf16 %v10189_v47, %v10189_v47  ;;  %v11202_v31 = vpack.c.bf16 %v10208_v3, %v10208_v3  ;;  %v11203_v62 = vpack.c.bf16 %v10209_v5, %v10209_v5  ;;  %v10307_v42 = vld [vmem:[%s13122_s19 + $0x88] sm:$0xff] }
 0x82a   : > { %10158 = vst.msk [vmem:[%s17714_s7] sm:$0xf] %vm19489_vm3, %v11196_v43  ;;  %v10224_v13 = vmul.f32 %v17686_v2, %v10222_v58  ;;  %v10225_v8 = vmul.f32 %v17686_v2, %v10223_v41  ;;  %v10244_v17 = vmul.f32 %v17686_v2, %v10242_v15  ;;  %v10245_v49 = vmul.f32 %v17686_v2, %v10243_v18  ;;  %v10326_v43 = vld [vmem:[%s13122_s19 + $0x90] sm:$0xff]  ;;  %vm19509_vm3 = vmmov %vm19500_vm0 }
 0x82b   : > { %10159 = vst.msk [vmem:[%s17714_s7 + $0x4] sm:$0xf] %vm19490_vm13, %v11197_v57  ;;  %v10264_v40 = vmul.f32 %v17686_v2, %v10262_v39  ;;  %v10265_v52 = vmul.f32 %v17686_v2, %v10263_v29  ;;  %v10284_v19 = vmul.f32 %v17686_v2, %v10282_v56  ;;  %v10285_v58 = vmul.f32 %v17686_v2, %v10283_v6  ;;  %v10306_v6 = vld [vmem:[%s13122_s19 + $0x80] sm:$0xff]  ;;  %v10327_v57 = vld [vmem:[%s13122_s19 + $0x98] sm:$0xff]  ;;  %vm19510_vm13 = vmmov %vm19500_vm0 }
 0x82c   : > { %10178 = vst.msk [vmem:[%s17714_s7 + $0x8] sm:$0xf] %vm19491_vm4, %v11198_v50  ;;  %v10228_v24 = vadd.f32 %v10226_v38, %v10224_v13  ;;  %v10229_v41 = vadd.f32 %v10227_v45, %v10225_v8  ;;  %v10248_v15 = vadd.f32 %v10246_v28, %v10244_v17  ;;  %v10249_v18 = vadd.f32 %v10247_v30, %v10245_v49  ;;  %v10346_v50 = vld [vmem:[%s13122_s19 + $0xa0] sm:$0xff]  ;;  %vm19511_vm4 = vmmov %vm19500_vm0 }
 0x82d   : > { %10179 = vst.msk [vmem:[%s17714_s7 + $0xc] sm:$0xf] %vm19492_vm11, %v11199_v32  ;;  %v10268_v14 = vadd.f32 %v10266_v55, %v10264_v40  ;;  %v10269_v39 = vadd.f32 %v10267_v33, %v10265_v52  ;;  %v10288_v29 = vadd.f32 %v10286_v61, %v10284_v19  ;;  %v10289_v4 = vadd.f32 %v10287_v54, %v10285_v58  ;;  %v10386_v61 = vld [vmem:[%s13122_s19 + $0xc0] sm:$0xff]  ;;  %v10387_v54 = vld [vmem:[%s13122_s19 + $0xc8] sm:$0xff]  ;;  %vm19512_vm11 = vmmov %vm19500_vm0 }
 0x82e   : > { %10198 = vst.msk [vmem:[%s17714_s7 + $0x10] sm:$0xf] %vm19493_vm12, %v11200_v51  ;;  %v11204_v56 = vpack.c.bf16 %v10228_v24, %v10228_v24  ;;  %v11205_v21 = vpack.c.bf16 %v10229_v41, %v10229_v41  ;;  %v11206_v20 = vpack.c.bf16 %v10248_v15, %v10248_v15  ;;  %v11207_v23 = vpack.c.bf16 %v10249_v18, %v10249_v18  ;;  %v10406_v24 = vld [vmem:[%s13122_s19 + $0xd0] sm:$0xff]  ;;  %v10407_v41 = vld [vmem:[%s13122_s19 + $0xd8] sm:$0xff]  ;;  %v10426_v15 = vld [vmem:[%s13122_s19 + $0xe0] sm:$0xff] }
 0x82f   : > { %10199 = vst.msk [vmem:[%s17714_s7 + $0x14] sm:$0xf] %vm19494_vm6, %v11201_v48  ;;  %v11208_v7 = vpack.c.bf16 %v10268_v14, %v10268_v14  ;;  %v11209_v47 = vpack.c.bf16 %v10269_v39, %v10269_v39  ;;  %v11210_v3 = vpack.c.bf16 %v10288_v29, %v10288_v29  ;;  %v11211_v5 = vpack.c.bf16 %v10289_v4, %v10289_v4  ;;  %v10347_v48 = vld [vmem:[%s13122_s19 + $0xa8] sm:$0xff]  ;;  %vm19517_vm12 = vmmov %vm19500_vm0 }
 0x830   : > { %10218 = vst.msk [vmem:[%s17714_s7 + $0x18] sm:$0xf] %vm19495_vm9, %v11202_v31  ;;  %v10304_v32 = vmul.f32 %v17686_v2, %v10302_v35  ;;  %v10305_v38 = vmul.f32 %v17686_v2, %v10303_v46  ;;  %v10324_v45 = vmul.f32 %v17686_v2, %v10322_v26  ;;  %v10325_v51 = vmul.f32 %v17686_v2, %v10323_v37  ;;  %v10366_v31 = vld [vmem:[%s13122_s19 + $0xb0] sm:$0xff]  ;;  %vm19518_vm6 = vmmov %vm19500_vm0 }
 0x831   : > { %10219 = vst.msk [vmem:[%s17714_s7 + $0x1c] sm:$0xf] %vm19496_vm14, %v11203_v62  ;;  %v10344_v27 = vmul.f32 %v17686_v2, %v19505_v22  ;;  %v10345_v35 = vmul.f32 %v17686_v2, %v19506_v16  ;;  %v19507_v46 = vsub.f32 %v17642_v60, %v17560_v34  ;;  %v19508_v37 = vsub.f32 %v17644_v53, %v17560_v34  ;;  %vm19519_vm9 = vmmov %vm19500_vm0 }
 0x832   : > { %10238 = vst.msk [vmem:[%s17714_s7 + $0x20] sm:$0xf] %vm19497_vm7, %v11204_v56  ;;  %v10308_v9 = vadd.f32 %v10306_v6, %v10304_v32  ;;  %v10309_v28 = vadd.f32 %v10307_v42, %v10305_v38  ;;  %v10328_v30 = vadd.f32 %v10326_v43, %v10324_v45  ;;  %v10329_v55 = vadd.f32 %v10327_v57, %v10325_v51  ;;  %v10446_v6 = vld [vmem:[%s13122_s19 + $0xf0] sm:$0xff]  ;;  %vm19520_vm14 = vmmov %vm19500_vm0 }
 0x833   : > { %10239 = vst.msk [vmem:[%s17714_s7 + $0x24] sm:$0xf] %vm19498_vm8, %v11205_v21  ;;  %v10364_v26 = vmul.f32 %v17686_v2, %v19507_v46  ;;  %v10365_v62 = vmul.f32 %v17686_v2, %v19508_v37  ;;  %v10348_v63 = vadd.f32 %v10346_v50, %v10344_v27  ;;  %v10349_v13 = vadd.f32 %v10347_v48, %v10345_v35  ;;  %vm19525_vm7 = vmmov %vm19500_vm0 }
 0x834   : > { %10258 = vst.msk [vmem:[%s17714_s7 + $0x28] sm:$0xf] %vm19499_vm5, %v11206_v20  ;;  %v11212_v17 = vpack.c.bf16 %v10308_v9, %v10308_v9  ;;  %v11213_v49 = vpack.c.bf16 %v10309_v28, %v10309_v28  ;;  %v11214_v53 = vpack.c.bf16 %v10328_v30, %v10328_v30  ;;  %v11215_v33 = vpack.c.bf16 %v10329_v55, %v10329_v55  ;;  %vm19526_vm8 = vmmov %vm19500_vm0 }
 0x835   : > { %10259 = vst.msk [vmem:[%s17714_s7 + $0x2c] sm:$0xf] %vm19500_vm0, %v11207_v23  ;;  %v10368_v8 = vadd.f32 %v10366_v31, %v10364_v26  ;;  %v10369_v60 = vadd.f32 %v10367_v10, %v10365_v62  ;;  %v11216_v40 = vpack.c.bf16 %v10348_v63, %v10348_v63  ;;  %v11217_v52 = vpack.c.bf16 %v10349_v13, %v10349_v13  ;;  %v10427_v23 = vld [vmem:[%s13122_s19 + $0xe8] sm:$0xff]  ;;  %vm19527_vm5 = vmmov %vm19500_vm0 }
 0x836   : > { %10278 = vst.msk [vmem:[%s17714_s7 + $0x30] sm:$0xf] %vm19501_vm15, %v11208_v7  ;;  %v19513_v18 = vsub.f32 %v17632_v0, %v17560_v34  ;;  %v19514_v39 = vsub.f32 %v17646_v12, %v17560_v34  ;;  %v19515_v4 = vsub.f32 %v17658_v44, %v17560_v34  ;;  %v19516_v21 = vsub.f32 %v17656_v1, %v17560_v34  ;;  %v10447_v0 = vld [vmem:[%s13122_s19 + $0xf8] sm:$0xff]  ;;  %vm19528_vm15 = vmmov %vm19500_vm0 }
 0x837   : > { %10279 = vst.msk [vmem:[%s17714_s7 + $0x34] sm:$0xf] %vm19502_vm1, %v11209_v47  ;;  %v11218_v19 = vpack.c.bf16 %v10368_v8, %v10368_v8  ;;  %v11219_v58 = vpack.c.bf16 %v10369_v60, %v10369_v60  ;;  %v19521_v12 = vsub.f32 %v17660_v36, %v17560_v34  ;;  %v19522_v1 = vsub.f32 %v17682_v59, %v17560_v34  ;;  %vm19529_vm1 = vmmov %vm19500_vm0 }
 0x838   : > { %10298 = vst.msk [vmem:[%s17714_s7 + $0x38] sm:$0xf] %vm19503_vm2, %v11210_v3  ;;  %v10384_v14 = vmul.f32 %v17686_v2, %v19513_v18  ;;  %v10385_v29 = vmul.f32 %v17686_v2, %v19514_v39  ;;  %v10404_v56 = vmul.f32 %v17686_v2, %v19515_v4  ;;  %v10405_v20 = vmul.f32 %v17686_v2, %v19516_v21  ;;  %vm19530_vm2 = vmmov %vm19500_vm0 }
 0x839   : > { %10299 = vst.msk [vmem:[%s17714_s7 + $0x3c] sm:$0xf] %vm19504_vm10, %v11211_v5  ;;  %v10424_v44 = vmul.f32 %v17686_v2, %v19521_v12  ;;  %v10425_v42 = vmul.f32 %v17686_v2, %v19522_v1  ;;  %v19523_v7 = vsub.f32 %v17684_v25, %v17560_v34  ;;  %v19524_v3 = vsub.f32 %v17672_v11, %v17560_v34  ;;  %vm19531_vm10 = vmmov %vm19500_vm0 }
 0x83a   : > { %10318 = vst.msk [vmem:[%s17714_s7 + $0x40] sm:$0xf] %vm19509_vm3, %v11212_v17  ;;  %v10388_v43 = vadd.f32 %v10386_v61, %v10384_v14  ;;  %v10389_v36 = vadd.f32 %v10387_v54, %v10385_v29  ;;  %v10408_v57 = vadd.f32 %v10406_v24, %v10404_v56  ;;  %v10409_v50 = vadd.f32 %v10407_v41, %v10405_v20 }
 0x83b   : > { %10319 = vst.msk [vmem:[%s17714_s7 + $0x44] sm:$0xf] %vm19510_vm13, %v11213_v49  ;;  %v10444_v47 = vmul.f32 %v17686_v2, %v19523_v7  ;;  %v10445_v5 = vmul.f32 %v17686_v2, %v19524_v3  ;;  %v10428_v59 = vadd.f32 %v10426_v15, %v10424_v44  ;;  %v10429_v32 = vadd.f32 %v10427_v23, %v10425_v42 }
 0x83c   : > { %10338 = vst.msk [vmem:[%s17714_s7 + $0x48] sm:$0xf] %vm19511_vm4, %v11214_v53  ;;  %v11220_v45 = vpack.c.bf16 %v10388_v43, %v10388_v43  ;;  %v11221_v34 = vpack.c.bf16 %v10389_v36, %v10389_v36  ;;  %v11222_v11 = vpack.c.bf16 %v10408_v57, %v10408_v57  ;;  %v11223_v2 = vpack.c.bf16 %v10409_v50, %v10409_v50 }
 0x83d   : > { %10339 = vst.msk [vmem:[%s17714_s7 + $0x4c] sm:$0xf] %vm19512_vm11, %v11215_v33  ;;  %v10448_v25 = vadd.f32 %v10446_v6, %v10444_v47  ;;  %v10449_v38 = vadd.f32 %v10447_v0, %v10445_v5  ;;  %v11224_v51 = vpack.c.bf16 %v10428_v59, %v10428_v59  ;;  %v11225_v48 = vpack.c.bf16 %v10429_v32, %v10429_v32 }
 0x83e   : > { %10358 = vst.msk [vmem:[%s17714_s7 + $0x50] sm:$0xf] %vm19517_vm12, %v11216_v40 }
 0x83f   : > { %10359 = vst.msk [vmem:[%s17714_s7 + $0x54] sm:$0xf] %vm19518_vm6, %v11217_v52  ;;  %v11226_v31 = vpack.c.bf16 %v10448_v25, %v10448_v25  ;;  %v11227_v10 = vpack.c.bf16 %v10449_v38, %v10449_v38 }
 0x840   : > { %10378 = vst.msk [vmem:[%s17714_s7 + $0x58] sm:$0xf] %vm19519_vm9, %v11218_v19 }
 0x841   : > { %10379 = vst.msk [vmem:[%s17714_s7 + $0x5c] sm:$0xf] %vm19520_vm14, %v11219_v58 }
 0x842   : > { %10398 = vst.msk [vmem:[%s17714_s7 + $0x60] sm:$0xf] %vm19525_vm7, %v11220_v45 }
 0x843   : > { %10399 = vst.msk [vmem:[%s17714_s7 + $0x64] sm:$0xf] %vm19526_vm8, %v11221_v34 }
 0x844   : > { %10418 = vst.msk [vmem:[%s17714_s7 + $0x68] sm:$0xf] %vm19527_vm5, %v11222_v11 }
 0x845   : > { %10419 = vst.msk [vmem:[%s17714_s7 + $0x6c] sm:$0xf] %vm19500_vm0, %v11223_v2 }
 0x846   : > { %10438 = vst.msk [vmem:[%s17714_s7 + $0x70] sm:$0xf] %vm19528_vm15, %v11224_v51 }
 0x847   : > { %10439 = vst.msk [vmem:[%s17714_s7 + $0x74] sm:$0xf] %vm19529_vm1, %v11225_v48 }
 0x848   : > { %10458 = vst.msk [vmem:[%s17714_s7 + $0x78] sm:$0xf] %vm19530_vm2, %v11226_v31 }
 0x849   : > { %10459 = vst.msk [vmem:[%s17714_s7 + $0x7c] sm:$0xf] %vm19531_vm10, %v11227_v10 }
 0x84a PF: > { %s13_s12 = sadd.s32 1, %s13081_s12  }
 0x84b   : > { %p10_p4 = scmp.ge.s32.totalorder %s13_s12, 4  }
 0x84d   :  { %12 = sbr.rel (!%p10_p4) target bundleno = 1 (0x1), region = 78 }

</bundles_post_ra>
